<compile_context>
chip_gen: v5e
topology: v5e:2x2
jax: 0.10.0
libtpu: 0.0.40
codegen_flags: <defaults>
</compile_context>

<pallas_src>
import functools

import jax
import jax.numpy as jnp
from jax.experimental import pallas as pl
from jax.experimental.pallas import tpu as pltpu


C_PAD = 128        # conv channels padded 80 -> 128 (lane dense)
FC1_PAD = 256      # fc1 output padded 250 -> 256
EPS = 1e-5

_PARALLEL1D = pltpu.CompilerParams(dimension_semantics=("parallel",))


def _pick_tile(m, target):
    """Largest divisor of m that is <= target and a multiple of 8 (or m itself)."""
    for d in range(min(m, target), 0, -1):
        if m % d == 0 and (d % 8 == 0 or d == m):
            return d
    return m


# ----------------------------------------------------------------------------
# Pallas kernels
# ----------------------------------------------------------------------------
def _conv1_kernel(x_ref, w_ref, b_ref, o_ref, s_ref, ss_ref):
    """conv1 as im2col matmul + bias, emitting per-tile BN partial stats."""
    acc = jnp.dot(x_ref[...], w_ref[...], preferred_element_type=jnp.float32)
    acc = acc + b_ref[...]
    o_ref[...] = acc
    s_ref[...] = jnp.sum(acc, axis=0, keepdims=True).reshape(1, 1, C_PAD)
    ss_ref[...] = jnp.sum(acc * acc, axis=0, keepdims=True).reshape(1, 1, C_PAD)


def conv1_matmul(patches, w, b):
    """patches: (M, 32) bf16, w: (32, 128) bf16, b: (1, 128) f32."""
    M, K = patches.shape
    TM = _pick_tile(M, 512)
    T = M // TM
    return pl.pallas_call(
        _conv1_kernel,
        out_shape=(
            jax.ShapeDtypeStruct((M, C_PAD), jnp.float32),
            jax.ShapeDtypeStruct((T, 1, C_PAD), jnp.float32),
            jax.ShapeDtypeStruct((T, 1, C_PAD), jnp.float32),
        ),
        grid=(T,),
        in_specs=[
            pl.BlockSpec((TM, K), lambda i: (i, 0)),
            pl.BlockSpec((K, C_PAD), lambda i: (0, 0)),
            pl.BlockSpec((1, C_PAD), lambda i: (0, 0)),
        ],
        out_specs=(
            pl.BlockSpec((TM, C_PAD), lambda i: (i, 0)),
            pl.BlockSpec((1, 1, C_PAD), lambda i: (i, 0, 0)),
            pl.BlockSpec((1, 1, C_PAD), lambda i: (i, 0, 0)),
        ),
        compiler_params=_PARALLEL1D,
    )(patches, w, b)


def _conv2_kernel(x_ref, w_ref, b_ref, o_ref, s_ref, ss_ref, *, bt):
    """5x5 conv via 25 shifted dots; patches formed in VMEM (no HBM im2col)."""
    rows = bt * 8 * 8
    acc = jnp.zeros((rows, C_PAD), jnp.float32)
    for ki in range(5):
        for kj in range(5):
            patch = x_ref[:, ki:ki + 8, kj:kj + 8, :]          # (bt, 8, 8, 128) f32
            patch = patch.reshape(rows, C_PAD).astype(jnp.bfloat16)
            acc = acc + jnp.dot(patch, w_ref[ki * 5 + kj],
                                preferred_element_type=jnp.float32)
    acc = acc + b_ref[...]
    o_ref[...] = acc.reshape(bt, 8, 8, C_PAD)
    s_ref[...] = jnp.sum(acc, axis=0, keepdims=True).reshape(1, 1, C_PAD)
    ss_ref[...] = jnp.sum(acc * acc, axis=0, keepdims=True).reshape(1, 1, C_PAD)


def conv2_direct(p1, w, b):
    """p1: (N, 12, 12, 128) f32, w: (25, 128, 128) bf16, b: (1, 128) f32."""
    N = p1.shape[0]
    BT = _pick_tile(N, 8)
    T = N // BT
    return pl.pallas_call(
        functools.partial(_conv2_kernel, bt=BT),
        out_shape=(
            jax.ShapeDtypeStruct((N, 8, 8, C_PAD), jnp.float32),
            jax.ShapeDtypeStruct((T, 1, C_PAD), jnp.float32),
            jax.ShapeDtypeStruct((T, 1, C_PAD), jnp.float32),
        ),
        grid=(T,),
        in_specs=[
            pl.BlockSpec((BT, 12, 12, C_PAD), lambda i: (i, 0, 0, 0)),
            pl.BlockSpec((25, C_PAD, C_PAD), lambda i: (0, 0, 0)),
            pl.BlockSpec((1, C_PAD), lambda i: (0, 0)),
        ],
        out_specs=(
            pl.BlockSpec((BT, 8, 8, C_PAD), lambda i: (i, 0, 0, 0)),
            pl.BlockSpec((1, 1, C_PAD), lambda i: (i, 0, 0)),
            pl.BlockSpec((1, 1, C_PAD), lambda i: (i, 0, 0)),
        ),
        compiler_params=_PARALLEL1D,
    )(p1, w, b)


def _bn_relu_kernel(x_ref, scale_ref, shift_ref, o_ref):
    y = x_ref[...] * scale_ref[...] + shift_ref[...]
    o_ref[...] = jnp.maximum(y, 0.0)


def bn_relu(x2d, scale, shift):
    """x2d: (M, 128) f32 rows = batch*spatial; scale/shift: (1, 128) f32."""
    M, C = x2d.shape
    TM = _pick_tile(M, 1024)
    T = M // TM
    return pl.pallas_call(
        _bn_relu_kernel,
        out_shape=jax.ShapeDtypeStruct((M, C), jnp.float32),
        grid=(T,),
        in_specs=[
            pl.BlockSpec((TM, C), lambda i: (i, 0)),
            pl.BlockSpec((1, C), lambda i: (0, 0)),
            pl.BlockSpec((1, C), lambda i: (0, 0)),
        ],
        out_specs=pl.BlockSpec((TM, C), lambda i: (i, 0)),
        compiler_params=_PARALLEL1D,
    )(x2d, scale, shift)


def _fc_kernel(x_ref, w1_ref, b1_ref, w2_ref, b2_ref, o_ref):
    """fused fc1+bias+ReLU -> fc2+bias -> log_softmax; h never leaves VMEM."""
    h = jnp.dot(x_ref[...].astype(jnp.bfloat16), w1_ref[...],
                preferred_element_type=jnp.float32)
    h = jnp.maximum(h + b1_ref[...], 0.0)                         # (TB, 256) f32
    logits = jnp.dot(h, w2_ref[...], preferred_element_type=jnp.float32)
    logits = logits + b2_ref[...]                                 # (TB, 25)
    m = jnp.max(logits, axis=-1, keepdims=True)
    s = logits - m
    lse = jnp.log(jnp.sum(jnp.exp(s), axis=-1, keepdims=True))
    o_ref[...] = s - lse


def fc_head(flat, w1, b1, w2, b2):
    """flat: (N, 2048) f32; w1: (2048, 256) bf16; w2: (256, 25) f32."""
    M, K = flat.shape
    n_out = w2.shape[1]
    TB = _pick_tile(M, 256)
    T = M // TB
    return pl.pallas_call(
        _fc_kernel,
        out_shape=jax.ShapeDtypeStruct((M, n_out), jnp.float32),
        grid=(T,),
        in_specs=[
            pl.BlockSpec((TB, K), lambda i: (i, 0)),
            pl.BlockSpec((K, FC1_PAD), lambda i: (0, 0)),
            pl.BlockSpec((1, FC1_PAD), lambda i: (0, 0)),
            pl.BlockSpec((FC1_PAD, n_out), lambda i: (0, 0)),
            pl.BlockSpec((1, n_out), lambda i: (0, 0)),
        ],
        out_specs=pl.BlockSpec((TB, n_out), lambda i: (i, 0)),
        compiler_params=_PARALLEL1D,
    )(flat, w1, b1, w2, b2)


# ----------------------------------------------------------------------------
# JAX glue: im2col (conv1 only), maxpool, BN stats -> scale/shift
# ----------------------------------------------------------------------------
def im2col_conv1(x):
    """x: (N, 28, 28, 1) f32 -> bf16 patches (N*24*24, 32); col order (ki,kj)."""
    N, H, W, _ = x.shape
    Ho, Wo = H - 4, W - 4
    cols = [x[:, i:i + Ho, j:j + Wo, :] for i in range(5) for j in range(5)]
    p = jnp.concatenate(cols, axis=-1).reshape(N * Ho * Wo, 25)
    p = jnp.pad(p, ((0, 0), (0, 7)))                     # K 25 -> 32 (zero cols)
    return p.astype(jnp.bfloat16), (N, Ho, Wo)


def maxpool2x2(x):
    N, H, W, C = x.shape
    return x.reshape(N, H // 2, 2, W // 2, 2, C).max(axis=(2, 4))


def _bn_scale_shift(s, ss, count, gamma, beta):
    """Combine per-tile partial sums into BN scale/shift (biased batch var)."""
    mean = jnp.sum(s, axis=0).reshape(C_PAD) / count
    ex2 = jnp.sum(ss, axis=0).reshape(C_PAD) / count
    var = jnp.maximum(ex2 - mean * mean, 0.0)
    scale = gamma * jax.lax.rsqrt(var + EPS)
    shift = beta - mean * scale
    return scale.reshape(1, C_PAD), shift.reshape(1, C_PAD)


# ----------------------------------------------------------------------------
# Parameters: PyTorch-style init + one-time prep (layout, padding, bf16)
# ----------------------------------------------------------------------------
def init_params(key):
    ks = jax.random.split(key, 8)

    def u(k, shape, fan_in):
        bound = 1.0 / jnp.sqrt(jnp.float32(fan_in))
        return jax.random.uniform(k, shape, jnp.float32, -bound, bound)

    return {
        "conv1_w": u(ks[0], (80, 1, 5, 5), 1 * 5 * 5),
        "conv1_b": u(ks[1], (80,), 1 * 5 * 5),
        "conv2_w": u(ks[2], (80, 80, 5, 5), 80 * 5 * 5),
        "conv2_b": u(ks[3], (80,), 80 * 5 * 5),
        "bn1_g": jnp.ones((80,), jnp.float32),
        "bn1_b": jnp.zeros((80,), jnp.float32),
        "bn2_g": jnp.ones((80,), jnp.float32),
        "bn2_b": jnp.zeros((80,), jnp.float32),
        "fc1_w": u(ks[4], (250, 1280), 1280),
        "fc1_b": u(ks[5], (250,), 1280),
        "fc2_w": u(ks[6], (25, 250), 250),
        "fc2_b": u(ks[7], (25,), 250),
    }


def prepare_params(p):
    """One-time weight preprocessing (hoisted out of the forward path)."""
    # conv1: (80,1,5,5) -> (25,80) -> pad K 25->32, Cout 80->128 -> bf16
    w1 = jnp.transpose(p["conv1_w"], (2, 3, 1, 0)).reshape(25, 80)
    w1 = jnp.pad(w1, ((0, 7), (0, C_PAD - 80))).astype(jnp.bfloat16)
    b1 = jnp.pad(p["conv1_b"], (0, C_PAD - 80)).reshape(1, C_PAD)

    # conv2: (80,80,5,5) -> (25, Cin, Cout) padded to (25,128,128) bf16
    w2 = jnp.transpose(p["conv2_w"], (2, 3, 1, 0)).reshape(25, 80, 80)
    w2 = jnp.pad(w2, ((0, 0), (0, C_PAD - 80), (0, C_PAD - 80))).astype(jnp.bfloat16)
    b2 = jnp.pad(p["conv2_b"], (0, C_PAD - 80)).reshape(1, C_PAD)

    # fc1: re-order rows so it consumes the padded NHWC flatten (h, w, c_pad)
    # directly (PyTorch flatten is NCHW order c*16 + h*4 + w).
    f1 = p["fc1_w"].reshape(250, 80, 4, 4)               # (out, c, h, w)
    f1 = jnp.transpose(f1, (2, 3, 1, 0))                 # (h, w, c, out)
    f1 = jnp.pad(f1, ((0, 0), (0, 0), (0, C_PAD - 80), (0, FC1_PAD - 250)))
    f1 = f1.reshape(4 * 4 * C_PAD, FC1_PAD).astype(jnp.bfloat16)
    fb1 = jnp.pad(p["fc1_b"], (0, FC1_PAD - 250)).reshape(1, FC1_PAD)

    # fc2: (25,250) -> (256,25) f32 (tiny, keep f32 precision); padded rows = 0
    f2 = jnp.pad(p["fc2_w"].T, ((0, FC1_PAD - 250), (0, 0))).astype(jnp.float32)
    fb2 = p["fc2_b"].reshape(1, 25)

    # BN affine params, channel-padded with zeros (padded lanes stay exactly 0)
    bn1_g = jnp.pad(p["bn1_g"], (0, C_PAD - 80))
    bn1_b = jnp.pad(p["bn1_b"], (0, C_PAD - 80))
    bn2_g = jnp.pad(p["bn2_g"], (0, C_PAD - 80))
    bn2_b = jnp.pad(p["bn2_b"], (0, C_PAD - 80))

    return {"w1": w1, "b1": b1, "w2": w2, "b2": b2,
            "f1": f1, "fb1": fb1, "f2": f2, "fb2": fb2,
            "bn1_g": bn1_g, "bn1_b": bn1_b, "bn2_g": bn2_g, "bn2_b": bn2_b}


# ----------------------------------------------------------------------------
# Forward pass
# ----------------------------------------------------------------------------
def net_forward(pp, x_nchw):
    x = jnp.transpose(x_nchw, (0, 2, 3, 1)).astype(jnp.float32)   # (N, 28, 28, 1)
    N = x.shape[0]

    # conv1 (+ bias, fused BN partial stats)
    patches, (_, Ho, Wo) = im2col_conv1(x)
    c1, s1, ss1 = conv1_matmul(patches, pp["w1"], pp["b1"])       # (N*576, 128) f32
    m1 = N * Ho * Wo
    sc1, sh1 = _bn_scale_shift(s1, ss1, m1, pp["bn1_g"], pp["bn1_b"])

    # BN + ReLU (Pallas), then 2x2 maxpool (XLA glue)
    c1 = bn_relu(c1, sc1, sh1).reshape(N, Ho, Wo, C_PAD)
    p1 = maxpool2x2(c1)                                           # (N, 12, 12, 128)

    # conv2: in-kernel patch extraction (+ bias, fused BN partial stats)
    c2, s2, ss2 = conv2_direct(p1, pp["w2"], pp["b2"])            # (N, 8, 8, 128) f32
    m2 = N * 8 * 8
    sc2, sh2 = _bn_scale_shift(s2, ss2, m2, pp["bn2_g"], pp["bn2_b"])

    c2 = bn_relu(c2.reshape(m2, C_PAD), sc2, sh2).reshape(N, 8, 8, C_PAD)
    p2 = maxpool2x2(c2)                                           # (N, 4, 4, 128)

    # fused fc1 + ReLU + fc2 + log_softmax (fc1 weights pre-permuted for NHWC)
    flat = p2.reshape(N, 4 * 4 * C_PAD)                           # (N, 2048)
    return fc_head(flat, pp["f1"], pp["fb1"], pp["f2"], pp["fb2"])  # (N, 25)


if __name__ == "__main__":
    key = jax.random.PRNGKey(0)
    k_param, k_x = jax.random.split(key)

    params = init_params(k_param)
    prepped = prepare_params(params)

    # fc1 expects 1280 = 80 * 4 * 4 features -> 28x28 single-channel input.
    x = jax.random.normal(k_x, (2, 1, 28, 28), dtype=jnp.float32)

    fwd = jax.jit(net_forward)
    out = jax.block_until_ready(fwd(prepped, x))

    assert out.shape == (2, 25)
    assert bool(jnp.all(jnp.isfinite(out)))
    print("KERNEL_OK")
</pallas_src>

<mosaic_0001>
module attributes {stable_mosaic.version = 11 : i64} {
  func.func @_conv1_kernel(%arg0: i32, %arg1: memref<384x32xbf16, #tpu.memory_space<vmem>>, %arg2: memref<32x128xbf16, #tpu.memory_space<vmem>>, %arg3: memref<1x128xf32, #tpu.memory_space<vmem>>, %arg4: memref<384x128xf32, #tpu.memory_space<vmem>>, %arg5: memref<1x1x128xf32, #tpu.memory_space<vmem>>, %arg6: memref<1x1x128xf32, #tpu.memory_space<vmem>>) attributes {dimension_semantics = [#tpu.dimension_semantics<parallel>], iteration_bounds = array<i64: 3>, scalar_prefetch = 0 : i64, scratch_operands = 0 : i64, tpu.core_type = #tpu.core_type<tc>, window_params = [{transform_indices = @transform_0, window_bounds = array<i64: 384, 32>}, {pipeline_mode = #tpu.pipeline_mode<synchronous>, transform_indices = @transform_1, window_bounds = array<i64: 32, 128>}, {pipeline_mode = #tpu.pipeline_mode<synchronous>, transform_indices = @transform_2, window_bounds = array<i64: 1, 128>}, {transform_indices = @transform_3, window_bounds = array<i64: 384, 128>}, {transform_indices = @transform_4, window_bounds = array<i64: 1, 1, 128>}, {transform_indices = @transform_5, window_bounds = array<i64: 1, 1, 128>}]} {
    %c0 = arith.constant 0 : index
    %c0_0 = arith.constant 0 : index
    %0 = vector.load %arg1[%c0, %c0_0] : memref<384x32xbf16, #tpu.memory_space<vmem>>, vector<384x32xbf16>
    %c0_1 = arith.constant 0 : index
    %c0_2 = arith.constant 0 : index
    %1 = vector.load %arg2[%c0_1, %c0_2] : memref<32x128xbf16, #tpu.memory_space<vmem>>, vector<32x128xbf16>
    %cst = arith.constant dense<0.000000e+00> : vector<384x128xf32>
    %2 = tpu.matmul %0, %1, %cst {dimension_numbers = #tpu.dot_dimension_numbers<[1], [0], [0], [1], [0, 0, 1, 1], [], []>} : vector<384x32xbf16>, vector<32x128xbf16>, vector<384x128xf32> -> vector<384x128xf32>
    %c0_3 = arith.constant 0 : index
    %c0_4 = arith.constant 0 : index
    %3 = vector.load %arg3[%c0_3, %c0_4] : memref<1x128xf32, #tpu.memory_space<vmem>>, vector<1x128xf32>
    %4 = vector.broadcast %3 : vector<1x128xf32> to vector<384x128xf32>
    %5 = arith.addf %2, %4 : vector<384x128xf32>
    %c0_5 = arith.constant 0 : index
    %c0_6 = arith.constant 0 : index
    %6 = vector.load %arg4[%c0_5, %c0_6] : memref<384x128xf32, #tpu.memory_space<vmem>>, vector<384x128xf32>
    tpu.vector_store %arg4[%c0_5, %c0_6], %5 {strides = array<i32>} : memref<384x128xf32, #tpu.memory_space<vmem>>, vector<384x128xf32>,
    %cst_7 = arith.constant dense<0.000000e+00> : vector<128xf32>
    %7 = vector.multi_reduction <add>, %5, %cst_7 [0] : vector<384x128xf32> to vector<128xf32>
    %8 = vector.shape_cast %7 : vector<128xf32> to vector<1x128xf32>
    %9 = vector.shape_cast %8 : vector<1x128xf32> to vector<1x1x128xf32>
    %c0_8 = arith.constant 0 : index
    %c0_9 = arith.constant 0 : index
    %c0_10 = arith.constant 0 : index
    %10 = vector.load %arg5[%c0_8, %c0_9, %c0_10] : memref<1x1x128xf32, #tpu.memory_space<vmem>>, vector<1x1x128xf32>
    tpu.vector_store %arg5[%c0_8, %c0_9, %c0_10], %9 {strides = array<i32>} : memref<1x1x128xf32, #tpu.memory_space<vmem>>, vector<1x1x128xf32>,
    %11 = arith.mulf %5, %5 : vector<384x128xf32>
    %cst_11 = arith.constant dense<0.000000e+00> : vector<128xf32>
    %12 = vector.multi_reduction <add>, %11, %cst_11 [0] : vector<384x128xf32> to vector<128xf32>
    %13 = vector.shape_cast %12 : vector<128xf32> to vector<1x128xf32>
    %14 = vector.shape_cast %13 : vector<1x128xf32> to vector<1x1x128xf32>
    %c0_12 = arith.constant 0 : index
    %c0_13 = arith.constant 0 : index
    %c0_14 = arith.constant 0 : index
    %15 = vector.load %arg6[%c0_12, %c0_13, %c0_14] : memref<1x1x128xf32, #tpu.memory_space<vmem>>, vector<1x1x128xf32>
    tpu.vector_store %arg6[%c0_12, %c0_13, %c0_14], %14 {strides = array<i32>} : memref<1x1x128xf32, #tpu.memory_space<vmem>>, vector<1x1x128xf32>,
    return
  }
  func.func @transform_0(%arg0: i32) -> (i32, i32) {
    %c0_i32 = arith.constant 0 : i32
    %c0_i32_0 = arith.constant 0 : i32
    return %arg0, %c0_i32 : i32, i32
  }
  func.func @transform_1(%arg0: i32) -> (i32, i32) {
    %c0_i32 = arith.constant 0 : i32
    %c0_i32_0 = arith.constant 0 : i32
    %c0_i32_1 = arith.constant 0 : i32
    return %c0_i32, %c0_i32_0 : i32, i32
  }
  func.func @transform_2(%arg0: i32) -> (i32, i32) {
    %c0_i32 = arith.constant 0 : i32
    %c0_i32_0 = arith.constant 0 : i32
    %c0_i32_1 = arith.constant 0 : i32
    return %c0_i32, %c0_i32_0 : i32, i32
  }
  func.func @transform_3(%arg0: i32) -> (i32, i32) {
    %c0_i32 = arith.constant 0 : i32
    %c0_i32_0 = arith.constant 0 : i32
    return %arg0, %c0_i32 : i32, i32
  }
  func.func @transform_4(%arg0: i32) -> (i32, i32, i32) {
    %c0_i32 = arith.constant 0 : i32
    %c0_i32_0 = arith.constant 0 : i32
    %c0_i32_1 = arith.constant 0 : i32
    return %arg0, %c0_i32, %c0_i32_0 : i32, i32, i32
  }
  func.func @transform_5(%arg0: i32) -> (i32, i32, i32) {
    %c0_i32 = arith.constant 0 : i32
    %c0_i32_0 = arith.constant 0 : i32
    %c0_i32_1 = arith.constant 0 : i32
    return %arg0, %c0_i32, %c0_i32_0 : i32, i32, i32
  }
}

module attributes {stable_mosaic.version = 11 : i64} {
  func.func @_bn_relu_kernel(%arg0: i32, %arg1: memref<576x128xf32, #tpu.memory_space<vmem>>, %arg2: memref<1x128xf32, #tpu.memory_space<vmem>>, %arg3: memref<1x128xf32, #tpu.memory_space<vmem>>, %arg4: memref<576x128xf32, #tpu.memory_space<vmem>>) attributes {dimension_semantics = [#tpu.dimension_semantics<parallel>], iteration_bounds = array<i64: 2>, scalar_prefetch = 0 : i64, scratch_operands = 0 : i64, tpu.core_type = #tpu.core_type<tc>, window_params = [{transform_indices = @transform_0, window_bounds = array<i64: 576, 128>}, {pipeline_mode = #tpu.pipeline_mode<synchronous>, transform_indices = @transform_1, window_bounds = array<i64: 1, 128>}, {pipeline_mode = #tpu.pipeline_mode<synchronous>, transform_indices = @transform_2, window_bounds = array<i64: 1, 128>}, {transform_indices = @transform_3, window_bounds = array<i64: 576, 128>}]} {
    %c0 = arith.constant 0 : index
    %c0_0 = arith.constant 0 : index
    %0 = vector.load %arg1[%c0, %c0_0] : memref<576x128xf32, #tpu.memory_space<vmem>>, vector<576x128xf32>
    %c0_1 = arith.constant 0 : index
    %c0_2 = arith.constant 0 : index
    %1 = vector.load %arg2[%c0_1, %c0_2] : memref<1x128xf32, #tpu.memory_space<vmem>>, vector<1x128xf32>
    %2 = vector.broadcast %1 : vector<1x128xf32> to vector<576x128xf32>
    %3 = arith.mulf %0, %2 : vector<576x128xf32>
    %c0_3 = arith.constant 0 : index
    %c0_4 = arith.constant 0 : index
    %4 = vector.load %arg3[%c0_3, %c0_4] : memref<1x128xf32, #tpu.memory_space<vmem>>, vector<1x128xf32>
    %5 = vector.broadcast %4 : vector<1x128xf32> to vector<576x128xf32>
    %6 = arith.addf %3, %5 : vector<576x128xf32>
    %cst = arith.constant 0.000000e+00 : f32
    %7 = vector.broadcast %cst : f32 to vector<576x128xf32>
    %8 = arith.maximumf %6, %7 : vector<576x128xf32>
    %c0_5 = arith.constant 0 : index
    %c0_6 = arith.constant 0 : index
    %9 = vector.load %arg4[%c0_5, %c0_6] : memref<576x128xf32, #tpu.memory_space<vmem>>, vector<576x128xf32>
    tpu.vector_store %arg4[%c0_5, %c0_6], %8 {strides = array<i32>} : memref<576x128xf32, #tpu.memory_space<vmem>>, vector<576x128xf32>,
    return
  }
  func.func @transform_0(%arg0: i32) -> (i32, i32) {
    %c0_i32 = arith.constant 0 : i32
    %c0_i32_0 = arith.constant 0 : i32
    return %arg0, %c0_i32 : i32, i32
  }
  func.func @transform_1(%arg0: i32) -> (i32, i32) {
    %c0_i32 = arith.constant 0 : i32
    %c0_i32_0 = arith.constant 0 : i32
    %c0_i32_1 = arith.constant 0 : i32
    return %c0_i32, %c0_i32_0 : i32, i32
  }
  func.func @transform_2(%arg0: i32) -> (i32, i32) {
    %c0_i32 = arith.constant 0 : i32
    %c0_i32_0 = arith.constant 0 : i32
    %c0_i32_1 = arith.constant 0 : i32
    return %c0_i32, %c0_i32_0 : i32, i32
  }
  func.func @transform_3(%arg0: i32) -> (i32, i32) {
    %c0_i32 = arith.constant 0 : i32
    %c0_i32_0 = arith.constant 0 : i32
    return %arg0, %c0_i32 : i32, i32
  }
}

module attributes {stable_mosaic.version = 11 : i64} {
  func.func @_conv2_kernel(%arg0: i32, %arg1: memref<2x12x12x128xf32, #tpu.memory_space<vmem>>, %arg2: memref<25x128x128xbf16, #tpu.memory_space<vmem>>, %arg3: memref<1x128xf32, #tpu.memory_space<vmem>>, %arg4: memref<2x8x8x128xf32, #tpu.memory_space<vmem>>, %arg5: memref<1x1x128xf32, #tpu.memory_space<vmem>>, %arg6: memref<1x1x128xf32, #tpu.memory_space<vmem>>) attributes {dimension_semantics = [#tpu.dimension_semantics<parallel>], iteration_bounds = array<i64: 1>, scalar_prefetch = 0 : i64, scratch_operands = 0 : i64, tpu.core_type = #tpu.core_type<tc>, window_params = [{transform_indices = @transform_0, window_bounds = array<i64: 2, 12, 12, 128>}, {pipeline_mode = #tpu.pipeline_mode<synchronous>, transform_indices = @transform_1, window_bounds = array<i64: 25, 128, 128>}, {pipeline_mode = #tpu.pipeline_mode<synchronous>, transform_indices = @transform_2, window_bounds = array<i64: 1, 128>}, {transform_indices = @transform_3, window_bounds = array<i64: 2, 8, 8, 128>}, {transform_indices = @transform_4, window_bounds = array<i64: 1, 1, 128>}, {transform_indices = @transform_5, window_bounds = array<i64: 1, 1, 128>}]} {
    %cst = arith.constant 0.000000e+00 : f32
    %0 = vector.broadcast %cst : f32 to vector<128x128xf32>
    %c0 = arith.constant 0 : index
    %c0_0 = arith.constant 0 : index
    %c0_1 = arith.constant 0 : index
    %c0_2 = arith.constant 0 : index
    %1 = vector.load %arg1[%c0, %c0_0, %c0_1, %c0_2] : memref<2x12x12x128xf32, #tpu.memory_space<vmem>>, vector<2x8x8x128xf32>
    %2 = vector.shape_cast %1 : vector<2x8x8x128xf32> to vector<128x128xf32>
    %3 = arith.truncf %2 : vector<128x128xf32> to vector<128x128xbf16>
    %c0_3 = arith.constant 0 : index
    %c0_4 = arith.constant 0 : index
    %c0_5 = arith.constant 0 : index
    %4 = vector.load %arg2[%c0_3, %c0_4, %c0_5] : memref<25x128x128xbf16, #tpu.memory_space<vmem>>, vector<1x128x128xbf16>
    %5 = vector.shape_cast %4 : vector<1x128x128xbf16> to vector<128x128xbf16>
    %cst_6 = arith.constant dense<0.000000e+00> : vector<128x128xf32>
    %6 = tpu.matmul %3, %5, %cst_6 {dimension_numbers = #tpu.dot_dimension_numbers<[1], [0], [0], [1], [0, 0, 1, 1], [], []>} : vector<128x128xbf16>, vector<128x128xbf16>, vector<128x128xf32> -> vector<128x128xf32>
    %7 = arith.addf %0, %6 : vector<128x128xf32>
    %c0_7 = arith.constant 0 : index
    %c0_8 = arith.constant 0 : index
    %c1 = arith.constant 1 : index
    %c0_9 = arith.constant 0 : index
    %8 = vector.load %arg1[%c0_7, %c0_8, %c1, %c0_9] : memref<2x12x12x128xf32, #tpu.memory_space<vmem>>, vector<2x8x8x128xf32>
    %9 = vector.shape_cast %8 : vector<2x8x8x128xf32> to vector<128x128xf32>
    %10 = arith.truncf %9 : vector<128x128xf32> to vector<128x128xbf16>
    %c1_10 = arith.constant 1 : index
    %c0_11 = arith.constant 0 : index
    %c0_12 = arith.constant 0 : index
    %11 = vector.load %arg2[%c1_10, %c0_11, %c0_12] : memref<25x128x128xbf16, #tpu.memory_space<vmem>>, vector<1x128x128xbf16>
    %12 = vector.shape_cast %11 : vector<1x128x128xbf16> to vector<128x128xbf16>
    %cst_13 = arith.constant dense<0.000000e+00> : vector<128x128xf32>
    %13 = tpu.matmul %10, %12, %cst_13 {dimension_numbers = #tpu.dot_dimension_numbers<[1], [0], [0], [1], [0, 0, 1, 1], [], []>} : vector<128x128xbf16>, vector<128x128xbf16>, vector<128x128xf32> -> vector<128x128xf32>
    %14 = arith.addf %7, %13 : vector<128x128xf32>
    %c0_14 = arith.constant 0 : index
    %c0_15 = arith.constant 0 : index
    %c2 = arith.constant 2 : index
    %c0_16 = arith.constant 0 : index
    %15 = vector.load %arg1[%c0_14, %c0_15, %c2, %c0_16] : memref<2x12x12x128xf32, #tpu.memory_space<vmem>>, vector<2x8x8x128xf32>
    %16 = vector.shape_cast %15 : vector<2x8x8x128xf32> to vector<128x128xf32>
    %17 = arith.truncf %16 : vector<128x128xf32> to vector<128x128xbf16>
    %c2_17 = arith.constant 2 : index
    %c0_18 = arith.constant 0 : index
    %c0_19 = arith.constant 0 : index
    %18 = vector.load %arg2[%c2_17, %c0_18, %c0_19] : memref<25x128x128xbf16, #tpu.memory_space<vmem>>, vector<1x128x128xbf16>
    %19 = vector.shape_cast %18 : vector<1x128x128xbf16> to vector<128x128xbf16>
    %cst_20 = arith.constant dense<0.000000e+00> : vector<128x128xf32>
    %20 = tpu.matmul %17, %19, %cst_20 {dimension_numbers = #tpu.dot_dimension_numbers<[1], [0], [0], [1], [0, 0, 1, 1], [], []>} : vector<128x128xbf16>, vector<128x128xbf16>, vector<128x128xf32> -> vector<128x128xf32>
    %21 = arith.addf %14, %20 : vector<128x128xf32>
    %c0_21 = arith.constant 0 : index
    %c0_22 = arith.constant 0 : index
    %c3 = arith.constant 3 : index
    %c0_23 = arith.constant 0 : index
    %22 = vector.load %arg1[%c0_21, %c0_22, %c3, %c0_23] : memref<2x12x12x128xf32, #tpu.memory_space<vmem>>, vector<2x8x8x128xf32>
    %23 = vector.shape_cast %22 : vector<2x8x8x128xf32> to vector<128x128xf32>
    %24 = arith.truncf %23 : vector<128x128xf32> to vector<128x128xbf16>
    %c3_24 = arith.constant 3 : index
    %c0_25 = arith.constant 0 : index
    %c0_26 = arith.constant 0 : index
    %25 = vector.load %arg2[%c3_24, %c0_25, %c0_26] : memref<25x128x128xbf16, #tpu.memory_space<vmem>>, vector<1x128x128xbf16>
    %26 = vector.shape_cast %25 : vector<1x128x128xbf16> to vector<128x128xbf16>
    %cst_27 = arith.constant dense<0.000000e+00> : vector<128x128xf32>
    %27 = tpu.matmul %24, %26, %cst_27 {dimension_numbers = #tpu.dot_dimension_numbers<[1], [0], [0], [1], [0, 0, 1, 1], [], []>} : vector<128x128xbf16>, vector<128x128xbf16>, vector<128x128xf32> -> vector<128x128xf32>
    %28 = arith.addf %21, %27 : vector<128x128xf32>
    %c0_28 = arith.constant 0 : index
    %c0_29 = arith.constant 0 : index
    %c4 = arith.constant 4 : index
    %c0_30 = arith.constant 0 : index
    %29 = vector.load %arg1[%c0_28, %c0_29, %c4, %c0_30] : memref<2x12x12x128xf32, #tpu.memory_space<vmem>>, vector<2x8x8x128xf32>
    %30 = vector.shape_cast %29 : vector<2x8x8x128xf32> to vector<128x128xf32>
    %31 = arith.truncf %30 : vector<128x128xf32> to vector<128x128xbf16>
    %c4_31 = arith.constant 4 : index
    %c0_32 = arith.constant 0 : index
    %c0_33 = arith.constant 0 : index
    %32 = vector.load %arg2[%c4_31, %c0_32, %c0_33] : memref<25x128x128xbf16, #tpu.memory_space<vmem>>, vector<1x128x128xbf16>
    %33 = vector.shape_cast %32 : vector<1x128x128xbf16> to vector<128x128xbf16>
    %cst_34 = arith.constant dense<0.000000e+00> : vector<128x128xf32>
    %34 = tpu.matmul %31, %33, %cst_34 {dimension_numbers = #tpu.dot_dimension_numbers<[1], [0], [0], [1], [0, 0, 1, 1], [], []>} : vector<128x128xbf16>, vector<128x128xbf16>, vector<128x128xf32> -> vector<128x128xf32>
    %35 = arith.addf %28, %34 : vector<128x128xf32>
    %c0_35 = arith.constant 0 : index
    %c1_36 = arith.constant 1 : index
    %c0_37 = arith.constant 0 : index
    %c0_38 = arith.constant 0 : index
    %36 = vector.load %arg1[%c0_35, %c1_36, %c0_37, %c0_38] : memref<2x12x12x128xf32, #tpu.memory_space<vmem>>, vector<2x8x8x128xf32>
    %37 = vector.shape_cast %36 : vector<2x8x8x128xf32> to vector<128x128xf32>
    %38 = arith.truncf %37 : vector<128x128xf32> to vector<128x128xbf16>
    %c5 = arith.constant 5 : index
    %c0_39 = arith.constant 0 : index
    %c0_40 = arith.constant 0 : index
    %39 = vector.load %arg2[%c5, %c0_39, %c0_40] : memref<25x128x128xbf16, #tpu.memory_space<vmem>>, vector<1x128x128xbf16>
    %40 = vector.shape_cast %39 : vector<1x128x128xbf16> to vector<128x128xbf16>
    %cst_41 = arith.constant dense<0.000000e+00> : vector<128x128xf32>
    %41 = tpu.matmul %38, %40, %cst_41 {dimension_numbers = #tpu.dot_dimension_numbers<[1], [0], [0], [1], [0, 0, 1, 1], [], []>} : vector<128x128xbf16>, vector<128x128xbf16>, vector<128x128xf32> -> vector<128x128xf32>
    %42 = arith.addf %35, %41 : vector<128x128xf32>
    %c0_42 = arith.constant 0 : index
    %c1_43 = arith.constant 1 : index
    %c1_44 = arith.constant 1 : index
    %c0_45 = arith.constant 0 : index
    %43 = vector.load %arg1[%c0_42, %c1_43, %c1_44, %c0_45] : memref<2x12x12x128xf32, #tpu.memory_space<vmem>>, vector<2x8x8x128xf32>
    %44 = vector.shape_cast %43 : vector<2x8x8x128xf32> to vector<128x128xf32>
    %45 = arith.truncf %44 : vector<128x128xf32> to vector<128x128xbf16>
    %c6 = arith.constant 6 : index
    %c0_46 = arith.constant 0 : index
    %c0_47 = arith.constant 0 : index
    %46 = vector.load %arg2[%c6, %c0_46, %c0_47] : memref<25x128x128xbf16, #tpu.memory_space<vmem>>, vector<1x128x128xbf16>
    %47 = vector.shape_cast %46 : vector<1x128x128xbf16> to vector<128x128xbf16>
    %cst_48 = arith.constant dense<0.000000e+00> : vector<128x128xf32>
    %48 = tpu.matmul %45, %47, %cst_48 {dimension_numbers = #tpu.dot_dimension_numbers<[1], [0], [0], [1], [0, 0, 1, 1], [], []>} : vector<128x128xbf16>, vector<128x128xbf16>, vector<128x128xf32> -> vector<128x128xf32>
    %49 = arith.addf %42, %48 : vector<128x128xf32>
    %c0_49 = arith.constant 0 : index
    %c1_50 = arith.constant 1 : index
    %c2_51 = arith.constant 2 : index
    %c0_52 = arith.constant 0 : index
    %50 = vector.load %arg1[%c0_49, %c1_50, %c2_51, %c0_52] : memref<2x12x12x128xf32, #tpu.memory_space<vmem>>, vector<2x8x8x128xf32>
    %51 = vector.shape_cast %50 : vector<2x8x8x128xf32> to vector<128x128xf32>
    %52 = arith.truncf %51 : vector<128x128xf32> to vector<128x128xbf16>
    %c7 = arith.constant 7 : index
    %c0_53 = arith.constant 0 : index
    %c0_54 = arith.constant 0 : index
    %53 = vector.load %arg2[%c7, %c0_53, %c0_54] : memref<25x128x128xbf16, #tpu.memory_space<vmem>>, vector<1x128x128xbf16>
    %54 = vector.shape_cast %53 : vector<1x128x128xbf16> to vector<128x128xbf16>
    %cst_55 = arith.constant dense<0.000000e+00> : vector<128x128xf32>
    %55 = tpu.matmul %52, %54, %cst_55 {dimension_numbers = #tpu.dot_dimension_numbers<[1], [0], [0], [1], [0, 0, 1, 1], [], []>} : vector<128x128xbf16>, vector<128x128xbf16>, vector<128x128xf32> -> vector<128x128xf32>
    %56 = arith.addf %49, %55 : vector<128x128xf32>
    %c0_56 = arith.constant 0 : index
    %c1_57 = arith.constant 1 : index
    %c3_58 = arith.constant 3 : index
    %c0_59 = arith.constant 0 : index
    %57 = vector.load %arg1[%c0_56, %c1_57, %c3_58, %c0_59] : memref<2x12x12x128xf32, #tpu.memory_space<vmem>>, vector<2x8x8x128xf32>
    %58 = vector.shape_cast %57 : vector<2x8x8x128xf32> to vector<128x128xf32>
    %59 = arith.truncf %58 : vector<128x128xf32> to vector<128x128xbf16>
    %c8 = arith.constant 8 : index
    %c0_60 = arith.constant 0 : index
    %c0_61 = arith.constant 0 : index
    %60 = vector.load %arg2[%c8, %c0_60, %c0_61] : memref<25x128x128xbf16, #tpu.memory_space<vmem>>, vector<1x128x128xbf16>
    %61 = vector.shape_cast %60 : vector<1x128x128xbf16> to vector<128x128xbf16>
    %cst_62 = arith.constant dense<0.000000e+00> : vector<128x128xf32>
    %62 = tpu.matmul %59, %61, %cst_62 {dimension_numbers = #tpu.dot_dimension_numbers<[1], [0], [0], [1], [0, 0, 1, 1], [], []>} : vector<128x128xbf16>, vector<128x128xbf16>, vector<128x128xf32> -> vector<128x128xf32>
    %63 = arith.addf %56, %62 : vector<128x128xf32>
    %c0_63 = arith.constant 0 : index
    %c1_64 = arith.constant 1 : index
    %c4_65 = arith.constant 4 : index
    %c0_66 = arith.constant 0 : index
    %64 = vector.load %arg1[%c0_63, %c1_64, %c4_65, %c0_66] : memref<2x12x12x128xf32, #tpu.memory_space<vmem>>, vector<2x8x8x128xf32>
    %65 = vector.shape_cast %64 : vector<2x8x8x128xf32> to vector<128x128xf32>
    %66 = arith.truncf %65 : vector<128x128xf32> to vector<128x128xbf16>
    %c9 = arith.constant 9 : index
    %c0_67 = arith.constant 0 : index
    %c0_68 = arith.constant 0 : index
    %67 = vector.load %arg2[%c9, %c0_67, %c0_68] : memref<25x128x128xbf16, #tpu.memory_space<vmem>>, vector<1x128x128xbf16>
    %68 = vector.shape_cast %67 : vector<1x128x128xbf16> to vector<128x128xbf16>
    %cst_69 = arith.constant dense<0.000000e+00> : vector<128x128xf32>
    %69 = tpu.matmul %66, %68, %cst_69 {dimension_numbers = #tpu.dot_dimension_numbers<[1], [0], [0], [1], [0, 0, 1, 1], [], []>} : vector<128x128xbf16>, vector<128x128xbf16>, vector<128x128xf32> -> vector<128x128xf32>
    %70 = arith.addf %63, %69 : vector<128x128xf32>
    %c0_70 = arith.constant 0 : index
    %c2_71 = arith.constant 2 : index
    %c0_72 = arith.constant 0 : index
    %c0_73 = arith.constant 0 : index
    %71 = vector.load %arg1[%c0_70, %c2_71, %c0_72, %c0_73] : memref<2x12x12x128xf32, #tpu.memory_space<vmem>>, vector<2x8x8x128xf32>
    %72 = vector.shape_cast %71 : vector<2x8x8x128xf32> to vector<128x128xf32>
    %73 = arith.truncf %72 : vector<128x128xf32> to vector<128x128xbf16>
    %c10 = arith.constant 10 : index
    %c0_74 = arith.constant 0 : index
    %c0_75 = arith.constant 0 : index
    %74 = vector.load %arg2[%c10, %c0_74, %c0_75] : memref<25x128x128xbf16, #tpu.memory_space<vmem>>, vector<1x128x128xbf16>
    %75 = vector.shape_cast %74 : vector<1x128x128xbf16> to vector<128x128xbf16>
    %cst_76 = arith.constant dense<0.000000e+00> : vector<128x128xf32>
    %76 = tpu.matmul %73, %75, %cst_76 {dimension_numbers = #tpu.dot_dimension_numbers<[1], [0], [0], [1], [0, 0, 1, 1], [], []>} : vector<128x128xbf16>, vector<128x128xbf16>, vector<128x128xf32> -> vector<128x128xf32>
    %77 = arith.addf %70, %76 : vector<128x128xf32>
    %c0_77 = arith.constant 0 : index
    %c2_78 = arith.constant 2 : index
    %c1_79 = arith.constant 1 : index
    %c0_80 = arith.constant 0 : index
    %78 = vector.load %arg1[%c0_77, %c2_78, %c1_79, %c0_80] : memref<2x12x12x128xf32, #tpu.memory_space<vmem>>, vector<2x8x8x128xf32>
    %79 = vector.shape_cast %78 : vector<2x8x8x128xf32> to vector<128x128xf32>
    %80 = arith.truncf %79 : vector<128x128xf32> to vector<128x128xbf16>
    %c11 = arith.constant 11 : index
    %c0_81 = arith.constant 0 : index
    %c0_82 = arith.constant 0 : index
    %81 = vector.load %arg2[%c11, %c0_81, %c0_82] : memref<25x128x128xbf16, #tpu.memory_space<vmem>>, vector<1x128x128xbf16>
    %82 = vector.shape_cast %81 : vector<1x128x128xbf16> to vector<128x128xbf16>
    %cst_83 = arith.constant dense<0.000000e+00> : vector<128x128xf32>
    %83 = tpu.matmul %80, %82, %cst_83 {dimension_numbers = #tpu.dot_dimension_numbers<[1], [0], [0], [1], [0, 0, 1, 1], [], []>} : vector<128x128xbf16>, vector<128x128xbf16>, vector<128x128xf32> -> vector<128x128xf32>
    %84 = arith.addf %77, %83 : vector<128x128xf32>
    %c0_84 = arith.constant 0 : index
    %c2_85 = arith.constant 2 : index
    %c2_86 = arith.constant 2 : index
    %c0_87 = arith.constant 0 : index
    %85 = vector.load %arg1[%c0_84, %c2_85, %c2_86, %c0_87] : memref<2x12x12x128xf32, #tpu.memory_space<vmem>>, vector<2x8x8x128xf32>
    %86 = vector.shape_cast %85 : vector<2x8x8x128xf32> to vector<128x128xf32>
    %87 = arith.truncf %86 : vector<128x128xf32> to vector<128x128xbf16>
    %c12 = arith.constant 12 : index
    %c0_88 = arith.constant 0 : index
    %c0_89 = arith.constant 0 : index
    %88 = vector.load %arg2[%c12, %c0_88, %c0_89] : memref<25x128x128xbf16, #tpu.memory_space<vmem>>, vector<1x128x128xbf16>
    %89 = vector.shape_cast %88 : vector<1x128x128xbf16> to vector<128x128xbf16>
    %cst_90 = arith.constant dense<0.000000e+00> : vector<128x128xf32>
    %90 = tpu.matmul %87, %89, %cst_90 {dimension_numbers = #tpu.dot_dimension_numbers<[1], [0], [0], [1], [0, 0, 1, 1], [], []>} : vector<128x128xbf16>, vector<128x128xbf16>, vector<128x128xf32> -> vector<128x128xf32>
    %91 = arith.addf %84, %90 : vector<128x128xf32>
    %c0_91 = arith.constant 0 : index
    %c2_92 = arith.constant 2 : index
    %c3_93 = arith.constant 3 : index
    %c0_94 = arith.constant 0 : index
    %92 = vector.load %arg1[%c0_91, %c2_92, %c3_93, %c0_94] : memref<2x12x12x128xf32, #tpu.memory_space<vmem>>, vector<2x8x8x128xf32>
    %93 = vector.shape_cast %92 : vector<2x8x8x128xf32> to vector<128x128xf32>
    %94 = arith.truncf %93 : vector<128x128xf32> to vector<128x128xbf16>
    %c13 = arith.constant 13 : index
    %c0_95 = arith.constant 0 : index
    %c0_96 = arith.constant 0 : index
    %95 = vector.load %arg2[%c13, %c0_95, %c0_96] : memref<25x128x128xbf16, #tpu.memory_space<vmem>>, vector<1x128x128xbf16>
    %96 = vector.shape_cast %95 : vector<1x128x128xbf16> to vector<128x128xbf16>
    %cst_97 = arith.constant dense<0.000000e+00> : vector<128x128xf32>
    %97 = tpu.matmul %94, %96, %cst_97 {dimension_numbers = #tpu.dot_dimension_numbers<[1], [0], [0], [1], [0, 0, 1, 1], [], []>} : vector<128x128xbf16>, vector<128x128xbf16>, vector<128x128xf32> -> vector<128x128xf32>
    %98 = arith.addf %91, %97 : vector<128x128xf32>
    %c0_98 = arith.constant 0 : index
    %c2_99 = arith.constant 2 : index
    %c4_100 = arith.constant 4 : index
    %c0_101 = arith.constant 0 : index
    %99 = vector.load %arg1[%c0_98, %c2_99, %c4_100, %c0_101] : memref<2x12x12x128xf32, #tpu.memory_space<vmem>>, vector<2x8x8x128xf32>
    %100 = vector.shape_cast %99 : vector<2x8x8x128xf32> to vector<128x128xf32>
    %101 = arith.truncf %100 : vector<128x128xf32> to vector<128x128xbf16>
    %c14 = arith.constant 14 : index
    %c0_102 = arith.constant 0 : index
    %c0_103 = arith.constant 0 : index
    %102 = vector.load %arg2[%c14, %c0_102, %c0_103] : memref<25x128x128xbf16, #tpu.memory_space<vmem>>, vector<1x128x128xbf16>
    %103 = vector.shape_cast %102 : vector<1x128x128xbf16> to vector<128x128xbf16>
    %cst_104 = arith.constant dense<0.000000e+00> : vector<128x128xf32>
    %104 = tpu.matmul %101, %103, %cst_104 {dimension_numbers = #tpu.dot_dimension_numbers<[1], [0], [0], [1], [0, 0, 1, 1], [], []>} : vector<128x128xbf16>, vector<128x128xbf16>, vector<128x128xf32> -> vector<128x128xf32>
    %105 = arith.addf %98, %104 : vector<128x128xf32>
    %c0_105 = arith.constant 0 : index
    %c3_106 = arith.constant 3 : index
    %c0_107 = arith.constant 0 : index
    %c0_108 = arith.constant 0 : index
    %106 = vector.load %arg1[%c0_105, %c3_106, %c0_107, %c0_108] : memref<2x12x12x128xf32, #tpu.memory_space<vmem>>, vector<2x8x8x128xf32>
    %107 = vector.shape_cast %106 : vector<2x8x8x128xf32> to vector<128x128xf32>
    %108 = arith.truncf %107 : vector<128x128xf32> to vector<128x128xbf16>
    %c15 = arith.constant 15 : index
    %c0_109 = arith.constant 0 : index
    %c0_110 = arith.constant 0 : index
    %109 = vector.load %arg2[%c15, %c0_109, %c0_110] : memref<25x128x128xbf16, #tpu.memory_space<vmem>>, vector<1x128x128xbf16>
    %110 = vector.shape_cast %109 : vector<1x128x128xbf16> to vector<128x128xbf16>
    %cst_111 = arith.constant dense<0.000000e+00> : vector<128x128xf32>
    %111 = tpu.matmul %108, %110, %cst_111 {dimension_numbers = #tpu.dot_dimension_numbers<[1], [0], [0], [1], [0, 0, 1, 1], [], []>} : vector<128x128xbf16>, vector<128x128xbf16>, vector<128x128xf32> -> vector<128x128xf32>
    %112 = arith.addf %105, %111 : vector<128x128xf32>
    %c0_112 = arith.constant 0 : index
    %c3_113 = arith.constant 3 : index
    %c1_114 = arith.constant 1 : index
    %c0_115 = arith.constant 0 : index
    %113 = vector.load %arg1[%c0_112, %c3_113, %c1_114, %c0_115] : memref<2x12x12x128xf32, #tpu.memory_space<vmem>>, vector<2x8x8x128xf32>
    %114 = vector.shape_cast %113 : vector<2x8x8x128xf32> to vector<128x128xf32>
    %115 = arith.truncf %114 : vector<128x128xf32> to vector<128x128xbf16>
    %c16 = arith.constant 16 : index
    %c0_116 = arith.constant 0 : index
    %c0_117 = arith.constant 0 : index
    %116 = vector.load %arg2[%c16, %c0_116, %c0_117] : memref<25x128x128xbf16, #tpu.memory_space<vmem>>, vector<1x128x128xbf16>
    %117 = vector.shape_cast %116 : vector<1x128x128xbf16> to vector<128x128xbf16>
    %cst_118 = arith.constant dense<0.000000e+00> : vector<128x128xf32>
    %118 = tpu.matmul %115, %117, %cst_118 {dimension_numbers = #tpu.dot_dimension_numbers<[1], [0], [0], [1], [0, 0, 1, 1], [], []>} : vector<128x128xbf16>, vector<128x128xbf16>, vector<128x128xf32> -> vector<128x128xf32>
    %119 = arith.addf %112, %118 : vector<128x128xf32>
    %c0_119 = arith.constant 0 : index
    %c3_120 = arith.constant 3 : index
    %c2_121 = arith.constant 2 : index
    %c0_122 = arith.constant 0 : index
    %120 = vector.load %arg1[%c0_119, %c3_120, %c2_121, %c0_122] : memref<2x12x12x128xf32, #tpu.memory_space<vmem>>, vector<2x8x8x128xf32>
    %121 = vector.shape_cast %120 : vector<2x8x8x128xf32> to vector<128x128xf32>
    %122 = arith.truncf %121 : vector<128x128xf32> to vector<128x128xbf16>
    %c17 = arith.constant 17 : index
    %c0_123 = arith.constant 0 : index
    %c0_124 = arith.constant 0 : index
    %123 = vector.load %arg2[%c17, %c0_123, %c0_124] : memref<25x128x128xbf16, #tpu.memory_space<vmem>>, vector<1x128x128xbf16>
    %124 = vector.shape_cast %123 : vector<1x128x128xbf16> to vector<128x128xbf16>
    %cst_125 = arith.constant dense<0.000000e+00> : vector<128x128xf32>
    %125 = tpu.matmul %122, %124, %cst_125 {dimension_numbers = #tpu.dot_dimension_numbers<[1], [0], [0], [1], [0, 0, 1, 1], [], []>} : vector<128x128xbf16>, vector<128x128xbf16>, vector<128x128xf32> -> vector<128x128xf32>
    %126 = arith.addf %119, %125 : vector<128x128xf32>
    %c0_126 = arith.constant 0 : index
    %c3_127 = arith.constant 3 : index
    %c3_128 = arith.constant 3 : index
    %c0_129 = arith.constant 0 : index
    %127 = vector.load %arg1[%c0_126, %c3_127, %c3_128, %c0_129] : memref<2x12x12x128xf32, #tpu.memory_space<vmem>>, vector<2x8x8x128xf32>
    %128 = vector.shape_cast %127 : vector<2x8x8x128xf32> to vector<128x128xf32>
    %129 = arith.truncf %128 : vector<128x128xf32> to vector<128x128xbf16>
    %c18 = arith.constant 18 : index
    %c0_130 = arith.constant 0 : index
    %c0_131 = arith.constant 0 : index
    %130 = vector.load %arg2[%c18, %c0_130, %c0_131] : memref<25x128x128xbf16, #tpu.memory_space<vmem>>, vector<1x128x128xbf16>
    %131 = vector.shape_cast %130 : vector<1x128x128xbf16> to vector<128x128xbf16>
    %cst_132 = arith.constant dense<0.000000e+00> : vector<128x128xf32>
    %132 = tpu.matmul %129, %131, %cst_132 {dimension_numbers = #tpu.dot_dimension_numbers<[1], [0], [0], [1], [0, 0, 1, 1], [], []>} : vector<128x128xbf16>, vector<128x128xbf16>, vector<128x128xf32> -> vector<128x128xf32>
    %133 = arith.addf %126, %132 : vector<128x128xf32>
    %c0_133 = arith.constant 0 : index
    %c3_134 = arith.constant 3 : index
    %c4_135 = arith.constant 4 : index
    %c0_136 = arith.constant 0 : index
    %134 = vector.load %arg1[%c0_133, %c3_134, %c4_135, %c0_136] : memref<2x12x12x128xf32, #tpu.memory_space<vmem>>, vector<2x8x8x128xf32>
    %135 = vector.shape_cast %134 : vector<2x8x8x128xf32> to vector<128x128xf32>
    %136 = arith.truncf %135 : vector<128x128xf32> to vector<128x128xbf16>
    %c19 = arith.constant 19 : index
    %c0_137 = arith.constant 0 : index
    %c0_138 = arith.constant 0 : index
    %137 = vector.load %arg2[%c19, %c0_137, %c0_138] : memref<25x128x128xbf16, #tpu.memory_space<vmem>>, vector<1x128x128xbf16>
    %138 = vector.shape_cast %137 : vector<1x128x128xbf16> to vector<128x128xbf16>
    %cst_139 = arith.constant dense<0.000000e+00> : vector<128x128xf32>
    %139 = tpu.matmul %136, %138, %cst_139 {dimension_numbers = #tpu.dot_dimension_numbers<[1], [0], [0], [1], [0, 0, 1, 1], [], []>} : vector<128x128xbf16>, vector<128x128xbf16>, vector<128x128xf32> -> vector<128x128xf32>
    %140 = arith.addf %133, %139 : vector<128x128xf32>
    %c0_140 = arith.constant 0 : index
    %c4_141 = arith.constant 4 : index
    %c0_142 = arith.constant 0 : index
    %c0_143 = arith.constant 0 : index
    %141 = vector.load %arg1[%c0_140, %c4_141, %c0_142, %c0_143] : memref<2x12x12x128xf32, #tpu.memory_space<vmem>>, vector<2x8x8x128xf32>
    %142 = vector.shape_cast %141 : vector<2x8x8x128xf32> to vector<128x128xf32>
    %143 = arith.truncf %142 : vector<128x128xf32> to vector<128x128xbf16>
    %c20 = arith.constant 20 : index
    %c0_144 = arith.constant 0 : index
    %c0_145 = arith.constant 0 : index
    %144 = vector.load %arg2[%c20, %c0_144, %c0_145] : memref<25x128x128xbf16, #tpu.memory_space<vmem>>, vector<1x128x128xbf16>
    %145 = vector.shape_cast %144 : vector<1x128x128xbf16> to vector<128x128xbf16>
    %cst_146 = arith.constant dense<0.000000e+00> : vector<128x128xf32>
    %146 = tpu.matmul %143, %145, %cst_146 {dimension_numbers = #tpu.dot_dimension_numbers<[1], [0], [0], [1], [0, 0, 1, 1], [], []>} : vector<128x128xbf16>, vector<128x128xbf16>, vector<128x128xf32> -> vector<128x128xf32>
    %147 = arith.addf %140, %146 : vector<128x128xf32>
    %c0_147 = arith.constant 0 : index
    %c4_148 = arith.constant 4 : index
    %c1_149 = arith.constant 1 : index
    %c0_150 = arith.constant 0 : index
    %148 = vector.load %arg1[%c0_147, %c4_148, %c1_149, %c0_150] : memref<2x12x12x128xf32, #tpu.memory_space<vmem>>, vector<2x8x8x128xf32>
    %149 = vector.shape_cast %148 : vector<2x8x8x128xf32> to vector<128x128xf32>
    %150 = arith.truncf %149 : vector<128x128xf32> to vector<128x128xbf16>
    %c21 = arith.constant 21 : index
    %c0_151 = arith.constant 0 : index
    %c0_152 = arith.constant 0 : index
    %151 = vector.load %arg2[%c21, %c0_151, %c0_152] : memref<25x128x128xbf16, #tpu.memory_space<vmem>>, vector<1x128x128xbf16>
    %152 = vector.shape_cast %151 : vector<1x128x128xbf16> to vector<128x128xbf16>
    %cst_153 = arith.constant dense<0.000000e+00> : vector<128x128xf32>
    %153 = tpu.matmul %150, %152, %cst_153 {dimension_numbers = #tpu.dot_dimension_numbers<[1], [0], [0], [1], [0, 0, 1, 1], [], []>} : vector<128x128xbf16>, vector<128x128xbf16>, vector<128x128xf32> -> vector<128x128xf32>
    %154 = arith.addf %147, %153 : vector<128x128xf32>
    %c0_154 = arith.constant 0 : index
    %c4_155 = arith.constant 4 : index
    %c2_156 = arith.constant 2 : index
    %c0_157 = arith.constant 0 : index
    %155 = vector.load %arg1[%c0_154, %c4_155, %c2_156, %c0_157] : memref<2x12x12x128xf32, #tpu.memory_space<vmem>>, vector<2x8x8x128xf32>
    %156 = vector.shape_cast %155 : vector<2x8x8x128xf32> to vector<128x128xf32>
    %157 = arith.truncf %156 : vector<128x128xf32> to vector<128x128xbf16>
    %c22 = arith.constant 22 : index
    %c0_158 = arith.constant 0 : index
    %c0_159 = arith.constant 0 : index
    %158 = vector.load %arg2[%c22, %c0_158, %c0_159] : memref<25x128x128xbf16, #tpu.memory_space<vmem>>, vector<1x128x128xbf16>
    %159 = vector.shape_cast %158 : vector<1x128x128xbf16> to vector<128x128xbf16>
    %cst_160 = arith.constant dense<0.000000e+00> : vector<128x128xf32>
    %160 = tpu.matmul %157, %159, %cst_160 {dimension_numbers = #tpu.dot_dimension_numbers<[1], [0], [0], [1], [0, 0, 1, 1], [], []>} : vector<128x128xbf16>, vector<128x128xbf16>, vector<128x128xf32> -> vector<128x128xf32>
    %161 = arith.addf %154, %160 : vector<128x128xf32>
    %c0_161 = arith.constant 0 : index
    %c4_162 = arith.constant 4 : index
    %c3_163 = arith.constant 3 : index
    %c0_164 = arith.constant 0 : index
    %162 = vector.load %arg1[%c0_161, %c4_162, %c3_163, %c0_164] : memref<2x12x12x128xf32, #tpu.memory_space<vmem>>, vector<2x8x8x128xf32>
    %163 = vector.shape_cast %162 : vector<2x8x8x128xf32> to vector<128x128xf32>
    %164 = arith.truncf %163 : vector<128x128xf32> to vector<128x128xbf16>
    %c23 = arith.constant 23 : index
    %c0_165 = arith.constant 0 : index
    %c0_166 = arith.constant 0 : index
    %165 = vector.load %arg2[%c23, %c0_165, %c0_166] : memref<25x128x128xbf16, #tpu.memory_space<vmem>>, vector<1x128x128xbf16>
    %166 = vector.shape_cast %165 : vector<1x128x128xbf16> to vector<128x128xbf16>
    %cst_167 = arith.constant dense<0.000000e+00> : vector<128x128xf32>
    %167 = tpu.matmul %164, %166, %cst_167 {dimension_numbers = #tpu.dot_dimension_numbers<[1], [0], [0], [1], [0, 0, 1, 1], [], []>} : vector<128x128xbf16>, vector<128x128xbf16>, vector<128x128xf32> -> vector<128x128xf32>
    %168 = arith.addf %161, %167 : vector<128x128xf32>
    %c0_168 = arith.constant 0 : index
    %c4_169 = arith.constant 4 : index
    %c4_170 = arith.constant 4 : index
    %c0_171 = arith.constant 0 : index
    %169 = vector.load %arg1[%c0_168, %c4_169, %c4_170, %c0_171] : memref<2x12x12x128xf32, #tpu.memory_space<vmem>>, vector<2x8x8x128xf32>
    %170 = vector.shape_cast %169 : vector<2x8x8x128xf32> to vector<128x128xf32>
    %171 = arith.truncf %170 : vector<128x128xf32> to vector<128x128xbf16>
    %c24 = arith.constant 24 : index
    %c0_172 = arith.constant 0 : index
    %c0_173 = arith.constant 0 : index
    %172 = vector.load %arg2[%c24, %c0_172, %c0_173] : memref<25x128x128xbf16, #tpu.memory_space<vmem>>, vector<1x128x128xbf16>
    %173 = vector.shape_cast %172 : vector<1x128x128xbf16> to vector<128x128xbf16>
    %cst_174 = arith.constant dense<0.000000e+00> : vector<128x128xf32>
    %174 = tpu.matmul %171, %173, %cst_174 {dimension_numbers = #tpu.dot_dimension_numbers<[1], [0], [0], [1], [0, 0, 1, 1], [], []>} : vector<128x128xbf16>, vector<128x128xbf16>, vector<128x128xf32> -> vector<128x128xf32>
    %175 = arith.addf %168, %174 : vector<128x128xf32>
    %c0_175 = arith.constant 0 : index
    %c0_176 = arith.constant 0 : index
    %176 = vector.load %arg3[%c0_175, %c0_176] : memref<1x128xf32, #tpu.memory_space<vmem>>, vector<1x128xf32>
    %177 = vector.broadcast %176 : vector<1x128xf32> to vector<128x128xf32>
    %178 = arith.addf %175, %177 : vector<128x128xf32>
    %179 = vector.shape_cast %178 : vector<128x128xf32> to vector<2x8x8x128xf32>
    %c0_177 = arith.constant 0 : index
    %c0_178 = arith.constant 0 : index
    %c0_179 = arith.constant 0 : index
    %c0_180 = arith.constant 0 : index
    %180 = vector.load %arg4[%c0_177, %c0_178, %c0_179, %c0_180] : memref<2x8x8x128xf32, #tpu.memory_space<vmem>>, vector<2x8x8x128xf32>
    tpu.vector_store %arg4[%c0_177, %c0_178, %c0_179, %c0_180], %179 {strides = array<i32>} : memref<2x8x8x128xf32, #tpu.memory_space<vmem>>, vector<2x8x8x128xf32>,
    %cst_181 = arith.constant dense<0.000000e+00> : vector<128xf32>
    %181 = vector.multi_reduction <add>, %178, %cst_181 [0] : vector<128x128xf32> to vector<128xf32>
    %182 = vector.shape_cast %181 : vector<128xf32> to vector<1x128xf32>
    %183 = vector.shape_cast %182 : vector<1x128xf32> to vector<1x1x128xf32>
    %c0_182 = arith.constant 0 : index
    %c0_183 = arith.constant 0 : index
    %c0_184 = arith.constant 0 : index
    %184 = vector.load %arg5[%c0_182, %c0_183, %c0_184] : memref<1x1x128xf32, #tpu.memory_space<vmem>>, vector<1x1x128xf32>
    tpu.vector_store %arg5[%c0_182, %c0_183, %c0_184], %183 {strides = array<i32>} : memref<1x1x128xf32, #tpu.memory_space<vmem>>, vector<1x1x128xf32>,
    %185 = arith.mulf %178, %178 : vector<128x128xf32>
    %cst_185 = arith.constant dense<0.000000e+00> : vector<128xf32>
    %186 = vector.multi_reduction <add>, %185, %cst_185 [0] : vector<128x128xf32> to vector<128xf32>
    %187 = vector.shape_cast %186 : vector<128xf32> to vector<1x128xf32>
    %188 = vector.shape_cast %187 : vector<1x128xf32> to vector<1x1x128xf32>
    %c0_186 = arith.constant 0 : index
    %c0_187 = arith.constant 0 : index
    %c0_188 = arith.constant 0 : index
    %189 = vector.load %arg6[%c0_186, %c0_187, %c0_188] : memref<1x1x128xf32, #tpu.memory_space<vmem>>, vector<1x1x128xf32>
    tpu.vector_store %arg6[%c0_186, %c0_187, %c0_188], %188 {strides = array<i32>} : memref<1x1x128xf32, #tpu.memory_space<vmem>>, vector<1x1x128xf32>,
    return
  }
  func.func @transform_0(%arg0: i32) -> (i32, i32, i32, i32) {
    %c0_i32 = arith.constant 0 : i32
    %c0_i32_0 = arith.constant 0 : i32
    %c0_i32_1 = arith.constant 0 : i32
    %c0_i32_2 = arith.constant 0 : i32
    return %arg0, %c0_i32, %c0_i32_0, %c0_i32_1 : i32, i32, i32, i32
  }
  func.func @transform_1(%arg0: i32) -> (i32, i32, i32) {
    %c0_i32 = arith.constant 0 : i32
    %c0_i32_0 = arith.constant 0 : i32
    %c0_i32_1 = arith.constant 0 : i32
    %c0_i32_2 = arith.constant 0 : i32
    return %c0_i32, %c0_i32_0, %c0_i32_1 : i32, i32, i32
  }
  func.func @transform_2(%arg0: i32) -> (i32, i32) {
    %c0_i32 = arith.constant 0 : i32
    %c0_i32_0 = arith.constant 0 : i32
    %c0_i32_1 = arith.constant 0 : i32
    return %c0_i32, %c0_i32_0 : i32, i32
  }
  func.func @transform_3(%arg0: i32) -> (i32, i32, i32, i32) {
    %c0_i32 = arith.constant 0 : i32
    %c0_i32_0 = arith.constant 0 : i32
    %c0_i32_1 = arith.constant 0 : i32
    %c0_i32_2 = arith.constant 0 : i32
    return %arg0, %c0_i32, %c0_i32_0, %c0_i32_1 : i32, i32, i32, i32
  }
  func.func @transform_4(%arg0: i32) -> (i32, i32, i32) {
    %c0_i32 = arith.constant 0 : i32
    %c0_i32_0 = arith.constant 0 : i32
    %c0_i32_1 = arith.constant 0 : i32
    return %arg0, %c0_i32, %c0_i32_0 : i32, i32, i32
  }
  func.func @transform_5(%arg0: i32) -> (i32, i32, i32) {
    %c0_i32 = arith.constant 0 : i32
    %c0_i32_0 = arith.constant 0 : i32
    %c0_i32_1 = arith.constant 0 : i32
    return %arg0, %c0_i32, %c0_i32_0 : i32, i32, i32
  }
}

module attributes {stable_mosaic.version = 11 : i64} {
  func.func @_bn_relu_kernel(%arg0: i32, %arg1: memref<128x128xf32, #tpu.memory_space<vmem>>, %arg2: memref<1x128xf32, #tpu.memory_space<vmem>>, %arg3: memref<1x128xf32, #tpu.memory_space<vmem>>, %arg4: memref<128x128xf32, #tpu.memory_space<vmem>>) attributes {dimension_semantics = [#tpu.dimension_semantics<parallel>], iteration_bounds = array<i64: 1>, scalar_prefetch = 0 : i64, scratch_operands = 0 : i64, tpu.core_type = #tpu.core_type<tc>, window_params = [{transform_indices = @transform_0, window_bounds = array<i64: 128, 128>}, {pipeline_mode = #tpu.pipeline_mode<synchronous>, transform_indices = @transform_1, window_bounds = array<i64: 1, 128>}, {pipeline_mode = #tpu.pipeline_mode<synchronous>, transform_indices = @transform_2, window_bounds = array<i64: 1, 128>}, {transform_indices = @transform_3, window_bounds = array<i64: 128, 128>}]} {
    %c0 = arith.constant 0 : index
    %c0_0 = arith.constant 0 : index
    %0 = vector.load %arg1[%c0, %c0_0] : memref<128x128xf32, #tpu.memory_space<vmem>>, vector<128x128xf32>
    %c0_1 = arith.constant 0 : index
    %c0_2 = arith.constant 0 : index
    %1 = vector.load %arg2[%c0_1, %c0_2] : memref<1x128xf32, #tpu.memory_space<vmem>>, vector<1x128xf32>
    %2 = vector.broadcast %1 : vector<1x128xf32> to vector<128x128xf32>
    %3 = arith.mulf %0, %2 : vector<128x128xf32>
    %c0_3 = arith.constant 0 : index
    %c0_4 = arith.constant 0 : index
    %4 = vector.load %arg3[%c0_3, %c0_4] : memref<1x128xf32, #tpu.memory_space<vmem>>, vector<1x128xf32>
    %5 = vector.broadcast %4 : vector<1x128xf32> to vector<128x128xf32>
    %6 = arith.addf %3, %5 : vector<128x128xf32>
    %cst = arith.constant 0.000000e+00 : f32
    %7 = vector.broadcast %cst : f32 to vector<128x128xf32>
    %8 = arith.maximumf %6, %7 : vector<128x128xf32>
    %c0_5 = arith.constant 0 : index
    %c0_6 = arith.constant 0 : index
    %9 = vector.load %arg4[%c0_5, %c0_6] : memref<128x128xf32, #tpu.memory_space<vmem>>, vector<128x128xf32>
    tpu.vector_store %arg4[%c0_5, %c0_6], %8 {strides = array<i32>} : memref<128x128xf32, #tpu.memory_space<vmem>>, vector<128x128xf32>,
    return
  }
  func.func @transform_0(%arg0: i32) -> (i32, i32) {
    %c0_i32 = arith.constant 0 : i32
    %c0_i32_0 = arith.constant 0 : i32
    return %arg0, %c0_i32 : i32, i32
  }
  func.func @transform_1(%arg0: i32) -> (i32, i32) {
    %c0_i32 = arith.constant 0 : i32
    %c0_i32_0 = arith.constant 0 : i32
    %c0_i32_1 = arith.constant 0 : i32
    return %c0_i32, %c0_i32_0 : i32, i32
  }
  func.func @transform_2(%arg0: i32) -> (i32, i32) {
    %c0_i32 = arith.constant 0 : i32
    %c0_i32_0 = arith.constant 0 : i32
    %c0_i32_1 = arith.constant 0 : i32
    return %c0_i32, %c0_i32_0 : i32, i32
  }
  func.func @transform_3(%arg0: i32) -> (i32, i32) {
    %c0_i32 = arith.constant 0 : i32
    %c0_i32_0 = arith.constant 0 : i32
    return %arg0, %c0_i32 : i32, i32
  }
}

module attributes {stable_mosaic.version = 11 : i64} {
  func.func @_fc_kernel(%arg0: i32, %arg1: memref<2x2048xf32, #tpu.memory_space<vmem>>, %arg2: memref<2048x256xbf16, #tpu.memory_space<vmem>>, %arg3: memref<1x256xf32, #tpu.memory_space<vmem>>, %arg4: memref<256x25xf32, #tpu.memory_space<vmem>>, %arg5: memref<1x25xf32, #tpu.memory_space<vmem>>, %arg6: memref<2x25xf32, #tpu.memory_space<vmem>>) attributes {dimension_semantics = [#tpu.dimension_semantics<parallel>], iteration_bounds = array<i64: 1>, scalar_prefetch = 0 : i64, scratch_operands = 0 : i64, tpu.core_type = #tpu.core_type<tc>, window_params = [{transform_indices = @transform_0, window_bounds = array<i64: 2, 2048>}, {pipeline_mode = #tpu.pipeline_mode<synchronous>, transform_indices = @transform_1, window_bounds = array<i64: 2048, 256>}, {pipeline_mode = #tpu.pipeline_mode<synchronous>, transform_indices = @transform_2, window_bounds = array<i64: 1, 256>}, {pipeline_mode = #tpu.pipeline_mode<synchronous>, transform_indices = @transform_3, window_bounds = array<i64: 256, 25>}, {pipeline_mode = #tpu.pipeline_mode<synchronous>, transform_indices = @transform_4, window_bounds = array<i64: 1, 25>}, {transform_indices = @transform_5, window_bounds = array<i64: 2, 25>}]} {
    %c0 = arith.constant 0 : index
    %c0_0 = arith.constant 0 : index
    %0 = vector.load %arg1[%c0, %c0_0] : memref<2x2048xf32, #tpu.memory_space<vmem>>, vector<2x2048xf32>
    %1 = arith.truncf %0 : vector<2x2048xf32> to vector<2x2048xbf16>
    %c0_1 = arith.constant 0 : index
    %c0_2 = arith.constant 0 : index
    %2 = vector.load %arg2[%c0_1, %c0_2] : memref<2048x256xbf16, #tpu.memory_space<vmem>>, vector<2048x256xbf16>
    %cst = arith.constant dense<0.000000e+00> : vector<2x256xf32>
    %3 = tpu.matmul %1, %2, %cst {dimension_numbers = #tpu.dot_dimension_numbers<[1], [0], [0], [1], [0, 0, 1, 1], [], []>} : vector<2x2048xbf16>, vector<2048x256xbf16>, vector<2x256xf32> -> vector<2x256xf32>
    %c0_3 = arith.constant 0 : index
    %c0_4 = arith.constant 0 : index
    %4 = vector.load %arg3[%c0_3, %c0_4] : memref<1x256xf32, #tpu.memory_space<vmem>>, vector<1x256xf32>
    %5 = vector.broadcast %4 : vector<1x256xf32> to vector<2x256xf32>
    %6 = arith.addf %3, %5 : vector<2x256xf32>
    %cst_5 = arith.constant 0.000000e+00 : f32
    %7 = vector.broadcast %cst_5 : f32 to vector<2x256xf32>
    %8 = arith.maximumf %6, %7 : vector<2x256xf32>
    %c0_6 = arith.constant 0 : index
    %c0_7 = arith.constant 0 : index
    %9 = vector.load %arg4[%c0_6, %c0_7] : memref<256x25xf32, #tpu.memory_space<vmem>>, vector<256x25xf32>
    %cst_8 = arith.constant dense<0.000000e+00> : vector<2x25xf32>
    %10 = tpu.matmul %8, %9, %cst_8 {dimension_numbers = #tpu.dot_dimension_numbers<[1], [0], [0], [1], [0, 0, 1, 1], [], []>} : vector<2x256xf32>, vector<256x25xf32>, vector<2x25xf32> -> vector<2x25xf32>
    %c0_9 = arith.constant 0 : index
    %c0_10 = arith.constant 0 : index
    %11 = vector.load %arg5[%c0_9, %c0_10] : memref<1x25xf32, #tpu.memory_space<vmem>>, vector<1x25xf32>
    %12 = vector.broadcast %11 : vector<1x25xf32> to vector<2x25xf32>
    %13 = arith.addf %10, %12 : vector<2x25xf32>
    %cst_11 = arith.constant dense<0xFF800000> : vector<2xf32>
    %14 = vector.multi_reduction <maximumf>, %13, %cst_11 [1] : vector<2x25xf32> to vector<2xf32>
    %15 = vector.shape_cast %14 : vector<2xf32> to vector<2x1xf32>
    %16 = vector.broadcast %15 : vector<2x1xf32> to vector<2x25xf32>
    %17 = arith.subf %13, %16 : vector<2x25xf32>
    %18 = math.exp %17 : vector<2x25xf32>
    %cst_12 = arith.constant dense<0.000000e+00> : vector<2xf32>
    %19 = vector.multi_reduction <add>, %18, %cst_12 [1] : vector<2x25xf32> to vector<2xf32>
    %20 = vector.shape_cast %19 : vector<2xf32> to vector<2x1xf32>
    %21 = math.log %20 : vector<2x1xf32>
    %22 = vector.broadcast %21 : vector<2x1xf32> to vector<2x25xf32>
    %23 = arith.subf %17, %22 : vector<2x25xf32>
    %c0_13 = arith.constant 0 : index
    %c0_14 = arith.constant 0 : index
    %24 = vector.load %arg6[%c0_13, %c0_14] : memref<2x25xf32, #tpu.memory_space<vmem>>, vector<2x25xf32>
    tpu.vector_store %arg6[%c0_13, %c0_14], %23 {strides = array<i32>} : memref<2x25xf32, #tpu.memory_space<vmem>>, vector<2x25xf32>,
    return
  }
  func.func @transform_0(%arg0: i32) -> (i32, i32) {
    %c0_i32 = arith.constant 0 : i32
    %c0_i32_0 = arith.constant 0 : i32
    return %arg0, %c0_i32 : i32, i32
  }
  func.func @transform_1(%arg0: i32) -> (i32, i32) {
    %c0_i32 = arith.constant 0 : i32
    %c0_i32_0 = arith.constant 0 : i32
    %c0_i32_1 = arith.constant 0 : i32
    return %c0_i32, %c0_i32_0 : i32, i32
  }
  func.func @transform_2(%arg0: i32) -> (i32, i32) {
    %c0_i32 = arith.constant 0 : i32
    %c0_i32_0 = arith.constant 0 : i32
    %c0_i32_1 = arith.constant 0 : i32
    return %c0_i32, %c0_i32_0 : i32, i32
  }
  func.func @transform_3(%arg0: i32) -> (i32, i32) {
    %c0_i32 = arith.constant 0 : i32
    %c0_i32_0 = arith.constant 0 : i32
    %c0_i32_1 = arith.constant 0 : i32
    return %c0_i32, %c0_i32_0 : i32, i32
  }
  func.func @transform_4(%arg0: i32) -> (i32, i32) {
    %c0_i32 = arith.constant 0 : i32
    %c0_i32_0 = arith.constant 0 : i32
    %c0_i32_1 = arith.constant 0 : i32
    return %c0_i32, %c0_i32_0 : i32, i32
  }
  func.func @transform_5(%arg0: i32) -> (i32, i32) {
    %c0_i32 = arith.constant 0 : i32
    %c0_i32_0 = arith.constant 0 : i32
    return %arg0, %c0_i32 : i32, i32
  }
}

</mosaic_0001>

<bundles_post_ra>
// kernel: net_forward.5
= control target key start
LH: loop header
LB: loop body
LE: loop exit
PB: predicated region body
PF: predicated region fallthrough
CT: control target
= control target key end

     0   :  { %s1162_s18 = smov 0   ;;  %s1605_s0 = inlined_call_operand.vmem [shape: bf16[1152,32], index: 0, kind: input, shape index: {}]   ;;  %s1606_s1 = inlined_call_operand.vmem [shape: bf16[32,128], index: 1, kind: input, shape index: {}]   ;;  %s1607_s2 = inlined_call_operand.vmem [shape: f32[1,128], index: 2, kind: input, shape index: {}]   ;;  %s1608_s3 = inlined_call_operand.vmem [shape: f32[1152,128], index: 3, kind: output, shape index: {0}]   ;;  %s1609_s4 = inlined_call_operand.vmem [shape: f32[3,1,128], index: 4, kind: output, shape index: {1}]   ;;  %s1610_s5 = inlined_call_operand.vmem [shape: f32[3,1,128], index: 5, kind: output, shape index: {2}]  }
   0x1 LB: > { %s1168_s19 = sadd.s32 4294967295, %s1130_s18   ;;  %p950_p0 = scmp.ge.s32.totalorder %s1130_s18, 1  ;;  %s1130_s18 = sphi %s1162_s18, %s16_s18  }
   0x2   : > { %p193_p1 = scmp.lt.s32.totalorder %s1130_s18, 4 }
   0x4   : > { %p194_p2 = pnand %p950_p0, %p193_p1 }
   0x5   : > { %s227_s22 = smul.u32 (!%p194_p2), 48, %s1168_s19  ;;  %p239_p4 = scmp.lt.s32.totalorder (!%p194_p2), %s1168_s19, 2 }
   0x6   : > { %197 = sbr.rel (%p194_p2) target bundleno = 324 (0x144), region = 32 }
   0x7   : > { %p228_p3 = scmp.lt.s32.totalorder (!%p194_p2), %s227_s22, 143 }
   0xb   : > { %v1108_v0 = vld [vmem:[%s1606_s1 + $0x8] sm:$0xff]  ;;  %v1107_v1 = vld [vmem:[%s1606_s1] sm:$0xff]  ;;  %s1612_s22 = smov (!%p228_p3, %s227_s22), 143  ;;  %vm434_vm0 = vcmask 261120   ;;  %s1614_s19 = smov (!%p239_p4, %s1168_s19), 2 }
   0xc   : > { %513 = vmatpush.bf16.msra.mxu0 %v1108_v0  ;;  %1109 = vmatpush.bf16.msra.mxu1 %v1108_v0  ;;  %s951_s25 = sshll.u32 %s1612_s22, 2  ;;  %s952_s29 = sshll.u32 %s1612_s22, 3  ;;  %v1239_v26 = vld [vmem:[%s1607_s2] ss:$0 sm:$0xff] }
   0xd   : > { %1110 = vmatpush.bf16.msra.mxu2 %v1108_v0  ;;  %1111 = vmatpush.bf16.msra.mxu3 %v1108_v0  ;;  %s1185_s28 = scalar_lea.vmem %s1605_s0, %s951_s25  ;;  %s1244_s9 = scalar_lea.vmem %s1608_s3, %s952_s29 }
   0xe   : > { %v1083_v2 = vld [vmem:[%s1185_s28] sm:$0xff]  ;;  %v1089_v3 = vld [vmem:[%s1185_s28 + $0x30] sm:$0xff]  ;;  %v1084_v5 = vld [vmem:[%s1185_s28 + $0x8] sm:$0xff]  ;;  %s241_s12 = scalar_lea.vmem %s1609_s4, %s1614_s19  ;;  %s244_s15 = scalar_lea.vmem %s1610_s5, %s1614_s19 }
   0xf   : > { %v1095_v4 = vld [vmem:[%s1185_s28 + $0x60] sm:$0xff]  ;;  %v1090_v6 = vld [vmem:[%s1185_s28 + $0x38] sm:$0xff]  ;;  %v1096_v7 = vld [vmem:[%s1185_s28 + $0x68] sm:$0xff] }
  0x10   : > { %514 = vmatpush.bf16.msra.mxu0 %v1107_v1  ;;  %1112 = vmatpush.bf16.msra.mxu1 %v1107_v1  ;;  %v1101_v8 = vld [vmem:[%s1185_s28 + $0x90] sm:$0xff]  ;;  %v1091_v10 = vld [vmem:[%s1185_s28 + $0x40] sm:$0xff]  ;;  %v1102_v12 = vld [vmem:[%s1185_s28 + $0x98] sm:$0xff] }
  0x11   : > { %1113 = vmatpush.bf16.msra.mxu2 %v1107_v1  ;;  %1114 = vmatpush.bf16.msra.mxu3 %v1107_v1  ;;  %v1085_v9 = vld [vmem:[%s1185_s28 + $0x10] sm:$0xff]  ;;  %v1086_v13 = vld [vmem:[%s1185_s28 + $0x18] sm:$0xff]  ;;  %v1092_v14 = vld [vmem:[%s1185_s28 + $0x48] sm:$0xff] }
  0x12   : > { %v1097_v11 = vld [vmem:[%s1185_s28 + $0x70] sm:$0xff]  ;;  %v1098_v15 = vld [vmem:[%s1185_s28 + $0x78] sm:$0xff]  ;;  %v1103_v16 = vld [vmem:[%s1185_s28 + $0xa0] sm:$0xff] }
  0x13   : > { %1057 = vmatmul.msk.bf16.vlgmr.msra.gmra.mxu0 %vm434_vm0, %v1083_v2  ;;  %1063 = vmatmul.msk.bf16.vlgmr.msra.gmra.mxu1 %vm434_vm0, %v1089_v3  ;;  %v1087_v17 = vld [vmem:[%s1185_s28 + $0x20] sm:$0xff]  ;;  %v1093_v18 = vld [vmem:[%s1185_s28 + $0x50] sm:$0xff]  ;;  %v1104_v20 = vld [vmem:[%s1185_s28 + $0xa8] sm:$0xff] }
  0x14   : > { %1069 = vmatmul.msk.bf16.vlgmr.msra.gmra.mxu2 %vm434_vm0, %v1095_v4  ;;  %1075 = vmatmul.msk.bf16.vlgmr.msra.gmra.mxu3 %vm434_vm0, %v1101_v8  ;;  %v1099_v19 = vld [vmem:[%s1185_s28 + $0x80] sm:$0xff]  ;;  %v1088_v21 = vld [vmem:[%s1185_s28 + $0x28] sm:$0xff]  ;;  %v1094_v22 = vld [vmem:[%s1185_s28 + $0x58] sm:$0xff] }
  0x15   : > { %v1100_v23 = vld [vmem:[%s1185_s28 + $0x88] sm:$0xff]  ;;  %v1105_v24 = vld [vmem:[%s1185_s28 + $0xb0] sm:$0xff]  ;;  %v1106_v25 = vld [vmem:[%s1185_s28 + $0xb8] sm:$0xff] }
  0x23   : > { %1058 = vmatmul.msk.bf16.gmra.mxu0 %vm434_vm0, %v1084_v5  ;;  %1064 = vmatmul.msk.bf16.gmra.mxu1 %vm434_vm0, %v1090_v6 }
  0x24   : > { %1070 = vmatmul.msk.bf16.gmra.mxu2 %vm434_vm0, %v1096_v7  ;;  %1076 = vmatmul.msk.bf16.gmra.mxu3 %vm434_vm0, %v1102_v12 }
  0x33   : > { %1059 = vmatmul.msk.bf16.gmra.mxu0 %vm434_vm0, %v1085_v9  ;;  %1065 = vmatmul.msk.bf16.gmra.mxu1 %vm434_vm0, %v1091_v10 }
  0x34   : > { %1071 = vmatmul.msk.bf16.gmra.mxu2 %vm434_vm0, %v1097_v11  ;;  %1077 = vmatmul.msk.bf16.gmra.mxu3 %vm434_vm0, %v1103_v16 }
  0x43   : > { %1060 = vmatmul.msk.bf16.gmra.mxu0 %vm434_vm0, %v1086_v13  ;;  %1066 = vmatmul.msk.bf16.gmra.mxu1 %vm434_vm0, %v1092_v14 }
  0x44   : > { %1072 = vmatmul.msk.bf16.gmra.mxu2 %vm434_vm0, %v1098_v15  ;;  %1078 = vmatmul.msk.bf16.gmra.mxu3 %vm434_vm0, %v1104_v20 }
  0x53   : > { %1061 = vmatmul.msk.bf16.gmra.mxu0 %vm434_vm0, %v1087_v17  ;;  %1067 = vmatmul.msk.bf16.gmra.mxu1 %vm434_vm0, %v1093_v18 }
  0x54   : > { %1073 = vmatmul.msk.bf16.gmra.mxu2 %vm434_vm0, %v1099_v19  ;;  %1079 = vmatmul.msk.bf16.gmra.mxu3 %vm434_vm0, %v1105_v24 }
  0x63   : > { %1062 = vmatmul.msk.bf16.gmra.mxu0 %vm434_vm0, %v1088_v21  ;;  %1068 = vmatmul.msk.bf16.gmra.mxu1 %vm434_vm0, %v1094_v22 }
  0x64   : > { %1074 = vmatmul.msk.bf16.gmra.mxu2 %vm434_vm0, %v1100_v23  ;;  %1080 = vmatmul.msk.bf16.gmra.mxu3 %vm434_vm0, %v1106_v25 }
  0x90   : > { %v516_v27 = vpop.f32.mrf.mxu0  ;;  %v546_v28 = vpop.f32.mrf.mxu1 }
  0x91   : > { %v1247_v29 = vadd.f32 %v1239_v26, %v516_v27  ;;  %v1250_v30 = vadd.f32 %v1239_v26, %v546_v28 }
  0x93   : > { %636 = vst [vmem:[%s1244_s9] sm:$0xff] %v1247_v29  ;;  %v738_v25 = vmul.f32 %v1247_v29, %v1247_v29 }
  0x94   : > { %648 = vst [vmem:[%s1244_s9 + $0x60] sm:$0xff] %v1250_v30 }
  0x97   : > { %v576_v35 = vpop.f32.mrf.mxu2  ;;  %v606_v54 = vpop.f32.mrf.mxu3 }
  0x98   : > { %v518_v31 = vpop.f32.mrf.mxu0  ;;  %v548_v32 = vpop.f32.mrf.mxu1  ;;  %v1267_v36 = vadd.f32 %v1239_v26, %v576_v35  ;;  %v1317_v56 = vadd.f32 %v1239_v26, %v606_v54 }
  0x99   : > { %v1257_v33 = vadd.f32 %v1239_v26, %v518_v31  ;;  %v1260_v34 = vadd.f32 %v1239_v26, %v548_v32 }
  0x9a   : > { %660 = vst [vmem:[%s1244_s9 + $0xc0] sm:$0xff] %v1267_v36 }
  0x9b   : > { %637 = vst [vmem:[%s1244_s9 + $0x8] sm:$0xff] %v1257_v33  ;;  %v739_v24 = vmul.f32 %v1257_v33, %v1257_v33  ;;  %v684_v28 = vadd.f32 %v1257_v33, %v1247_v29 }
  0x9c   : > { %649 = vst [vmem:[%s1244_s9 + $0x68] sm:$0xff] %v1260_v34 }
  0x9d   : > { %672 = vst [vmem:[%s1244_s9 + $0x120] sm:$0xff] %v1317_v56  ;;  %v786_v31 = vadd.f32 %v739_v24, %v738_v25 }
  0x9f   : > { %v578_v41 = vpop.f32.mrf.mxu2  ;;  %v608_v62 = vpop.f32.mrf.mxu3 }
  0xa0   : > { %v521_v37 = vpop.f32.mrf.mxu0  ;;  %v551_v38 = vpop.f32.mrf.mxu1  ;;  %v1278_v42 = vadd.f32 %v1239_v26, %v578_v41  ;;  %v1328_v63 = vadd.f32 %v1239_v26, %v608_v62 }
  0xa1   : > { %v1272_v39 = vadd.f32 %v1239_v26, %v521_v37  ;;  %v1275_v40 = vadd.f32 %v1239_v26, %v551_v38 }
  0xa2   : > { %661 = vst [vmem:[%s1244_s9 + $0xc8] sm:$0xff] %v1278_v42 }
  0xa3   : > { %638 = vst [vmem:[%s1244_s9 + $0x10] sm:$0xff] %v1272_v39  ;;  %v740_v27 = vmul.f32 %v1272_v39, %v1272_v39  ;;  %v685_v38 = vadd.f32 %v684_v28, %v1272_v39 }
  0xa4   : > { %650 = vst [vmem:[%s1244_s9 + $0x70] sm:$0xff] %v1275_v40 }
  0xa5   : > { %673 = vst [vmem:[%s1244_s9 + $0x128] sm:$0xff] %v1328_v63 }
  0xa7   : > { %v581_v47 = vpop.f32.mrf.mxu2  ;;  %v611_v6 = vpop.f32.mrf.mxu3 }
  0xa8   : > { %v523_v43 = vpop.f32.mrf.mxu0  ;;  %v553_v44 = vpop.f32.mrf.mxu1  ;;  %v1297_v48 = vadd.f32 %v1239_v26, %v581_v47  ;;  %v1357_v8 = vadd.f32 %v1239_v26, %v611_v6  ;;  %v787_v47 = vadd.f32 %v786_v31, %v740_v27 }
  0xa9   : > { %v1287_v45 = vadd.f32 %v1239_v26, %v523_v43  ;;  %v1290_v46 = vadd.f32 %v1239_v26, %v553_v44 }
  0xaa   : > { %662 = vst [vmem:[%s1244_s9 + $0xd0] sm:$0xff] %v1297_v48 }
  0xab   : > { %639 = vst [vmem:[%s1244_s9 + $0x18] sm:$0xff] %v1287_v45  ;;  %v741_v32 = vmul.f32 %v1287_v45, %v1287_v45  ;;  %v686_v39 = vadd.f32 %v685_v38, %v1287_v45 }
  0xac   : > { %651 = vst [vmem:[%s1244_s9 + $0x78] sm:$0xff] %v1290_v46 }
  0xad   : > { %674 = vst [vmem:[%s1244_s9 + $0x130] sm:$0xff] %v1357_v8 }
  0xaf   : > { %v583_v53 = vpop.f32.mrf.mxu2  ;;  %v613_v14 = vpop.f32.mrf.mxu3 }
  0xb0   : > { %v526_v49 = vpop.f32.mrf.mxu0  ;;  %v556_v50 = vpop.f32.mrf.mxu1  ;;  %v1308_v55 = vadd.f32 %v1239_v26, %v583_v53  ;;  %v1366_v15 = vadd.f32 %v1239_v26, %v613_v14  ;;  %v788_v53 = vadd.f32 %v787_v47, %v741_v32 }
  0xb1   : > { %v1302_v51 = vadd.f32 %v1239_v26, %v526_v49  ;;  %v1305_v52 = vadd.f32 %v1239_v26, %v556_v50 }
  0xb2   : > { %663 = vst [vmem:[%s1244_s9 + $0xd8] sm:$0xff] %v1308_v55 }
  0xb3   : > { %640 = vst [vmem:[%s1244_s9 + $0x20] sm:$0xff] %v1302_v51  ;;  %v742_v49 = vmul.f32 %v1302_v51, %v1302_v51 }
  0xb4   : > { %652 = vst [vmem:[%s1244_s9 + $0x80] sm:$0xff] %v1305_v52 }
  0xb5   : > { %675 = vst [vmem:[%s1244_s9 + $0x138] sm:$0xff] %v1366_v15 }
  0xb7   : > { %v586_v61 = vpop.f32.mrf.mxu2  ;;  %v616_v22 = vpop.f32.mrf.mxu3 }
  0xb8   : > { %v528_v57 = vpop.f32.mrf.mxu0  ;;  %v558_v58 = vpop.f32.mrf.mxu1  ;;  %v1335_v0 = vadd.f32 %v1239_v26, %v586_v61  ;;  %v1406_v44 = vadd.f32 %v1239_v26, %v616_v22 }
  0xb9   : > { %v1322_v59 = vadd.f32 %v1239_v26, %v528_v57  ;;  %v1325_v60 = vadd.f32 %v1239_v26, %v558_v58  ;;  %v687_v57 = vadd.f32 %v686_v39, %v1302_v51  ;;  %v789_v58 = vadd.f32 %v788_v53, %v742_v49 }
  0xba   : > { %664 = vst [vmem:[%s1244_s9 + $0xe0] sm:$0xff] %v1335_v0  ;;  %v750_v53 = vmul.f32 %v1250_v30, %v1250_v30 }
  0xbb   : > { %641 = vst [vmem:[%s1244_s9 + $0x28] sm:$0xff] %v1322_v59  ;;  %v743_v54 = vmul.f32 %v1322_v59, %v1322_v59  ;;  %v688_v45 = vadd.f32 %v687_v57, %v1322_v59 }
  0xbc   : > { %653 = vst [vmem:[%s1244_s9 + $0x88] sm:$0xff] %v1325_v60 }
  0xbd   : > { %676 = vst [vmem:[%s1244_s9 + $0x140] sm:$0xff] %v1406_v44  ;;  %v790_v62 = vadd.f32 %v789_v58, %v743_v54  ;;  %v751_v58 = vmul.f32 %v1260_v34, %v1260_v34 }
  0xbf   : > { %v588_v5 = vpop.f32.mrf.mxu2  ;;  %v618_v33 = vpop.f32.mrf.mxu3 }
  0xc0   : > { %v531_v1 = vpop.f32.mrf.mxu0  ;;  %v561_v2 = vpop.f32.mrf.mxu1  ;;  %v1348_v7 = vadd.f32 %v1239_v26, %v588_v5  ;;  %v1411_v50 = vadd.f32 %v1239_v26, %v618_v33 }
  0xc1   : > { %v1342_v3 = vadd.f32 %v1239_v26, %v531_v1  ;;  %v1345_v4 = vadd.f32 %v1239_v26, %v561_v2 }
  0xc2   : > { %665 = vst [vmem:[%s1244_s9 + $0xe8] sm:$0xff] %v1348_v7 }
  0xc3   : > { %642 = vst [vmem:[%s1244_s9 + $0x30] sm:$0xff] %v1342_v3  ;;  %v744_v61 = vmul.f32 %v1342_v3, %v1342_v3  ;;  %v689_v6 = vadd.f32 %v688_v45, %v1342_v3 }
  0xc4   : > { %654 = vst [vmem:[%s1244_s9 + $0x90] sm:$0xff] %v1345_v4 }
  0xc5   : > { %677 = vst [vmem:[%s1244_s9 + $0x148] sm:$0xff] %v1411_v50  ;;  %v791_v59 = vadd.f32 %v790_v62, %v744_v61  ;;  %v752_v62 = vmul.f32 %v1275_v40, %v1275_v40 }
  0xc7   : > { %v591_v13 = vpop.f32.mrf.mxu2  ;;  %v621_v14 = vpop.f32.mrf.mxu3 }
  0xc8   : > { %v533_v9 = vpop.f32.mrf.mxu0  ;;  %v563_v10 = vpop.f32.mrf.mxu1  ;;  %v1378_v20 = vadd.f32 %v1239_v26, %v591_v13 }
  0xc9   : > { %v534_v11 = vadd.f32 %v1239_v26, %v533_v9  ;;  %v1363_v12 = vadd.f32 %v1239_v26, %v563_v10 }
  0xca   : > { %666 = vst [vmem:[%s1244_s9 + $0xf0] sm:$0xff] %v1378_v20 }
  0xcb   : > { %643 = vst [vmem:[%s1244_s9 + $0x38] sm:$0xff] %v534_v11  ;;  %v745_v1 = vmul.f32 %v534_v11, %v534_v11 }
  0xcc   : > { %655 = vst [vmem:[%s1244_s9 + $0x98] sm:$0xff] %v1363_v12 }
  0xcd   : > { %v792_v22 = vadd.f32 %v791_v59, %v745_v1 }
  0xcf   : > { %v593_v21 = vpop.f32.mrf.mxu2  ;;  %v623_v33 = vpop.f32.mrf.mxu3 }
  0xd0   : > { %v536_v16 = vpop.f32.mrf.mxu0  ;;  %v566_v17 = vpop.f32.mrf.mxu1  ;;  %v1381_v23 = vadd.f32 %v1239_v26, %v593_v21  ;;  %v690_v21 = vadd.f32 %v689_v6, %v534_v11  ;;  %v1451_v47 = vadd.f32 %v1239_v26, %v623_v33 }
  0xd1   : > { %v537_v18 = vadd.f32 %v1239_v26, %v536_v16  ;;  %v1375_v19 = vadd.f32 %v1239_v26, %v566_v17 }
  0xd2   : > { %667 = vst [vmem:[%s1244_s9 + $0xf8] sm:$0xff] %v1381_v23 }
  0xd3   : > { %644 = vst [vmem:[%s1244_s9 + $0x40] sm:$0xff] %v537_v18  ;;  %v746_v16 = vmul.f32 %v537_v18, %v537_v18  ;;  %v691_v24 = vadd.f32 %v690_v21, %v537_v18  ;;  %v1448_v18 = vadd.f32 %v1239_v26, %v621_v14  ;;  %v755_v21 = vmul.f32 %v1325_v60, %v1325_v60 }
  0xd4   : > { %656 = vst [vmem:[%s1244_s9 + $0xa0] sm:$0xff] %v1375_v19 }
  0xd5   : > { %v793_v25 = vadd.f32 %v792_v22, %v746_v16  ;;  %678 = vst [vmem:[%s1244_s9 + $0x150] sm:$0xff] %v1448_v18 }
  0xd6   : > { %679 = vst [vmem:[%s1244_s9 + $0x158] sm:$0xff] %v1451_v47 }
  0xd7   : > { %v596_v29 = vpop.f32.mrf.mxu2  ;;  %v626_v6 = vpop.f32.mrf.mxu3 }
  0xd8   : > { %v538_v35 = vpop.f32.mrf.mxu0  ;;  %v568_v37 = vpop.f32.mrf.mxu1  ;;  %v1433_v10 = vadd.f32 %v1239_v26, %v596_v29 }
  0xd9   : > { %v539_v41 = vadd.f32 %v1239_v26, %v538_v35  ;;  %v1403_v43 = vadd.f32 %v1239_v26, %v568_v37 }
  0xda   : > { %668 = vst [vmem:[%s1244_s9 + $0x100] sm:$0xff] %v1433_v10 }
  0xdb   : > { %645 = vst [vmem:[%s1244_s9 + $0x48] sm:$0xff] %v539_v41  ;;  %v747_v3 = vmul.f32 %v539_v41, %v539_v41  ;;  %v692_v27 = vadd.f32 %v691_v24, %v539_v41 }
  0xdc   : > { %657 = vst [vmem:[%s1244_s9 + $0xa8] sm:$0xff] %v1403_v43 }
  0xdd   : > { %v794_v31 = vadd.f32 %v793_v25, %v747_v3 }
  0xdf   : > { %v598_v13 = vpop.f32.mrf.mxu2 }
  0xe0   : > { %v541_v2 = vpop.f32.mrf.mxu0  ;;  %v571_v5 = vpop.f32.mrf.mxu1  ;;  %v1436_v17 = vadd.f32 %v1239_v26, %v598_v13  ;;  %v753_v13 = vmul.f32 %v1290_v46, %v1290_v46 }
  0xe1   : > { %v542_v51 = vadd.f32 %v1239_v26, %v541_v2  ;;  %v1430_v9 = vadd.f32 %v1239_v26, %v571_v5 }
  0xe2   : > { %669 = vst [vmem:[%s1244_s9 + $0x108] sm:$0xff] %v1436_v17 }
  0xe3   : > { %646 = vst [vmem:[%s1244_s9 + $0x50] sm:$0xff] %v542_v51  ;;  %v748_v28 = vmul.f32 %v542_v51, %v542_v51  ;;  %v693_v11 = vadd.f32 %v692_v27, %v542_v51  ;;  %v1491_v27 = vadd.f32 %v1239_v26, %v626_v6 }
  0xe4   : > { %658 = vst [vmem:[%s1244_s9 + $0xb0] sm:$0xff] %v1430_v9 }
  0xe5   : > { %v795_v41 = vadd.f32 %v794_v31, %v748_v28  ;;  %v628_v28 = vpop.f32.mrf.mxu3  ;;  %680 = vst [vmem:[%s1244_s9 + $0x160] sm:$0xff] %v1491_v27 }
  0xe6   : > { %v1494_v31 = vadd.f32 %v1239_v26, %v628_v28 }
  0xe7   : > { %v601_v29 = vpop.f32.mrf.mxu2 }
  0xe8   : > { %v543_v32 = vpop.f32.mrf.mxu0  ;;  %v573_v35 = vpop.f32.mrf.mxu1  ;;  %681 = vst [vmem:[%s1244_s9 + $0x168] sm:$0xff] %v1494_v31 }
  0xe9   : > { %v544_v37 = vadd.f32 %v1239_v26, %v543_v32  ;;  %v574_v38 = vadd.f32 %v1239_v26, %v573_v35 }
  0xeb   : > { %647 = vst [vmem:[%s1244_s9 + $0x58] sm:$0xff] %v544_v37  ;;  %v694_v49 = vadd.f32 %v693_v11, %v544_v37  ;;  %v749_v39 = vmul.f32 %v544_v37, %v544_v37 }
  0xec   : > { %659 = vst [vmem:[%s1244_s9 + $0xb8] sm:$0xff] %v574_v38 }
  0xed   : > { %v695_v54 = vadd.f32 %v694_v49, %v1250_v30  ;;  %v796_v57 = vadd.f32 %v795_v41, %v749_v39  ;;  %v1469_v30 = vadd.f32 %v1239_v26, %v601_v29  ;;  %v759_v29 = vmul.f32 %v1403_v43, %v1403_v43  ;;  %v631_v39 = vpop.f32.mrf.mxu3 }
  0xee   : > { %v760_v49 = vmul.f32 %v1430_v9, %v1430_v9 }
  0xef   : > { %v696_v61 = vadd.f32 %v695_v54, %v1260_v34  ;;  %v797_v45 = vadd.f32 %v796_v57, %v750_v53  ;;  %v603_v5 = vpop.f32.mrf.mxu2  ;;  %670 = vst [vmem:[%s1244_s9 + $0x110] sm:$0xff] %v1469_v30  ;;  %v761_v57 = vmul.f32 %v574_v38, %v574_v38 }
  0xf0   : > { %v1472_v51 = vadd.f32 %v1239_v26, %v603_v5 }
  0xf1   : > { %v697_v1 = vadd.f32 %v696_v61, %v1275_v40  ;;  %v798_v2 = vadd.f32 %v797_v45, %v751_v58  ;;  %v754_v40 = vmul.f32 %v1305_v52, %v1305_v52 }
  0xf2   : > { %671 = vst [vmem:[%s1244_s9 + $0x118] sm:$0xff] %v1472_v51 }
  0xf3   : > { %v698_v34 = vadd.f32 %v697_v1, %v1290_v46  ;;  %v799_v14 = vadd.f32 %v798_v2, %v752_v62  ;;  %v756_v46 = vmul.f32 %v1345_v4, %v1345_v4  ;;  %v1522_v2 = vadd.f32 %v1239_v26, %v631_v39 }
  0xf5   : > { %v800_v59 = vadd.f32 %v799_v14, %v753_v13  ;;  %v699_v16 = vadd.f32 %v698_v34, %v1305_v52  ;;  %v757_v52 = vmul.f32 %v1363_v12, %v1363_v12  ;;  %v633_v5 = vpop.f32.mrf.mxu3  ;;  %682 = vst [vmem:[%s1244_s9 + $0x170] sm:$0xff] %v1522_v2 }
  0xf6   : > { %v1525_v6 = vadd.f32 %v1239_v26, %v633_v5  ;;  %v767_v26 = vmul.f32 %v1348_v7, %v1348_v7 }
  0xf7   : > { %v700_v22 = vadd.f32 %v699_v16, %v1325_v60  ;;  %v801_v3 = vadd.f32 %v800_v59, %v754_v40 }
  0xf8   : > { %683 = vst [vmem:[%s1244_s9 + $0x178] sm:$0xff] %v1525_v6 }
  0xf9   : > { %v701_v24 = vadd.f32 %v700_v22, %v1345_v4  ;;  %v802_v25 = vadd.f32 %v801_v3, %v755_v21  ;;  %v758_v4 = vmul.f32 %v1375_v19, %v1375_v19  ;;  %v769_v22 = vmul.f32 %v1381_v23, %v1381_v23 }
  0xfb   : > { %v702_v32 = vadd.f32 %v701_v24, %v1363_v12  ;;  %v803_v60 = vadd.f32 %v802_v25, %v756_v46  ;;  %v770_v24 = vmul.f32 %v1433_v10, %v1433_v10 }
  0xfd   : > { %v703_v35 = vadd.f32 %v702_v32, %v1375_v19  ;;  %v804_v11 = vadd.f32 %v803_v60, %v757_v52  ;;  %v762_v19 = vmul.f32 %v1267_v36, %v1267_v36  ;;  %v771_v52 = vmul.f32 %v1436_v17, %v1436_v17 }
  0xfe   : > { %v772_v60 = vmul.f32 %v1469_v30, %v1469_v30 }
  0xff   : > { %v704_v37 = vadd.f32 %v703_v35, %v1403_v43  ;;  %v805_v33 = vadd.f32 %v804_v11, %v758_v4  ;;  %v763_v43 = vmul.f32 %v1278_v42, %v1278_v42  ;;  %v773_v35 = vmul.f32 %v1472_v51, %v1472_v51 }
 0x101   : > { %v806_v41 = vadd.f32 %v805_v33, %v759_v29  ;;  %v705_v12 = vadd.f32 %v704_v37, %v1430_v9  ;;  %v764_v9 = vmul.f32 %v1297_v48, %v1297_v48 }
 0x103   : > { %v807_v53 = vadd.f32 %v806_v41, %v760_v49  ;;  %v706_v54 = vadd.f32 %v705_v12, %v574_v38 }
 0x105   : > { %v707_v58 = vadd.f32 %v706_v54, %v1267_v36  ;;  %v808_v61 = vadd.f32 %v807_v53, %v761_v57  ;;  %v765_v36 = vmul.f32 %v1308_v55, %v1308_v55 }
 0x107   : > { %v708_v45 = vadd.f32 %v707_v58, %v1278_v42  ;;  %v809_v62 = vadd.f32 %v808_v61, %v762_v19 }
 0x109   : > { %v709_v1 = vadd.f32 %v708_v45, %v1297_v48  ;;  %v810_v38 = vadd.f32 %v809_v62, %v763_v43  ;;  %v766_v48 = vmul.f32 %v1335_v0, %v1335_v0  ;;  %v782_v62 = vmul.f32 %v1491_v27, %v1491_v27 }
 0x10b   : > { %v710_v13 = vadd.f32 %v709_v1, %v1308_v55  ;;  %v811_v42 = vadd.f32 %v810_v38, %v764_v9  ;;  %v768_v55 = vmul.f32 %v1378_v20, %v1378_v20 }
 0x10d   : > { %v812_v34 = vadd.f32 %v811_v42, %v765_v36  ;;  %v711_v14 = vadd.f32 %v710_v13, %v1335_v0 }
 0x10f   : > { %v712_v40 = vadd.f32 %v711_v14, %v1348_v7  ;;  %v813_v59 = vadd.f32 %v812_v34, %v766_v48 }
 0x111   : > { %v713_v16 = vadd.f32 %v712_v40, %v1378_v20  ;;  %v814_v21 = vadd.f32 %v813_v59, %v767_v26 }
 0x113   : > { %v714_v3 = vadd.f32 %v713_v16, %v1381_v23  ;;  %v815_v46 = vadd.f32 %v814_v21, %v768_v55 }
 0x115   : > { %v715_v0 = vadd.f32 %v714_v3, %v1433_v10  ;;  %v816_v25 = vadd.f32 %v815_v46, %v769_v22  ;;  %v774_v10 = vmul.f32 %v1317_v56, %v1317_v56 }
 0x117   : > { %v817_v7 = vadd.f32 %v816_v25, %v770_v24  ;;  %v716_v28 = vadd.f32 %v715_v0, %v1436_v17  ;;  %v775_v17 = vmul.f32 %v1328_v63, %v1328_v63 }
 0x119   : > { %v818_v20 = vadd.f32 %v817_v7, %v771_v52  ;;  %v717_v32 = vadd.f32 %v716_v28, %v1469_v30  ;;  %v776_v30 = vmul.f32 %v1357_v8, %v1357_v8 }
 0x11b   : > { %v819_v23 = vadd.f32 %v818_v20, %v772_v60  ;;  %v718_v4 = vadd.f32 %v717_v32, %v1472_v51  ;;  %v777_v51 = vmul.f32 %v1366_v15, %v1366_v15 }
 0x11d   : > { %v719_v11 = vadd.f32 %v718_v4, %v1317_v56  ;;  %v820_v37 = vadd.f32 %v819_v23, %v773_v35  ;;  %v778_v56 = vmul.f32 %v1406_v44, %v1406_v44 }
 0x11f   : > { %v720_v29 = vadd.f32 %v719_v11, %v1328_v63  ;;  %v821_v33 = vadd.f32 %v820_v37, %v774_v10  ;;  %v779_v63 = vmul.f32 %v1411_v50, %v1411_v50 }
 0x121   : > { %v721_v41 = vadd.f32 %v720_v29, %v1357_v8  ;;  %v822_v12 = vadd.f32 %v821_v33, %v775_v17  ;;  %v780_v8 = vmul.f32 %v1448_v18, %v1448_v18 }
 0x123   : > { %v722_v49 = vadd.f32 %v721_v41, %v1366_v15  ;;  %v823_v39 = vadd.f32 %v822_v12, %v776_v30  ;;  %v781_v15 = vmul.f32 %v1451_v47, %v1451_v47 }
 0x125   : > { %v824_v53 = vadd.f32 %v823_v39, %v777_v51  ;;  %v723_v54 = vadd.f32 %v722_v49, %v1406_v44 }
 0x127   : > { %v724_v57 = vadd.f32 %v723_v54, %v1411_v50  ;;  %v825_v19 = vadd.f32 %v824_v53, %v778_v56 }
 0x129   : > { %v725_v58 = vadd.f32 %v724_v57, %v1448_v18  ;;  %v826_v61 = vadd.f32 %v825_v19, %v779_v63  ;;  %v783_v18 = vmul.f32 %v1494_v31, %v1494_v31 }
 0x12b   : > { %v726_v43 = vadd.f32 %v725_v58, %v1451_v47  ;;  %v827_v45 = vadd.f32 %v826_v61, %v780_v8  ;;  %v784_v47 = vmul.f32 %v1522_v2, %v1522_v2 }
 0x12d   : > { %v727_v44 = vadd.f32 %v726_v43, %v1491_v27  ;;  %v828_v50 = vadd.f32 %v827_v45, %v781_v15  ;;  %v785_v27 = vmul.f32 %v1525_v6, %v1525_v6 }
 0x12f   : > { %v829_v9 = vadd.f32 %v828_v50, %v782_v62  ;;  %v728_v1 = vadd.f32 %v727_v44, %v1494_v31 }
 0x131   : > { %v830_v38 = vadd.f32 %v829_v9, %v783_v18  ;;  %v729_v5 = vadd.f32 %v728_v1, %v1522_v2 }
 0x133   : > { %v831_v36 = vadd.f32 %v830_v38, %v784_v47  ;;  %v730_v13 = vadd.f32 %v729_v5, %v1525_v6 }
 0x135   : > { %v731_v42 = vrot.slane %v730_v13, 4  ;;  %v832_v48 = vadd.f32 %v831_v36, %v785_v27 }
 0x137   : > { %v732_v34 = vadd.f32 %v731_v42, %v730_v13  ;;  %v833_v14 = vrot.slane %v832_v48, 4 }
 0x139   : > { %v733_v26 = vrot.slane %v732_v34, 2  ;;  %v834_v40 = vadd.f32 %v833_v14, %v832_v48 }
 0x13b   : > { %v734_v31 = vadd.f32 %v733_v26, %v732_v34  ;;  %v835_v59 = vrot.slane %v834_v40, 2 }
 0x13d   : > { %v735_v55 = vrot.slane %v734_v31, 1  ;;  %v836_v16 = vadd.f32 %v835_v59, %v834_v40 }
 0x13f   : > { %v736_v2 = vadd.f32 %v735_v55, %v734_v31  ;;  %v837_v21 = vrot.slane %v836_v16, 1 }
 0x141   : > { %737 = vst [vmem:[%s241_s12] sm:$0x1] %v736_v2  ;;  %v838_v6 = vadd.f32 %v837_v21, %v836_v16 }
 0x143   : > { %839 = vst [vmem:[%s244_s15] sm:$0x1] %v838_v6 }
 0x144 PF: > { %s16_s18 = sadd.s32 1, %s1130_s18  }
 0x145   : > { %p13_p5 = scmp.ge.s32.totalorder %s16_s18, 5  }
 0x147   :  { %15 = sbr.rel (!%p13_p5) target bundleno = 1 (0x1), region = 86 }

// kernel: net_forward.6
= control target key start
LH: loop header
LB: loop body
LE: loop exit
PB: predicated region body
PF: predicated region fallthrough
CT: control target
= control target key end

     0   :  { %s645_s12 = smov 0   ;;  %s1009_s0 = inlined_call_operand.vmem [shape: f32[1152,128], index: 0, kind: input, shape index: {}]   ;;  %s1010_s1 = inlined_call_operand.vmem [shape: f32[1,128], index: 1, kind: input, shape index: {}]   ;;  %s1011_s2 = inlined_call_operand.vmem [shape: f32[1,128], index: 2, kind: input, shape index: {}]   ;;  %s1012_s3 = inlined_call_operand.vmem [shape: f32[1152,128], index: 3, kind: output, shape index: {}]  }
   0x1 LB: > { %s598_s13 = sadd.s32 4294967295, %s623_s12   ;;  %p602_p0 = scmp.ge.s32.totalorder %s623_s12, 1  ;;  %s623_s12 = sphi %s645_s12, %s13_s12  }
   0x2   : > { %p138_p1 = scmp.lt.s32.totalorder %s623_s12, 3 }
   0x4   : > { %p139_p2 = pnand %p602_p0, %p138_p1 }
   0x5   : > { %s162_s14 = smul.u32 (!%p139_p2), 72, %s598_s13 }
   0x6   : > { %142 = sbr.rel (%p139_p2) target bundleno = 93 (0x5d), region = 32 }
   0x7   : > { %p163_p3 = scmp.lt.s32.totalorder (!%p139_p2), %s162_s14, 143 }
   0xb   : > { %s1014_s14 = smov (!%p163_p3, %s162_s14), 143  ;;  %v656_v0 = vld [vmem:[%s1010_s1] ss:$0 sm:$0xff] }
   0xc   : > { %s603_s17 = sshll.u32 %s1014_s14, 3  ;;  %v666_v1 = vld [vmem:[%s1011_s2] ss:$0 sm:$0xff] }
   0xd   : > { %s661_s20 = scalar_lea.vmem %s1009_s0, %s603_s17  ;;  %s689_s25 = scalar_lea.vmem %s1012_s3, %s603_s17 }
   0xe   : > { %v174_v2 = vld [vmem:[%s661_s20] sm:$0xff]  ;;  %v175_v3 = vld [vmem:[%s661_s20 + $0x8] sm:$0xff]  ;;  %v176_v4 = vld [vmem:[%s661_s20 + $0x10] sm:$0xff] }
   0xf   : > { %v250_v5 = vmul.f32 %v656_v0, %v174_v2  ;;  %v251_v6 = vmul.f32 %v656_v0, %v175_v3  ;;  %v252_v7 = vmul.f32 %v656_v0, %v176_v4  ;;  %v177_v8 = vld [vmem:[%s661_s20 + $0x18] sm:$0xff]  ;;  %v178_v9 = vld [vmem:[%s661_s20 + $0x20] sm:$0xff]  ;;  %v179_v10 = vld [vmem:[%s661_s20 + $0x28] sm:$0xff] }
  0x10   : > { %v253_v11 = vmul.f32 %v656_v0, %v177_v8  ;;  %v254_v12 = vmul.f32 %v656_v0, %v178_v9  ;;  %v255_v13 = vmul.f32 %v656_v0, %v179_v10  ;;  %v180_v14 = vld [vmem:[%s661_s20 + $0x30] sm:$0xff]  ;;  %v181_v15 = vld [vmem:[%s661_s20 + $0x38] sm:$0xff]  ;;  %v182_v24 = vld [vmem:[%s661_s20 + $0x40] sm:$0xff] }
  0x11   : > { %v326_v16 = vadd.f32 %v666_v1, %v250_v5  ;;  %v327_v17 = vadd.f32 %v666_v1, %v251_v6  ;;  %v328_v18 = vadd.f32 %v666_v1, %v252_v7  ;;  %v256_v19 = vmul.f32 %v656_v0, %v180_v14  ;;  %v183_v25 = vld [vmem:[%s661_s20 + $0x48] sm:$0xff]  ;;  %v184_v26 = vld [vmem:[%s661_s20 + $0x50] sm:$0xff]  ;;  %v185_v31 = vld [vmem:[%s661_s20 + $0x58] sm:$0xff] }
  0x12   : > { %v329_v20 = vadd.f32 %v666_v1, %v253_v11  ;;  %v330_v21 = vadd.f32 %v666_v1, %v254_v12  ;;  %v331_v22 = vadd.f32 %v666_v1, %v255_v13  ;;  %v257_v23 = vmul.f32 %v656_v0, %v181_v15  ;;  %v186_v32 = vld [vmem:[%s661_s20 + $0x60] sm:$0xff]  ;;  %v187_v33 = vld [vmem:[%s661_s20 + $0x68] sm:$0xff]  ;;  %v188_v37 = vld [vmem:[%s661_s20 + $0x70] sm:$0xff] }
  0x13   : > { %v398_v27 = vmax.f32 %v326_v16, 0.0  ;;  %v399_v28 = vmax.f32 %v327_v17, 0.0  ;;  %v400_v29 = vmax.f32 %v328_v18, 0.0  ;;  %v332_v30 = vadd.f32 %v666_v1, %v256_v19  ;;  %v189_v42 = vld [vmem:[%s661_s20 + $0x78] sm:$0xff]  ;;  %v190_v54 = vld [vmem:[%s661_s20 + $0x80] sm:$0xff]  ;;  %v191_v55 = vld [vmem:[%s661_s20 + $0x88] sm:$0xff] }
  0x14   : > { %v401_v34 = vmax.f32 %v329_v20, 0.0  ;;  %v402_v35 = vmax.f32 %v330_v21, 0.0  ;;  %v333_v36 = vadd.f32 %v666_v1, %v257_v23  ;;  %v403_v38 = vmax.f32 %v331_v22, 0.0  ;;  %v192_v56 = vld [vmem:[%s661_s20 + $0x90] sm:$0xff]  ;;  %v193_v59 = vld [vmem:[%s661_s20 + $0x98] sm:$0xff]  ;;  %v194_v63 = vld [vmem:[%s661_s20 + $0xa0] sm:$0xff] }
  0x15   : > { %470 = vst [vmem:[%s689_s25] sm:$0xff] %v398_v27  ;;  %v258_v39 = vmul.f32 %v656_v0, %v182_v24  ;;  %v259_v40 = vmul.f32 %v656_v0, %v183_v25  ;;  %v260_v41 = vmul.f32 %v656_v0, %v184_v26  ;;  %v404_v43 = vmax.f32 %v332_v30, 0.0  ;;  %v195_v6 = vld [vmem:[%s661_s20 + $0xa8] sm:$0xff]  ;;  %v196_v10 = vld [vmem:[%s661_s20 + $0xb0] sm:$0xff]  ;;  %v197_v14 = vld [vmem:[%s661_s20 + $0xb8] sm:$0xff] }
  0x16   : > { %471 = vst [vmem:[%s689_s25 + $0x8] sm:$0xff] %v399_v28  ;;  %v261_v44 = vmul.f32 %v656_v0, %v185_v31  ;;  %v262_v45 = vmul.f32 %v656_v0, %v186_v32  ;;  %v263_v46 = vmul.f32 %v656_v0, %v187_v33  ;;  %v264_v50 = vmul.f32 %v656_v0, %v188_v37  ;;  %v198_v18 = vld [vmem:[%s661_s20 + $0xc0] sm:$0xff]  ;;  %v199_v22 = vld [vmem:[%s661_s20 + $0xc8] sm:$0xff]  ;;  %v200_v26 = vld [vmem:[%s661_s20 + $0xd0] sm:$0xff] }
  0x17   : > { %472 = vst [vmem:[%s689_s25 + $0x10] sm:$0xff] %v400_v29  ;;  %v334_v47 = vadd.f32 %v666_v1, %v258_v39  ;;  %v335_v48 = vadd.f32 %v666_v1, %v259_v40  ;;  %v336_v49 = vadd.f32 %v666_v1, %v260_v41  ;;  %v405_v51 = vmax.f32 %v333_v36, 0.0  ;;  %v201_v30 = vld [vmem:[%s661_s20 + $0xd8] sm:$0xff] }
  0x18   : > { %473 = vst [vmem:[%s689_s25 + $0x18] sm:$0xff] %v401_v34  ;;  %v337_v52 = vadd.f32 %v666_v1, %v261_v44  ;;  %v265_v53 = vmul.f32 %v656_v0, %v189_v42  ;;  %v338_v58 = vadd.f32 %v666_v1, %v262_v45  ;;  %v339_v62 = vadd.f32 %v666_v1, %v263_v46  ;;  %v202_v34 = vld [vmem:[%s661_s20 + $0xe0] sm:$0xff]  ;;  %v204_v42 = vld [vmem:[%s661_s20 + $0xf0] sm:$0xff]  ;;  %v205_v46 = vld [vmem:[%s661_s20 + $0xf8] sm:$0xff] }
  0x19   : > { %474 = vst [vmem:[%s689_s25 + $0x20] sm:$0xff] %v402_v35  ;;  %v406_v57 = vmax.f32 %v334_v47, 0.0  ;;  %v407_v60 = vmax.f32 %v335_v48, 0.0  ;;  %v408_v61 = vmax.f32 %v336_v49, 0.0  ;;  %v340_v2 = vadd.f32 %v666_v1, %v264_v50  ;;  %v206_v50 = vld [vmem:[%s661_s20 + $0x100] sm:$0xff] }
  0x1a   : > { %475 = vst [vmem:[%s689_s25 + $0x28] sm:$0xff] %v403_v38  ;;  %v266_v3 = vmul.f32 %v656_v0, %v190_v54  ;;  %v267_v4 = vmul.f32 %v656_v0, %v191_v55  ;;  %v268_v5 = vmul.f32 %v656_v0, %v192_v56  ;;  %v409_v7 = vmax.f32 %v337_v52, 0.0  ;;  %v203_v38 = vld [vmem:[%s661_s20 + $0xe8] sm:$0xff]  ;;  %v208_v55 = vld [vmem:[%s661_s20 + $0x110] sm:$0xff] }
  0x1b   : > { %476 = vst [vmem:[%s689_s25 + $0x30] sm:$0xff] %v404_v43  ;;  %v341_v8 = vadd.f32 %v666_v1, %v265_v53  ;;  %v269_v9 = vmul.f32 %v656_v0, %v193_v59  ;;  %v410_v11 = vmax.f32 %v338_v58, 0.0  ;;  %v270_v13 = vmul.f32 %v656_v0, %v194_v63  ;;  %v207_v54 = vld [vmem:[%s661_s20 + $0x108] sm:$0xff] }
  0x1c   : > { %477 = vst [vmem:[%s689_s25 + $0x38] sm:$0xff] %v405_v51  ;;  %v342_v12 = vadd.f32 %v666_v1, %v266_v3  ;;  %v411_v15 = vmax.f32 %v339_v62, 0.0  ;;  %v343_v16 = vadd.f32 %v666_v1, %v267_v4  ;;  %v271_v17 = vmul.f32 %v656_v0, %v195_v6  ;;  %v209_v62 = vld [vmem:[%s661_s20 + $0x118] sm:$0xff]  ;;  %v211_v6 = vld [vmem:[%s661_s20 + $0x128] sm:$0xff] }
  0x1d   : > { %478 = vst [vmem:[%s689_s25 + $0x40] sm:$0xff] %v406_v57  ;;  %v412_v19 = vmax.f32 %v340_v2, 0.0  ;;  %v344_v20 = vadd.f32 %v666_v1, %v268_v5  ;;  %v272_v21 = vmul.f32 %v656_v0, %v196_v10  ;;  %v413_v23 = vmax.f32 %v341_v8, 0.0  ;;  %v210_v5 = vld [vmem:[%s661_s20 + $0x120] sm:$0xff] }
  0x1e   : > { %479 = vst [vmem:[%s689_s25 + $0x48] sm:$0xff] %v407_v60  ;;  %v345_v24 = vadd.f32 %v666_v1, %v269_v9  ;;  %v273_v25 = vmul.f32 %v656_v0, %v197_v14  ;;  %v414_v27 = vmax.f32 %v342_v12, 0.0  ;;  %v346_v28 = vadd.f32 %v666_v1, %v270_v13  ;;  %v212_v9 = vld [vmem:[%s661_s20 + $0x130] sm:$0xff] }
  0x1f   : > { %480 = vst [vmem:[%s689_s25 + $0x50] sm:$0xff] %v408_v61  ;;  %v274_v29 = vmul.f32 %v656_v0, %v198_v18  ;;  %v415_v31 = vmax.f32 %v343_v16, 0.0  ;;  %v347_v32 = vadd.f32 %v666_v1, %v271_v17  ;;  %v275_v33 = vmul.f32 %v656_v0, %v199_v22  ;;  %v213_v17 = vld [vmem:[%s661_s20 + $0x138] sm:$0xff]  ;;  %v214_v22 = vld [vmem:[%s661_s20 + $0x140] sm:$0xff] }
  0x20   : > { %481 = vst [vmem:[%s689_s25 + $0x58] sm:$0xff] %v409_v7  ;;  %v416_v35 = vmax.f32 %v344_v20, 0.0  ;;  %v348_v36 = vadd.f32 %v666_v1, %v272_v21  ;;  %v276_v37 = vmul.f32 %v656_v0, %v200_v26  ;;  %v417_v39 = vmax.f32 %v345_v24, 0.0  ;;  %v215_v24 = vld [vmem:[%s661_s20 + $0x148] sm:$0xff] }
  0x21   : > { %482 = vst [vmem:[%s689_s25 + $0x60] sm:$0xff] %v410_v11  ;;  %v349_v40 = vadd.f32 %v666_v1, %v273_v25  ;;  %v277_v41 = vmul.f32 %v656_v0, %v201_v30  ;;  %v418_v43 = vmax.f32 %v346_v28, 0.0  ;;  %v350_v44 = vadd.f32 %v666_v1, %v274_v29  ;;  %v216_v25 = vld [vmem:[%s661_s20 + $0x150] sm:$0xff]  ;;  %v217_v29 = vld [vmem:[%s661_s20 + $0x158] sm:$0xff]  ;;  %v218_v30 = vld [vmem:[%s661_s20 + $0x160] sm:$0xff] }
  0x22   : > { %483 = vst [vmem:[%s689_s25 + $0x68] sm:$0xff] %v411_v15  ;;  %v278_v45 = vmul.f32 %v656_v0, %v202_v34  ;;  %v419_v47 = vmax.f32 %v347_v32, 0.0  ;;  %v351_v48 = vadd.f32 %v666_v1, %v275_v33  ;;  %v279_v49 = vmul.f32 %v656_v0, %v203_v38 }
  0x23   : > { %484 = vst [vmem:[%s689_s25 + $0x70] sm:$0xff] %v412_v19  ;;  %v420_v51 = vmax.f32 %v348_v36, 0.0  ;;  %v352_v52 = vadd.f32 %v666_v1, %v276_v37  ;;  %v280_v53 = vmul.f32 %v656_v0, %v204_v42  ;;  %v421_v56 = vmax.f32 %v349_v40, 0.0  ;;  %v220_v36 = vld [vmem:[%s661_s20 + $0x170] sm:$0xff]  ;;  %v221_v37 = vld [vmem:[%s661_s20 + $0x178] sm:$0xff] }
  0x24   : > { %485 = vst [vmem:[%s689_s25 + $0x78] sm:$0xff] %v413_v23  ;;  %v353_v57 = vadd.f32 %v666_v1, %v277_v41  ;;  %v281_v58 = vmul.f32 %v656_v0, %v205_v46  ;;  %v422_v59 = vmax.f32 %v350_v44, 0.0  ;;  %v354_v60 = vadd.f32 %v666_v1, %v278_v45  ;;  %v222_v46 = vld [vmem:[%s661_s20 + $0x180] sm:$0xff] }
  0x25   : > { %486 = vst [vmem:[%s689_s25 + $0x80] sm:$0xff] %v414_v27  ;;  %v282_v61 = vmul.f32 %v656_v0, %v206_v50  ;;  %v423_v63 = vmax.f32 %v351_v48, 0.0  ;;  %v355_v2 = vadd.f32 %v666_v1, %v279_v49  ;;  %v283_v3 = vmul.f32 %v656_v0, %v207_v54 }
  0x26   : > { %487 = vst [vmem:[%s689_s25 + $0x88] sm:$0xff] %v415_v31  ;;  %v284_v4 = vmul.f32 %v656_v0, %v208_v55  ;;  %v424_v7 = vmax.f32 %v352_v52, 0.0  ;;  %v356_v8 = vadd.f32 %v666_v1, %v280_v53  ;;  %v425_v10 = vmax.f32 %v353_v57, 0.0  ;;  %v219_v31 = vld [vmem:[%s661_s20 + $0x168] sm:$0xff]  ;;  %v224_v55 = vld [vmem:[%s661_s20 + $0x190] sm:$0xff] }
  0x27   : > { %488 = vst [vmem:[%s689_s25 + $0x90] sm:$0xff] %v416_v35  ;;  %v357_v11 = vadd.f32 %v666_v1, %v281_v58  ;;  %v285_v12 = vmul.f32 %v656_v0, %v209_v62  ;;  %v426_v13 = vmax.f32 %v354_v60, 0.0  ;;  %v358_v14 = vadd.f32 %v666_v1, %v282_v61  ;;  %v225_v60 = vld [vmem:[%s661_s20 + $0x198] sm:$0xff]  ;;  %v226_v61 = vld [vmem:[%s661_s20 + $0x1a0] sm:$0xff]  ;;  %v227_v62 = vld [vmem:[%s661_s20 + $0x1a8] sm:$0xff] }
  0x28   : > { %489 = vst [vmem:[%s689_s25 + $0x98] sm:$0xff] %v417_v39  ;;  %v286_v15 = vmul.f32 %v656_v0, %v210_v5  ;;  %v287_v16 = vmul.f32 %v656_v0, %v211_v6  ;;  %v427_v18 = vmax.f32 %v355_v2, 0.0  ;;  %v359_v19 = vadd.f32 %v666_v1, %v283_v3 }
  0x29   : > { %490 = vst [vmem:[%s689_s25 + $0xa0] sm:$0xff] %v418_v43  ;;  %v360_v20 = vadd.f32 %v666_v1, %v284_v4  ;;  %v288_v21 = vmul.f32 %v656_v0, %v212_v9  ;;  %v428_v23 = vmax.f32 %v356_v8, 0.0  ;;  %v429_v26 = vmax.f32 %v357_v11, 0.0 }
  0x2a   : > { %491 = vst [vmem:[%s689_s25 + $0xa8] sm:$0xff] %v419_v47  ;;  %v361_v27 = vadd.f32 %v666_v1, %v285_v12  ;;  %v289_v28 = vmul.f32 %v656_v0, %v213_v17  ;;  %v430_v32 = vmax.f32 %v358_v14, 0.0  ;;  %v362_v33 = vadd.f32 %v666_v1, %v286_v15  ;;  %v223_v47 = vld [vmem:[%s661_s20 + $0x188] sm:$0xff]  ;;  %v228_v17 = vld [vmem:[%s661_s20 + $0x1b0] sm:$0xff] }
  0x2b   : > { %492 = vst [vmem:[%s689_s25 + $0xb0] sm:$0xff] %v420_v51  ;;  %v363_v34 = vadd.f32 %v666_v1, %v287_v16  ;;  %v290_v35 = vmul.f32 %v656_v0, %v214_v22  ;;  %v431_v38 = vmax.f32 %v359_v19, 0.0  ;;  %v432_v39 = vmax.f32 %v360_v20, 0.0  ;;  %v230_v19 = vld [vmem:[%s661_s20 + $0x1c0] sm:$0xff] }
  0x2c   : > { %493 = vst [vmem:[%s689_s25 + $0xb8] sm:$0xff] %v421_v56  ;;  %v364_v40 = vadd.f32 %v666_v1, %v288_v21  ;;  %v291_v41 = vmul.f32 %v656_v0, %v215_v24  ;;  %v292_v42 = vmul.f32 %v656_v0, %v216_v25  ;;  %v293_v43 = vmul.f32 %v656_v0, %v217_v29  ;;  %v231_v24 = vld [vmem:[%s661_s20 + $0x1c8] sm:$0xff]  ;;  %v238_v29 = vld [vmem:[%s661_s20 + $0x200] sm:$0xff] }
  0x2d   : > { %494 = vst [vmem:[%s689_s25 + $0xc0] sm:$0xff] %v422_v59  ;;  %v294_v44 = vmul.f32 %v656_v0, %v218_v30  ;;  %v295_v45 = vmul.f32 %v656_v0, %v219_v31  ;;  %v433_v48 = vmax.f32 %v361_v27, 0.0  ;;  %v365_v49 = vadd.f32 %v666_v1, %v289_v28  ;;  %v239_v30 = vld [vmem:[%s661_s20 + $0x208] sm:$0xff]  ;;  %v240_v31 = vld [vmem:[%s661_s20 + $0x210] sm:$0xff] }
  0x2e   : > { %495 = vst [vmem:[%s689_s25 + $0xc8] sm:$0xff] %v423_v63  ;;  %v296_v50 = vmul.f32 %v656_v0, %v220_v36  ;;  %v297_v51 = vmul.f32 %v656_v0, %v221_v37  ;;  %v434_v52 = vmax.f32 %v362_v33, 0.0  ;;  %v435_v53 = vmax.f32 %v363_v34, 0.0  ;;  %v241_v36 = vld [vmem:[%s661_s20 + $0x218] sm:$0xff]  ;;  %v242_v37 = vld [vmem:[%s661_s20 + $0x220] sm:$0xff] }
  0x2f   : > { %496 = vst [vmem:[%s689_s25 + $0xd0] sm:$0xff] %v424_v7  ;;  %v366_v54 = vadd.f32 %v666_v1, %v290_v35  ;;  %v436_v56 = vmax.f32 %v364_v40, 0.0  ;;  %v367_v57 = vadd.f32 %v666_v1, %v291_v41  ;;  %v298_v58 = vmul.f32 %v656_v0, %v222_v46 }
  0x30   : > { %497 = vst [vmem:[%s689_s25 + $0xd8] sm:$0xff] %v425_v10  ;;  %v299_v59 = vmul.f32 %v656_v0, %v223_v47  ;;  %v368_v63 = vadd.f32 %v666_v1, %v292_v42  ;;  %v369_v2 = vadd.f32 %v666_v1, %v293_v43  ;;  %v370_v3 = vadd.f32 %v666_v1, %v294_v44  ;;  %v244_v43 = vld [vmem:[%s661_s20 + $0x230] sm:$0xff] }
  0x31   : > { %498 = vst [vmem:[%s689_s25 + $0xe0] sm:$0xff] %v426_v13  ;;  %v858_v4 = vadd.f32 %v666_v1, %v295_v45  ;;  %v437_v5 = vmax.f32 %v365_v49, 0.0  ;;  %v862_v6 = vadd.f32 %v666_v1, %v296_v50  ;;  %v865_v7 = vadd.f32 %v666_v1, %v297_v51  ;;  %v237_v13 = vld [vmem:[%s661_s20 + $0x1f8] sm:$0xff]  ;;  %v232_v50 = vld [vmem:[%s661_s20 + $0x1d0] sm:$0xff] }
  0x32   : > { %499 = vst [vmem:[%s689_s25 + $0xe8] sm:$0xff] %v427_v18  ;;  %v300_v8 = vmul.f32 %v656_v0, %v224_v55  ;;  %v438_v9 = vmax.f32 %v366_v54, 0.0  ;;  %v301_v10 = vmul.f32 %v656_v0, %v225_v60  ;;  %v302_v11 = vmul.f32 %v656_v0, %v226_v61  ;;  %v229_v18 = vld [vmem:[%s661_s20 + $0x1b8] sm:$0xff] }
  0x33   : > { %500 = vst [vmem:[%s689_s25 + $0xf0] sm:$0xff] %v428_v23  ;;  %v303_v12 = vmul.f32 %v656_v0, %v227_v62  ;;  %v439_v14 = vmax.f32 %v367_v57, 0.0  ;;  %v875_v15 = vadd.f32 %v666_v1, %v298_v58  ;;  %v878_v16 = vadd.f32 %v666_v1, %v299_v59  ;;  %v233_v54 = vld [vmem:[%s661_s20 + $0x1d8] sm:$0xff]  ;;  %v234_v59 = vld [vmem:[%s661_s20 + $0x1e0] sm:$0xff] }
  0x34   : > { %501 = vst [vmem:[%s689_s25 + $0xf8] sm:$0xff] %v429_v26  ;;  %v440_v20 = vmax.f32 %v368_v63, 0.0  ;;  %v441_v21 = vmax.f32 %v369_v2, 0.0  ;;  %v442_v22 = vmax.f32 %v370_v3, 0.0  ;;  %v443_v23 = vmax.f32 %v858_v4, 0.0 }
  0x35   : > { %502 = vst [vmem:[%s689_s25 + $0x100] sm:$0xff] %v430_v32  ;;  %v444_v25 = vmax.f32 %v862_v6, 0.0  ;;  %v445_v26 = vmax.f32 %v865_v7, 0.0  ;;  %v890_v27 = vadd.f32 %v666_v1, %v300_v8  ;;  %v313_v28 = vmul.f32 %v656_v0, %v237_v13 }
  0x36   : > { %503 = vst [vmem:[%s689_s25 + $0x108] sm:$0xff] %v431_v38  ;;  %v377_v32 = vadd.f32 %v666_v1, %v301_v10  ;;  %v899_v33 = vadd.f32 %v666_v1, %v302_v11  ;;  %v902_v34 = vadd.f32 %v666_v1, %v303_v12  ;;  %v304_v35 = vmul.f32 %v656_v0, %v228_v17  ;;  %v243_v38 = vld [vmem:[%s661_s20 + $0x228] sm:$0xff]  ;;  %v236_v10 = vld [vmem:[%s661_s20 + $0x1f0] sm:$0xff] }
  0x37   : > { %504 = vst [vmem:[%s689_s25 + $0x110] sm:$0xff] %v432_v39  ;;  %v446_v39 = vmax.f32 %v875_v15, 0.0  ;;  %v447_v40 = vmax.f32 %v878_v16, 0.0  ;;  %v305_v41 = vmul.f32 %v656_v0, %v229_v18  ;;  %v913_v42 = vadd.f32 %v666_v1, %v313_v28 }
  0x38   : > { %505 = vst [vmem:[%s689_s25 + $0x118] sm:$0xff] %v433_v48  ;;  %v306_v44 = vmul.f32 %v656_v0, %v230_v19  ;;  %v314_v45 = vmul.f32 %v656_v0, %v238_v29  ;;  %v315_v46 = vmul.f32 %v656_v0, %v239_v30  ;;  %v316_v47 = vmul.f32 %v656_v0, %v240_v31  ;;  %v245_v48 = vld [vmem:[%s661_s20 + $0x238] sm:$0xff] }
  0x39   : > { %506 = vst [vmem:[%s689_s25 + $0x120] sm:$0xff] %v434_v52  ;;  %v307_v49 = vmul.f32 %v656_v0, %v231_v24  ;;  %v317_v51 = vmul.f32 %v656_v0, %v241_v36  ;;  %v318_v52 = vmul.f32 %v656_v0, %v242_v37  ;;  %v320_v58 = vmul.f32 %v656_v0, %v244_v43 }
  0x3a   : > { %507 = vst [vmem:[%s689_s25 + $0x128] sm:$0xff] %v435_v53  ;;  %v319_v53 = vmul.f32 %v656_v0, %v243_v38  ;;  %v931_v55 = vadd.f32 %v666_v1, %v314_v45  ;;  %v937_v57 = vadd.f32 %v666_v1, %v316_v47  ;;  %v321_v63 = vmul.f32 %v656_v0, %v245_v48 }
  0x3b   : > { %508 = vst [vmem:[%s689_s25 + $0x130] sm:$0xff] %v436_v56  ;;  %v934_v56 = vadd.f32 %v666_v1, %v315_v46  ;;  %v943_v60 = vadd.f32 %v666_v1, %v317_v51  ;;  %v946_v61 = vadd.f32 %v666_v1, %v318_v52  ;;  %v448_v2 = vmax.f32 %v890_v27, 0.0 }
  0x3c   : > { %509 = vst [vmem:[%s689_s25 + $0x138] sm:$0xff] %v437_v5  ;;  %v949_v62 = vadd.f32 %v666_v1, %v319_v53  ;;  %v380_v3 = vadd.f32 %v666_v1, %v304_v35  ;;  %v308_v4 = vmul.f32 %v656_v0, %v232_v50  ;;  %v235_v5 = vld [vmem:[%s661_s20 + $0x1e8] sm:$0xff]  ;;  %v396_v6 = vadd.f32 %v666_v1, %v320_v58 }
  0x3d   : > { %510 = vst [vmem:[%s689_s25 + $0x140] sm:$0xff] %v438_v9  ;;  %v449_v7 = vmax.f32 %v377_v32, 0.0  ;;  %v381_v8 = vadd.f32 %v666_v1, %v305_v41  ;;  %v309_v9 = vmul.f32 %v656_v0, %v233_v54  ;;  %v397_v11 = vadd.f32 %v666_v1, %v321_v63 }
  0x3e   : > { %511 = vst [vmem:[%s689_s25 + $0x148] sm:$0xff] %v439_v14  ;;  %v450_v12 = vmax.f32 %v899_v33, 0.0  ;;  %v382_v13 = vadd.f32 %v666_v1, %v306_v44  ;;  %v310_v14 = vmul.f32 %v656_v0, %v234_v59  ;;  %v451_v15 = vmax.f32 %v902_v34, 0.0 }
  0x3f   : > { %512 = vst [vmem:[%s689_s25 + $0x150] sm:$0xff] %v440_v20  ;;  %v383_v16 = vadd.f32 %v666_v1, %v307_v49  ;;  %v311_v17 = vmul.f32 %v656_v0, %v235_v5  ;;  %v452_v18 = vmax.f32 %v380_v3, 0.0  ;;  %v384_v19 = vadd.f32 %v666_v1, %v308_v4 }
  0x40   : > { %513 = vst [vmem:[%s689_s25 + $0x158] sm:$0xff] %v441_v21  ;;  %v312_v20 = vmul.f32 %v656_v0, %v236_v10  ;;  %v453_v21 = vmax.f32 %v381_v8, 0.0  ;;  %v386_v24 = vadd.f32 %v666_v1, %v310_v14  ;;  %v461_v32 = vmax.f32 %v913_v42, 0.0 }
  0x41   : > { %514 = vst [vmem:[%s689_s25 + $0x160] sm:$0xff] %v442_v22  ;;  %v385_v22 = vadd.f32 %v666_v1, %v309_v9  ;;  %v456_v27 = vmax.f32 %v384_v19, 0.0  ;;  %v463_v33 = vmax.f32 %v934_v56, 0.0  ;;  %v464_v34 = vmax.f32 %v937_v57, 0.0 }
  0x42   : > { %515 = vst [vmem:[%s689_s25 + $0x168] sm:$0xff] %v443_v23  ;;  %v454_v23 = vmax.f32 %v382_v13, 0.0  ;;  %v388_v0 = vadd.f32 %v666_v1, %v312_v20  ;;  %v458_v29 = vmax.f32 %v386_v24, 0.0  ;;  %v465_v35 = vmax.f32 %v943_v60, 0.0 }
  0x43   : > { %516 = vst [vmem:[%s689_s25 + $0x170] sm:$0xff] %v444_v25  ;;  %v455_v25 = vmax.f32 %v383_v16, 0.0  ;;  %v457_v28 = vmax.f32 %v385_v22, 0.0  ;;  %v466_v36 = vmax.f32 %v946_v61, 0.0  ;;  %v467_v37 = vmax.f32 %v949_v62, 0.0 }
  0x44   : > { %517 = vst [vmem:[%s689_s25 + $0x178] sm:$0xff] %v445_v26  ;;  %v387_v26 = vadd.f32 %v666_v1, %v311_v17  ;;  %v460_v31 = vmax.f32 %v388_v0, 0.0  ;;  %v462_v1 = vmax.f32 %v931_v55, 0.0  ;;  %v468_v38 = vmax.f32 %v396_v6, 0.0 }
  0x45   : > { %518 = vst [vmem:[%s689_s25 + $0x180] sm:$0xff] %v446_v39  ;;  %v469_v39 = vmax.f32 %v397_v11, 0.0 }
  0x46   : > { %519 = vst [vmem:[%s689_s25 + $0x188] sm:$0xff] %v447_v40  ;;  %v459_v30 = vmax.f32 %v387_v26, 0.0 }
  0x47   : > { %520 = vst [vmem:[%s689_s25 + $0x190] sm:$0xff] %v448_v2 }
  0x48   : > { %521 = vst [vmem:[%s689_s25 + $0x198] sm:$0xff] %v449_v7 }
  0x49   : > { %522 = vst [vmem:[%s689_s25 + $0x1a0] sm:$0xff] %v450_v12 }
  0x4a   : > { %523 = vst [vmem:[%s689_s25 + $0x1a8] sm:$0xff] %v451_v15 }
  0x4b   : > { %524 = vst [vmem:[%s689_s25 + $0x1b0] sm:$0xff] %v452_v18 }
  0x4c   : > { %525 = vst [vmem:[%s689_s25 + $0x1b8] sm:$0xff] %v453_v21 }
  0x4d   : > { %526 = vst [vmem:[%s689_s25 + $0x1c0] sm:$0xff] %v454_v23 }
  0x4e   : > { %527 = vst [vmem:[%s689_s25 + $0x1c8] sm:$0xff] %v455_v25 }
  0x4f   : > { %528 = vst [vmem:[%s689_s25 + $0x1d0] sm:$0xff] %v456_v27 }
  0x50   : > { %529 = vst [vmem:[%s689_s25 + $0x1d8] sm:$0xff] %v457_v28 }
  0x51   : > { %530 = vst [vmem:[%s689_s25 + $0x1e0] sm:$0xff] %v458_v29 }
  0x52   : > { %531 = vst [vmem:[%s689_s25 + $0x1e8] sm:$0xff] %v459_v30 }
  0x53   : > { %532 = vst [vmem:[%s689_s25 + $0x1f0] sm:$0xff] %v460_v31 }
  0x54   : > { %533 = vst [vmem:[%s689_s25 + $0x1f8] sm:$0xff] %v461_v32 }
  0x55   : > { %534 = vst [vmem:[%s689_s25 + $0x200] sm:$0xff] %v462_v1 }
  0x56   : > { %535 = vst [vmem:[%s689_s25 + $0x208] sm:$0xff] %v463_v33 }
  0x57   : > { %536 = vst [vmem:[%s689_s25 + $0x210] sm:$0xff] %v464_v34 }
  0x58   : > { %537 = vst [vmem:[%s689_s25 + $0x218] sm:$0xff] %v465_v35 }
  0x59   : > { %538 = vst [vmem:[%s689_s25 + $0x220] sm:$0xff] %v466_v36 }
  0x5a   : > { %539 = vst [vmem:[%s689_s25 + $0x228] sm:$0xff] %v467_v37 }
  0x5b   : > { %540 = vst [vmem:[%s689_s25 + $0x230] sm:$0xff] %v468_v38 }
  0x5c   : > { %541 = vst [vmem:[%s689_s25 + $0x238] sm:$0xff] %v469_v39 }
  0x5d PF: > { %s13_s12 = sadd.s32 1, %s623_s12  }
  0x5e   : > { %p10_p4 = scmp.ge.s32.totalorder %s13_s12, 4  }
  0x60   :  { %12 = sbr.rel (!%p10_p4) target bundleno = 1 (0x1), region = 62 }

// kernel: net_forward.8
= control target key start
LH: loop header
LB: loop body
LE: loop exit
PB: predicated region body
PF: predicated region fallthrough
CT: control target
= control target key end

     0   :  { %s248_s0 = inlined_call_operand.vmem [shape: f32[128,128], index: 0, kind: input, shape index: {}]   ;;  %s249_s1 = inlined_call_operand.vmem [shape: f32[1,128], index: 1, kind: input, shape index: {}]   ;;  %s250_s2 = inlined_call_operand.vmem [shape: f32[1,128], index: 2, kind: input, shape index: {}]   ;;  %s251_s3 = inlined_call_operand.vmem [shape: f32[128,128], index: 3, kind: output, shape index: {}]  }
   0x1   :  { %v14_v0 = vld [vmem:[%s248_s0] sm:$0xff]  ;;  %v15_v3 = vld [vmem:[%s248_s0 + $0x8] sm:$0xff]  ;;  %v16_v6 = vld [vmem:[%s248_s0 + $0x10] sm:$0xff] }
   0x2   :  { %v106_v1 = vld [vmem:[%s249_s1] ss:$0 sm:$0xff]  ;;  %v17_v7 = vld [vmem:[%s248_s0 + $0x18] sm:$0xff]  ;;  %v19_v12 = vld [vmem:[%s248_s0 + $0x28] sm:$0xff] }
   0x3   :  { %v137_v2 = vld [vmem:[%s250_s2] ss:$0 sm:$0xff]  ;;  %v34_v4 = vmul.f32 %v106_v1, %v14_v0  ;;  %v35_v5 = vmul.f32 %v106_v1, %v15_v3  ;;  %v36_v9 = vmul.f32 %v106_v1, %v16_v6  ;;  %v37_v10 = vmul.f32 %v106_v1, %v17_v7  ;;  %v20_v13 = vld [vmem:[%s248_s0 + $0x30] sm:$0xff]  ;;  %v21_v14 = vld [vmem:[%s248_s0 + $0x38] sm:$0xff] }
   0x4   :  { %v18_v8 = vld [vmem:[%s248_s0 + $0x20] sm:$0xff]  ;;  %v39_v17 = vmul.f32 %v106_v1, %v19_v12  ;;  %v40_v18 = vmul.f32 %v106_v1, %v20_v13  ;;  %v41_v22 = vmul.f32 %v106_v1, %v21_v14  ;;  %v23_v24 = vld [vmem:[%s248_s0 + $0x48] sm:$0xff]  ;;  %v24_v29 = vld [vmem:[%s248_s0 + $0x50] sm:$0xff] }
   0x5   :  { %v38_v11 = vmul.f32 %v106_v1, %v18_v8  ;;  %v54_v15 = vadd.f32 %v137_v2, %v34_v4  ;;  %v55_v16 = vadd.f32 %v137_v2, %v35_v5  ;;  %v56_v19 = vadd.f32 %v137_v2, %v36_v9  ;;  %v22_v23 = vld [vmem:[%s248_s0 + $0x40] sm:$0xff]  ;;  %v25_v30 = vld [vmem:[%s248_s0 + $0x58] sm:$0xff]  ;;  %v27_v35 = vld [vmem:[%s248_s0 + $0x68] sm:$0xff] }
   0x6   :  { %v57_v20 = vadd.f32 %v137_v2, %v37_v10  ;;  %v59_v27 = vadd.f32 %v137_v2, %v39_v17  ;;  %v60_v28 = vadd.f32 %v137_v2, %v40_v18  ;;  %v26_v31 = vld [vmem:[%s248_s0 + $0x60] sm:$0xff]  ;;  %v61_v34 = vadd.f32 %v137_v2, %v41_v22  ;;  %v28_v36 = vld [vmem:[%s248_s0 + $0x70] sm:$0xff]  ;;  %v29_v41 = vld [vmem:[%s248_s0 + $0x78] sm:$0xff] }
   0x7   :  { %v58_v21 = vadd.f32 %v137_v2, %v38_v11  ;;  %v70_v25 = vmax.f32 %v54_v15, 0.0  ;;  %v71_v26 = vmax.f32 %v55_v16, 0.0  ;;  %v72_v32 = vmax.f32 %v56_v19, 0.0 }
   0x8   :  { %v73_v33 = vmax.f32 %v57_v20, 0.0  ;;  %v75_v38 = vmax.f32 %v59_v27, 0.0  ;;  %v42_v39 = vmul.f32 %v106_v1, %v22_v23  ;;  %v43_v40 = vmul.f32 %v106_v1, %v23_v24 }
   0x9   :  { %86 = vst [vmem:[%s251_s3] sm:$0xff] %v70_v25  ;;  %v74_v37 = vmax.f32 %v58_v21, 0.0  ;;  %v76_v42 = vmax.f32 %v60_v28, 0.0  ;;  %v44_v43 = vmul.f32 %v106_v1, %v24_v29  ;;  %v45_v44 = vmul.f32 %v106_v1, %v25_v30 }
   0xa   :  { %87 = vst [vmem:[%s251_s3 + $0x8] sm:$0xff] %v71_v26  ;;  %v46_v45 = vmul.f32 %v106_v1, %v26_v31  ;;  %v62_v46 = vadd.f32 %v137_v2, %v42_v39  ;;  %v63_v47 = vadd.f32 %v137_v2, %v43_v40  ;;  %v47_v48 = vmul.f32 %v106_v1, %v27_v35 }
   0xb   :  { %88 = vst [vmem:[%s251_s3 + $0x10] sm:$0xff] %v72_v32  ;;  %v48_v49 = vmul.f32 %v106_v1, %v28_v36  ;;  %v77_v50 = vmax.f32 %v61_v34, 0.0  ;;  %v64_v51 = vadd.f32 %v137_v2, %v44_v43  ;;  %v65_v52 = vadd.f32 %v137_v2, %v45_v44 }
   0xc   :  { %89 = vst [vmem:[%s251_s3 + $0x18] sm:$0xff] %v73_v33  ;;  %v49_v53 = vmul.f32 %v106_v1, %v29_v41  ;;  %v78_v54 = vmax.f32 %v62_v46, 0.0  ;;  %v66_v55 = vadd.f32 %v137_v2, %v46_v45  ;;  %v79_v56 = vmax.f32 %v63_v47, 0.0 }
   0xd   :  { %90 = vst [vmem:[%s251_s3 + $0x20] sm:$0xff] %v74_v37  ;;  %v67_v57 = vadd.f32 %v137_v2, %v47_v48  ;;  %v80_v58 = vmax.f32 %v64_v51, 0.0  ;;  %v68_v59 = vadd.f32 %v137_v2, %v48_v49  ;;  %v81_v60 = vmax.f32 %v65_v52, 0.0 }
   0xe   :  { %91 = vst [vmem:[%s251_s3 + $0x28] sm:$0xff] %v75_v38  ;;  %v69_v61 = vadd.f32 %v137_v2, %v49_v53  ;;  %v82_v62 = vmax.f32 %v66_v55, 0.0 }
   0xf   :  { %92 = vst [vmem:[%s251_s3 + $0x30] sm:$0xff] %v76_v42  ;;  %v83_v63 = vmax.f32 %v67_v57, 0.0  ;;  %v84_v0 = vmax.f32 %v68_v59, 0.0 }
  0x10   :  { %93 = vst [vmem:[%s251_s3 + $0x38] sm:$0xff] %v77_v50  ;;  %v85_v1 = vmax.f32 %v69_v61, 0.0 }
  0x11   :  { %94 = vst [vmem:[%s251_s3 + $0x40] sm:$0xff] %v78_v54 }
  0x12   :  { %95 = vst [vmem:[%s251_s3 + $0x48] sm:$0xff] %v79_v56 }
  0x13   :  { %96 = vst [vmem:[%s251_s3 + $0x50] sm:$0xff] %v80_v58 }
  0x14   :  { %97 = vst [vmem:[%s251_s3 + $0x58] sm:$0xff] %v81_v60 }
  0x15   :  { %98 = vst [vmem:[%s251_s3 + $0x60] sm:$0xff] %v82_v62 }
  0x16   :  { %99 = vst [vmem:[%s251_s3 + $0x68] sm:$0xff] %v83_v63 }
  0x17   :  { %100 = vst [vmem:[%s251_s3 + $0x70] sm:$0xff] %v84_v0 }
  0x18   :  { %101 = vst [vmem:[%s251_s3 + $0x78] sm:$0xff] %v85_v1 }

// kernel: net_forward.7
= control target key start
LH: loop header
LB: loop body
LE: loop exit
PB: predicated region body
PF: predicated region fallthrough
CT: control target
= control target key end

     0   :  { %s7997_s1 = inlined_call_operand.vmem [shape: bf16[25,128,128], index: 1, kind: input, shape index: {}]   ;;  %s7998_s0 = inlined_call_operand.vmem [shape: f32[2,12,12,128], index: 0, kind: input, shape index: {}]   ;;  %s7999_s2 = inlined_call_operand.vmem [shape: f32[1,128], index: 2, kind: input, shape index: {}]   ;;  %s8000_s3 = inlined_call_operand.vmem [shape: f32[2,8,8,128], index: 3, kind: output, shape index: {0}]   ;;  %s8001_s4 = inlined_call_operand.vmem [shape: f32[1,1,128], index: 4, kind: output, shape index: {1}]   ;;  %s8002_s5 = inlined_call_operand.vmem [shape: f32[1,1,128], index: 5, kind: output, shape index: {2}]  }
   0x1   :  { %v5465_v0 = vld [vmem:[%s7997_s1 + $0x78] sm:$0xff]  ;;  %v5464_v1 = vld [vmem:[%s7997_s1 + $0x70] sm:$0xff]  ;;  %v5463_v2 = vld [vmem:[%s7997_s1 + $0x68] sm:$0xff] }
   0x2   :  { %5650 = vmatpush.bf16.msra.mxu1 %v5465_v0  ;;  %5651 = vmatpush.bf16.msra.mxu2 %v5465_v0  ;;  %v5462_v3 = vld [vmem:[%s7997_s1 + $0x60] sm:$0xff]  ;;  %v5461_v4 = vld [vmem:[%s7997_s1 + $0x58] sm:$0xff]  ;;  %v5460_v5 = vld [vmem:[%s7997_s1 + $0x50] sm:$0xff] }
   0x3   :  { %5652 = vmatpush.bf16.msra.mxu3 %v5465_v0  ;;  %146 = vmatpush.bf16.msra.mxu0 %v5465_v0  ;;  %v5459_v6 = vld [vmem:[%s7997_s1 + $0x48] sm:$0xff]  ;;  %v5458_v7 = vld [vmem:[%s7997_s1 + $0x40] sm:$0xff]  ;;  %v62_v9 = vld [vmem:[%s7998_s0 + $0x51] sm:$0xff] }
   0x4   :  { %v5732_v8 = vld [vmem:[%s7998_s0 + $0x41] sm:$0xff]  ;;  %v66_v11 = vld [vmem:[%s7998_s0 + $0xd1] sm:$0xff] }
   0x5   :  { %v65_v10 = vld [vmem:[%s7998_s0 + $0xc1] sm:$0xff]  ;;  %v70_v13 = vld [vmem:[%s7998_s0 + $0x111] sm:$0xff]  ;;  %v75_v18 = vpack.c.bf16 %v62_v9, %v5732_v8 }
   0x6   :  { %5653 = vmatpush.bf16.msra.mxu1 %v5464_v1  ;;  %5654 = vmatpush.bf16.msra.mxu2 %v5464_v1  ;;  %v69_v12 = vld [vmem:[%s7998_s0 + $0x101] sm:$0xff]  ;;  %v5755_v15 = vld [vmem:[%s7998_s0 + $0x11] sm:$0xff]  ;;  %v77_v19 = vpack.c.bf16 %v66_v11, %v65_v10 }
   0x7   :  { %5655 = vmatpush.bf16.msra.mxu3 %v5464_v1  ;;  %147 = vmatpush.bf16.msra.mxu0 %v5464_v1  ;;  %v57_v14 = vld [vmem:[%s7998_s0 + $0x1] sm:$0xff]  ;;  %v5473_v16 = vld [vmem:[%s7997_s1 + $0xb8] sm:$0xff]  ;;  %v79_v20 = vpack.c.bf16 %v70_v13, %v69_v12  ;;  %v5472_v24 = vld [vmem:[%s7997_s1 + $0xb0] sm:$0xff] }
   0x8   :  { %v5457_v17 = vld [vmem:[%s7997_s1 + $0x38] sm:$0xff]  ;;  %v73_v21 = vpack.c.bf16 %v5755_v15, %v57_v14  ;;  %v5456_v25 = vld [vmem:[%s7997_s1 + $0x30] sm:$0xff]  ;;  %v5471_v28 = vld [vmem:[%s7997_s1 + $0xa8] sm:$0xff] }
   0x9   :  { %v5481_v22 = vld [vmem:[%s7997_s1 + $0xf8] sm:$0xff]  ;;  %v5480_v26 = vld [vmem:[%s7997_s1 + $0xf0] sm:$0xff]  ;;  %v5455_v29 = vld [vmem:[%s7997_s1 + $0x28] sm:$0xff] }
   0xa   :  { %5656 = vmatpush.bf16.msra.mxu1 %v5463_v2  ;;  %5657 = vmatpush.bf16.msra.mxu2 %v5463_v2  ;;  %v5489_v23 = vld [vmem:[%s7997_s1 + $0x138] sm:$0xff]  ;;  %v5488_v27 = vld [vmem:[%s7997_s1 + $0x130] sm:$0xff]  ;;  %v5479_v30 = vld [vmem:[%s7997_s1 + $0xe8] sm:$0xff] }
   0xb   :  { %5658 = vmatpush.bf16.msra.mxu3 %v5463_v2  ;;  %148 = vmatpush.bf16.msra.mxu0 %v5463_v2  ;;  %v5487_v31 = vld [vmem:[%s7997_s1 + $0x128] sm:$0xff]  ;;  %v5470_v32 = vld [vmem:[%s7997_s1 + $0xa0] sm:$0xff]  ;;  %v5815_v37 = vld [vmem:[%s7998_s0 + $0x71] sm:$0xff] }
   0xc   :  { %v5454_v33 = vld [vmem:[%s7997_s1 + $0x20] sm:$0xff]  ;;  %v68_v39 = vld [vmem:[%s7998_s0 + $0xf1] sm:$0xff]  ;;  %v5467_v56 = vld [vmem:[%s7997_s1 + $0x88] sm:$0xff] }
   0xd   :  { %v5478_v34 = vld [vmem:[%s7997_s1 + $0xe0] sm:$0xff]  ;;  %v72_v41 = vld [vmem:[%s7998_s0 + $0x131] sm:$0xff]  ;;  %v5451_v57 = vld [vmem:[%s7997_s1 + $0x8] sm:$0xff] }
   0xe   :  { %5659 = vmatpush.bf16.msra.mxu1 %v5462_v3  ;;  %5660 = vmatpush.bf16.msra.mxu2 %v5462_v3  ;;  %v5486_v35 = vld [vmem:[%s7997_s1 + $0x120] sm:$0xff]  ;;  %v5837_v43 = vld [vmem:[%s7998_s0 + $0x31] sm:$0xff]  ;;  %v5475_v58 = vld [vmem:[%s7997_s1 + $0xc8] sm:$0xff] }
   0xf   :  { %5661 = vmatpush.bf16.msra.mxu3 %v5462_v3  ;;  %149 = vmatpush.bf16.msra.mxu0 %v5462_v3  ;;  %v5810_v36 = vld [vmem:[%s7998_s0 + $0x61] sm:$0xff]  ;;  %v5469_v44 = vld [vmem:[%s7997_s1 + $0x98] sm:$0xff]  ;;  %v5468_v52 = vld [vmem:[%s7997_s1 + $0x90] sm:$0xff] }
  0x10   :  { %v67_v38 = vld [vmem:[%s7998_s0 + $0xe1] sm:$0xff]  ;;  %v5453_v45 = vld [vmem:[%s7997_s1 + $0x18] sm:$0xff]  ;;  %v76_v46 = vpack.c.bf16 %v5815_v37, %v5810_v36  ;;  %v5452_v53 = vld [vmem:[%s7997_s1 + $0x10] sm:$0xff] }
  0x11   :  { %v71_v40 = vld [vmem:[%s7998_s0 + $0x121] sm:$0xff]  ;;  %v78_v47 = vpack.c.bf16 %v68_v39, %v67_v38  ;;  %v5477_v50 = vld [vmem:[%s7997_s1 + $0xd8] sm:$0xff]  ;;  %v5476_v54 = vld [vmem:[%s7997_s1 + $0xd0] sm:$0xff] }
  0x12   :  { %5662 = vmatpush.bf16.msra.mxu1 %v5461_v4  ;;  %5663 = vmatpush.bf16.msra.mxu2 %v5461_v4  ;;  %v5832_v42 = vld [vmem:[%s7998_s0 + $0x21] sm:$0xff]  ;;  %v80_v48 = vpack.c.bf16 %v72_v41, %v71_v40  ;;  %v5485_v51 = vld [vmem:[%s7997_s1 + $0x118] sm:$0xff]  ;;  %v5484_v55 = vld [vmem:[%s7997_s1 + $0x110] sm:$0xff] }
  0x13   :  { %5664 = vmatpush.bf16.msra.mxu3 %v5461_v4  ;;  %150 = vmatpush.bf16.msra.mxu0 %v5461_v4  ;;  %v74_v49 = vpack.c.bf16 %v5837_v43, %v5832_v42  ;;  %v5483_v59 = vld [vmem:[%s7997_s1 + $0x108] sm:$0xff]  ;;  %v5466_v60 = vld [vmem:[%s7997_s1 + $0x80] sm:$0xff]  ;;  %v5897_v1 = vld [vmem:[%s7998_s0 + $0x10] sm:$0xff] }
  0x14   :  { %v5450_v61 = vld [vmem:[%s7997_s1] sm:$0xff]  ;;  %v5505_v2 = vld [vmem:[%s7997_s1 + $0x1b8] sm:$0xff] }
  0x15   :  { %v17_v62 = vld [vmem:[%s7998_s0] sm:$0xff]  ;;  %v5497_v3 = vld [vmem:[%s7997_s1 + $0x178] sm:$0xff] }
  0x16   :  { %5665 = vmatpush.bf16.msra.mxu1 %v5460_v5  ;;  %5666 = vmatpush.bf16.msra.mxu2 %v5460_v5  ;;  %v5474_v63 = vld [vmem:[%s7997_s1 + $0xc0] sm:$0xff]  ;;  %v601_v10 = vld [vmem:[%s7998_s0 + $0x14] sm:$0xff]  ;;  %v33_v13 = vpack.c.bf16 %v5897_v1, %v17_v62 }
  0x17   :  { %5667 = vmatpush.bf16.msra.mxu3 %v5460_v5  ;;  %151 = vmatpush.bf16.msra.mxu0 %v5460_v5  ;;  %v5482_v0 = vld [vmem:[%s7997_s1 + $0x100] sm:$0xff]  ;;  %v5911_v5 = vld [vmem:[%s7998_s0 + $0x12] sm:$0xff] }
  0x18   :  { %v292_v4 = vld [vmem:[%s7998_s0 + $0x2] sm:$0xff]  ;;  %v5513_v11 = vld [vmem:[%s7997_s1 + $0x1f8] sm:$0xff] }
  0x19   :  { %v600_v9 = vld [vmem:[%s7998_s0 + $0x4] sm:$0xff]  ;;  %v5521_v12 = vld [vmem:[%s7997_s1 + $0x238] sm:$0xff]  ;;  %v308_v14 = vpack.c.bf16 %v5911_v5, %v292_v4 }
  0x1a   :  { %5668 = vmatpush.bf16.msra.mxu1 %v5459_v6  ;;  %5669 = vmatpush.bf16.msra.mxu2 %v5459_v6  ;;  %v5502_v40 = vld [vmem:[%s7997_s1 + $0x1a0] sm:$0xff]  ;;  %v6096_v4 = vld [vmem:[%s7998_s0 + $0x73] sm:$0xff] }
  0x1b   :  { %5670 = vmatpush.bf16.msra.mxu3 %v5459_v6  ;;  %152 = vmatpush.bf16.msra.mxu0 %v5459_v6  ;;  %v446_v6 = vld [vmem:[%s7998_s0 + $0x3] sm:$0xff] }
  0x1c   :  { %v5510_v41 = vld [vmem:[%s7997_s1 + $0x1e0] sm:$0xff] }
  0x1d   :  { %v6071_v62 = vld [vmem:[%s7998_s0 + $0x60] sm:$0xff] }
  0x1e   :  { %5671 = vmatpush.bf16.msra.mxu1 %v5458_v7  ;;  %5672 = vmatpush.bf16.msra.mxu2 %v5458_v7 }
  0x1f   :  { %5673 = vmatpush.bf16.msra.mxu3 %v5458_v7  ;;  %153 = vmatpush.bf16.msra.mxu0 %v5458_v7  ;;  %v5919_v7 = vld [vmem:[%s7998_s0 + $0x13] sm:$0xff] }
  0x21   :  { %164 = vmatmul.bf16.vlgmr.msra.gmra.mxu1 %v75_v18  ;;  %174 = vmatmul.bf16.vlgmr.msra.gmra.mxu2 %v77_v19  ;;  %v5504_v18 = vld [vmem:[%s7997_s1 + $0x1b0] sm:$0xff] }
  0x22   :  { %381 = vmatpush.bf16.msrb.mxu2 %v5473_v16  ;;  %243 = vmatpush.bf16.msrb.mxu1 %v5457_v17  ;;  %v462_v16 = vpack.c.bf16 %v5919_v7, %v446_v6  ;;  %v616_v17 = vpack.c.bf16 %v601_v10, %v600_v9  ;;  %v5496_v19 = vld [vmem:[%s7997_s1 + $0x170] sm:$0xff]  ;;  %v606_v6 = vld [vmem:[%s7998_s0 + $0x64] sm:$0xff] }
  0x23   :  { %184 = vmatmul.bf16.vlgmr.msra.gmra.mxu3 %v79_v20  ;;  %154 = vmatmul.bf16.vlgmr.msra.gmra.mxu0 %v73_v21  ;;  %v5512_v20 = vld [vmem:[%s7997_s1 + $0x1f0] sm:$0xff] }
  0x24   :  { %535 = vmatpush.bf16.msrb.mxu3 %v5481_v22  ;;  %689 = vmatpush.bf16.msrb.mxu0 %v5489_v23  ;;  %v5520_v21 = vld [vmem:[%s7997_s1 + $0x230] sm:$0xff]  ;;  %v5503_v22 = vld [vmem:[%s7997_s1 + $0x1a8] sm:$0xff] }
  0x25   :  { %v5495_v23 = vld [vmem:[%s7997_s1 + $0x168] sm:$0xff]  ;;  %v607_v9 = vld [vmem:[%s7998_s0 + $0x74] sm:$0xff] }
  0x26   :  { %382 = vmatpush.bf16.msrb.mxu2 %v5472_v24  ;;  %244 = vmatpush.bf16.msrb.mxu1 %v5456_v25  ;;  %v5511_v24 = vld [vmem:[%s7997_s1 + $0x1e8] sm:$0xff] }
  0x27   :  { %v5519_v25 = vld [vmem:[%s7997_s1 + $0x228] sm:$0xff] }
  0x28   :  { %536 = vmatpush.bf16.msrb.mxu3 %v5480_v26  ;;  %690 = vmatpush.bf16.msrb.mxu0 %v5488_v27  ;;  %v5963_v26 = vld [vmem:[%s7998_s0 + $0x20] sm:$0xff]  ;;  %v5968_v27 = vld [vmem:[%s7998_s0 + $0x30] sm:$0xff] }
  0x2a   :  { %383 = vmatpush.bf16.msrb.mxu2 %v5471_v28  ;;  %245 = vmatpush.bf16.msrb.mxu1 %v5455_v29  ;;  %v5973_v28 = vld [vmem:[%s7998_s0 + $0x22] sm:$0xff]  ;;  %v5978_v29 = vld [vmem:[%s7998_s0 + $0x32] sm:$0xff] }
  0x2c   :  { %537 = vmatpush.bf16.msrb.mxu3 %v5479_v30  ;;  %691 = vmatpush.bf16.msrb.mxu0 %v5487_v31  ;;  %v5983_v30 = vld [vmem:[%s7998_s0 + $0x23] sm:$0xff]  ;;  %v5988_v31 = vld [vmem:[%s7998_s0 + $0x33] sm:$0xff] }
  0x2d   :  { %v463_v38 = vpack.c.bf16 %v5988_v31, %v5983_v30 }
  0x2e   :  { %384 = vmatpush.bf16.msrb.mxu2 %v5470_v32  ;;  %246 = vmatpush.bf16.msrb.mxu1 %v5454_v33  ;;  %v602_v32 = vld [vmem:[%s7998_s0 + $0x24] sm:$0xff]  ;;  %v603_v33 = vld [vmem:[%s7998_s0 + $0x34] sm:$0xff] }
  0x2f   :  { %v617_v39 = vpack.c.bf16 %v603_v33, %v602_v32  ;;  %v609_v32 = vld [vmem:[%s7998_s0 + $0xd4] sm:$0xff] }
  0x30   :  { %538 = vmatpush.bf16.msrb.mxu3 %v5478_v34  ;;  %692 = vmatpush.bf16.msrb.mxu0 %v5486_v35  ;;  %v34_v34 = vpack.c.bf16 %v5968_v27, %v5963_v26  ;;  %v309_v35 = vpack.c.bf16 %v5978_v29, %v5973_v28 }
  0x31   :  { %169 = vmatmul.bf16.gmra.mxu1 %v76_v46  ;;  %179 = vmatmul.bf16.gmra.mxu2 %v78_v47  ;;  %v6017_v46 = vld [vmem:[%s7998_s0 + $0x40] sm:$0xff]  ;;  %v6022_v47 = vld [vmem:[%s7998_s0 + $0x50] sm:$0xff] }
  0x32   :  { %385 = vmatpush.bf16.msrb.mxu2 %v5469_v44  ;;  %247 = vmatpush.bf16.msrb.mxu1 %v5453_v45  ;;  %v5494_v44 = vld [vmem:[%s7997_s1 + $0x160] sm:$0xff] }
  0x33   :  { %189 = vmatmul.bf16.gmra.mxu3 %v80_v48  ;;  %159 = vmatmul.bf16.gmra.mxu0 %v74_v49  ;;  %v5518_v45 = vld [vmem:[%s7997_s1 + $0x220] sm:$0xff]  ;;  %v6032_v49 = vld [vmem:[%s7998_s0 + $0x52] sm:$0xff] }
  0x34   :  { %539 = vmatpush.bf16.msrb.mxu3 %v5477_v50  ;;  %693 = vmatpush.bf16.msrb.mxu0 %v5485_v51  ;;  %v6027_v48 = vld [vmem:[%s7998_s0 + $0x42] sm:$0xff]  ;;  %v6042_v51 = vld [vmem:[%s7998_s0 + $0x53] sm:$0xff] }
  0x35   :  { %v6037_v50 = vld [vmem:[%s7998_s0 + $0x43] sm:$0xff] }
  0x36   :  { %386 = vmatpush.bf16.msrb.mxu2 %v5468_v52  ;;  %248 = vmatpush.bf16.msrb.mxu1 %v5452_v53  ;;  %v604_v52 = vld [vmem:[%s7998_s0 + $0x44] sm:$0xff]  ;;  %v605_v53 = vld [vmem:[%s7998_s0 + $0x54] sm:$0xff] }
  0x38   :  { %540 = vmatpush.bf16.msrb.mxu3 %v5476_v54  ;;  %694 = vmatpush.bf16.msrb.mxu0 %v5484_v55  ;;  %v35_v54 = vpack.c.bf16 %v6022_v47, %v6017_v46  ;;  %v310_v55 = vpack.c.bf16 %v6032_v49, %v6027_v48 }
  0x3a   :  { %387 = vmatpush.bf16.msrb.mxu2 %v5467_v56  ;;  %249 = vmatpush.bf16.msrb.mxu1 %v5451_v57  ;;  %v464_v56 = vpack.c.bf16 %v6042_v51, %v6037_v50  ;;  %v618_v57 = vpack.c.bf16 %v605_v53, %v604_v52  ;;  %v6175_v52 = vld [vmem:[%s7998_s0 + $0xf0] sm:$0xff]  ;;  %v6180_v53 = vld [vmem:[%s7998_s0 + $0xe2] sm:$0xff] }
  0x3c   :  { %541 = vmatpush.bf16.msrb.mxu3 %v5475_v58  ;;  %695 = vmatpush.bf16.msrb.mxu0 %v5483_v59  ;;  %v5501_v58 = vld [vmem:[%s7997_s1 + $0x198] sm:$0xff] }
  0x3d   :  { %v5509_v59 = vld [vmem:[%s7997_s1 + $0x1d8] sm:$0xff] }
  0x3e   :  { %388 = vmatpush.bf16.msrb.mxu2 %v5466_v60  ;;  %250 = vmatpush.bf16.msrb.mxu1 %v5450_v61  ;;  %v5493_v60 = vld [vmem:[%s7997_s1 + $0x158] sm:$0xff] }
  0x3f   :  { %v5517_v61 = vld [vmem:[%s7997_s1 + $0x218] sm:$0xff] }
  0x40   :  { %542 = vmatpush.bf16.msrb.mxu3 %v5474_v63  ;;  %696 = vmatpush.bf16.msrb.mxu0 %v5482_v0  ;;  %v6076_v63 = vld [vmem:[%s7998_s0 + $0x70] sm:$0xff]  ;;  %v6081_v0 = vld [vmem:[%s7998_s0 + $0x62] sm:$0xff] }
  0x41   :  { %251 = vmatmul.bf16.vlgmr.msrb.gmra.mxu1 %v33_v13  ;;  %389 = vmatmul.bf16.vlgmr.msrb.gmra.mxu2 %v308_v14  ;;  %v36_v10 = vpack.c.bf16 %v6076_v63, %v6071_v62  ;;  %v619_v13 = vpack.c.bf16 %v607_v9, %v606_v6  ;;  %v5500_v14 = vld [vmem:[%s7997_s1 + $0x190] sm:$0xff]  ;;  %v5498_v9 = vld [vmem:[%s7997_s1 + $0x180] sm:$0xff] }
  0x42   :  { %998 = vmatpush.bf16.msra.mxu2 %v5505_v2  ;;  %844 = vmatpush.bf16.msra.mxu1 %v5497_v3  ;;  %v6086_v2 = vld [vmem:[%s7998_s0 + $0x72] sm:$0xff]  ;;  %v6091_v3 = vld [vmem:[%s7998_s0 + $0x63] sm:$0xff] }
  0x43   :  { %543 = vmatmul.bf16.vlgmr.msrb.gmra.mxu3 %v462_v16  ;;  %697 = vmatmul.bf16.vlgmr.msrb.gmra.mxu0 %v616_v17  ;;  %v5508_v16 = vld [vmem:[%s7997_s1 + $0x1d0] sm:$0xff] }
  0x44   :  { %1152 = vmatpush.bf16.msra.mxu3 %v5513_v11  ;;  %1306 = vmatpush.bf16.msra.mxu0 %v5521_v12  ;;  %v311_v11 = vpack.c.bf16 %v6086_v2, %v6081_v0  ;;  %v465_v12 = vpack.c.bf16 %v6096_v4, %v6091_v3  ;;  %v5492_v17 = vld [vmem:[%s7997_s1 + $0x150] sm:$0xff] }
  0x46   :  { %999 = vmatpush.bf16.msra.mxu2 %v5504_v18  ;;  %845 = vmatpush.bf16.msra.mxu1 %v5496_v19  ;;  %v5516_v18 = vld [vmem:[%s7997_s1 + $0x210] sm:$0xff]  ;;  %v25_v19 = vld [vmem:[%s7998_s0 + $0xc0] sm:$0xff] }
  0x48   :  { %1153 = vmatpush.bf16.msra.mxu3 %v5512_v20  ;;  %1307 = vmatpush.bf16.msra.mxu0 %v5520_v21  ;;  %v6128_v20 = vld [vmem:[%s7998_s0 + $0xd0] sm:$0xff]  ;;  %v300_v21 = vld [vmem:[%s7998_s0 + $0xc2] sm:$0xff] }
  0x49   :  { %v37_v33 = vpack.c.bf16 %v6128_v20, %v25_v19  ;;  %v6249_v19 = vld [vmem:[%s7998_s0 + $0x113] sm:$0xff] }
  0x4a   :  { %1000 = vmatpush.bf16.msra.mxu2 %v5503_v22  ;;  %846 = vmatpush.bf16.msra.mxu1 %v5495_v23  ;;  %v6136_v22 = vld [vmem:[%s7998_s0 + $0xd2] sm:$0xff]  ;;  %v454_v23 = vld [vmem:[%s7998_s0 + $0xc3] sm:$0xff]  ;;  %8009 = vst [vmem:[#allocation2_spill] sm:$0xff] %v6249_v19 }
  0x4c   :  { %1154 = vmatpush.bf16.msra.mxu3 %v5511_v24  ;;  %1308 = vmatpush.bf16.msra.mxu0 %v5519_v25  ;;  %v6144_v24 = vld [vmem:[%s7998_s0 + $0xd3] sm:$0xff]  ;;  %v608_v25 = vld [vmem:[%s7998_s0 + $0xc4] sm:$0xff] }
  0x4e   :  { %1001 = vmatpush.bf16.msra.mxu2 %v5502_v40  ;;  %847 = vmatpush.bf16.msra.mxu1 %v5494_v44  ;;  %v5507_v40 = vld [vmem:[%s7997_s1 + $0x1c8] sm:$0xff] }
  0x4f   :  { %v5515_v44 = vld [vmem:[%s7997_s1 + $0x208] sm:$0xff] }
  0x50   :  { %1155 = vmatpush.bf16.msra.mxu3 %v5510_v41  ;;  %1309 = vmatpush.bf16.msra.mxu0 %v5518_v45  ;;  %v5491_v41 = vld [vmem:[%s7997_s1 + $0x148] sm:$0xff]  ;;  %v6170_v45 = vld [vmem:[%s7998_s0 + $0xe0] sm:$0xff] }
  0x51   :  { %256 = vmatmul.bf16.gmra.mxu1 %v34_v34  ;;  %394 = vmatmul.bf16.gmra.mxu2 %v309_v35  ;;  %v312_v34 = vpack.c.bf16 %v6136_v22, %v300_v21  ;;  %v466_v35 = vpack.c.bf16 %v6144_v24, %v454_v23  ;;  %v612_v21 = vld [vmem:[%s7998_s0 + $0x104] sm:$0xff]  ;;  %v613_v23 = vld [vmem:[%s7998_s0 + $0x114] sm:$0xff] }
  0x52   :  { %1002 = vmatpush.bf16.msra.mxu2 %v5501_v58  ;;  %848 = vmatpush.bf16.msra.mxu1 %v5493_v60  ;;  %v611_v58 = vld [vmem:[%s7998_s0 + $0xf4] sm:$0xff] }
  0x53   :  { %548 = vmatmul.bf16.gmra.mxu3 %v463_v38  ;;  %702 = vmatmul.bf16.gmra.mxu0 %v617_v39  ;;  %v620_v38 = vpack.c.bf16 %v609_v32, %v608_v25  ;;  %v5499_v39 = vld [vmem:[%s7997_s1 + $0x188] sm:$0xff] }
  0x54   :  { %1156 = vmatpush.bf16.msra.mxu3 %v5509_v59  ;;  %1310 = vmatpush.bf16.msra.mxu0 %v5517_v61  ;;  %v38_v59 = vpack.c.bf16 %v6175_v52, %v6170_v45 }
  0x56   :  { %1003 = vmatpush.bf16.msra.mxu2 %v5500_v14  ;;  %849 = vmatpush.bf16.msra.mxu1 %v5492_v17  ;;  %v6229_v14 = vld [vmem:[%s7998_s0 + $0x110] sm:$0xff] }
  0x57   :  { %v6239_v17 = vld [vmem:[%s7998_s0 + $0x112] sm:$0xff] }
  0x58   :  { %1157 = vmatpush.bf16.msra.mxu3 %v5508_v16  ;;  %1311 = vmatpush.bf16.msra.mxu0 %v5516_v18  ;;  %v6234_v16 = vld [vmem:[%s7998_s0 + $0x102] sm:$0xff] }
  0x59   :  { %v6244_v18 = vld [vmem:[%s7998_s0 + $0x103] sm:$0xff]  ;;  %v314_v32 = vpack.c.bf16 %v6239_v17, %v6234_v16 }
  0x5a   :  { %1004 = vmatpush.bf16.msra.mxu2 %v5499_v39  ;;  %850 = vmatpush.bf16.msra.mxu1 %v5491_v41  ;;  %v5537_v39 = vld [vmem:[%s7997_s1 + $0x2b8] sm:$0xff] }
  0x5c   :  { %1158 = vmatpush.bf16.msra.mxu3 %v5507_v40  ;;  %1312 = vmatpush.bf16.msra.mxu0 %v5515_v44  ;;  %v5545_v40 = vld [vmem:[%s7997_s1 + $0x2f8] sm:$0xff] }
  0x5e   :  { %1005 = vmatpush.bf16.msra.mxu2 %v5498_v9  ;;  %v6296_v9 = vld [vmem:[%s7998_s0 + $0x122] sm:$0xff] }
  0x61   :  { %261 = vmatmul.bf16.gmra.mxu1 %v35_v54  ;;  %399 = vmatmul.bf16.gmra.mxu2 %v310_v55  ;;  %v6185_v54 = vld [vmem:[%s7998_s0 + $0xf2] sm:$0xff]  ;;  %v6190_v55 = vld [vmem:[%s7998_s0 + $0xe3] sm:$0xff] }
  0x62   :  { %v313_v60 = vpack.c.bf16 %v6185_v54, %v6180_v53  ;;  %1615 = vmatpush.bf16.msrb.mxu2 %v5537_v39 }
  0x63   :  { %553 = vmatmul.bf16.gmra.mxu3 %v464_v56  ;;  %707 = vmatmul.bf16.gmra.mxu0 %v618_v57  ;;  %v6195_v56 = vld [vmem:[%s7998_s0 + $0xf3] sm:$0xff]  ;;  %v610_v57 = vld [vmem:[%s7998_s0 + $0xe4] sm:$0xff] }
  0x64   :  { %v467_v61 = vpack.c.bf16 %v6195_v56, %v6190_v55  ;;  %v621_v6 = vpack.c.bf16 %v611_v58, %v610_v57 }
  0x71   :  { %266 = vmatmul.bf16.gmra.mxu1 %v36_v10  ;;  %404 = vmatmul.bf16.gmra.mxu2 %v311_v11  ;;  %v5506_v10 = vld [vmem:[%s7997_s1 + $0x1c0] sm:$0xff] }
  0x72   :  { %1159 = vmatpush.bf16.msra.mxu3 %v5506_v10  ;;  %v5490_v11 = vld [vmem:[%s7997_s1 + $0x140] sm:$0xff]  ;;  %v6301_v10 = vld [vmem:[%s7998_s0 + $0x132] sm:$0xff] }
  0x73   :  { %558 = vmatmul.bf16.gmra.mxu3 %v465_v12  ;;  %712 = vmatmul.bf16.gmra.mxu0 %v619_v13  ;;  %v5514_v12 = vld [vmem:[%s7997_s1 + $0x200] sm:$0xff]  ;;  %8012 = vst [vmem:[#allocation5_spill] sm:$0xff] %v6301_v10 }
  0x74   :  { %851 = vmatpush.bf16.msra.mxu1 %v5490_v11  ;;  %v6224_v13 = vld [vmem:[%s7998_s0 + $0x100] sm:$0xff]  ;;  %1313 = vmatpush.bf16.msra.mxu0 %v5514_v12  ;;  %v6311_v12 = vld [vmem:[%s7998_s0 + $0x133] sm:$0xff] }
  0x75   :  { %v39_v25 = vpack.c.bf16 %v6229_v14, %v6224_v13  ;;  %v6306_v11 = vld [vmem:[%s7998_s0 + $0x123] sm:$0xff]  ;;  %8014 = vst [vmem:[#allocation7_spill] sm:$0xff] %v6311_v12 }
  0x76   :  { %1769 = vmatpush.bf16.msrb.mxu3 %v5545_v40  ;;  %8013 = vst [vmem:[#allocation6_spill] sm:$0xff] %v6306_v11  ;;  %v469_v40 = vpack.c.bf16 %v6311_v12, %v6306_v11  ;;  %v1079_v12 = vpack.c.bf16 %v5973_v28, %v5911_v5  ;;  %v1233_v11 = vpack.c.bf16 %v5983_v30, %v5919_v7 }
  0x81   :  { %271 = vmatmul.bf16.gmra.mxu1 %v37_v33  ;;  %409 = vmatmul.bf16.gmra.mxu2 %v312_v34  ;;  %v468_v34 = vpack.c.bf16 %v6249_v19, %v6244_v18 }
  0x83   :  { %563 = vmatmul.bf16.gmra.mxu3 %v466_v35  ;;  %717 = vmatmul.bf16.gmra.mxu0 %v620_v38  ;;  %v622_v35 = vpack.c.bf16 %v613_v23, %v612_v21  ;;  %v614_v21 = vld [vmem:[%s7998_s0 + $0x124] sm:$0xff]  ;;  %v615_v23 = vld [vmem:[%s7998_s0 + $0x134] sm:$0xff] }
  0x91   :  { %276 = vmatmul.bf16.gmra.mxu1 %v38_v59  ;;  %414 = vmatmul.bf16.gmra.mxu2 %v313_v60  ;;  %v5529_v59 = vld [vmem:[%s7997_s1 + $0x278] sm:$0xff] }
  0x92   :  { %v5553_v60 = vld [vmem:[%s7997_s1 + $0x338] sm:$0xff]  ;;  %1460 = vmatpush.bf16.msrb.mxu1 %v5529_v59  ;;  %v623_v59 = vpack.c.bf16 %v615_v23, %v614_v21 }
  0x93   :  { %568 = vmatmul.bf16.gmra.mxu3 %v467_v61  ;;  %722 = vmatmul.bf16.gmra.mxu0 %v621_v6  ;;  %v6286_v61 = vld [vmem:[%s7998_s0 + $0x120] sm:$0xff]  ;;  %v6291_v6 = vld [vmem:[%s7998_s0 + $0x130] sm:$0xff] }
  0x94   :  { %8011 = vst [vmem:[#allocation4_spill] sm:$0xff] %v6291_v6  ;;  %1923 = vmatpush.bf16.msrb.mxu0 %v5553_v60 }
  0x9e   :  { %v6261_v33 = vpop.f32.mrf.mxu1 }
  0xa0   :  { %v155_v38 = vpop.f32.mrf.mxu0 }
  0xa1   :  { %281 = vmatmul.bf16.gmra.mxu1 %v39_v25  ;;  %419 = vmatmul.bf16.gmra.mxu2 %v314_v32 }
  0xa3   :  { %573 = vmatmul.bf16.gmra.mxu3 %v468_v34  ;;  %727 = vmatmul.bf16.gmra.mxu0 %v622_v35  ;;  %v40_v34 = vpack.c.bf16 %v6291_v6, %v6286_v61  ;;  %v315_v35 = vpack.c.bf16 %v6301_v10, %v6296_v9  ;;  %v5544_v6 = vld [vmem:[%s7997_s1 + $0x2f0] sm:$0xff] }
  0xa4   :  { %v6271_v41 = vpop.f32.mrf.mxu2  ;;  %1770 = vmatpush.bf16.msrb.mxu3 %v5544_v6  ;;  %v771_v6 = vpack.c.bf16 %v5963_v26, %v5897_v1  ;;  %v5535_v1 = vld [vmem:[%s7997_s1 + $0x2a8] sm:$0xff] }
  0xa6   :  { %v6273_v44 = vpop.f32.mrf.mxu3  ;;  %v6275_v57 = vpop.f32.mrf.mxu1 }
  0xa7   :  { %8010 = vst [vmem:[#allocation3_spill] sm:$0xff] %v6273_v44 }
  0xa8   :  { %v157_v58 = vpop.f32.mrf.mxu0 }
  0xac   :  { %v6319_v25 = vpop.f32.mrf.mxu2 }
  0xae   :  { %v6321_v32 = vpop.f32.mrf.mxu3  ;;  %v6327_v39 = vpop.f32.mrf.mxu1 }
  0xaf   :  { %8015 = vst [vmem:[#allocation8_spill] sm:$0xff] %v6321_v32  ;;  %v5536_v32 = vld [vmem:[%s7997_s1 + $0x2b0] sm:$0xff] }
  0xb0   :  { %v160_v60 = vpop.f32.mrf.mxu0  ;;  %1616 = vmatpush.bf16.msrb.mxu2 %v5536_v32  ;;  %v925_v32 = vpack.c.bf16 %v5832_v42, %v5755_v15  ;;  %v5543_v15 = vld [vmem:[%s7997_s1 + $0x2e8] sm:$0xff] }
  0xb1   :  { %286 = vmatmul.bf16.gmra.mxu1 %v40_v34  ;;  %424 = vmatmul.bf16.gmra.mxu2 %v315_v35  ;;  %v5528_v34 = vld [vmem:[%s7997_s1 + $0x270] sm:$0xff] }
  0xb2   :  { %v5552_v35 = vld [vmem:[%s7997_s1 + $0x330] sm:$0xff]  ;;  %1461 = vmatpush.bf16.msrb.mxu1 %v5528_v34  ;;  %1771 = vmatpush.bf16.msrb.mxu3 %v5543_v15  ;;  %v1080_v15 = vpack.c.bf16 %v6027_v48, %v5978_v29 }
  0xb3   :  { %578 = vmatmul.bf16.gmra.mxu3 %v469_v40  ;;  %732 = vmatmul.bf16.gmra.mxu0 %v623_v59 }
  0xb4   :  { %v6337_v10 = vpop.f32.mrf.mxu2  ;;  %1924 = vmatpush.bf16.msrb.mxu0 %v5552_v35  ;;  %1617 = vmatpush.bf16.msrb.mxu2 %v5535_v1 }
  0xb6   :  { %v6339_v44 = vpop.f32.mrf.mxu3  ;;  %v6341_v21 = vpop.f32.mrf.mxu1 }
  0xb7   :  { %8016 = vst [vmem:[#allocation9_spill] sm:$0xff] %v6339_v44 }
  0xb8   :  { %v162_v23 = vpop.f32.mrf.mxu0 }
  0xbc   :  { %v6349_v40 = vpop.f32.mrf.mxu2 }
  0xbe   :  { %v6351_v59 = vpop.f32.mrf.mxu3  ;;  %v252_v44 = vpop.f32.mrf.mxu1 }
  0xbf   :  { %v253_v19 = vadd.f32 %v252_v44, %v155_v38  ;;  %v5527_v44 = vld [vmem:[%s7997_s1 + $0x268] sm:$0xff] }
  0xc0   :  { %v698_v34 = vpop.f32.mrf.mxu0  ;;  %1462 = vmatpush.bf16.msrb.mxu1 %v5527_v44  ;;  %v6402_v44 = vld [vmem:[%s7998_s0 + $0x51] sm:$0xff] }
  0xc1   :  { %852 = vmatmul.bf16.vlgmr.msra.gmra.mxu1 %v771_v6  ;;  %1006 = vmatmul.bf16.vlgmr.msra.gmra.mxu2 %v925_v32  ;;  %v772_v32 = vpack.c.bf16 %v6017_v46, %v5968_v27 }
  0xc3   :  { %1160 = vmatmul.bf16.vlgmr.msra.gmra.mxu3 %v1079_v12  ;;  %1314 = vmatmul.bf16.vlgmr.msra.gmra.mxu0 %v1233_v11  ;;  %v5551_v11 = vld [vmem:[%s7997_s1 + $0x328] sm:$0xff] }
  0xc4   :  { %v390_v42 = vpop.f32.mrf.mxu2  ;;  %1925 = vmatpush.bf16.msrb.mxu0 %v5551_v11 }
  0xc5   :  { %v430_v5 = vadd.f32 %v390_v42, %v253_v19  ;;  %v1234_v42 = vpack.c.bf16 %v6037_v50, %v5988_v31 }
  0xc6   :  { %v544_v26 = vpop.f32.mrf.mxu3  ;;  %v254_v7 = vpop.f32.mrf.mxu1 }
  0xc7   :  { %v584_v28 = vadd.f32 %v544_v26, %v430_v5  ;;  %v255_v30 = vadd.f32 %v254_v7, %v157_v58  ;;  %v926_v58 = vpack.c.bf16 %v5732_v8, %v5837_v43  ;;  %v5534_v8 = vld [vmem:[%s7997_s1 + $0x2a0] sm:$0xff] }
  0xc8   :  { %v700_v38 = vpop.f32.mrf.mxu0  ;;  %v5542_v43 = vld [vmem:[%s7997_s1 + $0x2e0] sm:$0xff]  ;;  %1618 = vmatpush.bf16.msrb.mxu2 %v5534_v8  ;;  %v5525_v8 = vld [vmem:[%s7997_s1 + $0x258] sm:$0xff] }
  0xc9   :  { %v6373_v12 = vadd.f32 %v698_v34, %v584_v28  ;;  %1772 = vmatpush.bf16.msrb.mxu3 %v5542_v43  ;;  %v5526_v28 = vld [vmem:[%s7997_s1 + $0x260] sm:$0xff]  ;;  %v5549_v43 = vld [vmem:[%s7997_s1 + $0x318] sm:$0xff] }
  0xca   :  { %1463 = vmatpush.bf16.msrb.mxu1 %v5526_v28 }
  0xcc   :  { %v392_v35 = vpop.f32.mrf.mxu2 }
  0xcd   :  { %v431_v6 = vadd.f32 %v392_v35, %v255_v30  ;;  %v5550_v30 = vld [vmem:[%s7997_s1 + $0x320] sm:$0xff] }
  0xce   :  { %v546_v19 = vpop.f32.mrf.mxu3  ;;  %v257_v1 = vpop.f32.mrf.mxu1  ;;  %1926 = vmatpush.bf16.msrb.mxu0 %v5550_v30  ;;  %1464 = vmatpush.bf16.msrb.mxu1 %v5525_v8 }
  0xcf   :  { %v585_v5 = vadd.f32 %v546_v19, %v431_v6  ;;  %v258_v26 = vadd.f32 %v257_v1, %v160_v60  ;;  %v773_v6 = vpack.c.bf16 %v6071_v62, %v6022_v47  ;;  %v927_v19 = vpack.c.bf16 %v5810_v36, %v6402_v44  ;;  %v5533_v36 = vld [vmem:[%s7997_s1 + $0x298] sm:$0xff] }
  0xd0   :  { %v703_v34 = vpop.f32.mrf.mxu0  ;;  %v1235_v1 = vpack.c.bf16 %v6091_v3, %v6042_v51  ;;  %v5541_v47 = vld [vmem:[%s7997_s1 + $0x2d8] sm:$0xff]  ;;  %1619 = vmatpush.bf16.msrb.mxu2 %v5533_v36  ;;  %v5524_v36 = vld [vmem:[%s7997_s1 + $0x250] sm:$0xff] }
  0xd1   :  { %857 = vmatmul.bf16.gmra.mxu1 %v772_v32  ;;  %1011 = vmatmul.bf16.gmra.mxu2 %v926_v58  ;;  %v6383_v7 = vadd.f32 %v700_v38, %v585_v5  ;;  %v1081_v58 = vpack.c.bf16 %v6081_v0, %v6032_v49 }
  0xd2   :  { %1773 = vmatpush.bf16.msrb.mxu3 %v5541_v47  ;;  %1927 = vmatpush.bf16.msrb.mxu0 %v5549_v43  ;;  %v5548_v47 = vld [vmem:[%s7997_s1 + $0x310] sm:$0xff]  ;;  %v1083_v43 = vpack.c.bf16 %v6180_v53, %v6136_v22 }
  0xd3   :  { %1165 = vmatmul.bf16.gmra.mxu3 %v1080_v15  ;;  %1319 = vmatmul.bf16.gmra.mxu0 %v1234_v42 }
  0xd4   :  { %v395_v27 = vpop.f32.mrf.mxu2  ;;  %1465 = vmatpush.bf16.msrb.mxu1 %v5524_v36 }
  0xd5   :  { %v432_v29 = vadd.f32 %v395_v27, %v258_v26 }
  0xd6   :  { %v549_v31 = vpop.f32.mrf.mxu3  ;;  %v259_v46 = vpop.f32.mrf.mxu1  ;;  %1928 = vmatpush.bf16.msrb.mxu0 %v5548_v47 }
  0xd7   :  { %v586_v48 = vadd.f32 %v549_v31, %v432_v29  ;;  %v260_v50 = vadd.f32 %v259_v46, %v162_v23  ;;  %v6433_v29 = vld [vmem:[%s7998_s0 + $0x80] sm:$0xff] }
  0xd8   :  { %v705_v60 = vpop.f32.mrf.mxu0  ;;  %v6443_v31 = vld [vmem:[%s7998_s0 + $0x82] sm:$0xff]  ;;  %v774_v28 = vpack.c.bf16 %v6433_v29, %v6076_v63  ;;  %v5540_v63 = vld [vmem:[%s7997_s1 + $0x2d0] sm:$0xff] }
  0xd9   :  { %v6397_v38 = vadd.f32 %v703_v34, %v586_v48  ;;  %v4369_v46 = vld [vmem:[%s7998_s0 + $0x83] sm:$0xff]  ;;  %1774 = vmatpush.bf16.msrb.mxu3 %v5540_v63 }
  0xdc   :  { %v397_v11 = vpop.f32.mrf.mxu2 }
  0xdd   :  { %v433_v23 = vadd.f32 %v397_v11, %v260_v50 }
  0xde   :  { %v551_v35 = vpop.f32.mrf.mxu3  ;;  %v262_v32 = vpop.f32.mrf.mxu1 }
  0xdf   :  { %v587_v15 = vadd.f32 %v551_v35, %v433_v23  ;;  %v263_v42 = vadd.f32 %v262_v32, %v6261_v33  ;;  %v1082_v23 = vpack.c.bf16 %v6443_v31, %v6086_v2  ;;  %v1236_v35 = vpack.c.bf16 %v4369_v46, %v6096_v4 }
  0xe0   :  { %v708_v5 = vpop.f32.mrf.mxu0  ;;  %v1237_v46 = vpack.c.bf16 %v6190_v55, %v6144_v24 }
  0xe1   :  { %862 = vmatmul.bf16.gmra.mxu1 %v773_v6  ;;  %1016 = vmatmul.bf16.gmra.mxu2 %v927_v19  ;;  %v6413_v26 = vadd.f32 %v705_v60, %v587_v15 }
  0xe3   :  { %1170 = vmatmul.bf16.gmra.mxu3 %v1081_v58  ;;  %1324 = vmatmul.bf16.gmra.mxu0 %v1235_v1 }
  0xe4   :  { %v400_v49 = vpop.f32.mrf.mxu2 }
  0xe5   :  { %v434_v51 = vadd.f32 %v400_v49, %v263_v42 }
  0xe6   :  { %v554_v62 = vpop.f32.mrf.mxu3  ;;  %v264_v0 = vpop.f32.mrf.mxu1 }
  0xe7   :  { %v588_v3 = vadd.f32 %v554_v62, %v434_v51  ;;  %v265_v33 = vadd.f32 %v264_v0, %v6275_v57  ;;  %v6438_v57 = vld [vmem:[%s7998_s0 + $0x81] sm:$0xff]  ;;  %v4242_v51 = vld [vmem:[%s7998_s0 + $0xd1] sm:$0xff] }
  0xe8   :  { %v710_v34 = vpop.f32.mrf.mxu0  ;;  %v928_v30 = vpack.c.bf16 %v6438_v57, %v5815_v37  ;;  %v5532_v37 = vld [vmem:[%s7997_s1 + $0x290] sm:$0xff] }
  0xe9   :  { %v6428_v27 = vadd.f32 %v708_v5, %v588_v3  ;;  %1620 = vmatpush.bf16.msrb.mxu2 %v5532_v37 }
  0xec   :  { %v402_v48 = vpop.f32.mrf.mxu2 }
  0xed   :  { %v435_v50 = vadd.f32 %v402_v48, %v265_v33  ;;  %v775_v33 = vpack.c.bf16 %v6170_v45, %v6128_v20  ;;  %v5531_v20 = vld [vmem:[%s7997_s1 + $0x288] sm:$0xff] }
  0xee   :  { %v556_v60 = vpop.f32.mrf.mxu3  ;;  %v267_v11 = vpop.f32.mrf.mxu1  ;;  %v5539_v45 = vld [vmem:[%s7997_s1 + $0x2c8] sm:$0xff]  ;;  %1621 = vmatpush.bf16.msrb.mxu2 %v5531_v20 }
  0xef   :  { %v589_v6 = vadd.f32 %v556_v60, %v435_v50  ;;  %v268_v19 = vadd.f32 %v267_v11, %v6327_v39  ;;  %1775 = vmatpush.bf16.msrb.mxu3 %v5539_v45 }
  0xf0   :  { %v713_v32 = vpop.f32.mrf.mxu0 }
  0xf1   :  { %867 = vmatmul.bf16.gmra.mxu1 %v774_v28  ;;  %1021 = vmatmul.bf16.gmra.mxu2 %v928_v30  ;;  %v6456_v58 = vadd.f32 %v710_v34, %v589_v6 }
  0xf3   :  { %1175 = vmatmul.bf16.gmra.mxu3 %v1082_v23  ;;  %1329 = vmatmul.bf16.gmra.mxu0 %v1236_v35  ;;  %v5523_v23 = vld [vmem:[%s7997_s1 + $0x248] sm:$0xff] }
  0xf4   :  { %v405_v2 = vpop.f32.mrf.mxu2  ;;  %v5547_v35 = vld [vmem:[%s7997_s1 + $0x308] sm:$0xff]  ;;  %1466 = vmatpush.bf16.msrb.mxu1 %v5523_v23 }
  0xf5   :  { %v436_v4 = vadd.f32 %v405_v2, %v268_v19  ;;  %1929 = vmatpush.bf16.msrb.mxu0 %v5547_v35  ;;  %v6513_v19 = vld [vmem:[%s7998_s0 + $0x101] sm:$0xff] }
  0xf6   :  { %v559_v39 = vpop.f32.mrf.mxu3  ;;  %v269_v1 = vpop.f32.mrf.mxu1 }
  0xf7   :  { %v590_v15 = vadd.f32 %v559_v39, %v436_v4  ;;  %v270_v42 = vadd.f32 %v269_v1, %v6341_v21  ;;  %v6479_v21 = vld [vmem:[%s7998_s0 + $0xe1] sm:$0xff]  ;;  %v776_v4 = vpack.c.bf16 %v6224_v13, %v6175_v52 }
  0xf8   :  { %v715_v5 = vpop.f32.mrf.mxu0  ;;  %v929_v34 = vpack.c.bf16 %v6479_v21, %v4242_v51  ;;  %v5530_v52 = vld [vmem:[%s7997_s1 + $0x280] sm:$0xff] }
  0xf9   :  { %v6471_v49 = vadd.f32 %v713_v32, %v590_v15  ;;  %v1084_v15 = vpack.c.bf16 %v6234_v16, %v6185_v54  ;;  %v5538_v13 = vld [vmem:[%s7997_s1 + $0x2c0] sm:$0xff]  ;;  %1622 = vmatpush.bf16.msrb.mxu2 %v5530_v52 }
  0xfa   :  { %1776 = vmatpush.bf16.msrb.mxu3 %v5538_v13  ;;  %v6596_v52 = vld [vmem:[%s7998_s0 + $0x142] sm:$0xff] }
  0xfb   :  { %v4377_v13 = vld [vmem:[%s7998_s0 + $0x143] sm:$0xff] }
  0xfc   :  { %v407_v62 = vpop.f32.mrf.mxu2 }
  0xfd   :  { %v437_v0 = vadd.f32 %v407_v62, %v270_v42  ;;  %v1238_v42 = vpack.c.bf16 %v6244_v18, %v6195_v56 }
  0xfe   :  { %v561_v3 = vpop.f32.mrf.mxu3  ;;  %v272_v8 = vpop.f32.mrf.mxu1 }
  0xff   :  { %v591_v48 = vadd.f32 %v561_v3, %v437_v0  ;;  %v273_v22 = vadd.f32 %v272_v8, %v6271_v41  ;;  %v6508_v41 = vld [vmem:[%s7998_s0 + $0xf1] sm:$0xff]  ;;  %v5522_v0 = vld [vmem:[%s7997_s1 + $0x240] sm:$0xff] }
 0x100   :  { %v718_v50 = vpop.f32.mrf.mxu0  ;;  %v930_v39 = vpack.c.bf16 %v6513_v19, %v6508_v41  ;;  %v5546_v3 = vld [vmem:[%s7997_s1 + $0x300] sm:$0xff]  ;;  %1467 = vmatpush.bf16.msrb.mxu1 %v5522_v0  ;;  %v8022_v0 = vld [vmem:[#allocation5_spill] sm:$0xff] }
 0x101   :  { %872 = vmatmul.bf16.gmra.mxu1 %v775_v33  ;;  %1026 = vmatmul.bf16.gmra.mxu2 %v929_v34  ;;  %v6488_v60 = vadd.f32 %v715_v5, %v591_v48  ;;  %v6549_v34 = vld [vmem:[%s7998_s0 + $0x121] sm:$0xff] }
 0x102   :  { %1930 = vmatpush.bf16.msrb.mxu0 %v5546_v3  ;;  %v1086_v3 = vpack.c.bf16 %v6596_v52, %v8022_v0 }
 0x103   :  { %1180 = vmatmul.bf16.gmra.mxu3 %v1083_v43  ;;  %1334 = vmatmul.bf16.gmra.mxu0 %v1237_v46 }
 0x104   :  { %v410_v53 = vpop.f32.mrf.mxu2 }
 0x105   :  { %v438_v24 = vadd.f32 %v410_v53, %v273_v22  ;;  %v1085_v22 = vpack.c.bf16 %v6296_v9, %v6239_v17  ;;  %v8017_v53 = vld [vmem:[#allocation2_spill] sm:$0xff]  ;;  %v8019_v17 = vld [vmem:[#allocation3_spill] sm:$0xff] }
 0x106   :  { %v564_v55 = vpop.f32.mrf.mxu3  ;;  %v274_v28 = vpop.f32.mrf.mxu1 }
 0x107   :  { %v592_v30 = vadd.f32 %v564_v55, %v438_v24  ;;  %v275_v32 = vadd.f32 %v274_v28, %v6319_v25  ;;  %v8018_v24 = vld [vmem:[#allocation6_spill] sm:$0xff] }
 0x108   :  { %v720_v11 = vpop.f32.mrf.mxu0  ;;  %v1239_v55 = vpack.c.bf16 %v8018_v24, %v8017_v53 }
 0x109   :  { %v6503_v6 = vadd.f32 %v718_v50, %v592_v30  ;;  %v777_v50 = vpack.c.bf16 %v6286_v61, %v6229_v14  ;;  %v5569_v14 = vld [vmem:[%s7997_s1 + $0x3b8] sm:$0xff] }
 0x10a   :  { %v5577_v61 = vld [vmem:[%s7997_s1 + $0x3f8] sm:$0xff]  ;;  %2231 = vmatpush.bf16.msra.mxu2 %v5569_v14 }
 0x10b   :  { %2386 = vmatpush.bf16.msra.mxu3 %v5577_v61 }
 0x10c   :  { %v412_v37 = vpop.f32.mrf.mxu2 }
 0x10d   :  { %v439_v63 = vadd.f32 %v412_v37, %v275_v32 }
 0x10e   :  { %v566_v2 = vpop.f32.mrf.mxu3  ;;  %v277_v1 = vpop.f32.mrf.mxu1 }
 0x10f   :  { %v593_v5 = vadd.f32 %v566_v2, %v439_v63  ;;  %v278_v54 = vadd.f32 %v277_v1, %v6337_v10  ;;  %v6544_v10 = vld [vmem:[%s7998_s0 + $0x111] sm:$0xff]  ;;  %v6580_v1 = vld [vmem:[%s7998_s0 + $0x140] sm:$0xff] }
 0x110   :  { %v723_v36 = vpop.f32.mrf.mxu0  ;;  %v931_v20 = vpack.c.bf16 %v6549_v34, %v6544_v10  ;;  %v5561_v2 = vld [vmem:[%s7997_s1 + $0x378] sm:$0xff] }
 0x111   :  { %877 = vmatmul.bf16.gmra.mxu1 %v776_v4  ;;  %1031 = vmatmul.bf16.gmra.mxu2 %v930_v39  ;;  %v6524_v25 = vadd.f32 %v720_v11, %v593_v5  ;;  %v5585_v4 = vld [vmem:[%s7997_s1 + $0x438] sm:$0xff]  ;;  %v8020_v5 = vld [vmem:[#allocation8_spill] sm:$0xff] }
 0x112   :  { %2077 = vmatpush.bf16.msra.mxu1 %v5561_v2  ;;  %2540 = vmatpush.bf16.msra.mxu0 %v5585_v4  ;;  %v6648_v4 = vld [vmem:[%s7998_s0 + $0x31] sm:$0xff] }
 0x113   :  { %1185 = vmatmul.bf16.gmra.mxu3 %v1084_v15  ;;  %1339 = vmatmul.bf16.gmra.mxu0 %v1238_v42  ;;  %v6585_v15 = vld [vmem:[%s7998_s0 + $0x131] sm:$0xff]  ;;  %v6590_v42 = vld [vmem:[%s7998_s0 + $0x141] sm:$0xff] }
 0x114   :  { %v415_v16 = vpop.f32.mrf.mxu2 }
 0x115   :  { %v440_v56 = vadd.f32 %v415_v16, %v278_v54 }
 0x116   :  { %v569_v18 = vpop.f32.mrf.mxu3  ;;  %v279_v47 = vpop.f32.mrf.mxu1 }
 0x117   :  { %v594_v51 = vadd.f32 %v569_v18, %v440_v56  ;;  %v280_v8 = vadd.f32 %v279_v47, %v6349_v40  ;;  %v8021_v18 = vld [vmem:[#allocation4_spill] sm:$0xff] }
 0x118   :  { %v725_v62 = vpop.f32.mrf.mxu0  ;;  %v778_v47 = vpack.c.bf16 %v6580_v1, %v8021_v18 }
 0x119   :  { %v6539_v33 = vadd.f32 %v723_v36, %v594_v51  ;;  %v932_v51 = vpack.c.bf16 %v6590_v42, %v6585_v15 }
 0x11c   :  { %v417_v43 = vpop.f32.mrf.mxu2 }
 0x11d   :  { %v441_v46 = vadd.f32 %v417_v43, %v280_v8  ;;  %v8023_v8 = vld [vmem:[#allocation7_spill] sm:$0xff] }
 0x11e   :  { %v571_v48 = vpop.f32.mrf.mxu3  ;;  %v282_v45 = vpop.f32.mrf.mxu1  ;;  %v1240_v43 = vpack.c.bf16 %v4377_v13, %v8023_v8 }
 0x11f   :  { %v595_v28 = vadd.f32 %v571_v48, %v441_v46  ;;  %v283_v9 = vadd.f32 %v282_v45, %v8019_v17  ;;  %v5576_v45 = vld [vmem:[%s7997_s1 + $0x3f0] sm:$0xff] }
 0x120   :  { %v728_v30 = vpop.f32.mrf.mxu0  ;;  %2387 = vmatpush.bf16.msra.mxu3 %v5576_v45  ;;  %v5560_v17 = vld [vmem:[%s7997_s1 + $0x370] sm:$0xff] }
 0x121   :  { %882 = vmatmul.bf16.gmra.mxu1 %v777_v50  ;;  %1036 = vmatmul.bf16.gmra.mxu2 %v931_v20  ;;  %v6560_v40 = vadd.f32 %v725_v62, %v595_v28  ;;  %v5568_v20 = vld [vmem:[%s7997_s1 + $0x3b0] sm:$0xff] }
 0x122   :  { %2232 = vmatpush.bf16.msra.mxu2 %v5568_v20  ;;  %2078 = vmatpush.bf16.msra.mxu1 %v5560_v17  ;;  %v6695_v17 = vld [vmem:[%s7998_s0 + $0x50] sm:$0xff] }
 0x123   :  { %1190 = vmatmul.bf16.gmra.mxu3 %v1085_v22  ;;  %1344 = vmatmul.bf16.gmra.mxu0 %v1239_v55  ;;  %v8024_v22 = vld [vmem:[#allocation9_spill] sm:$0xff] }
 0x124   :  { %v420_v11 = vpop.f32.mrf.mxu2 }
 0x125   :  { %v442_v23 = vadd.f32 %v420_v11, %v283_v9  ;;  %v5584_v9 = vld [vmem:[%s7997_s1 + $0x430] sm:$0xff] }
 0x126   :  { %v574_v35 = vpop.f32.mrf.mxu3  ;;  %v284_v32 = vpop.f32.mrf.mxu1  ;;  %v4426_v11 = vld [vmem:[%s7998_s0 + $0x14] sm:$0xff]  ;;  %2541 = vmatpush.bf16.msra.mxu0 %v5584_v9  ;;  %v6700_v9 = vld [vmem:[%s7998_s0 + $0x41] sm:$0xff] }
 0x127   :  { %v596_v37 = vadd.f32 %v574_v35, %v442_v23  ;;  %v285_v36 = vadd.f32 %v284_v32, %v8020_v5  ;;  %v6629_v23 = vld [vmem:[%s7998_s0 + $0x24] sm:$0xff] }
 0x128   :  { %v730_v63 = vpop.f32.mrf.mxu0  ;;  %v4490_v32 = vld [vmem:[%s7998_s0 + $0x20] sm:$0xff] }
 0x129   :  { %v6575_v39 = vadd.f32 %v728_v30, %v596_v37  ;;  %v6639_v37 = vld [vmem:[%s7998_s0 + $0x30] sm:$0xff]  ;;  %v4618_v5 = vld [vmem:[%s7998_s0 + $0x22] sm:$0xff] }
 0x12c   :  { %v422_v54 = vpop.f32.mrf.mxu2 }
 0x12d   :  { %v443_v16 = vadd.f32 %v422_v54, %v285_v36  ;;  %v4619_v36 = vld [vmem:[%s7998_s0 + $0x32] sm:$0xff] }
 0x12e   :  { %v576_v56 = vpop.f32.mrf.mxu3  ;;  %v287_v62 = vpop.f32.mrf.mxu1 }
 0x12f   :  { %v597_v46 = vadd.f32 %v576_v56, %v443_v16  ;;  %v288_v53 = vadd.f32 %v287_v62, %v8024_v22  ;;  %v1387_v56 = vpack.c.bf16 %v6629_v23, %v4426_v11  ;;  %v4620_v11 = vld [vmem:[%s7998_s0 + $0x42] sm:$0xff] }
 0x130   :  { %v733_v48 = vpop.f32.mrf.mxu0 }
 0x131   :  { %887 = vmatmul.bf16.gmra.mxu1 %v778_v47  ;;  %1041 = vmatmul.bf16.gmra.mxu2 %v932_v51  ;;  %v6608_v50 = vadd.f32 %v730_v63, %v597_v46  ;;  %v4554_v63 = vld [vmem:[%s7998_s0 + $0x21] sm:$0xff]  ;;  %v1850_v51 = vpack.c.bf16 %v4619_v36, %v4618_v5 }
 0x132   :  { %v1696_v47 = vpack.c.bf16 %v6648_v4, %v4554_v63  ;;  %v5575_v46 = vld [vmem:[%s7997_s1 + $0x3e8] sm:$0xff] }
 0x133   :  { %1195 = vmatmul.bf16.gmra.mxu3 %v1086_v3  ;;  %1349 = vmatmul.bf16.gmra.mxu0 %v1240_v43  ;;  %v5567_v43 = vld [vmem:[%s7997_s1 + $0x3a8] sm:$0xff] }
 0x134   :  { %v425_v24 = vpop.f32.mrf.mxu2  ;;  %2233 = vmatpush.bf16.msra.mxu2 %v5567_v43  ;;  %2388 = vmatpush.bf16.msra.mxu3 %v5575_v46 }
 0x135   :  { %v444_v55 = vadd.f32 %v425_v24, %v288_v53 }
 0x136   :  { %v579_v28 = vpop.f32.mrf.mxu3  ;;  %v289_v30 = vpop.f32.mrf.mxu1 }
 0x137   :  { %v598_v14 = vadd.f32 %v579_v28, %v444_v55  ;;  %v290_v2 = vadd.f32 %v289_v30, %v6351_v59  ;;  %v1542_v59 = vpack.c.bf16 %v6639_v37, %v4490_v32  ;;  %v5559_v55 = vld [vmem:[%s7997_s1 + $0x368] sm:$0xff]  ;;  %v6678_v30 = vld [vmem:[%s7998_s0 + $0x34] sm:$0xff] }
 0x138   :  { %v735_v61 = vpop.f32.mrf.mxu0  ;;  %v5583_v28 = vld [vmem:[%s7997_s1 + $0x428] sm:$0xff]  ;;  %2079 = vmatpush.bf16.msra.mxu1 %v5559_v55  ;;  %v4621_v32 = vld [vmem:[%s7998_s0 + $0x52] sm:$0xff] }
 0x139   :  { %v6631_v35 = vadd.f32 %v733_v48, %v598_v14  ;;  %2542 = vmatpush.bf16.msra.mxu0 %v5583_v28  ;;  %v6750_v55 = vld [vmem:[%s7998_s0 + $0x70] sm:$0xff]  ;;  %v6755_v28 = vld [vmem:[%s7998_s0 + $0x61] sm:$0xff] }
 0x13c   :  { %v427_v13 = vpop.f32.mrf.mxu2 }
 0x13d   :  { %v445_v54 = vadd.f32 %v427_v13, %v290_v2 }
 0x13e   :  { %v581_v16 = vpop.f32.mrf.mxu3  ;;  %v853_v18 = vpop.f32.mrf.mxu1 }
 0x13f   :  { %v599_v62 = vadd.f32 %v581_v16, %v445_v54  ;;  %v893_v0 = vadd.f32 %v853_v18, %v6373_v12  ;;  %v1697_v16 = vpack.c.bf16 %v6402_v44, %v6700_v9 }
 0x140   :  { %v1315_v3 = vpop.f32.mrf.mxu0 }
 0x141   :  { %1468 = vmatmul.bf16.vlgmr.msrb.gmra.mxu1 %v1387_v56  ;;  %1623 = vmatmul.bf16.vlgmr.msrb.gmra.mxu2 %v1542_v59  ;;  %v6660_v8 = vadd.f32 %v735_v61, %v599_v62  ;;  %v6690_v61 = vld [vmem:[%s7998_s0 + $0x40] sm:$0xff]  ;;  %v1851_v56 = vpack.c.bf16 %v4621_v32, %v4620_v11  ;;  %v6760_v11 = vld [vmem:[%s7998_s0 + $0x71] sm:$0xff] }
 0x142   :  { %v1543_v13 = vpack.c.bf16 %v6695_v17, %v6690_v61  ;;  %v5566_v62 = vld [vmem:[%s7997_s1 + $0x3a0] sm:$0xff] }
 0x143   :  { %1777 = vmatmul.bf16.vlgmr.msrb.gmra.mxu3 %v1696_v47  ;;  %1931 = vmatmul.bf16.vlgmr.msrb.gmra.mxu0 %v1850_v51  ;;  %v4622_v32 = vld [vmem:[%s7998_s0 + $0x62] sm:$0xff] }
 0x144   :  { %v1007_v48 = vpop.f32.mrf.mxu2  ;;  %2234 = vmatpush.bf16.msra.mxu2 %v5566_v62 }
 0x145   :  { %v1047_v20 = vadd.f32 %v1007_v48, %v893_v0  ;;  %v5574_v0 = vld [vmem:[%s7997_s1 + $0x3e0] sm:$0xff] }
 0x146   :  { %v1161_v12 = vpop.f32.mrf.mxu3  ;;  %v855_v45 = vpop.f32.mrf.mxu1  ;;  %2389 = vmatpush.bf16.msra.mxu3 %v5574_v0 }
 0x147   :  { %v1201_v22 = vadd.f32 %v1161_v12, %v1047_v20  ;;  %v894_v53 = vadd.f32 %v855_v45, %v6383_v7  ;;  %v6685_v7 = vld [vmem:[%s7998_s0 + $0x44] sm:$0xff] }
 0x148   :  { %v1317_v24 = vpop.f32.mrf.mxu0  ;;  %v1388_v36 = vpack.c.bf16 %v6685_v7, %v6678_v30  ;;  %v5558_v12 = vld [vmem:[%s7997_s1 + $0x360] sm:$0xff] }
 0x149   :  { %v6680_v14 = vadd.f32 %v1315_v3, %v1201_v22  ;;  %v5582_v45 = vld [vmem:[%s7997_s1 + $0x420] sm:$0xff]  ;;  %v6733_v22 = vld [vmem:[%s7998_s0 + $0x54] sm:$0xff]  ;;  %2080 = vmatpush.bf16.msra.mxu1 %v5558_v12 }
 0x14a   :  { %2543 = vmatpush.bf16.msra.mxu0 %v5582_v45  ;;  %v5557_v45 = vld [vmem:[%s7997_s1 + $0x358] sm:$0xff] }
 0x14c   :  { %v1009_v63 = vpop.f32.mrf.mxu2 }
 0x14d   :  { %v1048_v2 = vadd.f32 %v1009_v63, %v894_v53  ;;  %v6738_v53 = vld [vmem:[%s7998_s0 + $0x64] sm:$0xff]  ;;  %v4623_v63 = vld [vmem:[%s7998_s0 + $0x72] sm:$0xff]  ;;  %2081 = vmatpush.bf16.msra.mxu1 %v5557_v45 }
 0x14e   :  { %v1163_v5 = vpop.f32.mrf.mxu3  ;;  %v858_v54 = vpop.f32.mrf.mxu1 }
 0x14f   :  { %v1202_v59 = vadd.f32 %v1163_v5, %v1048_v2  ;;  %v895_v18 = vadd.f32 %v858_v54, %v6397_v38 }
 0x150   :  { %v1320_v47 = vpop.f32.mrf.mxu0 }
 0x151   :  { %1473 = vmatmul.bf16.gmra.mxu1 %v1388_v36  ;;  %1628 = vmatmul.bf16.gmra.mxu2 %v1543_v13  ;;  %v6715_v51 = vadd.f32 %v1317_v24, %v1202_v59  ;;  %v6745_v24 = vld [vmem:[%s7998_s0 + $0x60] sm:$0xff]  ;;  %v1389_v13 = vpack.c.bf16 %v6738_v53, %v6733_v22  ;;  %v1852_v59 = vpack.c.bf16 %v4623_v63, %v4622_v32  ;;  %v5581_v32 = vld [vmem:[%s7997_s1 + $0x418] sm:$0xff] }
 0x152   :  { %v1544_v54 = vpack.c.bf16 %v6750_v55, %v6745_v24  ;;  %2544 = vmatpush.bf16.msra.mxu0 %v5581_v32  ;;  %v5556_v32 = vld [vmem:[%s7997_s1 + $0x350] sm:$0xff] }
 0x153   :  { %1782 = vmatmul.bf16.gmra.mxu3 %v1697_v16  ;;  %1936 = vmatmul.bf16.gmra.mxu0 %v1851_v56  ;;  %v1698_v56 = vpack.c.bf16 %v6760_v11, %v6755_v28 }
 0x154   :  { %v1012_v44 = vpop.f32.mrf.mxu2  ;;  %2082 = vmatpush.bf16.msra.mxu1 %v5556_v32  ;;  %v5571_v32 = vld [vmem:[%s7997_s1 + $0x3c8] sm:$0xff] }
 0x155   :  { %v1049_v3 = vadd.f32 %v1012_v44, %v895_v18  ;;  %v5565_v44 = vld [vmem:[%s7997_s1 + $0x398] sm:$0xff] }
 0x156   :  { %v1166_v38 = vpop.f32.mrf.mxu3  ;;  %v860_v43 = vpop.f32.mrf.mxu1  ;;  %2235 = vmatpush.bf16.msra.mxu2 %v5565_v44 }
 0x157   :  { %v1203_v46 = vadd.f32 %v1166_v38, %v1049_v3  ;;  %v896_v48 = vadd.f32 %v860_v43, %v6413_v26  ;;  %v5573_v3 = vld [vmem:[%s7997_s1 + $0x3d8] sm:$0xff] }
 0x158   :  { %v1322_v20 = vpop.f32.mrf.mxu0  ;;  %2390 = vmatpush.bf16.msra.mxu3 %v5573_v3 }
 0x159   :  { %v6740_v26 = vadd.f32 %v1320_v47, %v1203_v46 }
 0x15c   :  { %v1014_v2 = vpop.f32.mrf.mxu2 }
 0x15d   :  { %v1050_v5 = vadd.f32 %v1014_v2, %v896_v48  ;;  %v6795_v2 = vld [vmem:[%s7998_s0 + $0x74] sm:$0xff] }
 0x15e   :  { %v1168_v36 = vpop.f32.mrf.mxu3  ;;  %v863_v16 = vpop.f32.mrf.mxu1 }
 0x15f   :  { %v1204_v18 = vadd.f32 %v1168_v36, %v1050_v5  ;;  %v897_v47 = vadd.f32 %v863_v16, %v6428_v27  ;;  %v6805_v5 = vld [vmem:[%s7998_s0 + $0x90] sm:$0xff] }
 0x160   :  { %v1325_v62 = vpop.f32.mrf.mxu0  ;;  %v6810_v36 = vld [vmem:[%s7998_s0 + $0x91] sm:$0xff] }
 0x161   :  { %1478 = vmatmul.bf16.gmra.mxu1 %v1389_v13  ;;  %1633 = vmatmul.bf16.gmra.mxu2 %v1544_v54  ;;  %v6775_v0 = vadd.f32 %v1322_v20, %v1204_v18  ;;  %v4625_v13 = vld [vmem:[%s7998_s0 + $0x92] sm:$0xff]  ;;  %v1545_v18 = vpack.c.bf16 %v6805_v5, %v6433_v29 }
 0x162   :  { %v1853_v44 = vpack.c.bf16 %v4625_v13, %v6443_v31  ;;  %v5564_v29 = vld [vmem:[%s7997_s1 + $0x390] sm:$0xff] }
 0x163   :  { %1787 = vmatmul.bf16.gmra.mxu3 %v1698_v56  ;;  %1941 = vmatmul.bf16.gmra.mxu0 %v1852_v59  ;;  %v5580_v13 = vld [vmem:[%s7997_s1 + $0x410] sm:$0xff] }
 0x164   :  { %v1017_v38 = vpop.f32.mrf.mxu2  ;;  %2236 = vmatpush.bf16.msra.mxu2 %v5564_v29  ;;  %2545 = vmatpush.bf16.msra.mxu0 %v5580_v13 }
 0x165   :  { %v1051_v43 = vadd.f32 %v1017_v38, %v897_v47 }
 0x166   :  { %v1171_v27 = vpop.f32.mrf.mxu3  ;;  %v865_v46 = vpop.f32.mrf.mxu1 }
 0x167   :  { %v1205_v48 = vadd.f32 %v1171_v27, %v1051_v43  ;;  %v898_v20 = vadd.f32 %v865_v46, %v6456_v58  ;;  %v6800_v58 = vld [vmem:[%s7998_s0 + $0x84] sm:$0xff] }
 0x168   :  { %v1327_v12 = vpop.f32.mrf.mxu0  ;;  %v1390_v59 = vpack.c.bf16 %v6800_v58, %v6795_v2 }
 0x169   :  { %v6790_v63 = vadd.f32 %v1325_v62, %v1205_v48  ;;  %v1699_v62 = vpack.c.bf16 %v6810_v36, %v6438_v57  ;;  %v5572_v57 = vld [vmem:[%s7997_s1 + $0x3d0] sm:$0xff] }
 0x16a   :  { %2391 = vmatpush.bf16.msra.mxu3 %v5572_v57  ;;  %v1700_v57 = vpack.c.bf16 %v6508_v41, %v6479_v21 }
 0x16c   :  { %v1019_v54 = vpop.f32.mrf.mxu2 }
 0x16d   :  { %v1052_v16 = vadd.f32 %v1019_v54, %v898_v20  ;;  %v4434_v54 = vld [vmem:[%s7998_s0 + $0xd4] sm:$0xff] }
 0x16e   :  { %v1173_v56 = vpop.f32.mrf.mxu3  ;;  %v868_v47 = vpop.f32.mrf.mxu1  ;;  %2392 = vmatpush.bf16.msra.mxu3 %v5571_v32  ;;  %v1701_v32 = vpack.c.bf16 %v6544_v10, %v6513_v19 }
 0x16f   :  { %v1206_v3 = vadd.f32 %v1173_v56, %v1052_v16  ;;  %v899_v38 = vadd.f32 %v868_v47, %v6471_v49  ;;  %v4498_v56 = vld [vmem:[%s7998_s0 + $0xe0] sm:$0xff]  ;;  %v4627_v47 = vld [vmem:[%s7998_s0 + $0xf2] sm:$0xff] }
 0x170   :  { %v1330_v43 = vpop.f32.mrf.mxu0 }
 0x171   :  { %1483 = vmatmul.bf16.gmra.mxu1 %v1390_v59  ;;  %1638 = vmatmul.bf16.gmra.mxu2 %v1545_v18  ;;  %v6823_v27 = vadd.f32 %v1327_v12, %v1206_v3  ;;  %v6854_v59 = vld [vmem:[%s7998_s0 + $0xf0] sm:$0xff]  ;;  %v4626_v18 = vld [vmem:[%s7998_s0 + $0xe2] sm:$0xff] }
 0x173   :  { %1792 = vmatmul.bf16.gmra.mxu3 %v1699_v62  ;;  %1946 = vmatmul.bf16.gmra.mxu0 %v1853_v44 }
 0x174   :  { %v1022_v46 = vpop.f32.mrf.mxu2 }
 0x175   :  { %v1053_v31 = vadd.f32 %v1022_v46, %v899_v38  ;;  %v1854_v46 = vpack.c.bf16 %v4627_v47, %v4626_v18  ;;  %v5555_v18 = vld [vmem:[%s7997_s1 + $0x348] sm:$0xff] }
 0x176   :  { %v1176_v49 = vpop.f32.mrf.mxu3  ;;  %v870_v48 = vpop.f32.mrf.mxu1  ;;  %v5579_v47 = vld [vmem:[%s7997_s1 + $0x408] sm:$0xff]  ;;  %2083 = vmatpush.bf16.msra.mxu1 %v5555_v18  ;;  %v5570_v18 = vld [vmem:[%s7997_s1 + $0x3c0] sm:$0xff] }
 0x177   :  { %v1207_v20 = vadd.f32 %v1176_v49, %v1053_v31  ;;  %v900_v12 = vadd.f32 %v870_v48, %v6488_v60  ;;  %v6846_v60 = vld [vmem:[%s7998_s0 + $0xe4] sm:$0xff]  ;;  %2546 = vmatpush.bf16.msra.mxu0 %v5579_v47  ;;  %2393 = vmatpush.bf16.msra.mxu3 %v5570_v18 }
 0x178   :  { %v1332_v45 = vpop.f32.mrf.mxu0  ;;  %v1391_v38 = vpack.c.bf16 %v6846_v60, %v4434_v54 }
 0x179   :  { %v6841_v16 = vadd.f32 %v1330_v43, %v1207_v20  ;;  %v1546_v43 = vpack.c.bf16 %v6854_v59, %v4498_v56 }
 0x17c   :  { %v1024_v62 = vpop.f32.mrf.mxu2 }
 0x17d   :  { %v1054_v44 = vadd.f32 %v1024_v62, %v900_v12  ;;  %v5563_v12 = vld [vmem:[%s7997_s1 + $0x388] sm:$0xff]  ;;  %v6885_v62 = vld [vmem:[%s7998_s0 + $0xf4] sm:$0xff] }
 0x17e   :  { %v1178_v3 = vpop.f32.mrf.mxu3  ;;  %v873_v29 = vpop.f32.mrf.mxu1  ;;  %2237 = vmatpush.bf16.msra.mxu2 %v5563_v12 }
 0x17f   :  { %v1208_v31 = vadd.f32 %v1178_v3, %v1054_v44  ;;  %v901_v49 = vadd.f32 %v873_v29, %v6503_v6  ;;  %v6897_v3 = vld [vmem:[%s7998_s0 + $0x100] sm:$0xff]  ;;  %v4629_v29 = vld [vmem:[%s7998_s0 + $0x112] sm:$0xff] }
 0x180   :  { %v1335_v48 = vpop.f32.mrf.mxu0 }
 0x181   :  { %1488 = vmatmul.bf16.gmra.mxu1 %v1391_v38  ;;  %1643 = vmatmul.bf16.gmra.mxu2 %v1546_v43  ;;  %v6867_v20 = vadd.f32 %v1332_v45, %v1208_v31  ;;  %v6902_v38 = vld [vmem:[%s7998_s0 + $0x110] sm:$0xff]  ;;  %v4628_v43 = vld [vmem:[%s7998_s0 + $0x102] sm:$0xff] }
 0x183   :  { %1797 = vmatmul.bf16.gmra.mxu3 %v1700_v57  ;;  %1951 = vmatmul.bf16.gmra.mxu0 %v1854_v46 }
 0x184   :  { %v1027_v21 = vpop.f32.mrf.mxu2 }
 0x185   :  { %v1055_v41 = vadd.f32 %v1027_v21, %v901_v49  ;;  %v1855_v21 = vpack.c.bf16 %v4629_v29, %v4628_v43 }
 0x186   :  { %v1181_v6 = vpop.f32.mrf.mxu3  ;;  %v875_v13 = vpop.f32.mrf.mxu1 }
 0x187   :  { %v1209_v54 = vadd.f32 %v1181_v6, %v1055_v41  ;;  %v902_v45 = vadd.f32 %v875_v13, %v6524_v25  ;;  %v6892_v25 = vld [vmem:[%s7998_s0 + $0x104] sm:$0xff] }
 0x188   :  { %v1337_v56 = vpop.f32.mrf.mxu0  ;;  %v1392_v49 = vpack.c.bf16 %v6892_v25, %v6885_v62 }
 0x189   :  { %v6887_v44 = vadd.f32 %v1335_v48, %v1209_v54  ;;  %v1547_v48 = vpack.c.bf16 %v6902_v38, %v6897_v3 }
 0x18c   :  { %v1029_v57 = vpop.f32.mrf.mxu2 }
 0x18d   :  { %v1056_v46 = vadd.f32 %v1029_v57, %v902_v45  ;;  %v5562_v45 = vld [vmem:[%s7997_s1 + $0x380] sm:$0xff] }
 0x18e   :  { %v1183_v31 = vpop.f32.mrf.mxu3  ;;  %v878_v12 = vpop.f32.mrf.mxu1  ;;  %2238 = vmatpush.bf16.msra.mxu2 %v5562_v45  ;;  %v5554_v57 = vld [vmem:[%s7997_s1 + $0x340] sm:$0xff] }
 0x18f   :  { %v1210_v41 = vadd.f32 %v1183_v31, %v1056_v46  ;;  %v903_v6 = vadd.f32 %v878_v12, %v6539_v33  ;;  %v5578_v46 = vld [vmem:[%s7997_s1 + $0x400] sm:$0xff]  ;;  %v6935_v31 = vld [vmem:[%s7998_s0 + $0x114] sm:$0xff]  ;;  %2084 = vmatpush.bf16.msra.mxu1 %v5554_v57 }
 0x190   :  { %v1340_v13 = vpop.f32.mrf.mxu0  ;;  %2547 = vmatpush.bf16.msra.mxu0 %v5578_v46  ;;  %v6952_v12 = vld [vmem:[%s7998_s0 + $0x130] sm:$0xff] }
 0x191   :  { %1493 = vmatmul.bf16.gmra.mxu1 %v1392_v49  ;;  %1648 = vmatmul.bf16.gmra.mxu2 %v1547_v48  ;;  %v6917_v54 = vadd.f32 %v1337_v56, %v1210_v41  ;;  %v6947_v48 = vld [vmem:[%s7998_s0 + $0x120] sm:$0xff] }
 0x192   :  { %v1548_v18 = vpack.c.bf16 %v6952_v12, %v6947_v48 }
 0x193   :  { %1802 = vmatmul.bf16.gmra.mxu3 %v1701_v32  ;;  %1956 = vmatmul.bf16.gmra.mxu0 %v1855_v21  ;;  %v4630_v32 = vld [vmem:[%s7998_s0 + $0x122] sm:$0xff]  ;;  %v4631_v21 = vld [vmem:[%s7998_s0 + $0x132] sm:$0xff] }
 0x194   :  { %v1032_v19 = vpop.f32.mrf.mxu2 }
 0x195   :  { %v1057_v10 = vadd.f32 %v1032_v19, %v903_v6 }
 0x196   :  { %v1186_v33 = vpop.f32.mrf.mxu3  ;;  %v880_v47 = vpop.f32.mrf.mxu1 }
 0x197   :  { %v1211_v43 = vadd.f32 %v1186_v33, %v1057_v10  ;;  %v904_v56 = vadd.f32 %v880_v47, %v6560_v40  ;;  %v6942_v40 = vld [vmem:[%s7998_s0 + $0x124] sm:$0xff]  ;;  %v1702_v10 = vpack.c.bf16 %v6585_v15, %v6549_v34  ;;  %v1856_v33 = vpack.c.bf16 %v4631_v21, %v4630_v32 }
 0x198   :  { %v1342_v29 = vpop.f32.mrf.mxu0  ;;  %v1393_v45 = vpack.c.bf16 %v6942_v40, %v6935_v31 }
 0x199   :  { %v6937_v49 = vadd.f32 %v1340_v13, %v1211_v43 }
 0x19c   :  { %v1034_v41 = vpop.f32.mrf.mxu2 }
 0x19d   :  { %v1058_v6 = vadd.f32 %v1034_v41, %v904_v56  ;;  %v5601_v56 = vld [vmem:[%s7997_s1 + $0x4b8] sm:$0xff] }
 0x19e   :  { %v1188_v13 = vpop.f32.mrf.mxu3  ;;  %v883_v19 = vpop.f32.mrf.mxu1  ;;  %v5609_v41 = vld [vmem:[%s7997_s1 + $0x4f8] sm:$0xff]  ;;  %2848 = vmatpush.bf16.msrb.mxu2 %v5601_v56 }
 0x19f   :  { %v1212_v47 = vadd.f32 %v1188_v13, %v1058_v6  ;;  %v905_v43 = vadd.f32 %v883_v19, %v6575_v39  ;;  %3002 = vmatpush.bf16.msrb.mxu3 %v5609_v41  ;;  %v5593_v13 = vld [vmem:[%s7997_s1 + $0x478] sm:$0xff] }
 0x1a0   :  { %v1345_v57 = vpop.f32.mrf.mxu0  ;;  %2694 = vmatpush.bf16.msrb.mxu1 %v5593_v13  ;;  %v6987_v19 = vld [vmem:[%s7998_s0 + $0x134] sm:$0xff] }
 0x1a1   :  { %1498 = vmatmul.bf16.gmra.mxu1 %v1393_v45  ;;  %1653 = vmatmul.bf16.gmra.mxu2 %v1548_v18  ;;  %v6967_v46 = vadd.f32 %v1342_v29, %v1212_v47  ;;  %v5617_v45 = vld [vmem:[%s7997_s1 + $0x538] sm:$0xff] }
 0x1a2   :  { %3157 = vmatpush.bf16.msrb.mxu0 %v5617_v45  ;;  %v4633_v47 = vld [vmem:[%s7998_s0 + $0x152] sm:$0xff] }
 0x1a3   :  { %1807 = vmatmul.bf16.gmra.mxu3 %v1702_v10  ;;  %1961 = vmatmul.bf16.gmra.mxu0 %v1856_v33  ;;  %v6997_v10 = vld [vmem:[%s7998_s0 + $0x150] sm:$0xff] }
 0x1a4   :  { %v1037_v34 = vpop.f32.mrf.mxu2  ;;  %v7002_v33 = vld [vmem:[%s7998_s0 + $0x151] sm:$0xff] }
 0x1a5   :  { %v1059_v15 = vadd.f32 %v1037_v34, %v905_v43  ;;  %v1549_v34 = vpack.c.bf16 %v6997_v10, %v6580_v1  ;;  %v5600_v1 = vld [vmem:[%s7997_s1 + $0x4b0] sm:$0xff] }
 0x1a6   :  { %v1191_v39 = vpop.f32.mrf.mxu3  ;;  %v885_v32 = vpop.f32.mrf.mxu1  ;;  %2849 = vmatpush.bf16.msrb.mxu2 %v5600_v1 }
 0x1a7   :  { %v1213_v21 = vadd.f32 %v1191_v39, %v1059_v15  ;;  %v906_v29 = vadd.f32 %v885_v32, %v6608_v50  ;;  %v6992_v50 = vld [vmem:[%s7998_s0 + $0x144] sm:$0xff]  ;;  %v1703_v39 = vpack.c.bf16 %v7002_v33, %v6590_v42  ;;  %v1857_v32 = vpack.c.bf16 %v4633_v47, %v6596_v52  ;;  %v5608_v42 = vld [vmem:[%s7997_s1 + $0x4f0] sm:$0xff] }
 0x1a8   :  { %v1347_v6 = vpop.f32.mrf.mxu0  ;;  %v1394_v41 = vpack.c.bf16 %v6992_v50, %v6987_v19  ;;  %3003 = vmatpush.bf16.msrb.mxu3 %v5608_v42  ;;  %v2158_v42 = vpack.c.bf16 %v6678_v30, %v6629_v23  ;;  %v5599_v23 = vld [vmem:[%s7997_s1 + $0x4a8] sm:$0xff] }
 0x1a9   :  { %v6982_v18 = vadd.f32 %v1345_v57, %v1213_v21 }
 0x1aa   :  { %2850 = vmatpush.bf16.msrb.mxu2 %v5599_v23 }
 0x1ac   :  { %v1039_v43 = vpop.f32.mrf.mxu2 }
 0x1ad   :  { %v1060_v57 = vadd.f32 %v1039_v43, %v906_v29 }
 0x1ae   :  { %v1193_v56 = vpop.f32.mrf.mxu3  ;;  %v888_v15 = vpop.f32.mrf.mxu1 }
 0x1af   :  { %v1214_v21 = vadd.f32 %v1193_v56, %v1060_v57  ;;  %v907_v13 = vadd.f32 %v888_v15, %v6631_v35 }
 0x1b0   :  { %v1350_v45 = vpop.f32.mrf.mxu0 }
 0x1b1   :  { %1503 = vmatmul.bf16.gmra.mxu1 %v1394_v41  ;;  %1658 = vmatmul.bf16.gmra.mxu2 %v1549_v34  ;;  %v7015_v29 = vadd.f32 %v1347_v6, %v1214_v21  ;;  %v5592_v41 = vld [vmem:[%s7997_s1 + $0x470] sm:$0xff] }
 0x1b2   :  { %v5616_v34 = vld [vmem:[%s7997_s1 + $0x530] sm:$0xff]  ;;  %2695 = vmatpush.bf16.msrb.mxu1 %v5592_v41 }
 0x1b3   :  { %1812 = vmatmul.bf16.gmra.mxu3 %v1703_v39  ;;  %1966 = vmatmul.bf16.gmra.mxu0 %v1857_v32  ;;  %v4682_v39 = vld [vmem:[%s7998_s0 + $0x23] sm:$0xff] }
 0x1b4   :  { %v1042_v43 = vpop.f32.mrf.mxu2  ;;  %3158 = vmatpush.bf16.msrb.mxu0 %v5616_v34  ;;  %v5591_v34 = vld [vmem:[%s7997_s1 + $0x468] sm:$0xff] }
 0x1b5   :  { %v1061_v52 = vadd.f32 %v1042_v43, %v907_v13 }
 0x1b6   :  { %v1196_v35 = vpop.f32.mrf.mxu3  ;;  %v890_v47 = vpop.f32.mrf.mxu1  ;;  %2696 = vmatpush.bf16.msrb.mxu1 %v5591_v34 }
 0x1b7   :  { %v1215_v57 = vadd.f32 %v1196_v35, %v1061_v52  ;;  %v908_v6 = vadd.f32 %v890_v47, %v6660_v8  ;;  %v7038_v8 = vld [vmem:[%s7998_s0 + $0x33] sm:$0xff]  ;;  %v2467_v52 = vpack.c.bf16 %v6700_v9, %v6648_v4 }
 0x1b8   :  { %v1352_v56 = vpop.f32.mrf.mxu0  ;;  %v2004_v1 = vpack.c.bf16 %v7038_v8, %v4682_v39  ;;  %v5615_v39 = vld [vmem:[%s7997_s1 + $0x528] sm:$0xff] }
 0x1b9   :  { %v7030_v15 = vadd.f32 %v1350_v45, %v1215_v57  ;;  %v2313_v45 = vpack.c.bf16 %v6690_v61, %v6639_v37  ;;  %v5607_v37 = vld [vmem:[%s7997_s1 + $0x4e8] sm:$0xff]  ;;  %3159 = vmatpush.bf16.msrb.mxu0 %v5615_v39 }
 0x1ba   :  { %3004 = vmatpush.bf16.msrb.mxu3 %v5607_v37  ;;  %v7106_v39 = vld [vmem:[%s7998_s0 + $0x63] sm:$0xff] }
 0x1bc   :  { %v1044_v32 = vpop.f32.mrf.mxu2 }
 0x1bd   :  { %v1062_v21 = vadd.f32 %v1044_v32, %v908_v6 }
 0x1be   :  { %v1198_v13 = vpop.f32.mrf.mxu3  ;;  %v1469_v43 = vpop.f32.mrf.mxu1 }
 0x1bf   :  { %v1216_v35 = vadd.f32 %v1198_v13, %v1062_v21  ;;  %v1509_v47 = vadd.f32 %v1469_v43, %v6680_v14  ;;  %v7068_v21 = vld [vmem:[%s7998_s0 + $0x43] sm:$0xff]  ;;  %v4876_v13 = vld [vmem:[%s7998_s0 + $0x51] sm:$0xff] }
 0x1c0   :  { %v1932_v57 = vpop.f32.mrf.mxu0 }
 0x1c1   :  { %2085 = vmatmul.bf16.vlgmr.msra.gmra.mxu1 %v2004_v1  ;;  %2239 = vmatmul.bf16.vlgmr.msra.gmra.mxu2 %v2158_v42  ;;  %v7048_v6 = vadd.f32 %v1352_v56, %v1216_v35 }
 0x1c3   :  { %2394 = vmatmul.bf16.vlgmr.msra.gmra.mxu3 %v2313_v45  ;;  %2548 = vmatmul.bf16.vlgmr.msra.gmra.mxu0 %v2467_v52  ;;  %v2159_v52 = vpack.c.bf16 %v6733_v22, %v6685_v7  ;;  %v5598_v7 = vld [vmem:[%s7997_s1 + $0x4a0] sm:$0xff] }
 0x1c4   :  { %v1624_v30 = vpop.f32.mrf.mxu2  ;;  %2851 = vmatpush.bf16.msrb.mxu2 %v5598_v7 }
 0x1c5   :  { %v1664_v4 = vadd.f32 %v1624_v30, %v1509_v47  ;;  %v2314_v47 = vpack.c.bf16 %v6745_v24, %v6695_v17  ;;  %v5606_v17 = vld [vmem:[%s7997_s1 + $0x4e0] sm:$0xff] }
 0x1c6   :  { %v1778_v14 = vpop.f32.mrf.mxu3  ;;  %v1471_v61 = vpop.f32.mrf.mxu1  ;;  %3005 = vmatpush.bf16.msrb.mxu3 %v5606_v17 }
 0x1c7   :  { %v1818_v9 = vadd.f32 %v1778_v14, %v1664_v4  ;;  %v1510_v56 = vadd.f32 %v1471_v61, %v6715_v51  ;;  %v7073_v51 = vld [vmem:[%s7998_s0 + $0x53] sm:$0xff] }
 0x1c8   :  { %v1934_v41 = vpop.f32.mrf.mxu0  ;;  %v2005_v45 = vpack.c.bf16 %v7073_v51, %v7068_v21 }
 0x1c9   :  { %v7063_v32 = vadd.f32 %v1932_v57, %v1818_v9  ;;  %v2468_v57 = vpack.c.bf16 %v6755_v28, %v4876_v13  ;;  %v7116_v13 = vld [vmem:[%s7998_s0 + $0x80] sm:$0xff] }
 0x1cc   :  { %v1626_v1 = vpop.f32.mrf.mxu2 }
 0x1cd   :  { %v1665_v42 = vadd.f32 %v1626_v1, %v1510_v56  ;;  %v5590_v56 = vld [vmem:[%s7997_s1 + $0x460] sm:$0xff] }
 0x1ce   :  { %v1780_v43 = vpop.f32.mrf.mxu3  ;;  %v1474_v35 = vpop.f32.mrf.mxu1  ;;  %2697 = vmatpush.bf16.msrb.mxu1 %v5590_v56  ;;  %v4879_v1 = vld [vmem:[%s7998_s0 + $0x81] sm:$0xff] }
 0x1cf   :  { %v1819_v23 = vadd.f32 %v1780_v43, %v1665_v42  ;;  %v1511_v37 = vadd.f32 %v1474_v35, %v6740_v26  ;;  %v2160_v35 = vpack.c.bf16 %v6795_v2, %v6738_v53  ;;  %v5597_v53 = vld [vmem:[%s7997_s1 + $0x498] sm:$0xff]  ;;  %v7149_v56 = vld [vmem:[%s7998_s0 + $0x83] sm:$0xff] }
 0x1d0   :  { %v1937_v30 = vpop.f32.mrf.mxu0  ;;  %2852 = vmatpush.bf16.msrb.mxu2 %v5597_v53 }
 0x1d1   :  { %2090 = vmatmul.bf16.gmra.mxu1 %v2005_v45  ;;  %2244 = vmatmul.bf16.gmra.mxu2 %v2159_v52  ;;  %v7086_v4 = vadd.f32 %v1934_v41, %v1819_v23  ;;  %v5614_v41 = vld [vmem:[%s7997_s1 + $0x520] sm:$0xff]  ;;  %v2469_v23 = vpack.c.bf16 %v4879_v1, %v6760_v11 }
 0x1d2   :  { %3160 = vmatpush.bf16.msrb.mxu0 %v5614_v41  ;;  %v7159_v41 = vld [vmem:[%s7998_s0 + $0x94] sm:$0xff]  ;;  %v7164_v1 = vld [vmem:[%s7998_s0 + $0xa0] sm:$0xff] }
 0x1d3   :  { %2399 = vmatmul.bf16.gmra.mxu3 %v2314_v47  ;;  %2553 = vmatmul.bf16.gmra.mxu0 %v2468_v57  ;;  %v2315_v57 = vpack.c.bf16 %v7116_v13, %v6750_v55  ;;  %v5605_v55 = vld [vmem:[%s7997_s1 + $0x4d8] sm:$0xff] }
 0x1d4   :  { %v1629_v22 = vpop.f32.mrf.mxu2  ;;  %3006 = vmatpush.bf16.msrb.mxu3 %v5605_v55 }
 0x1d5   :  { %v1666_v24 = vadd.f32 %v1629_v22, %v1511_v37 }
 0x1d6   :  { %v1783_v26 = vpop.f32.mrf.mxu3  ;;  %v1476_v28 = vpop.f32.mrf.mxu1 }
 0x1d7   :  { %v1820_v14 = vadd.f32 %v1783_v26, %v1666_v24  ;;  %v1512_v61 = vadd.f32 %v1476_v28, %v6775_v0  ;;  %v7111_v0 = vld [vmem:[%s7998_s0 + $0x73] sm:$0xff] }
 0x1d8   :  { %v1939_v9 = vpop.f32.mrf.mxu0  ;;  %v2006_v52 = vpack.c.bf16 %v7111_v0, %v7106_v39 }
 0x1d9   :  { %v7101_v34 = vadd.f32 %v1937_v30, %v1820_v14  ;;  %v5589_v14 = vld [vmem:[%s7997_s1 + $0x458] sm:$0xff] }
 0x1da   :  { %2698 = vmatpush.bf16.msrb.mxu1 %v5589_v14 }
 0x1dc   :  { %v1631_v42 = vpop.f32.mrf.mxu2 }
 0x1dd   :  { %v1667_v43 = vadd.f32 %v1631_v42, %v1512_v61  ;;  %v5613_v61 = vld [vmem:[%s7997_s1 + $0x518] sm:$0xff]  ;;  %v4881_v42 = vld [vmem:[%s7998_s0 + $0xa1] sm:$0xff] }
 0x1de   :  { %v1785_v45 = vpop.f32.mrf.mxu3  ;;  %v1479_v47 = vpop.f32.mrf.mxu1  ;;  %3161 = vmatpush.bf16.msrb.mxu0 %v5613_v61  ;;  %v4690_v61 = vld [vmem:[%s7998_s0 + $0xe3] sm:$0xff] }
 0x1df   :  { %v1821_v37 = vadd.f32 %v1785_v45, %v1667_v43  ;;  %v1513_v30 = vadd.f32 %v1479_v47, %v6790_v63  ;;  %v2161_v47 = vpack.c.bf16 %v7159_v41, %v6800_v58  ;;  %v5596_v58 = vld [vmem:[%s7997_s1 + $0x490] sm:$0xff] }
 0x1e0   :  { %v1942_v7 = vpop.f32.mrf.mxu0  ;;  %2853 = vmatpush.bf16.msrb.mxu2 %v5596_v58 }
 0x1e1   :  { %2095 = vmatmul.bf16.gmra.mxu1 %v2006_v52  ;;  %2249 = vmatmul.bf16.gmra.mxu2 %v2160_v35  ;;  %v7129_v17 = vadd.f32 %v1939_v9, %v1821_v37  ;;  %v2470_v37 = vpack.c.bf16 %v4881_v42, %v6810_v36  ;;  %v4882_v42 = vld [vmem:[%s7998_s0 + $0xf1] sm:$0xff] }
 0x1e3   :  { %2404 = vmatmul.bf16.gmra.mxu3 %v2315_v57  ;;  %2558 = vmatmul.bf16.gmra.mxu0 %v2469_v23  ;;  %v2316_v23 = vpack.c.bf16 %v7164_v1, %v6805_v5  ;;  %v5604_v5 = vld [vmem:[%s7997_s1 + $0x4d0] sm:$0xff] }
 0x1e4   :  { %v1634_v2 = vpop.f32.mrf.mxu2  ;;  %3007 = vmatpush.bf16.msrb.mxu3 %v5604_v5 }
 0x1e5   :  { %v1668_v11 = vadd.f32 %v1634_v2, %v1513_v30 }
 0x1e6   :  { %v1788_v63 = vpop.f32.mrf.mxu3  ;;  %v1481_v22 = vpop.f32.mrf.mxu1 }
 0x1e7   :  { %v1822_v24 = vadd.f32 %v1788_v63, %v1668_v11  ;;  %v1514_v26 = vadd.f32 %v1481_v22, %v6823_v27  ;;  %v7154_v27 = vld [vmem:[%s7998_s0 + $0x93] sm:$0xff] }
 0x1e8   :  { %v1944_v28 = vpop.f32.mrf.mxu0  ;;  %v2007_v35 = vpack.c.bf16 %v7154_v27, %v7149_v56 }
 0x1e9   :  { %v7144_v9 = vadd.f32 %v1942_v7, %v1822_v24 }
 0x1ec   :  { %v1636_v43 = vpop.f32.mrf.mxu2 }
 0x1ed   :  { %v1669_v45 = vadd.f32 %v1636_v43, %v1514_v26  ;;  %v5588_v26 = vld [vmem:[%s7997_s1 + $0x450] sm:$0xff]  ;;  %v4883_v43 = vld [vmem:[%s7998_s0 + $0x101] sm:$0xff] }
 0x1ee   :  { %v1790_v52 = vpop.f32.mrf.mxu3  ;;  %v1484_v57 = vpop.f32.mrf.mxu1  ;;  %2699 = vmatpush.bf16.msrb.mxu1 %v5588_v26  ;;  %v7234_v26 = vld [vmem:[%s7998_s0 + $0x103] sm:$0xff] }
 0x1ef   :  { %v1823_v30 = vadd.f32 %v1790_v52, %v1669_v45  ;;  %v1515_v7 = vadd.f32 %v1484_v57, %v6841_v16  ;;  %v2162_v57 = vpack.c.bf16 %v6885_v62, %v6846_v60  ;;  %v5603_v60 = vld [vmem:[%s7997_s1 + $0x4c8] sm:$0xff] }
 0x1f0   :  { %v1947_v53 = vpop.f32.mrf.mxu0  ;;  %3008 = vmatpush.bf16.msrb.mxu3 %v5603_v60 }
 0x1f1   :  { %2100 = vmatmul.bf16.gmra.mxu1 %v2007_v35  ;;  %2254 = vmatmul.bf16.gmra.mxu2 %v2161_v47  ;;  %v7177_v55 = vadd.f32 %v1944_v28, %v1823_v30  ;;  %v5612_v28 = vld [vmem:[%s7997_s1 + $0x510] sm:$0xff]  ;;  %v2471_v30 = vpack.c.bf16 %v4883_v43, %v4882_v42 }
 0x1f2   :  { %3162 = vmatpush.bf16.msrb.mxu0 %v5612_v28  ;;  %v4884_v28 = vld [vmem:[%s7998_s0 + $0x111] sm:$0xff] }
 0x1f3   :  { %2409 = vmatmul.bf16.gmra.mxu3 %v2316_v23  ;;  %2563 = vmatmul.bf16.gmra.mxu0 %v2470_v37  ;;  %v2317_v37 = vpack.c.bf16 %v6897_v3, %v6854_v59 }
 0x1f4   :  { %v1639_v2 = vpop.f32.mrf.mxu2 }
 0x1f5   :  { %v1670_v36 = vadd.f32 %v1639_v2, %v1515_v7  ;;  %v5595_v2 = vld [vmem:[%s7997_s1 + $0x488] sm:$0xff] }
 0x1f6   :  { %v1793_v16 = vpop.f32.mrf.mxu3  ;;  %v1486_v11 = vpop.f32.mrf.mxu1  ;;  %2854 = vmatpush.bf16.msrb.mxu2 %v5595_v2 }
 0x1f7   :  { %v1824_v63 = vadd.f32 %v1793_v16, %v1670_v36  ;;  %v1516_v22 = vadd.f32 %v1486_v11, %v6867_v20  ;;  %v7200_v20 = vld [vmem:[%s7998_s0 + $0xf3] sm:$0xff] }
 0x1f8   :  { %v1949_v24 = vpop.f32.mrf.mxu0  ;;  %v2008_v47 = vpack.c.bf16 %v7200_v20, %v4690_v61  ;;  %v4885_v61 = vld [vmem:[%s7998_s0 + $0x121] sm:$0xff] }
 0x1f9   :  { %v7192_v14 = vadd.f32 %v1947_v53, %v1824_v63  ;;  %v5587_v63 = vld [vmem:[%s7997_s1 + $0x448] sm:$0xff] }
 0x1fa   :  { %2700 = vmatpush.bf16.msrb.mxu1 %v5587_v63  ;;  %v4887_v63 = vld [vmem:[%s7998_s0 + $0x141] sm:$0xff] }
 0x1fc   :  { %v1641_v45 = vpop.f32.mrf.mxu2 }
 0x1fd   :  { %v1671_v52 = vadd.f32 %v1641_v45, %v1516_v22  ;;  %v5611_v22 = vld [vmem:[%s7997_s1 + $0x508] sm:$0xff] }
 0x1fe   :  { %v1795_v35 = vpop.f32.mrf.mxu3  ;;  %v1489_v23 = vpop.f32.mrf.mxu1  ;;  %3163 = vmatpush.bf16.msrb.mxu0 %v5611_v22 }
 0x1ff   :  { %v1825_v7 = vadd.f32 %v1795_v35, %v1671_v52  ;;  %v1517_v53 = vadd.f32 %v1489_v23, %v6887_v44  ;;  %v2163_v35 = vpack.c.bf16 %v6935_v31, %v6892_v25  ;;  %v2472_v23 = vpack.c.bf16 %v4885_v61, %v4884_v28  ;;  %v5602_v25 = vld [vmem:[%s7997_s1 + $0x4c0] sm:$0xff] }
 0x200   :  { %v1952_v58 = vpop.f32.mrf.mxu0  ;;  %3009 = vmatpush.bf16.msrb.mxu3 %v5602_v25 }
 0x201   :  { %2105 = vmatmul.bf16.gmra.mxu1 %v2008_v47  ;;  %2259 = vmatmul.bf16.gmra.mxu2 %v2162_v57  ;;  %v7214_v5 = vadd.f32 %v1949_v24, %v1825_v7  ;;  %v2318_v57 = vpack.c.bf16 %v6947_v48, %v6902_v38 }
 0x203   :  { %2414 = vmatmul.bf16.gmra.mxu3 %v2317_v37  ;;  %2568 = vmatmul.bf16.gmra.mxu0 %v2471_v30 }
 0x204   :  { %v1644_v59 = vpop.f32.mrf.mxu2 }
 0x205   :  { %v1672_v62 = vadd.f32 %v1644_v59, %v1517_v53 }
 0x206   :  { %v1798_v44 = vpop.f32.mrf.mxu3  ;;  %v1491_v3 = vpop.f32.mrf.mxu1 }
 0x207   :  { %v1826_v36 = vadd.f32 %v1798_v44, %v1672_v62  ;;  %v1518_v16 = vadd.f32 %v1491_v3, %v6917_v54  ;;  %v7239_v54 = vld [vmem:[%s7998_s0 + $0x113] sm:$0xff]  ;;  %v5586_v62 = vld [vmem:[%s7997_s1 + $0x440] sm:$0xff] }
 0x208   :  { %v1954_v11 = vpop.f32.mrf.mxu0  ;;  %v2009_v52 = vpack.c.bf16 %v7239_v54, %v7234_v26  ;;  %v5610_v44 = vld [vmem:[%s7997_s1 + $0x500] sm:$0xff]  ;;  %2701 = vmatpush.bf16.msrb.mxu1 %v5586_v62 }
 0x209   :  { %v7229_v24 = vadd.f32 %v1952_v58, %v1826_v36  ;;  %v5594_v58 = vld [vmem:[%s7997_s1 + $0x480] sm:$0xff]  ;;  %3164 = vmatpush.bf16.msrb.mxu0 %v5610_v44 }
 0x20a   :  { %2855 = vmatpush.bf16.msrb.mxu2 %v5594_v58  ;;  %v7274_v36 = vld [vmem:[%s7998_s0 + $0x123] sm:$0xff] }
 0x20b   :  { %v4889_v62 = vld [vmem:[%s7998_s0 + $0x161] sm:$0xff] }
 0x20c   :  { %v1646_v42 = vpop.f32.mrf.mxu2 }
 0x20d   :  { %v1673_v43 = vadd.f32 %v1646_v42, %v1518_v16  ;;  %v7284_v16 = vld [vmem:[%s7998_s0 + $0x140] sm:$0xff] }
 0x20e   :  { %v1800_v45 = vpop.f32.mrf.mxu3  ;;  %v1494_v47 = vpop.f32.mrf.mxu1 }
 0x20f   :  { %v1827_v37 = vadd.f32 %v1800_v45, %v1673_v43  ;;  %v1519_v30 = vadd.f32 %v1494_v47, %v6937_v49  ;;  %v2164_v43 = vpack.c.bf16 %v6987_v19, %v6942_v40  ;;  %v5641_v40 = vld [vmem:[%s7997_s1 + $0x5f8] sm:$0xff] }
 0x210   :  { %v1957_v7 = vpop.f32.mrf.mxu0  ;;  %3619 = vmatpush.bf16.msra.mxu3 %v5641_v40 }
 0x211   :  { %2110 = vmatmul.bf16.gmra.mxu1 %v2009_v52  ;;  %2264 = vmatmul.bf16.gmra.mxu2 %v2163_v35  ;;  %v7254_v53 = vadd.f32 %v1954_v11, %v1827_v37  ;;  %v4886_v11 = vld [vmem:[%s7998_s0 + $0x131] sm:$0xff]  ;;  %v2319_v52 = vpack.c.bf16 %v7284_v16, %v6952_v12 }
 0x212   :  { %v2473_v35 = vpack.c.bf16 %v4887_v63, %v4886_v11 }
 0x213   :  { %2419 = vmatmul.bf16.gmra.mxu3 %v2318_v57  ;;  %2573 = vmatmul.bf16.gmra.mxu0 %v2472_v23 }
 0x214   :  { %v1649_v38 = vpop.f32.mrf.mxu2 }
 0x215   :  { %v1674_v31 = vadd.f32 %v1649_v38, %v1519_v30  ;;  %v5633_v30 = vld [vmem:[%s7997_s1 + $0x5b8] sm:$0xff] }
 0x216   :  { %v1803_v49 = vpop.f32.mrf.mxu3  ;;  %v1496_v48 = vpop.f32.mrf.mxu1  ;;  %3465 = vmatpush.bf16.msra.mxu2 %v5633_v30 }
 0x217   :  { %v1828_v2 = vadd.f32 %v1803_v49, %v1674_v31  ;;  %v1520_v60 = vadd.f32 %v1496_v48, %v6967_v46  ;;  %v7279_v46 = vld [vmem:[%s7998_s0 + $0x133] sm:$0xff] }
 0x218   :  { %v1959_v59 = vpop.f32.mrf.mxu0  ;;  %v2010_v42 = vpack.c.bf16 %v7279_v46, %v7274_v36  ;;  %v5625_v31 = vld [vmem:[%s7997_s1 + $0x578] sm:$0xff] }
 0x219   :  { %v7269_v3 = vadd.f32 %v1957_v7, %v1828_v2  ;;  %v5649_v49 = vld [vmem:[%s7997_s1 + $0x638] sm:$0xff]  ;;  %3311 = vmatpush.bf16.msra.mxu1 %v5625_v31  ;;  %v7319_v2 = vld [vmem:[%s7998_s0 + $0x143] sm:$0xff] }
 0x21a   :  { %3773 = vmatpush.bf16.msra.mxu0 %v5649_v49  ;;  %v5130_v31 = vld [vmem:[%s7998_s0 + $0x40] sm:$0xff]  ;;  %v5131_v49 = vld [vmem:[%s7998_s0 + $0x50] sm:$0xff] }
 0x21c   :  { %v1651_v22 = vpop.f32.mrf.mxu2 }
 0x21d   :  { %v1675_v28 = vadd.f32 %v1651_v22, %v1520_v60  ;;  %v7329_v60 = vld [vmem:[%s7998_s0 + $0x154] sm:$0xff] }
 0x21e   :  { %v1805_v61 = vpop.f32.mrf.mxu3  ;;  %v1499_v45 = vpop.f32.mrf.mxu1 }
 0x21f   :  { %v1829_v47 = vadd.f32 %v1805_v61, %v1675_v28  ;;  %v1521_v57 = vadd.f32 %v1499_v45, %v6982_v18  ;;  %v2165_v28 = vpack.c.bf16 %v7329_v60, %v6992_v50  ;;  %v5632_v50 = vld [vmem:[%s7997_s1 + $0x5b0] sm:$0xff] }
 0x220   :  { %v1962_v23 = vpop.f32.mrf.mxu0  ;;  %3466 = vmatpush.bf16.msra.mxu2 %v5632_v50  ;;  %v5631_v50 = vld [vmem:[%s7997_s1 + $0x5a8] sm:$0xff] }
 0x221   :  { %2115 = vmatmul.bf16.gmra.mxu1 %v2010_v42  ;;  %2269 = vmatmul.bf16.gmra.mxu2 %v2164_v43  ;;  %v7299_v37 = vadd.f32 %v1959_v59, %v1829_v47  ;;  %v7334_v59 = vld [vmem:[%s7998_s0 + $0x160] sm:$0xff]  ;;  %v2474_v43 = vpack.c.bf16 %v4889_v62, %v7002_v33 }
 0x222   :  { %v2320_v42 = vpack.c.bf16 %v7334_v59, %v6997_v10  ;;  %v5640_v10 = vld [vmem:[%s7997_s1 + $0x5f0] sm:$0xff] }
 0x223   :  { %2424 = vmatmul.bf16.gmra.mxu3 %v2319_v52  ;;  %2578 = vmatmul.bf16.gmra.mxu0 %v2473_v35 }
 0x224   :  { %v1654_v12 = vpop.f32.mrf.mxu2  ;;  %3620 = vmatpush.bf16.msra.mxu3 %v5640_v10  ;;  %3467 = vmatpush.bf16.msra.mxu2 %v5631_v50  ;;  %v5630_v50 = vld [vmem:[%s7997_s1 + $0x5a0] sm:$0xff] }
 0x225   :  { %v1676_v19 = vadd.f32 %v1654_v12, %v1521_v57 }
 0x226   :  { %v1808_v18 = vpop.f32.mrf.mxu3  ;;  %v1501_v7 = vpop.f32.mrf.mxu1 }
 0x227   :  { %v1830_v58 = vadd.f32 %v1808_v18, %v1676_v19  ;;  %v1522_v25 = vadd.f32 %v1501_v7, %v7015_v29  ;;  %v7324_v29 = vld [vmem:[%s7998_s0 + $0x153] sm:$0xff] }
 0x228   :  { %v1964_v38 = vpop.f32.mrf.mxu0  ;;  %v2011_v22 = vpack.c.bf16 %v7324_v29, %v7319_v2  ;;  %v5624_v19 = vld [vmem:[%s7997_s1 + $0x570] sm:$0xff]  ;;  %3468 = vmatpush.bf16.msra.mxu2 %v5630_v50 }
 0x229   :  { %v7314_v48 = vadd.f32 %v1962_v23, %v1830_v58  ;;  %v5648_v18 = vld [vmem:[%s7997_s1 + $0x630] sm:$0xff]  ;;  %3312 = vmatpush.bf16.msra.mxu1 %v5624_v19 }
 0x22a   :  { %3774 = vmatpush.bf16.msra.mxu0 %v5648_v18  ;;  %v4938_v58 = vld [vmem:[%s7998_s0 + $0x32] sm:$0xff] }
 0x22b   :  { %v7411_v19 = vld [vmem:[%s7998_s0 + $0x52] sm:$0xff] }
 0x22c   :  { %v1656_v44 = vpop.f32.mrf.mxu2  ;;  %v7421_v18 = vld [vmem:[%s7998_s0 + $0x54] sm:$0xff] }
 0x22d   :  { %v1677_v11 = vadd.f32 %v1656_v44, %v1522_v25  ;;  %v5066_v25 = vld [vmem:[%s7998_s0 + $0x34] sm:$0xff] }
 0x22e   :  { %v1810_v63 = vpop.f32.mrf.mxu3  ;;  %v1504_v61 = vpop.f32.mrf.mxu1 }
 0x22f   :  { %v1831_v45 = vadd.f32 %v1810_v63, %v1677_v11  ;;  %v1523_v52 = vadd.f32 %v1504_v61, %v7030_v15 }
 0x230   :  { %v1967_v35 = vpop.f32.mrf.mxu0 }
 0x231   :  { %2120 = vmatmul.bf16.gmra.mxu1 %v2011_v22  ;;  %2274 = vmatmul.bf16.gmra.mxu2 %v2165_v28  ;;  %v7347_v47 = vadd.f32 %v1964_v38, %v1831_v45  ;;  %v7378_v38 = vld [vmem:[%s7998_s0 + $0x44] sm:$0xff]  ;;  %v2775_v22 = vpack.c.bf16 %v7068_v21, %v7038_v8 }
 0x232   :  { %v2929_v61 = vpack.c.bf16 %v7378_v38, %v5066_v25  ;;  %v5639_v8 = vld [vmem:[%s7997_s1 + $0x5e8] sm:$0xff]  ;;  %v5132_v25 = vld [vmem:[%s7998_s0 + $0x60] sm:$0xff] }
 0x233   :  { %2429 = vmatmul.bf16.gmra.mxu3 %v2320_v42  ;;  %2583 = vmatmul.bf16.gmra.mxu0 %v2474_v43  ;;  %v3084_v42 = vpack.c.bf16 %v5131_v49, %v5130_v31  ;;  %v5133_v31 = vld [vmem:[%s7998_s0 + $0x70] sm:$0xff] }
 0x234   :  { %v1659_v57 = vpop.f32.mrf.mxu2  ;;  %3621 = vmatpush.bf16.msra.mxu3 %v5639_v8 }
 0x235   :  { %v1678_v33 = vadd.f32 %v1659_v57, %v1523_v52 }
 0x236   :  { %v1813_v15 = vpop.f32.mrf.mxu3  ;;  %v1506_v23 = vpop.f32.mrf.mxu1 }
 0x237   :  { %v1832_v30 = vadd.f32 %v1813_v15, %v1678_v33  ;;  %v1524_v40 = vadd.f32 %v1506_v23, %v7048_v6  ;;  %v7370_v6 = vld [vmem:[%s7998_s0 + $0x42] sm:$0xff] }
 0x238   :  { %v1969_v12 = vpop.f32.mrf.mxu0  ;;  %v2621_v63 = vpack.c.bf16 %v7370_v6, %v4938_v58  ;;  %v7426_v58 = vld [vmem:[%s7998_s0 + $0x64] sm:$0xff] }
 0x239   :  { %v7362_v7 = vadd.f32 %v1967_v35, %v1832_v30  ;;  %v5623_v30 = vld [vmem:[%s7997_s1 + $0x568] sm:$0xff] }
 0x23a   :  { %3313 = vmatpush.bf16.msra.mxu1 %v5623_v30  ;;  %v7461_v30 = vld [vmem:[%s7998_s0 + $0x72] sm:$0xff] }
 0x23c   :  { %v1661_v62 = vpop.f32.mrf.mxu2 }
 0x23d   :  { %v1679_v44 = vadd.f32 %v1661_v62, %v1524_v40  ;;  %v5647_v40 = vld [vmem:[%s7997_s1 + $0x628] sm:$0xff] }
 0x23e   :  { %v1815_v11 = vpop.f32.mrf.mxu3  ;;  %v2086_v28 = vpop.f32.mrf.mxu1  ;;  %3775 = vmatpush.bf16.msra.mxu0 %v5647_v40  ;;  %v7471_v40 = vld [vmem:[%s7998_s0 + $0x74] sm:$0xff] }
 0x23f   :  { %v1833_v43 = vadd.f32 %v1815_v11, %v1679_v44  ;;  %v2126_v45 = vadd.f32 %v2086_v28, %v7063_v32  ;;  %v2930_v28 = vpack.c.bf16 %v7426_v58, %v7421_v18 }
 0x240   :  { %v2549_v52 = vpop.f32.mrf.mxu0 }
 0x241   :  { %2702 = vmatmul.bf16.vlgmr.msrb.gmra.mxu1 %v2621_v63  ;;  %2856 = vmatmul.bf16.vlgmr.msrb.gmra.mxu2 %v2775_v22  ;;  %v7391_v35 = vadd.f32 %v1969_v12, %v1833_v43  ;;  %v2776_v63 = vpack.c.bf16 %v7106_v39, %v7073_v51  ;;  %v5638_v51 = vld [vmem:[%s7997_s1 + $0x5e0] sm:$0xff] }
 0x242   :  { %3622 = vmatpush.bf16.msra.mxu3 %v5638_v51 }
 0x243   :  { %3010 = vmatmul.bf16.vlgmr.msrb.gmra.mxu3 %v2929_v61  ;;  %3165 = vmatmul.bf16.vlgmr.msrb.gmra.mxu0 %v3084_v42  ;;  %v3085_v61 = vpack.c.bf16 %v5133_v31, %v5132_v25  ;;  %v7476_v25 = vld [vmem:[%s7998_s0 + $0x84] sm:$0xff]  ;;  %v5135_v31 = vld [vmem:[%s7998_s0 + $0x90] sm:$0xff] }
 0x244   :  { %v2240_v21 = vpop.f32.mrf.mxu2 }
 0x245   :  { %v2280_v10 = vadd.f32 %v2240_v21, %v2126_v45 }
 0x246   :  { %v2395_v32 = vpop.f32.mrf.mxu3  ;;  %v2088_v57 = vpop.f32.mrf.mxu1 }
 0x247   :  { %v2435_v33 = vadd.f32 %v2395_v32, %v2280_v10  ;;  %v2127_v15 = vadd.f32 %v2088_v57, %v7086_v4  ;;  %v7416_v4 = vld [vmem:[%s7998_s0 + $0x62] sm:$0xff] }
 0x248   :  { %v2551_v23 = vpop.f32.mrf.mxu0  ;;  %v2622_v11 = vpack.c.bf16 %v7416_v4, %v7411_v19 }
 0x249   :  { %v7406_v12 = vadd.f32 %v2549_v52, %v2435_v33  ;;  %v5622_v33 = vld [vmem:[%s7997_s1 + $0x560] sm:$0xff] }
 0x24a   :  { %3314 = vmatpush.bf16.msra.mxu1 %v5622_v33  ;;  %v7509_v33 = vld [vmem:[%s7998_s0 + $0x92] sm:$0xff] }
 0x24c   :  { %v2242_v49 = vpop.f32.mrf.mxu2 }
 0x24d   :  { %v2281_v62 = vadd.f32 %v2242_v49, %v2127_v15  ;;  %v5646_v15 = vld [vmem:[%s7997_s1 + $0x620] sm:$0xff] }
 0x24e   :  { %v2397_v44 = vpop.f32.mrf.mxu3  ;;  %v2091_v22 = vpop.f32.mrf.mxu1  ;;  %3776 = vmatpush.bf16.msra.mxu0 %v5646_v15  ;;  %v7519_v15 = vld [vmem:[%s7998_s0 + $0xa3] sm:$0xff] }
 0x24f   :  { %v2436_v42 = vadd.f32 %v2397_v44, %v2281_v62  ;;  %v2128_v43 = vadd.f32 %v2091_v22, %v7101_v34 }
 0x250   :  { %v2554_v45 = vpop.f32.mrf.mxu0 }
 0x251   :  { %2707 = vmatmul.bf16.gmra.mxu1 %v2622_v11  ;;  %2861 = vmatmul.bf16.gmra.mxu2 %v2776_v63  ;;  %v7441_v52 = vadd.f32 %v2551_v23, %v2436_v42  ;;  %v2777_v63 = vpack.c.bf16 %v7149_v56, %v7111_v0  ;;  %v5629_v0 = vld [vmem:[%s7997_s1 + $0x598] sm:$0xff] }
 0x252   :  { %v5637_v56 = vld [vmem:[%s7997_s1 + $0x5d8] sm:$0xff]  ;;  %3469 = vmatpush.bf16.msra.mxu2 %v5629_v0 }
 0x253   :  { %3015 = vmatmul.bf16.gmra.mxu3 %v2930_v28  ;;  %3170 = vmatmul.bf16.gmra.mxu0 %v3085_v61  ;;  %v2931_v28 = vpack.c.bf16 %v7476_v25, %v7471_v40  ;;  %v3086_v61 = vpack.c.bf16 %v5135_v31, %v7116_v13  ;;  %v7524_v31 = vld [vmem:[%s7998_s0 + $0xa4] sm:$0xff] }
 0x254   :  { %v2245_v39 = vpop.f32.mrf.mxu2  ;;  %3623 = vmatpush.bf16.msra.mxu3 %v5637_v56 }
 0x255   :  { %v2282_v8 = vadd.f32 %v2245_v39, %v2128_v43 }
 0x256   :  { %v2400_v34 = vpop.f32.mrf.mxu3  ;;  %v2093_v21 = vpop.f32.mrf.mxu1 }
 0x257   :  { %v2437_v10 = vadd.f32 %v2400_v34, %v2282_v8  ;;  %v2129_v32 = vadd.f32 %v2093_v21, %v7129_v17  ;;  %v7466_v17 = vld [vmem:[%s7998_s0 + $0x82] sm:$0xff] }
 0x258   :  { %v2556_v57 = vpop.f32.mrf.mxu0  ;;  %v2623_v11 = vpack.c.bf16 %v7466_v17, %v7461_v30 }
 0x259   :  { %v7456_v23 = vadd.f32 %v2554_v45, %v2437_v10  ;;  %v5621_v10 = vld [vmem:[%s7997_s1 + $0x558] sm:$0xff] }
 0x25a   :  { %3315 = vmatpush.bf16.msra.mxu1 %v5621_v10 }
 0x25c   :  { %v2247_v49 = vpop.f32.mrf.mxu2 }
 0x25d   :  { %v2283_v62 = vadd.f32 %v2247_v49, %v2129_v32  ;;  %v5645_v32 = vld [vmem:[%s7997_s1 + $0x618] sm:$0xff]  ;;  %v5137_v49 = vld [vmem:[%s7998_s0 + $0xb0] sm:$0xff] }
 0x25e   :  { %v2402_v44 = vpop.f32.mrf.mxu3  ;;  %v2096_v22 = vpop.f32.mrf.mxu1  ;;  %3777 = vmatpush.bf16.msra.mxu0 %v5645_v32  ;;  %v4946_v32 = vld [vmem:[%s7998_s0 + $0xf2] sm:$0xff] }
 0x25f   :  { %v2438_v42 = vadd.f32 %v2402_v44, %v2283_v62  ;;  %v2130_v43 = vadd.f32 %v2096_v22, %v7144_v9  ;;  %v2778_v22 = vpack.c.bf16 %v7519_v15, %v7154_v27  ;;  %v5628_v27 = vld [vmem:[%s7997_s1 + $0x590] sm:$0xff] }
 0x260   :  { %v2559_v45 = vpop.f32.mrf.mxu0  ;;  %3470 = vmatpush.bf16.msra.mxu2 %v5628_v27 }
 0x261   :  { %2712 = vmatmul.bf16.gmra.mxu1 %v2623_v11  ;;  %2866 = vmatmul.bf16.gmra.mxu2 %v2777_v63  ;;  %v7489_v50 = vadd.f32 %v2556_v57, %v2438_v42  ;;  %v3087_v42 = vpack.c.bf16 %v5137_v49, %v7164_v1  ;;  %v5074_v49 = vld [vmem:[%s7998_s0 + $0xf4] sm:$0xff] }
 0x263   :  { %3020 = vmatmul.bf16.gmra.mxu3 %v2931_v28  ;;  %3175 = vmatmul.bf16.gmra.mxu0 %v3086_v61  ;;  %v2932_v61 = vpack.c.bf16 %v7524_v31, %v7159_v41  ;;  %v5636_v41 = vld [vmem:[%s7997_s1 + $0x5d0] sm:$0xff] }
 0x264   :  { %v2250_v51 = vpop.f32.mrf.mxu2  ;;  %3624 = vmatpush.bf16.msra.mxu3 %v5636_v41 }
 0x265   :  { %v2284_v13 = vadd.f32 %v2250_v51, %v2130_v43 }
 0x266   :  { %v2405_v9 = vpop.f32.mrf.mxu3  ;;  %v2098_v39 = vpop.f32.mrf.mxu1 }
 0x267   :  { %v2439_v8 = vadd.f32 %v2405_v9, %v2284_v13  ;;  %v2131_v34 = vadd.f32 %v2098_v39, %v7177_v55  ;;  %v7514_v55 = vld [vmem:[%s7998_s0 + $0xa2] sm:$0xff] }
 0x268   :  { %v2561_v21 = vpop.f32.mrf.mxu0  ;;  %v2624_v63 = vpack.c.bf16 %v7514_v55, %v7509_v33 }
 0x269   :  { %v7504_v57 = vadd.f32 %v2559_v45, %v2439_v8 }
 0x26c   :  { %v2252_v62 = vpop.f32.mrf.mxu2 }
 0x26d   :  { %v2285_v44 = vadd.f32 %v2252_v62, %v2131_v34  ;;  %v5620_v34 = vld [vmem:[%s7997_s1 + $0x550] sm:$0xff]  ;;  %v7568_v62 = vld [vmem:[%s7998_s0 + $0x104] sm:$0xff] }
 0x26e   :  { %v2407_v11 = vpop.f32.mrf.mxu3  ;;  %v2101_v28 = vpop.f32.mrf.mxu1  ;;  %3316 = vmatpush.bf16.msra.mxu1 %v5620_v34 }
 0x26f   :  { %v2440_v43 = vadd.f32 %v2407_v11, %v2285_v44  ;;  %v2132_v45 = vadd.f32 %v2101_v28, %v7192_v14  ;;  %v5138_v44 = vld [vmem:[%s7998_s0 + $0x100] sm:$0xff]  ;;  %v5139_v11 = vld [vmem:[%s7998_s0 + $0x110] sm:$0xff] }
 0x270   :  { %v2564_v0 = vpop.f32.mrf.mxu0 }
 0x271   :  { %2717 = vmatmul.bf16.gmra.mxu1 %v2624_v63  ;;  %2871 = vmatmul.bf16.gmra.mxu2 %v2778_v22  ;;  %v7537_v56 = vadd.f32 %v2561_v21, %v2440_v43  ;;  %v5644_v21 = vld [vmem:[%s7997_s1 + $0x610] sm:$0xff] }
 0x272   :  { %3778 = vmatpush.bf16.msra.mxu0 %v5644_v21  ;;  %v5619_v21 = vld [vmem:[%s7997_s1 + $0x548] sm:$0xff] }
 0x273   :  { %3025 = vmatmul.bf16.gmra.mxu3 %v2932_v61  ;;  %3180 = vmatmul.bf16.gmra.mxu0 %v3087_v42  ;;  %v2779_v42 = vpack.c.bf16 %v7234_v26, %v7200_v20  ;;  %v5635_v20 = vld [vmem:[%s7997_s1 + $0x5c8] sm:$0xff] }
 0x274   :  { %v2255_v51 = vpop.f32.mrf.mxu2  ;;  %3625 = vmatpush.bf16.msra.mxu3 %v5635_v20  ;;  %3317 = vmatpush.bf16.msra.mxu1 %v5619_v21 }
 0x275   :  { %v2286_v1 = vadd.f32 %v2255_v51, %v2132_v45  ;;  %v2933_v45 = vpack.c.bf16 %v7568_v62, %v5074_v49 }
 0x276   :  { %v2410_v14 = vpop.f32.mrf.mxu3  ;;  %v2103_v13 = vpop.f32.mrf.mxu1 }
 0x277   :  { %v2441_v9 = vadd.f32 %v2410_v14, %v2286_v1  ;;  %v2133_v39 = vadd.f32 %v2103_v13, %v7214_v5  ;;  %v7560_v5 = vld [vmem:[%s7998_s0 + $0x102] sm:$0xff] }
 0x278   :  { %v2566_v8 = vpop.f32.mrf.mxu0  ;;  %v2625_v61 = vpack.c.bf16 %v7560_v5, %v4946_v32  ;;  %v5627_v14 = vld [vmem:[%s7997_s1 + $0x588] sm:$0xff] }
 0x279   :  { %v7552_v10 = vadd.f32 %v2564_v0, %v2441_v9  ;;  %v3088_v0 = vpack.c.bf16 %v5139_v11, %v5138_v44  ;;  %3471 = vmatpush.bf16.msra.mxu2 %v5627_v14  ;;  %v5643_v32 = vld [vmem:[%s7997_s1 + $0x608] sm:$0xff]  ;;  %v7601_v44 = vld [vmem:[%s7998_s0 + $0x112] sm:$0xff] }
 0x27a   :  { %3779 = vmatpush.bf16.msra.mxu0 %v5643_v32  ;;  %v7611_v11 = vld [vmem:[%s7998_s0 + $0x114] sm:$0xff]  ;;  %v5618_v32 = vld [vmem:[%s7997_s1 + $0x540] sm:$0xff] }
 0x27b   :  { %3318 = vmatpush.bf16.msra.mxu1 %v5618_v32 }
 0x27c   :  { %v2257_v63 = vpop.f32.mrf.mxu2 }
 0x27d   :  { %v2287_v22 = vadd.f32 %v2257_v63, %v2133_v39  ;;  %v7616_v63 = vld [vmem:[%s7998_s0 + $0x124] sm:$0xff] }
 0x27e   :  { %v2412_v28 = vpop.f32.mrf.mxu3  ;;  %v2106_v43 = vpop.f32.mrf.mxu1 }
 0x27f   :  { %v2442_v27 = vadd.f32 %v2412_v28, %v2287_v22  ;;  %v2134_v41 = vadd.f32 %v2106_v43, %v7229_v24  ;;  %v5140_v22 = vld [vmem:[%s7998_s0 + $0x120] sm:$0xff]  ;;  %v5141_v28 = vld [vmem:[%s7998_s0 + $0x130] sm:$0xff] }
 0x280   :  { %v2569_v51 = vpop.f32.mrf.mxu0 }
 0x281   :  { %2722 = vmatmul.bf16.gmra.mxu1 %v2625_v61  ;;  %2876 = vmatmul.bf16.gmra.mxu2 %v2779_v42  ;;  %v7581_v1 = vadd.f32 %v2566_v8, %v2442_v27 }
 0x283   :  { %3030 = vmatmul.bf16.gmra.mxu3 %v2933_v45  ;;  %3185 = vmatmul.bf16.gmra.mxu0 %v3088_v0  ;;  %v2780_v0 = vpack.c.bf16 %v7274_v36, %v7239_v54  ;;  %v5634_v54 = vld [vmem:[%s7997_s1 + $0x5c0] sm:$0xff] }
 0x284   :  { %v2260_v26 = vpop.f32.mrf.mxu2  ;;  %3626 = vmatpush.bf16.msra.mxu3 %v5634_v54 }
 0x285   :  { %v2288_v13 = vadd.f32 %v2260_v26, %v2134_v41  ;;  %v2934_v41 = vpack.c.bf16 %v7616_v63, %v7611_v11 }
 0x286   :  { %v2415_v24 = vpop.f32.mrf.mxu3  ;;  %v2108_v9 = vpop.f32.mrf.mxu1 }
 0x287   :  { %v2443_v39 = vadd.f32 %v2415_v24, %v2288_v13  ;;  %v2135_v8 = vadd.f32 %v2108_v9, %v7254_v53  ;;  %v7606_v53 = vld [vmem:[%s7998_s0 + $0x122] sm:$0xff] }
 0x288   :  { %v2571_v34 = vpop.f32.mrf.mxu0  ;;  %v2626_v45 = vpack.c.bf16 %v7606_v53, %v7601_v44  ;;  %v5626_v24 = vld [vmem:[%s7997_s1 + $0x580] sm:$0xff] }
 0x289   :  { %v7596_v49 = vadd.f32 %v2569_v51, %v2443_v39  ;;  %v3089_v51 = vpack.c.bf16 %v5141_v28, %v5140_v22  ;;  %3472 = vmatpush.bf16.msra.mxu2 %v5626_v24  ;;  %v5642_v22 = vld [vmem:[%s7997_s1 + $0x600] sm:$0xff] }
 0x28a   :  { %3780 = vmatpush.bf16.msra.mxu0 %v5642_v22 }
 0x28c   :  { %v2262_v61 = vpop.f32.mrf.mxu2 }
 0x28d   :  { %v2289_v42 = vadd.f32 %v2262_v61, %v2135_v8  ;;  %v7651_v61 = vld [vmem:[%s7998_s0 + $0x132] sm:$0xff] }
 0x28e   :  { %v2417_v43 = vpop.f32.mrf.mxu3  ;;  %v2111_v27 = vpop.f32.mrf.mxu1 }
 0x28f   :  { %v2444_v14 = vadd.f32 %v2417_v43, %v2289_v42  ;;  %v2136_v20 = vadd.f32 %v2111_v27, %v7269_v3  ;;  %v7661_v42 = vld [vmem:[%s7998_s0 + $0x134] sm:$0xff]  ;;  %v7666_v43 = vld [vmem:[%s7998_s0 + $0x144] sm:$0xff] }
 0x290   :  { %v2574_v26 = vpop.f32.mrf.mxu0 }
 0x291   :  { %2727 = vmatmul.bf16.gmra.mxu1 %v2626_v45  ;;  %2881 = vmatmul.bf16.gmra.mxu2 %v2780_v0  ;;  %v7631_v13 = vadd.f32 %v2571_v34, %v2444_v14  ;;  %v5143_v45 = vld [vmem:[%s7998_s0 + $0x150] sm:$0xff]  ;;  %v2781_v14 = vpack.c.bf16 %v7319_v2, %v7279_v46 }
 0x292   :  { %v3090_v24 = vpack.c.bf16 %v5143_v45, %v7284_v16  ;;  %v7687_v16 = vld [vmem:[%s7998_s0 + $0x152] sm:$0xff] }
 0x293   :  { %3035 = vmatmul.bf16.gmra.mxu3 %v2934_v41  ;;  %3190 = vmatmul.bf16.gmra.mxu0 %v3089_v51  ;;  %v5145_v45 = vld [vmem:[%s7998_s0 + $0x170] sm:$0xff] }
 0x294   :  { %v2265_v36 = vpop.f32.mrf.mxu2 }
 0x295   :  { %v2290_v9 = vadd.f32 %v2265_v36, %v2136_v20 }
 0x296   :  { %v2420_v3 = vpop.f32.mrf.mxu3  ;;  %v2113_v39 = vpop.f32.mrf.mxu1 }
 0x297   :  { %v2445_v8 = vadd.f32 %v2420_v3, %v2290_v9  ;;  %v2137_v34 = vadd.f32 %v2113_v39, %v7299_v37  ;;  %v7656_v37 = vld [vmem:[%s7998_s0 + $0x142] sm:$0xff] }
 0x298   :  { %v2576_v21 = vpop.f32.mrf.mxu0  ;;  %v2627_v51 = vpack.c.bf16 %v7656_v37, %v7651_v61 }
 0x299   :  { %v7646_v28 = vadd.f32 %v2574_v26, %v2445_v8  ;;  %v2935_v26 = vpack.c.bf16 %v7666_v43, %v7661_v42 }
 0x29c   :  { %v2267_v0 = vpop.f32.mrf.mxu2 }
 0x29d   :  { %v2291_v27 = vadd.f32 %v2267_v0, %v2137_v34 }
 0x29e   :  { %v2422_v41 = vpop.f32.mrf.mxu3  ;;  %v2116_v20 = vpop.f32.mrf.mxu1 }
 0x29f   :  { %v2446_v54 = vadd.f32 %v2422_v41, %v2291_v27  ;;  %v2138_v36 = vadd.f32 %v2116_v20, %v7314_v48  ;;  %v7692_v48 = vld [vmem:[%s7998_s0 + $0x162] sm:$0xff] }
 0x2a0   :  { %v2579_v9 = vpop.f32.mrf.mxu0 }
 0x2a1   :  { %2732 = vmatmul.bf16.gmra.mxu1 %v2627_v51  ;;  %2886 = vmatmul.bf16.gmra.mxu2 %v2781_v14  ;;  %v7679_v3 = vadd.f32 %v2576_v21, %v2446_v54  ;;  %v7697_v21 = vld [vmem:[%s7998_s0 + $0x163] sm:$0xff]  ;;  %v2628_v14 = vpack.c.bf16 %v7692_v48, %v7687_v16  ;;  %v3091_v54 = vpack.c.bf16 %v5145_v45, %v7334_v59  ;;  %v5323_v45 = vld [vmem:[%s7998_s0 + $0x53] sm:$0xff] }
 0x2a2   :  { %v2782_v20 = vpack.c.bf16 %v7697_v21, %v7324_v29  ;;  %v5194_v59 = vld [vmem:[%s7998_s0 + $0x41] sm:$0xff] }
 0x2a3   :  { %3040 = vmatmul.bf16.gmra.mxu3 %v2935_v26  ;;  %3195 = vmatmul.bf16.gmra.mxu0 %v3090_v24 }
 0x2a4   :  { %v2270_v39 = vpop.f32.mrf.mxu2 }
 0x2a5   :  { %v2292_v8 = vadd.f32 %v2270_v39, %v2138_v36 }
 0x2a6   :  { %v2425_v34 = vpop.f32.mrf.mxu3  ;;  %v2118_v46 = vpop.f32.mrf.mxu1 }
 0x2a7   :  { %v2447_v2 = vadd.f32 %v2425_v34, %v2292_v8  ;;  %v2139_v32 = vadd.f32 %v2118_v46, %v7347_v47  ;;  %v7702_v47 = vld [vmem:[%s7998_s0 + $0x164] sm:$0xff] }
 0x2a8   :  { %v2581_v22 = vpop.f32.mrf.mxu0  ;;  %8025 = vst [vmem:[#allocation2_spill] sm:$0xff] %v7702_v47  ;;  %v2936_v24 = vpack.c.bf16 %v7702_v47, %v7329_v60 }
 0x2a9   :  { %v7682_v0 = vadd.f32 %v2579_v9, %v2447_v2 }
 0x2ac   :  { %v2272_v27 = vpop.f32.mrf.mxu2 }
 0x2ad   :  { %v2293_v41 = vadd.f32 %v2272_v27, %v2139_v32 }
 0x2ae   :  { %v2427_v51 = vpop.f32.mrf.mxu3  ;;  %v2121_v26 = vpop.f32.mrf.mxu1 }
 0x2af   :  { %v2448_v36 = vadd.f32 %v2427_v51, %v2293_v41  ;;  %v2140_v9 = vadd.f32 %v2121_v26, %v7362_v7  ;;  %v5195_v7 = vld [vmem:[%s7998_s0 + $0x51] sm:$0xff] }
 0x2b0   :  { %v2584_v39 = vpop.f32.mrf.mxu0 }
 0x2b1   :  { %2737 = vmatmul.bf16.gmra.mxu1 %v2628_v14  ;;  %2891 = vmatmul.bf16.gmra.mxu2 %v2782_v20  ;;  %v7715_v8 = vadd.f32 %v2581_v22, %v2448_v36  ;;  %v5322_v22 = vld [vmem:[%s7998_s0 + $0x43] sm:$0xff]  ;;  %v3238_v14 = vpack.c.bf16 %v5195_v7, %v5194_v59  ;;  %v3392_v20 = vpack.c.bf16 %v7411_v19, %v7370_v6 }
 0x2b3   :  { %3045 = vmatmul.bf16.gmra.mxu3 %v2936_v24  ;;  %3200 = vmatmul.bf16.gmra.mxu0 %v3091_v54  ;;  %v3546_v24 = vpack.c.bf16 %v5323_v45, %v5322_v22  ;;  %v3700_v54 = vpack.c.bf16 %v7421_v18, %v7378_v38  ;;  %v5196_v38 = vld [vmem:[%s7998_s0 + $0x61] sm:$0xff] }
 0x2b4   :  { %v2275_v34 = vpop.f32.mrf.mxu2  ;;  %v5324_v18 = vld [vmem:[%s7998_s0 + $0x63] sm:$0xff] }
 0x2b5   :  { %v2294_v46 = vadd.f32 %v2275_v34, %v2140_v9 }
 0x2b6   :  { %v2430_v2 = vpop.f32.mrf.mxu3  ;;  %v2123_v29 = vpop.f32.mrf.mxu1 }
 0x2b7   :  { %v2449_v32 = vadd.f32 %v2430_v2, %v2294_v46  ;;  %v2141_v27 = vadd.f32 %v2123_v29, %v7391_v35 }
 0x2b8   :  { %v2586_v60 = vpop.f32.mrf.mxu0 }
 0x2b9   :  { %v7718_v47 = vadd.f32 %v2584_v39, %v2449_v32 }
 0x2bc   :  { %v2277_v35 = vpop.f32.mrf.mxu2 }
 0x2bd   :  { %v2295_v41 = vadd.f32 %v2277_v35, %v2141_v27  ;;  %v3393_v35 = vpack.c.bf16 %v7461_v30, %v7416_v4 }
 0x2be   :  { %v2432_v51 = vpop.f32.mrf.mxu3  ;;  %v2703_v26 = vpop.f32.mrf.mxu1 }
 0x2bf   :  { %v2450_v36 = vadd.f32 %v2432_v51, %v2295_v41  ;;  %v2743_v9 = vadd.f32 %v2703_v26, %v7406_v12  ;;  %v5197_v12 = vld [vmem:[%s7998_s0 + $0x71] sm:$0xff] }
 0x2c0   :  { %v3166_v39 = vpop.f32.mrf.mxu0  ;;  %v3239_v45 = vpack.c.bf16 %v5197_v12, %v5196_v38  ;;  %v3394_v12 = vpack.c.bf16 %v7509_v33, %v7466_v17 }
 0x2c1   :  { %3319 = vmatmul.bf16.vlgmr.msra.gmra.mxu1 %v3238_v14  ;;  %3473 = vmatmul.bf16.vlgmr.msra.gmra.mxu2 %v3392_v20  ;;  %v7737_v34 = vadd.f32 %v2586_v60, %v2450_v36  ;;  %v5325_v60 = vld [vmem:[%s7998_s0 + $0x73] sm:$0xff]  ;;  %v3701_v14 = vpack.c.bf16 %v7471_v40, %v7426_v58  ;;  %v5198_v58 = vld [vmem:[%s7998_s0 + $0x81] sm:$0xff] }
 0x2c2   :  { %v3547_v51 = vpack.c.bf16 %v5325_v60, %v5324_v18  ;;  %v5326_v40 = vld [vmem:[%s7998_s0 + $0x83] sm:$0xff] }
 0x2c3   :  { %3627 = vmatmul.bf16.vlgmr.msra.gmra.mxu3 %v3546_v24  ;;  %3781 = vmatmul.bf16.vlgmr.msra.gmra.mxu0 %v3700_v54 }
 0x2c4   :  { %v2857_v46 = vpop.f32.mrf.mxu2 }
 0x2c5   :  { %v2897_v2 = vadd.f32 %v2857_v46, %v2743_v9 }
 0x2c6   :  { %v3011_v29 = vpop.f32.mrf.mxu3  ;;  %v2705_v32 = vpop.f32.mrf.mxu1 }
 0x2c7   :  { %v3051_v6 = vadd.f32 %v3011_v29, %v2897_v2  ;;  %v2744_v19 = vadd.f32 %v2705_v32, %v7441_v52  ;;  %v5327_v32 = vld [vmem:[%s7998_s0 + $0x93] sm:$0xff] }
 0x2c8   :  { %v3168_v27 = vpop.f32.mrf.mxu0  ;;  %v3548_v60 = vpack.c.bf16 %v5327_v32, %v5326_v40 }
 0x2c9   :  { %v7740_v59 = vadd.f32 %v3166_v39, %v3051_v6 }
 0x2cc   :  { %v2859_v52 = vpop.f32.mrf.mxu2 }
 0x2cd   :  { %v2898_v7 = vadd.f32 %v2859_v52, %v2744_v19 }
 0x2ce   :  { %v3013_v22 = vpop.f32.mrf.mxu3  ;;  %v2708_v41 = vpop.f32.mrf.mxu1 }
 0x2cf   :  { %v3052_v20 = vadd.f32 %v3013_v22, %v2898_v7  ;;  %v2745_v26 = vadd.f32 %v2708_v41, %v7456_v23  ;;  %v5199_v23 = vld [vmem:[%s7998_s0 + $0x91] sm:$0xff] }
 0x2d0   :  { %v3171_v24 = vpop.f32.mrf.mxu0  ;;  %v3240_v38 = vpack.c.bf16 %v5199_v23, %v5198_v58 }
 0x2d1   :  { %3324 = vmatmul.bf16.gmra.mxu1 %v3239_v45  ;;  %3478 = vmatmul.bf16.gmra.mxu2 %v3393_v35  ;;  %v7759_v54 = vadd.f32 %v3168_v27, %v3052_v20 }
 0x2d3   :  { %3632 = vmatmul.bf16.gmra.mxu3 %v3547_v51  ;;  %3786 = vmatmul.bf16.gmra.mxu0 %v3701_v14 }
 0x2d4   :  { %v2862_v36 = vpop.f32.mrf.mxu2 }
 0x2d5   :  { %v2899_v9 = vadd.f32 %v2862_v36, %v2745_v26  ;;  %v5265_v36 = vld [vmem:[%s7998_s0 + $0xb2] sm:$0xff] }
 0x2d6   :  { %v3016_v39 = vpop.f32.mrf.mxu3  ;;  %v2710_v46 = vpop.f32.mrf.mxu1 }
 0x2d7   :  { %v3053_v4 = vadd.f32 %v3016_v39, %v2899_v9  ;;  %v2746_v30 = vadd.f32 %v2710_v46, %v7489_v50  ;;  %v5391_v50 = vld [vmem:[%s7998_s0 + $0x94] sm:$0xff] }
 0x2d8   :  { %v3173_v2 = vpop.f32.mrf.mxu0  ;;  %v3702_v52 = vpack.c.bf16 %v5391_v50, %v7476_v25  ;;  %v5200_v25 = vld [vmem:[%s7998_s0 + $0xa1] sm:$0xff]  ;;  %v5329_v9 = vld [vmem:[%s7998_s0 + $0xb3] sm:$0xff] }
 0x2d9   :  { %v7762_v29 = vadd.f32 %v3171_v24, %v3053_v4  ;;  %v3549_v23 = vpack.c.bf16 %v5329_v9, %v7519_v15 }
 0x2dc   :  { %v2864_v6 = vpop.f32.mrf.mxu2 }
 0x2dd   :  { %v2900_v19 = vadd.f32 %v2864_v6, %v2746_v30 }
 0x2de   :  { %v3018_v27 = vpop.f32.mrf.mxu3  ;;  %v2713_v18 = vpop.f32.mrf.mxu1 }
 0x2df   :  { %v3054_v7 = vadd.f32 %v3018_v27, %v2900_v19  ;;  %v2747_v22 = vadd.f32 %v2713_v18, %v7504_v57  ;;  %v5201_v57 = vld [vmem:[%s7998_s0 + $0xb1] sm:$0xff] }
 0x2e0   :  { %v3176_v45 = vpop.f32.mrf.mxu0  ;;  %v3241_v30 = vpack.c.bf16 %v5201_v57, %v5200_v25 }
 0x2e1   :  { %3329 = vmatmul.bf16.gmra.mxu1 %v3240_v38  ;;  %3483 = vmatmul.bf16.gmra.mxu2 %v3394_v12  ;;  %v7783_v35 = vadd.f32 %v3173_v2, %v3054_v7  ;;  %v3395_v2 = vpack.c.bf16 %v5265_v36, %v7514_v55  ;;  %v5330_v7 = vld [vmem:[%s7998_s0 + $0x103] sm:$0xff] }
 0x2e3   :  { %3637 = vmatmul.bf16.gmra.mxu3 %v3548_v60  ;;  %3791 = vmatmul.bf16.gmra.mxu0 %v3702_v52 }
 0x2e4   :  { %v2867_v41 = vpop.f32.mrf.mxu2 }
 0x2e5   :  { %v2901_v51 = vadd.f32 %v2867_v41, %v2747_v22  ;;  %v5331_v22 = vld [vmem:[%s7998_s0 + $0x113] sm:$0xff] }
 0x2e6   :  { %v3021_v14 = vpop.f32.mrf.mxu3  ;;  %v2715_v20 = vpop.f32.mrf.mxu1 }
 0x2e7   :  { %v3055_v26 = vadd.f32 %v3021_v14, %v2901_v51  ;;  %v2748_v17 = vadd.f32 %v2715_v20, %v7537_v56  ;;  %v5393_v56 = vld [vmem:[%s7998_s0 + $0xb4] sm:$0xff]  ;;  %v3396_v14 = vpack.c.bf16 %v7601_v44, %v7560_v5 }
 0x2e8   :  { %v3178_v33 = vpop.f32.mrf.mxu0  ;;  %v3703_v40 = vpack.c.bf16 %v5393_v56, %v7524_v31  ;;  %v5202_v31 = vld [vmem:[%s7998_s0 + $0x101] sm:$0xff] }
 0x2e9   :  { %v7786_v24 = vadd.f32 %v3176_v45, %v3055_v26  ;;  %v3550_v26 = vpack.c.bf16 %v5331_v22, %v5330_v7 }
 0x2ec   :  { %v2869_v39 = vpop.f32.mrf.mxu2 }
 0x2ed   :  { %v2902_v46 = vadd.f32 %v2869_v39, %v2748_v17  ;;  %v3704_v17 = vpack.c.bf16 %v7611_v11, %v7568_v62  ;;  %v5204_v62 = vld [vmem:[%s7998_s0 + $0x121] sm:$0xff] }
 0x2ee   :  { %v3023_v4 = vpop.f32.mrf.mxu3  ;;  %v2718_v58 = vpop.f32.mrf.mxu1  ;;  %v5332_v11 = vld [vmem:[%s7998_s0 + $0x123] sm:$0xff] }
 0x2ef   :  { %v3056_v32 = vadd.f32 %v3023_v4, %v2902_v46  ;;  %v2749_v50 = vadd.f32 %v2718_v58, %v7552_v10  ;;  %v5203_v10 = vld [vmem:[%s7998_s0 + $0x111] sm:$0xff] }
 0x2f0   :  { %v3181_v6 = vpop.f32.mrf.mxu0  ;;  %v3242_v51 = vpack.c.bf16 %v5203_v10, %v5202_v31 }
 0x2f1   :  { %3334 = vmatmul.bf16.gmra.mxu1 %v3241_v30  ;;  %3488 = vmatmul.bf16.gmra.mxu2 %v3395_v2  ;;  %v7807_v19 = vadd.f32 %v3178_v33, %v3056_v32  ;;  %v5333_v2 = vld [vmem:[%s7998_s0 + $0x133] sm:$0xff]  ;;  %v3397_v32 = vpack.c.bf16 %v7651_v61, %v7606_v53 }
 0x2f3   :  { %3642 = vmatmul.bf16.gmra.mxu3 %v3549_v23  ;;  %3796 = vmatmul.bf16.gmra.mxu0 %v3703_v40 }
 0x2f4   :  { %v2872_v27 = vpop.f32.mrf.mxu2 }
 0x2f5   :  { %v2903_v38 = vadd.f32 %v2872_v27, %v2749_v50  ;;  %v3705_v27 = vpack.c.bf16 %v7661_v42, %v7616_v63  ;;  %v5206_v63 = vld [vmem:[%s7998_s0 + $0x141] sm:$0xff] }
 0x2f6   :  { %v3026_v12 = vpop.f32.mrf.mxu3  ;;  %v2720_v18 = vpop.f32.mrf.mxu1  ;;  %v5334_v42 = vld [vmem:[%s7998_s0 + $0x143] sm:$0xff] }
 0x2f7   :  { %v3057_v55 = vadd.f32 %v3026_v12, %v2903_v38  ;;  %v2750_v60 = vadd.f32 %v2720_v18, %v7581_v1 }
 0x2f8   :  { %v3183_v15 = vpop.f32.mrf.mxu0 }
 0x2f9   :  { %v7810_v52 = vadd.f32 %v3181_v6, %v3057_v55  ;;  %v3551_v6 = vpack.c.bf16 %v5333_v2, %v5332_v11  ;;  %v5337_v11 = vld [vmem:[%s7998_s0 + $0x173] sm:$0xff] }
 0x2fc   :  { %v2874_v1 = vpop.f32.mrf.mxu2 }
 0x2fd   :  { %v2904_v45 = vadd.f32 %v2874_v1, %v2750_v60  ;;  %v5335_v1 = vld [vmem:[%s7998_s0 + $0x153] sm:$0xff] }
 0x2fe   :  { %v3028_v41 = vpop.f32.mrf.mxu3  ;;  %v2723_v20 = vpop.f32.mrf.mxu1 }
 0x2ff   :  { %v3058_v33 = vadd.f32 %v3028_v41, %v2904_v45  ;;  %v2751_v25 = vadd.f32 %v2723_v20, %v7596_v49  ;;  %v5205_v49 = vld [vmem:[%s7998_s0 + $0x131] sm:$0xff]  ;;  %v3398_v20 = vpack.c.bf16 %v7687_v16, %v7656_v37 }
 0x300   :  { %v3186_v57 = vpop.f32.mrf.mxu0  ;;  %v3243_v40 = vpack.c.bf16 %v5205_v49, %v5204_v62  ;;  %v5273_v49 = vld [vmem:[%s7998_s0 + $0x172] sm:$0xff] }
 0x301   :  { %3339 = vmatmul.bf16.gmra.mxu1 %v3242_v51  ;;  %3493 = vmatmul.bf16.gmra.mxu2 %v3396_v14  ;;  %v7829_v36 = vadd.f32 %v3183_v15, %v3058_v33 }
 0x303   :  { %3647 = vmatmul.bf16.gmra.mxu3 %v3550_v26  ;;  %3801 = vmatmul.bf16.gmra.mxu0 %v3704_v17  ;;  %v3552_v17 = vpack.c.bf16 %v5335_v1, %v5334_v42 }
 0x304   :  { %v2877_v9 = vpop.f32.mrf.mxu2 }
 0x305   :  { %v2905_v56 = vadd.f32 %v2877_v9, %v2751_v25 }
 0x306   :  { %v3031_v39 = vpop.f32.mrf.mxu3  ;;  %v2725_v46 = vpop.f32.mrf.mxu1 }
 0x307   :  { %v3059_v5 = vadd.f32 %v3031_v39, %v2905_v56  ;;  %v2752_v44 = vadd.f32 %v2725_v46, %v7631_v13 }
 0x308   :  { %v3188_v4 = vpop.f32.mrf.mxu0 }
 0x309   :  { %v7832_v30 = vadd.f32 %v3186_v57, %v3059_v5 }
 0x30c   :  { %v2879_v13 = vpop.f32.mrf.mxu2 }
 0x30d   :  { %v2906_v58 = vadd.f32 %v2879_v13, %v2752_v44 }
 0x30e   :  { %v3033_v23 = vpop.f32.mrf.mxu3  ;;  %v2728_v50 = vpop.f32.mrf.mxu1 }
 0x30f   :  { %v3060_v38 = vadd.f32 %v3033_v23, %v2906_v58  ;;  %v2753_v12 = vadd.f32 %v2728_v50, %v7646_v28  ;;  %v5207_v28 = vld [vmem:[%s7998_s0 + $0x151] sm:$0xff]  ;;  %v3553_v50 = vpack.c.bf16 %v5337_v11, %v7697_v21 }
 0x310   :  { %v3191_v18 = vpop.f32.mrf.mxu0  ;;  %v3244_v14 = vpack.c.bf16 %v5207_v28, %v5206_v63 }
 0x311   :  { %3344 = vmatmul.bf16.gmra.mxu1 %v3243_v40  ;;  %3498 = vmatmul.bf16.gmra.mxu2 %v3397_v32  ;;  %v7851_v55 = vadd.f32 %v3188_v4, %v3060_v38  ;;  %v3399_v40 = vpack.c.bf16 %v5273_v49, %v7692_v48 }
 0x313   :  { %3652 = vmatmul.bf16.gmra.mxu3 %v3551_v6  ;;  %3806 = vmatmul.bf16.gmra.mxu0 %v3705_v27  ;;  %v8026_v6 = vld [vmem:[#allocation2_spill] sm:$0xff] }
 0x314   :  { %v2882_v60 = vpop.f32.mrf.mxu2 }
 0x315   :  { %v2907_v15 = vadd.f32 %v2882_v60, %v2753_v12 }
 0x316   :  { %v3036_v31 = vpop.f32.mrf.mxu3  ;;  %v2730_v10 = vpop.f32.mrf.mxu1 }
 0x317   :  { %v3061_v53 = vadd.f32 %v3036_v31, %v2907_v15  ;;  %v2754_v61 = vadd.f32 %v2730_v10, %v7679_v3  ;;  %v5399_v3 = vld [vmem:[%s7998_s0 + $0x154] sm:$0xff] }
 0x318   :  { %v3193_v7 = vpop.f32.mrf.mxu0  ;;  %v3706_v33 = vpack.c.bf16 %v5399_v3, %v7666_v43  ;;  %v5208_v43 = vld [vmem:[%s7998_s0 + $0x161] sm:$0xff] }
 0x319   :  { %v7854_v22 = vadd.f32 %v3191_v18, %v3061_v53 }
 0x31c   :  { %v2884_v45 = vpop.f32.mrf.mxu2 }
 0x31d   :  { %v2908_v41 = vadd.f32 %v2884_v45, %v2754_v61 }
 0x31e   :  { %v3038_v51 = vpop.f32.mrf.mxu3  ;;  %v2733_v26 = vpop.f32.mrf.mxu1 }
 0x31f   :  { %v3062_v25 = vadd.f32 %v3038_v51, %v2908_v41  ;;  %v2755_v57 = vadd.f32 %v2733_v26, %v7682_v0  ;;  %v5209_v0 = vld [vmem:[%s7998_s0 + $0x171] sm:$0xff] }
 0x320   :  { %v3196_v9 = vpop.f32.mrf.mxu0  ;;  %v3245_v23 = vpack.c.bf16 %v5209_v0, %v5208_v43 }
 0x321   :  { %3349 = vmatmul.bf16.gmra.mxu1 %v3244_v14  ;;  %3503 = vmatmul.bf16.gmra.mxu2 %v3398_v20  ;;  %v7875_v56 = vadd.f32 %v3193_v7, %v3062_v25 }
 0x323   :  { %3657 = vmatmul.bf16.gmra.mxu3 %v3552_v17  ;;  %3811 = vmatmul.bf16.gmra.mxu0 %v3706_v33 }
 0x324   :  { %v2887_v39 = vpop.f32.mrf.mxu2 }
 0x325   :  { %v2909_v46 = vadd.f32 %v2887_v39, %v2755_v57 }
 0x326   :  { %v3041_v5 = vpop.f32.mrf.mxu3  ;;  %v2735_v44 = vpop.f32.mrf.mxu1 }
 0x327   :  { %v3063_v4 = vadd.f32 %v3041_v5, %v2909_v46  ;;  %v2756_v37 = vadd.f32 %v2735_v44, %v7715_v8  ;;  %v5401_v8 = vld [vmem:[%s7998_s0 + $0x174] sm:$0xff] }
 0x328   :  { %v3198_v16 = vpop.f32.mrf.mxu0  ;;  %v3707_v27 = vpack.c.bf16 %v5401_v8, %v8026_v6 }
 0x329   :  { %v7878_v62 = vadd.f32 %v3196_v9, %v3063_v4 }
 0x32c   :  { %v2889_v2 = vpop.f32.mrf.mxu2 }
 0x32d   :  { %v2910_v13 = vadd.f32 %v2889_v2, %v2756_v37 }
 0x32e   :  { %v3043_v58 = vpop.f32.mrf.mxu3  ;;  %v2738_v32 = vpop.f32.mrf.mxu1 }
 0x32f   :  { %v3064_v38 = vadd.f32 %v3043_v58, %v2910_v13  ;;  %v2757_v12 = vadd.f32 %v2738_v32, %v7718_v47 }
 0x330   :  { %v3201_v18 = vpop.f32.mrf.mxu0 }
 0x331   :  { %3354 = vmatmul.bf16.gmra.mxu1 %v3245_v23  ;;  %3508 = vmatmul.bf16.gmra.mxu2 %v3399_v40  ;;  %v7899_v60 = vadd.f32 %v3198_v16, %v3064_v38 }
 0x333   :  { %3662 = vmatmul.bf16.gmra.mxu3 %v3553_v50  ;;  %3816 = vmatmul.bf16.gmra.mxu0 %v3707_v27 }
 0x334   :  { %v2892_v15 = vpop.f32.mrf.mxu2 }
 0x335   :  { %v2911_v31 = vadd.f32 %v2892_v15, %v2757_v12 }
 0x336   :  { %v3046_v10 = vpop.f32.mrf.mxu3  ;;  %v2740_v53 = vpop.f32.mrf.mxu1 }
 0x337   :  { %v3065_v48 = vadd.f32 %v3046_v10, %v2911_v31  ;;  %v2758_v61 = vadd.f32 %v2740_v53, %v7737_v34  ;;  %v7910_v34 = vld [vmem:[%s7999_s2] ss:$0 sm:$0xff] }
 0x338   :  { %v3203_v21 = vpop.f32.mrf.mxu0 }
 0x339   :  { %v7902_v7 = vadd.f32 %v3201_v18, %v3065_v48 }
 0x33c   :  { %v2894_v63 = vpop.f32.mrf.mxu2 }
 0x33d   :  { %v2912_v28 = vadd.f32 %v2894_v63, %v2758_v61 }
 0x33e   :  { %v3048_v47 = vpop.f32.mrf.mxu3  ;;  %v3320_v42 = vpop.f32.mrf.mxu1 }
 0x33f   :  { %v3066_v1 = vadd.f32 %v3048_v47, %v2912_v28  ;;  %v3360_v41 = vadd.f32 %v3320_v42, %v7740_v59 }
 0x340   :  { %v3782_v3 = vpop.f32.mrf.mxu0 }
 0x341   :  { %v7904_v45 = vadd.f32 %v3203_v21, %v3066_v1 }
 0x344   :  { %v3474_v51 = vpop.f32.mrf.mxu2 }
 0x345   :  { %v3514_v14 = vadd.f32 %v3474_v51, %v3360_v41 }
 0x346   :  { %v3628_v20 = vpop.f32.mrf.mxu3  ;;  %v3322_v26 = vpop.f32.mrf.mxu1 }
 0x347   :  { %v3668_v17 = vadd.f32 %v3628_v20, %v3514_v14  ;;  %v3361_v9 = vadd.f32 %v3322_v26, %v7759_v54 }
 0x348   :  { %v3784_v33 = vpop.f32.mrf.mxu0 }
 0x349   :  { %v3822_v25 = vadd.f32 %v3782_v3, %v3668_v17 }
 0x34b   :  { %v3842_v57 = vadd.f32 %v7910_v34, %v3822_v25 }
 0x34c   :  { %v3476_v39 = vpop.f32.mrf.mxu2 }
 0x34d   :  { %3858 = vst [vmem:[%s8000_s3] sm:$0xff] %v3842_v57  ;;  %v3515_v59 = vadd.f32 %v3476_v39, %v3361_v9  ;;  %v3896_v49 = vmul.f32 %v3842_v57, %v3842_v57 }
 0x34e   :  { %v3630_v46 = vpop.f32.mrf.mxu3  ;;  %v3325_v5 = vpop.f32.mrf.mxu1 }
 0x34f   :  { %v3669_v44 = vadd.f32 %v3630_v46, %v3515_v59  ;;  %v3362_v43 = vadd.f32 %v3325_v5, %v7762_v29 }
 0x350   :  { %v3787_v4 = vpop.f32.mrf.mxu0 }
 0x351   :  { %v3823_v37 = vadd.f32 %v3784_v33, %v3669_v44 }
 0x353   :  { %v3843_v16 = vadd.f32 %v7910_v34, %v3823_v37 }
 0x354   :  { %v3479_v0 = vpop.f32.mrf.mxu2 }
 0x355   :  { %3859 = vst [vmem:[%s8000_s3 + $0x8] sm:$0xff] %v3843_v16  ;;  %v3874_v54 = vadd.f32 %v3843_v16, %v3842_v57  ;;  %v3897_v11 = vmul.f32 %v3843_v16, %v3843_v16  ;;  %v3516_v8 = vadd.f32 %v3479_v0, %v3362_v43 }
 0x356   :  { %v3633_v2 = vpop.f32.mrf.mxu3  ;;  %v3327_v13 = vpop.f32.mrf.mxu1 }
 0x357   :  { %v3912_v58 = vadd.f32 %v3897_v11, %v3896_v49  ;;  %v3670_v23 = vadd.f32 %v3633_v2, %v3516_v8  ;;  %v3363_v6 = vadd.f32 %v3327_v13, %v7783_v35 }
 0x358   :  { %v3789_v40 = vpop.f32.mrf.mxu0 }
 0x359   :  { %v3824_v32 = vadd.f32 %v3787_v4, %v3670_v23 }
 0x35b   :  { %v3844_v50 = vadd.f32 %v7910_v34, %v3824_v32 }
 0x35c   :  { %v3481_v29 = vpop.f32.mrf.mxu2 }
 0x35d   :  { %3860 = vst [vmem:[%s8000_s3 + $0x10] sm:$0xff] %v3844_v50  ;;  %v3875_v27 = vadd.f32 %v3874_v54, %v3844_v50  ;;  %v3898_v38 = vmul.f32 %v3844_v50, %v3844_v50  ;;  %v3517_v12 = vadd.f32 %v3481_v29, %v3363_v6 }
 0x35e   :  { %v3635_v18 = vpop.f32.mrf.mxu3  ;;  %v3330_v15 = vpop.f32.mrf.mxu1 }
 0x35f   :  { %v3913_v31 = vadd.f32 %v3912_v58, %v3898_v38  ;;  %v3671_v10 = vadd.f32 %v3635_v18, %v3517_v12  ;;  %v3364_v21 = vadd.f32 %v3330_v15, %v7786_v24 }
 0x360   :  { %v3792_v53 = vpop.f32.mrf.mxu0 }
 0x361   :  { %v3825_v48 = vadd.f32 %v3789_v40, %v3671_v10 }
 0x363   :  { %v3845_v61 = vadd.f32 %v7910_v34, %v3825_v48 }
 0x364   :  { %v3484_v63 = vpop.f32.mrf.mxu2 }
 0x365   :  { %3861 = vst [vmem:[%s8000_s3 + $0x18] sm:$0xff] %v3845_v61  ;;  %v3876_v35 = vadd.f32 %v3875_v27, %v3845_v61  ;;  %v3899_v28 = vmul.f32 %v3845_v61, %v3845_v61  ;;  %v3518_v47 = vadd.f32 %v3484_v63, %v3364_v21 }
 0x366   :  { %v3638_v42 = vpop.f32.mrf.mxu3  ;;  %v3332_v1 = vpop.f32.mrf.mxu1 }
 0x367   :  { %v3914_v3 = vadd.f32 %v3913_v31, %v3899_v28  ;;  %v3672_v41 = vadd.f32 %v3638_v42, %v3518_v47  ;;  %v3365_v26 = vadd.f32 %v3332_v1, %v7807_v19 }
 0x368   :  { %v3794_v51 = vpop.f32.mrf.mxu0 }
 0x369   :  { %v3826_v14 = vadd.f32 %v3792_v53, %v3672_v41 }
 0x36b   :  { %v3846_v20 = vadd.f32 %v7910_v34, %v3826_v14 }
 0x36c   :  { %v3486_v17 = vpop.f32.mrf.mxu2 }
 0x36d   :  { %3862 = vst [vmem:[%s8000_s3 + $0x20] sm:$0xff] %v3846_v20  ;;  %v3877_v24 = vadd.f32 %v3876_v35, %v3846_v20  ;;  %v3900_v33 = vmul.f32 %v3846_v20, %v3846_v20  ;;  %v3519_v25 = vadd.f32 %v3486_v17, %v3365_v26 }
 0x36e   :  { %v3640_v57 = vpop.f32.mrf.mxu3  ;;  %v3335_v9 = vpop.f32.mrf.mxu1 }
 0x36f   :  { %v3915_v39 = vadd.f32 %v3914_v3, %v3900_v33  ;;  %v3673_v59 = vadd.f32 %v3640_v57, %v3519_v25  ;;  %v3366_v4 = vadd.f32 %v3335_v9, %v7810_v52 }
 0x370   :  { %v3797_v46 = vpop.f32.mrf.mxu0 }
 0x371   :  { %v3827_v5 = vadd.f32 %v3794_v51, %v3673_v59 }
 0x373   :  { %v3847_v44 = vadd.f32 %v7910_v34, %v3827_v5 }
 0x374   :  { %v3489_v37 = vpop.f32.mrf.mxu2 }
 0x375   :  { %3863 = vst [vmem:[%s8000_s3 + $0x28] sm:$0xff] %v3847_v44  ;;  %v3878_v19 = vadd.f32 %v3877_v24, %v3847_v44  ;;  %v3901_v16 = vmul.f32 %v3847_v44, %v3847_v44  ;;  %v3520_v43 = vadd.f32 %v3489_v37, %v3366_v4 }
 0x376   :  { %v3643_v0 = vpop.f32.mrf.mxu3  ;;  %v3337_v49 = vpop.f32.mrf.mxu1 }
 0x377   :  { %v3916_v54 = vadd.f32 %v3915_v39, %v3901_v16  ;;  %v3674_v11 = vadd.f32 %v3643_v0, %v3520_v43  ;;  %v3367_v58 = vadd.f32 %v3337_v49, %v7829_v36 }
 0x378   :  { %v3799_v8 = vpop.f32.mrf.mxu0 }
 0x379   :  { %v3828_v2 = vadd.f32 %v3797_v46, %v3674_v11 }
 0x37b   :  { %v3848_v13 = vadd.f32 %v7910_v34, %v3828_v2 }
 0x37c   :  { %v3491_v23 = vpop.f32.mrf.mxu2 }
 0x37d   :  { %3864 = vst [vmem:[%s8000_s3 + $0x30] sm:$0xff] %v3848_v13  ;;  %v3879_v52 = vadd.f32 %v3878_v19, %v3848_v13  ;;  %v3902_v40 = vmul.f32 %v3848_v13, %v3848_v13  ;;  %v3521_v32 = vadd.f32 %v3491_v23, %v3367_v58 }
 0x37e   :  { %v3645_v50 = vpop.f32.mrf.mxu3  ;;  %v3340_v6 = vpop.f32.mrf.mxu1 }
 0x37f   :  { %v3917_v29 = vadd.f32 %v3916_v54, %v3902_v40  ;;  %v3675_v27 = vadd.f32 %v3645_v50, %v3521_v32  ;;  %v3368_v15 = vadd.f32 %v3340_v6, %v7832_v30 }
 0x380   :  { %v3802_v38 = vpop.f32.mrf.mxu0 }
 0x381   :  { %v3829_v12 = vadd.f32 %v3799_v8, %v3675_v27 }
 0x383   :  { %v3849_v18 = vadd.f32 %v7910_v34, %v3829_v12 }
 0x384   :  { %v3494_v31 = vpop.f32.mrf.mxu2 }
 0x385   :  { %3865 = vst [vmem:[%s8000_s3 + $0x38] sm:$0xff] %v3849_v18  ;;  %v3880_v36 = vadd.f32 %v3879_v52, %v3849_v18  ;;  %v3903_v10 = vmul.f32 %v3849_v18, %v3849_v18  ;;  %v3522_v53 = vadd.f32 %v3494_v31, %v3368_v15 }
 0x386   :  { %v3648_v48 = vpop.f32.mrf.mxu3  ;;  %v3342_v61 = vpop.f32.mrf.mxu1 }
 0x387   :  { %v3918_v21 = vadd.f32 %v3917_v29, %v3903_v10  ;;  %v3676_v63 = vadd.f32 %v3648_v48, %v3522_v53  ;;  %v3369_v42 = vadd.f32 %v3342_v61, %v7851_v55 }
 0x388   :  { %v3804_v35 = vpop.f32.mrf.mxu0 }
 0x389   :  { %v3830_v28 = vadd.f32 %v3802_v38, %v3676_v63 }
 0x38b   :  { %v3850_v47 = vadd.f32 %v7910_v34, %v3830_v28 }
 0x38c   :  { %v3496_v1 = vpop.f32.mrf.mxu2 }
 0x38d   :  { %3866 = vst [vmem:[%s8000_s3 + $0x40] sm:$0xff] %v3850_v47  ;;  %v3881_v30 = vadd.f32 %v3880_v36, %v3850_v47  ;;  %v3904_v3 = vmul.f32 %v3850_v47, %v3850_v47  ;;  %v3523_v41 = vadd.f32 %v3496_v1, %v3369_v42 }
 0x38e   :  { %v3650_v51 = vpop.f32.mrf.mxu3  ;;  %v3345_v14 = vpop.f32.mrf.mxu1 }
 0x38f   :  { %v3919_v20 = vadd.f32 %v3918_v21, %v3904_v3  ;;  %v3677_v26 = vadd.f32 %v3650_v51, %v3523_v41  ;;  %v3370_v25 = vadd.f32 %v3345_v14, %v7854_v22 }
 0x390   :  { %v3807_v17 = vpop.f32.mrf.mxu0 }
 0x391   :  { %v3831_v24 = vadd.f32 %v3804_v35, %v3677_v26 }
 0x393   :  { %v3851_v33 = vadd.f32 %v7910_v34, %v3831_v24 }
 0x394   :  { %v3499_v57 = vpop.f32.mrf.mxu2 }
 0x395   :  { %3867 = vst [vmem:[%s8000_s3 + $0x48] sm:$0xff] %v3851_v33  ;;  %v3882_v55 = vadd.f32 %v3881_v30, %v3851_v33  ;;  %v3905_v9 = vmul.f32 %v3851_v33, %v3851_v33  ;;  %v3524_v39 = vadd.f32 %v3499_v57, %v3370_v25 }
 0x396   :  { %v3653_v59 = vpop.f32.mrf.mxu3  ;;  %v3347_v46 = vpop.f32.mrf.mxu1 }
 0x397   :  { %v3920_v5 = vadd.f32 %v3919_v20, %v3905_v9  ;;  %v3678_v44 = vadd.f32 %v3653_v59, %v3524_v39  ;;  %v3371_v16 = vadd.f32 %v3347_v46, %v7875_v56 }
 0x398   :  { %v3809_v4 = vpop.f32.mrf.mxu0 }
 0x399   :  { %v3832_v37 = vadd.f32 %v3807_v17, %v3678_v44 }
 0x39b   :  { %v3852_v19 = vadd.f32 %v7910_v34, %v3832_v37 }
 0x39c   :  { %v3501_v43 = vpop.f32.mrf.mxu2 }
 0x39d   :  { %3868 = vst [vmem:[%s8000_s3 + $0x50] sm:$0xff] %v3852_v19  ;;  %v3883_v22 = vadd.f32 %v3882_v55, %v3852_v19  ;;  %v3906_v0 = vmul.f32 %v3852_v19, %v3852_v19  ;;  %v3525_v49 = vadd.f32 %v3501_v43, %v3371_v16 }
 0x39e   :  { %v3655_v54 = vpop.f32.mrf.mxu3  ;;  %v3350_v11 = vpop.f32.mrf.mxu1 }
 0x39f   :  { %v3921_v8 = vadd.f32 %v3920_v5, %v3906_v0  ;;  %v3679_v2 = vadd.f32 %v3655_v54, %v3525_v49  ;;  %v3372_v52 = vadd.f32 %v3350_v11, %v7878_v62 }
 0x3a0   :  { %v3812_v58 = vpop.f32.mrf.mxu0 }
 0x3a1   :  { %v3833_v13 = vadd.f32 %v3809_v4, %v3679_v2 }
 0x3a3   :  { %v3853_v23 = vadd.f32 %v7910_v34, %v3833_v13 }
 0x3a4   :  { %v3504_v40 = vpop.f32.mrf.mxu2 }
 0x3a5   :  { %3869 = vst [vmem:[%s8000_s3 + $0x58] sm:$0xff] %v3853_v23  ;;  %v3884_v56 = vadd.f32 %v3883_v22, %v3853_v23  ;;  %v3907_v32 = vmul.f32 %v3853_v23, %v3853_v23  ;;  %v3526_v50 = vadd.f32 %v3504_v40, %v3372_v52 }
 0x3a6   :  { %v3658_v6 = vpop.f32.mrf.mxu3  ;;  %v3352_v29 = vpop.f32.mrf.mxu1 }
 0x3a7   :  { %v3922_v27 = vadd.f32 %v3921_v8, %v3907_v32  ;;  %v3680_v38 = vadd.f32 %v3658_v6, %v3526_v50  ;;  %v3373_v15 = vadd.f32 %v3352_v29, %v7899_v60 }
 0x3a8   :  { %v3814_v31 = vpop.f32.mrf.mxu0 }
 0x3a9   :  { %v3834_v12 = vadd.f32 %v3812_v58, %v3680_v38 }
 0x3ab   :  { %v3854_v18 = vadd.f32 %v7910_v34, %v3834_v12 }
 0x3ac   :  { %v3506_v36 = vpop.f32.mrf.mxu2 }
 0x3ad   :  { %3870 = vst [vmem:[%s8000_s3 + $0x60] sm:$0xff] %v3854_v18  ;;  %v3885_v62 = vadd.f32 %v3884_v56, %v3854_v18  ;;  %v3908_v10 = vmul.f32 %v3854_v18, %v3854_v18  ;;  %v3527_v53 = vadd.f32 %v3506_v36, %v3373_v15 }
 0x3ae   :  { %v3660_v48 = vpop.f32.mrf.mxu3  ;;  %v3355_v61 = vpop.f32.mrf.mxu1 }
 0x3af   :  { %v3923_v21 = vadd.f32 %v3922_v27, %v3908_v10  ;;  %v3681_v63 = vadd.f32 %v3660_v48, %v3527_v53  ;;  %v3374_v47 = vadd.f32 %v3355_v61, %v7902_v7 }
 0x3b0   :  { %v3817_v41 = vpop.f32.mrf.mxu0 }
 0x3b1   :  { %v3835_v35 = vadd.f32 %v3814_v31, %v3681_v63 }
 0x3b3   :  { %v3855_v28 = vadd.f32 %v7910_v34, %v3835_v35 }
 0x3b4   :  { %v3509_v42 = vpop.f32.mrf.mxu2 }
 0x3b5   :  { %3871 = vst [vmem:[%s8000_s3 + $0x68] sm:$0xff] %v3855_v28  ;;  %v3886_v60 = vadd.f32 %v3885_v62, %v3855_v28  ;;  %v3909_v1 = vmul.f32 %v3855_v28, %v3855_v28  ;;  %v3528_v30 = vadd.f32 %v3509_v42, %v3374_v47 }
 0x3b6   :  { %v3663_v3 = vpop.f32.mrf.mxu3  ;;  %v3357_v20 = vpop.f32.mrf.mxu1 }
 0x3b7   :  { %v3924_v51 = vadd.f32 %v3923_v21, %v3909_v1  ;;  %v3682_v14 = vadd.f32 %v3663_v3, %v3528_v30  ;;  %v3375_v24 = vadd.f32 %v3357_v20, %v7904_v45 }
 0x3b8   :  { %v3819_v59 = vpop.f32.mrf.mxu0 }
 0x3b9   :  { %v3836_v26 = vadd.f32 %v3817_v41, %v3682_v14 }
 0x3bb   :  { %v3856_v17 = vadd.f32 %v7910_v34, %v3836_v26 }
 0x3bc   :  { %v3511_v33 = vpop.f32.mrf.mxu2 }
 0x3bd   :  { %3872 = vst [vmem:[%s8000_s3 + $0x70] sm:$0xff] %v3856_v17  ;;  %v3887_v7 = vadd.f32 %v3886_v60, %v3856_v17  ;;  %v3910_v25 = vmul.f32 %v3856_v17, %v3856_v17  ;;  %v3529_v57 = vadd.f32 %v3511_v33, %v3375_v24 }
 0x3be   :  { %v3665_v55 = vpop.f32.mrf.mxu3 }
 0x3bf   :  { %v3925_v9 = vadd.f32 %v3924_v51, %v3910_v25  ;;  %v3683_v39 = vadd.f32 %v3665_v55, %v3529_v57 }
 0x3c1   :  { %v3837_v46 = vadd.f32 %v3819_v59, %v3683_v39 }
 0x3c3   :  { %v3857_v5 = vadd.f32 %v7910_v34, %v3837_v46 }
 0x3c5   :  { %3873 = vst [vmem:[%s8000_s3 + $0x78] sm:$0xff] %v3857_v5  ;;  %v3888_v45 = vadd.f32 %v3887_v7, %v3857_v5  ;;  %v3911_v44 = vmul.f32 %v3857_v5, %v3857_v5 }
 0x3c7   :  { %v3889_v4 = vrot.slane %v3888_v45, 4  ;;  %v3926_v37 = vadd.f32 %v3925_v9, %v3911_v44 }
 0x3c9   :  { %v3890_v19 = vadd.f32 %v3889_v4, %v3888_v45  ;;  %v3927_v16 = vrot.slane %v3926_v37, 4 }
 0x3cb   :  { %v3891_v43 = vrot.slane %v3890_v19, 2  ;;  %v3928_v22 = vadd.f32 %v3927_v16, %v3926_v37 }
 0x3cd   :  { %v3892_v0 = vadd.f32 %v3891_v43, %v3890_v19  ;;  %v3929_v49 = vrot.slane %v3928_v22, 2 }
 0x3cf   :  { %v3893_v54 = vrot.slane %v3892_v0, 1  ;;  %v3930_v11 = vadd.f32 %v3929_v49, %v3928_v22 }
 0x3d1   :  { %v3894_v8 = vadd.f32 %v3893_v54, %v3892_v0  ;;  %v3931_v2 = vrot.slane %v3930_v11, 1 }
 0x3d3   :  { %3895 = vst [vmem:[%s8001_s4] sm:$0x1] %v3894_v8  ;;  %v3932_v34 = vadd.f32 %v3931_v2, %v3930_v11 }
 0x3d5   :  { %3933 = vst [vmem:[%s8002_s5] sm:$0x1] %v3932_v34 }

// kernel: net_forward.9
= control target key start
LH: loop header
LB: loop body
LE: loop exit
PB: predicated region body
PF: predicated region fallthrough
CT: control target
= control target key end

     0   :  { %s5242_s0 = inlined_call_operand.vmem [shape: f32[2,2048], index: 0, kind: input, shape index: {}]   ;;  %s5243_s1 = inlined_call_operand.vmem [shape: bf16[2048,256], index: 1, kind: input, shape index: {}]   ;;  %s5244_s2 = inlined_call_operand.vmem [shape: f32[1,256], index: 2, kind: input, shape index: {}]   ;;  %s5245_s3 = inlined_call_operand.vmem [shape: f32[256,25], index: 3, kind: input, shape index: {}]   ;;  %s5246_s4 = inlined_call_operand.vmem [shape: f32[1,25], index: 4, kind: input, shape index: {}]   ;;  %s5247_s5 = inlined_call_operand.hbm [shape: f32[2,25], index: 5, kind: output, shape index: {}]  }
   0x1   :  { %v2206_v0 = vld [vmem:[%s5243_s1 + $0x70] sm:$0xf]  ;;  %v3187_v1 = vld [vmem:[%s5243_s1 + $0x74] sm:$0xf0]  ;;  %v2198_v11 = vld [vmem:[%s5243_s1 + $0x60] sm:$0xf] }
   0x2   :  { %v2270_v2 = vld [vmem:[%s5243_s1 + $0xf0] sm:$0xf]  ;;  %v2207_v3 = vor.u32 %v3187_v1, %v2206_v0  ;;  %v3203_v4 = vld [vmem:[%s5243_s1 + $0xf4] sm:$0xf0]  ;;  %v3185_v13 = vld [vmem:[%s5243_s1 + $0x64] sm:$0xf0] }
   0x3   :  { %v2334_v5 = vld [vmem:[%s5243_s1 + $0x170] sm:$0xf]  ;;  %v3219_v6 = vld [vmem:[%s5243_s1 + $0x174] sm:$0xf0]  ;;  %v2271_v7 = vor.u32 %v3203_v4, %v2270_v2  ;;  %v2262_v14 = vld [vmem:[%s5243_s1 + $0xe0] sm:$0xf]  ;;  %v2199_v16 = vor.u32 %v3185_v13, %v2198_v11 }
   0x4   :  { %v2335_v8 = vor.u32 %v3219_v6, %v2334_v5  ;;  %v2398_v9 = vld [vmem:[%s5243_s1 + $0x1f0] sm:$0xf]  ;;  %v3235_v10 = vld [vmem:[%s5243_s1 + $0x1f4] sm:$0xf0]  ;;  %1624 = vmatpush.bf16.msra.mxu0 %v2207_v3  ;;  %v3201_v15 = vld [vmem:[%s5243_s1 + $0xe4] sm:$0xf0] }
   0x5   :  { %v2399_v12 = vor.u32 %v3235_v10, %v2398_v9  ;;  %1637 = vmatpush.bf16.msra.mxu1 %v2271_v7  ;;  %v2263_v17 = vor.u32 %v3201_v15, %v2262_v14  ;;  %v2326_v18 = vld [vmem:[%s5243_s1 + $0x160] sm:$0xf]  ;;  %v3217_v19 = vld [vmem:[%s5243_s1 + $0x164] sm:$0xf0]  ;;  %v2190_v23 = vld [vmem:[%s5243_s1 + $0x50] sm:$0xf] }
   0x6   :  { %1650 = vmatpush.bf16.msra.mxu2 %v2335_v8  ;;  %v2390_v20 = vld [vmem:[%s5243_s1 + $0x1e0] sm:$0xf]  ;;  %v2327_v21 = vor.u32 %v3217_v19, %v2326_v18  ;;  %v3233_v22 = vld [vmem:[%s5243_s1 + $0x1e4] sm:$0xf0]  ;;  %v3183_v24 = vld [vmem:[%s5243_s1 + $0x54] sm:$0xf0] }
   0x7   :  { %1663 = vmatpush.bf16.msra.mxu3 %v2399_v12  ;;  %v2391_v25 = vor.u32 %v3233_v22, %v2390_v20  ;;  %v2254_v26 = vld [vmem:[%s5243_s1 + $0xd0] sm:$0xf]  ;;  %v3199_v27 = vld [vmem:[%s5243_s1 + $0xd4] sm:$0xf0]  ;;  %v2191_v29 = vor.u32 %v3183_v24, %v2190_v23  ;;  %v2182_v35 = vld [vmem:[%s5243_s1 + $0x40] sm:$0xf] }
   0x8   :  { %v2318_v28 = vld [vmem:[%s5243_s1 + $0x150] sm:$0xf]  ;;  %1625 = vmatpush.bf16.msra.mxu0 %v2199_v16  ;;  %v3215_v30 = vld [vmem:[%s5243_s1 + $0x154] sm:$0xf0]  ;;  %v2255_v33 = vor.u32 %v3199_v27, %v2254_v26  ;;  %v3181_v36 = vld [vmem:[%s5243_s1 + $0x44] sm:$0xf0] }
   0x9   :  { %v2382_v31 = vld [vmem:[%s5243_s1 + $0x1d0] sm:$0xf]  ;;  %v3231_v32 = vld [vmem:[%s5243_s1 + $0x1d4] sm:$0xf0]  ;;  %1638 = vmatpush.bf16.msra.mxu1 %v2263_v17  ;;  %v2319_v34 = vor.u32 %v3215_v30, %v2318_v28  ;;  %v2246_v37 = vld [vmem:[%s5243_s1 + $0xc0] sm:$0xf]  ;;  %v2183_v44 = vor.u32 %v3181_v36, %v2182_v35 }
   0xa   :  { %1651 = vmatpush.bf16.msra.mxu2 %v2327_v21  ;;  %v2383_v38 = vor.u32 %v3231_v32, %v2382_v31  ;;  %v3197_v39 = vld [vmem:[%s5243_s1 + $0xc4] sm:$0xf0]  ;;  %v2310_v40 = vld [vmem:[%s5243_s1 + $0x140] sm:$0xf]  ;;  %v2174_v47 = vld [vmem:[%s5243_s1 + $0x30] sm:$0xf] }
   0xb   :  { %1664 = vmatpush.bf16.msra.mxu3 %v2391_v25  ;;  %v3213_v41 = vld [vmem:[%s5243_s1 + $0x144] sm:$0xf0]  ;;  %v2374_v42 = vld [vmem:[%s5243_s1 + $0x1c0] sm:$0xf]  ;;  %v2247_v45 = vor.u32 %v3197_v39, %v2246_v37  ;;  %v3179_v48 = vld [vmem:[%s5243_s1 + $0x34] sm:$0xf0] }
   0xc   :  { %v3229_v43 = vld [vmem:[%s5243_s1 + $0x1c4] sm:$0xf0]  ;;  %1626 = vmatpush.bf16.msra.mxu0 %v2191_v29  ;;  %v2311_v46 = vor.u32 %v3213_v41, %v2310_v40  ;;  %v2238_v49 = vld [vmem:[%s5243_s1 + $0xb0] sm:$0xf]  ;;  %v3195_v51 = vld [vmem:[%s5243_s1 + $0xb4] sm:$0xf0]  ;;  %v2175_v56 = vor.u32 %v3179_v48, %v2174_v47 }
   0xd   :  { %1639 = vmatpush.bf16.msra.mxu1 %v2255_v33  ;;  %v2375_v50 = vor.u32 %v3229_v43, %v2374_v42  ;;  %v2302_v52 = vld [vmem:[%s5243_s1 + $0x130] sm:$0xf]  ;;  %v3211_v53 = vld [vmem:[%s5243_s1 + $0x134] sm:$0xf0]  ;;  %v2239_v57 = vor.u32 %v3195_v51, %v2238_v49  ;;  %v2166_v59 = vld [vmem:[%s5243_s1 + $0x20] sm:$0xf] }
   0xe   :  { %1652 = vmatpush.bf16.msra.mxu2 %v2319_v34  ;;  %v2366_v54 = vld [vmem:[%s5243_s1 + $0x1b0] sm:$0xf]  ;;  %v3227_v55 = vld [vmem:[%s5243_s1 + $0x1b4] sm:$0xf0]  ;;  %v2303_v58 = vor.u32 %v3211_v53, %v2302_v52  ;;  %v3177_v60 = vld [vmem:[%s5243_s1 + $0x24] sm:$0xf0] }
   0xf   :  { %1665 = vmatpush.bf16.msra.mxu3 %v2383_v38  ;;  %v2230_v61 = vld [vmem:[%s5243_s1 + $0xa0] sm:$0xf]  ;;  %v2367_v62 = vor.u32 %v3227_v55, %v2366_v54  ;;  %v3193_v63 = vld [vmem:[%s5243_s1 + $0xa4] sm:$0xf0]  ;;  %v2167_v4 = vor.u32 %v3177_v60, %v2166_v59  ;;  %v2158_v7 = vld [vmem:[%s5243_s1 + $0x10] sm:$0xf] }
  0x10   :  { %1627 = vmatpush.bf16.msra.mxu0 %v2183_v44  ;;  %v2294_v0 = vld [vmem:[%s5243_s1 + $0x120] sm:$0xf]  ;;  %v3209_v1 = vld [vmem:[%s5243_s1 + $0x124] sm:$0xf0]  ;;  %v2231_v5 = vor.u32 %v3193_v63, %v2230_v61  ;;  %v3175_v8 = vld [vmem:[%s5243_s1 + $0x14] sm:$0xf0] }
  0x11   :  { %1640 = vmatpush.bf16.msra.mxu1 %v2247_v45  ;;  %v2358_v2 = vld [vmem:[%s5243_s1 + $0x1a0] sm:$0xf]  ;;  %v3225_v3 = vld [vmem:[%s5243_s1 + $0x1a4] sm:$0xf0]  ;;  %v2295_v6 = vor.u32 %v3209_v1, %v2294_v0  ;;  %v2222_v9 = vld [vmem:[%s5243_s1 + $0x90] sm:$0xf]  ;;  %v2159_v16 = vor.u32 %v3175_v8, %v2158_v7 }
  0x12   :  { %1653 = vmatpush.bf16.msra.mxu2 %v2311_v46  ;;  %v2359_v10 = vor.u32 %v3225_v3, %v2358_v2  ;;  %v3191_v11 = vld [vmem:[%s5243_s1 + $0x94] sm:$0xf0]  ;;  %v2286_v12 = vld [vmem:[%s5243_s1 + $0x110] sm:$0xf]  ;;  %v2150_v17 = vld [vmem:[%s5243_s1] sm:$0xf] }
  0x13   :  { %1666 = vmatpush.bf16.msra.mxu3 %v2375_v50  ;;  %v3207_v13 = vld [vmem:[%s5243_s1 + $0x114] sm:$0xf0]  ;;  %v2350_v14 = vld [vmem:[%s5243_s1 + $0x190] sm:$0xf]  ;;  %v3173_v18 = vld [vmem:[%s5243_s1 + $0x4] sm:$0xf0]  ;;  %v2223_v19 = vor.u32 %v3191_v11, %v2222_v9 }
  0x14   :  { %1628 = vmatpush.bf16.msra.mxu0 %v2175_v56  ;;  %v3223_v15 = vld [vmem:[%s5243_s1 + $0x194] sm:$0xf0]  ;;  %v2287_v20 = vor.u32 %v3207_v13, %v2286_v12  ;;  %v2214_v21 = vld [vmem:[%s5243_s1 + $0x80] sm:$0xf]  ;;  %v3189_v22 = vld [vmem:[%s5243_s1 + $0x84] sm:$0xf0]  ;;  %v2151_v31 = vor.u32 %v3173_v18, %v2150_v17 }
  0x15   :  { %1641 = vmatpush.bf16.msra.mxu1 %v2239_v57  ;;  %v2278_v23 = vld [vmem:[%s5243_s1 + $0x100] sm:$0xf]  ;;  %v2351_v24 = vor.u32 %v3223_v15, %v2350_v14  ;;  %v3205_v25 = vld [vmem:[%s5243_s1 + $0x104] sm:$0xf0]  ;;  %v2462_v28 = vld [vmem:[%s5243_s1 + $0x270] sm:$0xf]  ;;  %v2215_v35 = vor.u32 %v3189_v22, %v2214_v21 }
  0x16   :  { %1654 = vmatpush.bf16.msra.mxu2 %v2303_v58  ;;  %v2342_v26 = vld [vmem:[%s5243_s1 + $0x180] sm:$0xf]  ;;  %v3221_v27 = vld [vmem:[%s5243_s1 + $0x184] sm:$0xf0]  ;;  %v3251_v29 = vld [vmem:[%s5243_s1 + $0x274] sm:$0xf0]  ;;  %v2279_v36 = vor.u32 %v3205_v25, %v2278_v23 }
  0x17   :  { %1667 = vmatpush.bf16.msra.mxu3 %v2367_v62  ;;  %v2526_v30 = vld [vmem:[%s5243_s1 + $0x2f0] sm:$0xf]  ;;  %v3267_v32 = vld [vmem:[%s5243_s1 + $0x2f4] sm:$0xf0]  ;;  %v2343_v39 = vor.u32 %v3221_v27, %v2342_v26  ;;  %v2463_v40 = vor.u32 %v3251_v29, %v2462_v28  ;;  %v2454_v43 = vld [vmem:[%s5243_s1 + $0x260] sm:$0xf] }
  0x18   :  { %1629 = vmatpush.bf16.msra.mxu0 %v2167_v4  ;;  %v2590_v33 = vld [vmem:[%s5243_s1 + $0x370] sm:$0xf]  ;;  %v3283_v34 = vld [vmem:[%s5243_s1 + $0x374] sm:$0xf0]  ;;  %v2527_v41 = vor.u32 %v3267_v32, %v2526_v30  ;;  %v3249_v44 = vld [vmem:[%s5243_s1 + $0x264] sm:$0xf0] }
  0x19   :  { %1642 = vmatpush.bf16.msra.mxu1 %v2231_v5  ;;  %v2654_v37 = vld [vmem:[%s5243_s1 + $0x3f0] sm:$0xf]  ;;  %v3299_v38 = vld [vmem:[%s5243_s1 + $0x3f4] sm:$0xf0]  ;;  %v2591_v42 = vor.u32 %v3283_v34, %v2590_v33  ;;  %v2518_v45 = vld [vmem:[%s5243_s1 + $0x2e0] sm:$0xf]  ;;  %v2455_v52 = vor.u32 %v3249_v44, %v2454_v43 }
  0x1a   :  { %1655 = vmatpush.bf16.msra.mxu2 %v2295_v6  ;;  %v2655_v46 = vor.u32 %v3299_v38, %v2654_v37  ;;  %v3265_v47 = vld [vmem:[%s5243_s1 + $0x2e4] sm:$0xf0]  ;;  %v2582_v48 = vld [vmem:[%s5243_s1 + $0x360] sm:$0xf]  ;;  %v2446_v55 = vld [vmem:[%s5243_s1 + $0x250] sm:$0xf] }
  0x1b   :  { %1668 = vmatpush.bf16.msra.mxu3 %v2359_v10  ;;  %v3281_v49 = vld [vmem:[%s5243_s1 + $0x364] sm:$0xf0]  ;;  %v2646_v50 = vld [vmem:[%s5243_s1 + $0x3e0] sm:$0xf]  ;;  %v2519_v53 = vor.u32 %v3265_v47, %v2518_v45  ;;  %v3247_v56 = vld [vmem:[%s5243_s1 + $0x254] sm:$0xf0] }
  0x1c   :  { %1630 = vmatpush.bf16.msra.mxu0 %v2159_v16  ;;  %v3297_v51 = vld [vmem:[%s5243_s1 + $0x3e4] sm:$0xf0]  ;;  %v2583_v54 = vor.u32 %v3281_v49, %v2582_v48  ;;  %v2510_v57 = vld [vmem:[%s5243_s1 + $0x2d0] sm:$0xf]  ;;  %v3263_v59 = vld [vmem:[%s5243_s1 + $0x2d4] sm:$0xf0]  ;;  %v2447_v0 = vor.u32 %v3247_v56, %v2446_v55 }
  0x1d   :  { %1643 = vmatpush.bf16.msra.mxu1 %v2223_v19  ;;  %v2647_v58 = vor.u32 %v3297_v51, %v2646_v50  ;;  %v2574_v60 = vld [vmem:[%s5243_s1 + $0x350] sm:$0xf]  ;;  %v3279_v61 = vld [vmem:[%s5243_s1 + $0x354] sm:$0xf0]  ;;  %v2438_v1 = vld [vmem:[%s5243_s1 + $0x240] sm:$0xf]  ;;  %v2511_v3 = vor.u32 %v3263_v59, %v2510_v57 }
  0x1e   :  { %1656 = vmatpush.bf16.msra.mxu2 %v2287_v20  ;;  %v2638_v62 = vld [vmem:[%s5243_s1 + $0x3d0] sm:$0xf]  ;;  %v3295_v63 = vld [vmem:[%s5243_s1 + $0x3d4] sm:$0xf0]  ;;  %v21_v2 = vld [vmem:[%s5242_s0] sm:$0xff]  ;;  %v2575_v4 = vor.u32 %v3279_v61, %v2574_v60 }
  0x1f   :  { %1669 = vmatpush.bf16.msra.mxu3 %v2351_v24  ;;  %v3245_v5 = vld [vmem:[%s5243_s1 + $0x244] sm:$0xf0]  ;;  %v2502_v6 = vld [vmem:[%s5243_s1 + $0x2c0] sm:$0xf]  ;;  %29 = vst [vmem:[#allocation1] ss:$4 sm:$0xff] %v21_v2  ;;  %v2639_v7 = vor.u32 %v3295_v63, %v2638_v62 }
  0x20   :  { %1631 = vmatpush.bf16.msra.mxu0 %v2151_v31  ;;  %v3261_v8 = vld [vmem:[%s5243_s1 + $0x2c4] sm:$0xf0]  ;;  %v2566_v9 = vld [vmem:[%s5243_s1 + $0x340] sm:$0xf]  ;;  %v2439_v13 = vor.u32 %v3245_v5, %v2438_v1  ;;  %v2430_v14 = vld [vmem:[%s5243_s1 + $0x230] sm:$0xf] }
  0x21   :  { %1644 = vmatpush.bf16.msra.mxu1 %v2215_v35  ;;  %v3277_v10 = vld [vmem:[%s5243_s1 + $0x344] sm:$0xf0]  ;;  %v2630_v11 = vld [vmem:[%s5243_s1 + $0x3c0] sm:$0xf]  ;;  %v3243_v15 = vld [vmem:[%s5243_s1 + $0x234] sm:$0xf0]  ;;  %v2503_v16 = vor.u32 %v3261_v8, %v2502_v6 }
  0x22   :  { %1657 = vmatpush.bf16.msra.mxu2 %v2279_v36  ;;  %v3293_v12 = vld [vmem:[%s5243_s1 + $0x3c4] sm:$0xf0]  ;;  %v2567_v17 = vor.u32 %v3277_v10, %v2566_v9  ;;  %v2494_v18 = vld [vmem:[%s5243_s1 + $0x2b0] sm:$0xf]  ;;  %v3259_v19 = vld [vmem:[%s5243_s1 + $0x2b4] sm:$0xf0]  ;;  %v2431_v28 = vor.u32 %v3243_v15, %v2430_v14 }
  0x23   :  { %1670 = vmatpush.bf16.msra.mxu3 %v2343_v39  ;;  %v2558_v20 = vld [vmem:[%s5243_s1 + $0x330] sm:$0xf]  ;;  %v2631_v21 = vor.u32 %v3293_v12, %v2630_v11  ;;  %v3275_v22 = vld [vmem:[%s5243_s1 + $0x334] sm:$0xf0]  ;;  %v2422_v25 = vld [vmem:[%s5243_s1 + $0x220] sm:$0xf]  ;;  %v2495_v29 = vor.u32 %v3259_v19, %v2494_v18 }
  0x24   :  { %1676 = vmatpush.bf16.msrb.mxu0 %v2463_v40  ;;  %v2622_v23 = vld [vmem:[%s5243_s1 + $0x3b0] sm:$0xf]  ;;  %v3291_v24 = vld [vmem:[%s5243_s1 + $0x3b4] sm:$0xf0]  ;;  %v3241_v26 = vld [vmem:[%s5243_s1 + $0x224] sm:$0xf0]  ;;  %v2559_v34 = vor.u32 %v3275_v22, %v2558_v20 }
  0x25   :  { %1689 = vmatpush.bf16.msrb.mxu1 %v2527_v41  ;;  %v23_v27 = vld [vmem:[%s5242_s0 + $0x10] sm:$0xff]  ;;  %v2486_v30 = vld [vmem:[%s5243_s1 + $0x2a0] sm:$0xf]  ;;  %v3257_v31 = vld [vmem:[%s5243_s1 + $0x2a4] sm:$0xf0]  ;;  %v2623_v39 = vor.u32 %v3291_v24, %v2622_v23 }
  0x26   :  { %1702 = vmatpush.bf16.msrb.mxu2 %v2591_v42  ;;  %v34_v32 = vld.sshfl [vmem:[#allocation1 + $0x10] sm:$0xff pattern:$0x73625140]  ;;  %v32_v33 = vld.sshfl [vmem:[#allocation1] sm:$0xff pattern:$0x73625140]  ;;  %v2487_v49 = vor.u32 %v3257_v31, %v2486_v30 }
  0x27   :  { %1715 = vmatpush.bf16.msrb.mxu3 %v2655_v46  ;;  %v3821_v35 = vpack.c.bf16 %v34_v32, %v34_v32  ;;  %v3823_v36 = vpack.c.bf16 %v32_v33, %v32_v33  ;;  %v35_v37 = vld.sshfl [vmem:[#allocation1 + $0x18] sm:$0xff pattern:$0x73625140]  ;;  %v33_v38 = vld.sshfl [vmem:[#allocation1 + $0x8] sm:$0xff pattern:$0x73625140]  ;;  %v2423_v46 = vor.u32 %v3241_v26, %v2422_v25 }
  0x28   :  { %1677 = vmatpush.bf16.msrb.mxu0 %v2455_v52  ;;  %v2550_v40 = vld [vmem:[%s5243_s1 + $0x320] sm:$0xf]  ;;  %v3273_v41 = vld [vmem:[%s5243_s1 + $0x324] sm:$0xf0]  ;;  %v3831_v42 = vpack.c.bf16 %v35_v37, %v35_v37  ;;  %40 = vst [vmem:[#allocation1] ss:$4 sm:$0xff] %v23_v27  ;;  %v3833_v43 = vpack.c.bf16 %v33_v38, %v33_v38 }
  0x29   :  { %1690 = vmatpush.bf16.msrb.mxu1 %v2519_v53  ;;  %v2614_v44 = vld [vmem:[%s5243_s1 + $0x3a0] sm:$0xf]  ;;  %v3289_v45 = vld [vmem:[%s5243_s1 + $0x3a4] sm:$0xf0]  ;;  %1658 = vmatmul.bf16.vlgmr.msra.gmra.mxu2 %v3821_v35  ;;  %v2414_v47 = vld [vmem:[%s5243_s1 + $0x210] sm:$0xf]  ;;  %v2551_v50 = vor.u32 %v3273_v41, %v2550_v40 }
  0x2a   :  { %1703 = vmatpush.bf16.msrb.mxu2 %v2583_v54  ;;  %1632 = vmatmul.bf16.vlgmr.msra.gmra.mxu0 %v3823_v36  ;;  %v3239_v48 = vld [vmem:[%s5243_s1 + $0x214] sm:$0xf0]  ;;  %v2478_v51 = vld [vmem:[%s5243_s1 + $0x290] sm:$0xf]  ;;  %v2615_v54 = vor.u32 %v3289_v45, %v2614_v44  ;;  %v22_v57 = vld [vmem:[%s5242_s0 + $0x8] sm:$0xff] }
  0x2b   :  { %1716 = vmatpush.bf16.msrb.mxu3 %v2647_v58  ;;  %v3255_v52 = vld [vmem:[%s5243_s1 + $0x294] sm:$0xf0]  ;;  %v2542_v53 = vld [vmem:[%s5243_s1 + $0x310] sm:$0xf]  ;;  %1645 = vmatmul.bf16.vlgmr.msra.gmra.mxu1 %v3833_v43  ;;  %v2406_v59 = vld [vmem:[%s5243_s1 + $0x200] sm:$0xf]  ;;  %v2415_v60 = vor.u32 %v3239_v48, %v2414_v47 }
  0x2c   :  { %1678 = vmatpush.bf16.msrb.mxu0 %v2447_v0  ;;  %1671 = vmatmul.bf16.vlgmr.msra.gmra.mxu3 %v3831_v42  ;;  %v3271_v55 = vld [vmem:[%s5243_s1 + $0x314] sm:$0xf0]  ;;  %v2606_v56 = vld [vmem:[%s5243_s1 + $0x390] sm:$0xf]  ;;  %31 = vst [vmem:[#allocation1 + $0x20] ss:$4 sm:$0xff] %v22_v57  ;;  %v2479_v0 = vor.u32 %v3255_v52, %v2478_v51 }
  0x2d   :  { %1691 = vmatpush.bf16.msrb.mxu1 %v2511_v3  ;;  %v3287_v58 = vld [vmem:[%s5243_s1 + $0x394] sm:$0xf0]  ;;  %v3237_v61 = vld [vmem:[%s5243_s1 + $0x204] sm:$0xf0]  ;;  %v2470_v62 = vld [vmem:[%s5243_s1 + $0x280] sm:$0xf]  ;;  %v2543_v1 = vor.u32 %v3271_v55, %v2542_v53 }
  0x2e   :  { %1704 = vmatpush.bf16.msrb.mxu2 %v2575_v4  ;;  %v3253_v63 = vld [vmem:[%s5243_s1 + $0x284] sm:$0xf0]  ;;  %v2534_v2 = vld [vmem:[%s5243_s1 + $0x300] sm:$0xf]  ;;  %v2607_v5 = vor.u32 %v3287_v58, %v2606_v56  ;;  %v3315_v8 = vld [vmem:[%s5243_s1 + $0x474] sm:$0xf0]  ;;  %v2407_v12 = vor.u32 %v3237_v61, %v2406_v59 }
  0x2f   :  { %1717 = vmatpush.bf16.msrb.mxu3 %v2639_v7  ;;  %v3269_v3 = vld [vmem:[%s5243_s1 + $0x304] sm:$0xf0]  ;;  %v2598_v4 = vld [vmem:[%s5243_s1 + $0x380] sm:$0xf]  ;;  %v2718_v7 = vld [vmem:[%s5243_s1 + $0x470] sm:$0xf] }
  0x30   :  { %1679 = vmatpush.bf16.msrb.mxu0 %v2439_v13  ;;  %v3285_v6 = vld [vmem:[%s5243_s1 + $0x384] sm:$0xf0]  ;;  %v2782_v9 = vld [vmem:[%s5243_s1 + $0x4f0] sm:$0xf]  ;;  %v3331_v10 = vld [vmem:[%s5243_s1 + $0x4f4] sm:$0xf0]  ;;  %v2719_v22 = vor.u32 %v3315_v8, %v2718_v7 }
  0x31   :  { %1692 = vmatpush.bf16.msrb.mxu1 %v2503_v16  ;;  %v2846_v11 = vld [vmem:[%s5243_s1 + $0x570] sm:$0xf]  ;;  %v3347_v13 = vld [vmem:[%s5243_s1 + $0x574] sm:$0xf0]  ;;  %v2471_v16 = vor.u32 %v3253_v63, %v2470_v62  ;;  %v2710_v18 = vld [vmem:[%s5243_s1 + $0x460] sm:$0xf]  ;;  %v2783_v27 = vor.u32 %v3331_v10, %v2782_v9 }
  0x32   :  { %1705 = vmatpush.bf16.msrb.mxu2 %v2567_v17  ;;  %v2910_v14 = vld [vmem:[%s5243_s1 + $0x5f0] sm:$0xf]  ;;  %v3363_v15 = vld [vmem:[%s5243_s1 + $0x5f4] sm:$0xf0]  ;;  %v2535_v17 = vor.u32 %v3269_v3, %v2534_v2  ;;  %v3313_v19 = vld [vmem:[%s5243_s1 + $0x464] sm:$0xf0] }
  0x33   :  { %1718 = vmatpush.bf16.msrb.mxu3 %v2631_v21  ;;  %v24_v20 = vld [vmem:[%s5242_s0 + $0x18] sm:$0xff]  ;;  %v2599_v21 = vor.u32 %v3285_v6, %v2598_v4  ;;  %v2774_v23 = vld [vmem:[%s5243_s1 + $0x4e0] sm:$0xf]  ;;  %v3329_v24 = vld [vmem:[%s5243_s1 + $0x4e4] sm:$0xf0]  ;;  %v2911_v31 = vor.u32 %v3363_v15, %v2910_v14  ;;  %v2711_v41 = vor.u32 %v3313_v19, %v2710_v18 }
  0x34   :  { %1680 = vmatpush.bf16.msrb.mxu0 %v2431_v28  ;;  %v38_v25 = vld.sshfl [vmem:[#allocation1 + $0x30] sm:$0xff pattern:$0x73625140]  ;;  %v36_v26 = vld.sshfl [vmem:[#allocation1 + $0x20] sm:$0xff pattern:$0x73625140]  ;;  %v2847_v28 = vor.u32 %v3347_v13, %v2846_v11  ;;  %v2775_v45 = vor.u32 %v3329_v24, %v2774_v23 }
  0x35   :  { %1693 = vmatpush.bf16.msrb.mxu1 %v2495_v29  ;;  %v39_v29 = vld.sshfl [vmem:[#allocation1 + $0x38] sm:$0xff pattern:$0x73625140]  ;;  %v37_v30 = vld.sshfl [vmem:[#allocation1 + $0x28] sm:$0xff pattern:$0x73625140] }
  0x36   :  { %1706 = vmatpush.bf16.msrb.mxu2 %v2559_v34  ;;  %v2838_v32 = vld [vmem:[%s5243_s1 + $0x560] sm:$0xf]  ;;  %v3345_v33 = vld [vmem:[%s5243_s1 + $0x564] sm:$0xf0]  ;;  %v3941_v34 = vpack.c.bf16 %v38_v25, %v38_v25  ;;  %41 = vst [vmem:[#allocation1 + $0x20] ss:$4 sm:$0xff] %v24_v20  ;;  %v3951_v40 = vpack.c.bf16 %v39_v29, %v39_v29  ;;  %v3953_v44 = vpack.c.bf16 %v37_v30, %v37_v30 }
  0x37   :  { %1719 = vmatpush.bf16.msrb.mxu3 %v2623_v39  ;;  %v2902_v37 = vld [vmem:[%s5243_s1 + $0x5e0] sm:$0xf]  ;;  %v3361_v38 = vld [vmem:[%s5243_s1 + $0x5e4] sm:$0xf0]  ;;  %v3949_v39 = vpack.c.bf16 %v36_v26, %v36_v26  ;;  %v2702_v47 = vld [vmem:[%s5243_s1 + $0x450] sm:$0xf] }
  0x38   :  { %1681 = vmatpush.bf16.msrb.mxu0 %v2423_v46  ;;  %v2839_v46 = vor.u32 %v3345_v33, %v2838_v32  ;;  %v3311_v48 = vld [vmem:[%s5243_s1 + $0x454] sm:$0xf0]  ;;  %v2830_v52 = vld [vmem:[%s5243_s1 + $0x550] sm:$0xf]  ;;  %v2694_v59 = vld [vmem:[%s5243_s1 + $0x440] sm:$0xf] }
  0x39   :  { %1694 = vmatpush.bf16.msrb.mxu1 %v2487_v49  ;;  %v2766_v49 = vld [vmem:[%s5243_s1 + $0x4d0] sm:$0xf]  ;;  %v3327_v51 = vld [vmem:[%s5243_s1 + $0x4d4] sm:$0xf0]  ;;  %v2703_v56 = vor.u32 %v3311_v48, %v2702_v47  ;;  %v2758_v61 = vld [vmem:[%s5243_s1 + $0x4c0] sm:$0xf] }
  0x3a   :  { %1707 = vmatpush.bf16.msrb.mxu2 %v2551_v50  ;;  %v2903_v50 = vor.u32 %v3361_v38, %v2902_v37  ;;  %v3343_v53 = vld [vmem:[%s5243_s1 + $0x554] sm:$0xf0]  ;;  %v2767_v57 = vor.u32 %v3327_v51, %v2766_v49  ;;  %v3325_v63 = vld [vmem:[%s5243_s1 + $0x4c4] sm:$0xf0]  ;;  %v2886_v2 = vld [vmem:[%s5243_s1 + $0x5c0] sm:$0xf] }
  0x3b   :  { %1720 = vmatpush.bf16.msrb.mxu3 %v2615_v54  ;;  %v2894_v54 = vld [vmem:[%s5243_s1 + $0x5d0] sm:$0xf]  ;;  %v3359_v55 = vld [vmem:[%s5243_s1 + $0x5d4] sm:$0xf0]  ;;  %v2831_v58 = vor.u32 %v3343_v53, %v2830_v52  ;;  %v3357_v3 = vld [vmem:[%s5243_s1 + $0x5c4] sm:$0xf0] }
  0x3c   :  { %1682 = vmatpush.bf16.msrb.mxu0 %v2415_v60  ;;  %v3309_v60 = vld [vmem:[%s5243_s1 + $0x444] sm:$0xf0]  ;;  %v2895_v62 = vor.u32 %v3359_v55, %v2894_v54  ;;  %v2686_v7 = vld [vmem:[%s5243_s1 + $0x430] sm:$0xf]  ;;  %v3307_v8 = vld [vmem:[%s5243_s1 + $0x434] sm:$0xf0]  ;;  %v2887_v10 = vor.u32 %v3357_v3, %v2886_v2 }
  0x3d   :  { %1695 = vmatpush.bf16.msrb.mxu1 %v2479_v0  ;;  %v2822_v0 = vld [vmem:[%s5243_s1 + $0x540] sm:$0xf]  ;;  %v2695_v4 = vor.u32 %v3309_v60, %v2694_v59  ;;  %v2750_v9 = vld [vmem:[%s5243_s1 + $0x4b0] sm:$0xf]  ;;  %v3323_v11 = vld [vmem:[%s5243_s1 + $0x4b4] sm:$0xf0] }
  0x3e   :  { %1708 = vmatpush.bf16.msrb.mxu2 %v2543_v1  ;;  %v3341_v1 = vld [vmem:[%s5243_s1 + $0x544] sm:$0xf0]  ;;  %v3339_v13 = vld [vmem:[%s5243_s1 + $0x534] sm:$0xf0]  ;;  %v2878_v14 = vld [vmem:[%s5243_s1 + $0x5b0] sm:$0xf] }
  0x3f   :  { %1721 = vmatpush.bf16.msrb.mxu3 %v2607_v5  ;;  %v2759_v5 = vor.u32 %v3325_v63, %v2758_v61  ;;  %v2823_v6 = vor.u32 %v3341_v1, %v2822_v0  ;;  %v3355_v15 = vld [vmem:[%s5243_s1 + $0x5b4] sm:$0xf0]  ;;  %v2678_v19 = vld [vmem:[%s5243_s1 + $0x420] sm:$0xf]  ;;  %v3305_v20 = vld [vmem:[%s5243_s1 + $0x424] sm:$0xf0] }
  0x40   :  { %1683 = vmatpush.bf16.msrb.mxu0 %v2407_v12  ;;  %v2814_v12 = vld [vmem:[%s5243_s1 + $0x530] sm:$0xf]  ;;  %v3321_v23 = vld [vmem:[%s5243_s1 + $0x4a4] sm:$0xf0]  ;;  %v2806_v24 = vld [vmem:[%s5243_s1 + $0x520] sm:$0xf] }
  0x41   :  { %1696 = vmatpush.bf16.msrb.mxu1 %v2471_v16  ;;  %v2687_v16 = vor.u32 %v3307_v8, %v2686_v7  ;;  %v2815_v18 = vor.u32 %v3339_v13, %v2814_v12  ;;  %v3337_v25 = vld [vmem:[%s5243_s1 + $0x524] sm:$0xf0]  ;;  %v2870_v26 = vld [vmem:[%s5243_s1 + $0x5a0] sm:$0xf]  ;;  %v3303_v32 = vld [vmem:[%s5243_s1 + $0x414] sm:$0xf0] }
  0x42   :  { %1709 = vmatpush.bf16.msrb.mxu2 %v2535_v17  ;;  %v2751_v17 = vor.u32 %v3323_v11, %v2750_v9  ;;  %v2807_v30 = vor.u32 %v3337_v25, %v2806_v24  ;;  %v2734_v33 = vld [vmem:[%s5243_s1 + $0x490] sm:$0xf]  ;;  %v3319_v38 = vld [vmem:[%s5243_s1 + $0x494] sm:$0xf0]  ;;  %v2662_v48 = vld [vmem:[%s5243_s1 + $0x400] sm:$0xf] }
  0x43   :  { %1722 = vmatpush.bf16.msrb.mxu3 %v2599_v21  ;;  %1684 = vmatmul.bf16.vlgmr.msrb.gmra.mxu0 %v3949_v39  ;;  %v2742_v21 = vld [vmem:[%s5243_s1 + $0x4a0] sm:$0xf]  ;;  %v3351_v47 = vld [vmem:[%s5243_s1 + $0x594] sm:$0xf0]  ;;  %v3317_v52 = vld [vmem:[%s5243_s1 + $0x484] sm:$0xf0]  ;;  %v2735_v53 = vor.u32 %v3319_v38, %v2734_v33 }
  0x44   :  { %1728 = vmatpush.bf16.msra.mxu0 %v2719_v22  ;;  %1697 = vmatmul.bf16.vlgmr.msrb.gmra.mxu1 %v3953_v44  ;;  %v2879_v22 = vor.u32 %v3355_v15, %v2878_v14  ;;  %v2743_v29 = vor.u32 %v3321_v23, %v2742_v21  ;;  %v2726_v51 = vld [vmem:[%s5243_s1 + $0x480] sm:$0xf]  ;;  %v3349_v59 = vld [vmem:[%s5243_s1 + $0x584] sm:$0xf0]  ;;  %v2974_v60 = vld [vmem:[%s5243_s1 + $0x670] sm:$0xf] }
  0x45   :  { %1741 = vmatpush.bf16.msra.mxu1 %v2783_v27  ;;  %1710 = vmatmul.bf16.vlgmr.msrb.gmra.mxu2 %v3941_v34  ;;  %v3353_v27 = vld [vmem:[%s5243_s1 + $0x5a4] sm:$0xf0]  ;;  %v2790_v55 = vld [vmem:[%s5243_s1 + $0x500] sm:$0xf]  ;;  %v3379_v61 = vld [vmem:[%s5243_s1 + $0x674] sm:$0xf0] }
  0x46   :  { %1754 = vmatpush.bf16.msra.mxu2 %v2847_v28  ;;  %1723 = vmatmul.bf16.vlgmr.msrb.gmra.mxu3 %v3951_v40  ;;  %v2679_v28 = vor.u32 %v3305_v20, %v2678_v19  ;;  %v2871_v37 = vor.u32 %v3353_v27, %v2870_v26  ;;  %v3395_v63 = vld [vmem:[%s5243_s1 + $0x6f4] sm:$0xf0]  ;;  %v3102_v0 = vld [vmem:[%s5243_s1 + $0x770] sm:$0xf]  ;;  %v2966_v15 = vld [vmem:[%s5243_s1 + $0x660] sm:$0xf] }
  0x47   :  { %1767 = vmatpush.bf16.msra.mxu3 %v2911_v31  ;;  %v2670_v31 = vld [vmem:[%s5243_s1 + $0x410] sm:$0xf]  ;;  %v3411_v2 = vld [vmem:[%s5243_s1 + $0x774] sm:$0xf0]  ;;  %v3393_v20 = vld [vmem:[%s5243_s1 + $0x6e4] sm:$0xf0] }
  0x48   :  { %1729 = vmatpush.bf16.msra.mxu0 %v2711_v41  ;;  %v2798_v41 = vld [vmem:[%s5243_s1 + $0x510] sm:$0xf]  ;;  %v2671_v49 = vor.u32 %v3303_v32, %v2670_v31  ;;  %v42_v7 = vld.sshfl [vmem:[#allocation1] sm:$0xff pattern:$0x73625140]  ;;  %v3103_v14 = vor.u32 %v3411_v2, %v3102_v0 }
  0x49   :  { %1742 = vmatpush.bf16.msra.mxu1 %v2775_v45  ;;  %v3335_v45 = vld [vmem:[%s5243_s1 + $0x514] sm:$0xf0]  ;;  %v3166_v3 = vld [vmem:[%s5243_s1 + $0x7f0] sm:$0xf]  ;;  %v4136_v19 = vpack.c.bf16 %v42_v7, %v42_v7  ;;  %v3094_v21 = vld [vmem:[%s5243_s1 + $0x760] sm:$0xf] }
  0x4a   :  { %1755 = vmatpush.bf16.msra.mxu2 %v2839_v46  ;;  %v2862_v46 = vld [vmem:[%s5243_s1 + $0x590] sm:$0xf]  ;;  %v2799_v54 = vor.u32 %v3335_v45, %v2798_v41  ;;  %v43_v11 = vld.sshfl [vmem:[#allocation1 + $0x8] sm:$0xff pattern:$0x73625140] }
  0x4b   :  { %1768 = vmatpush.bf16.msra.mxu3 %v2903_v50  ;;  %v3301_v50 = vld [vmem:[%s5243_s1 + $0x404] sm:$0xf0]  ;;  %v44_v8 = vld.sshfl [vmem:[#allocation1 + $0x10] sm:$0xff pattern:$0x73625140]  ;;  %v4149_v24 = vpack.c.bf16 %v43_v11, %v43_v11 }
  0x4c   :  { %1730 = vmatpush.bf16.msra.mxu0 %v2703_v56  ;;  %v3333_v56 = vld [vmem:[%s5243_s1 + $0x504] sm:$0xf0]  ;;  %v2663_v1 = vor.u32 %v3301_v50, %v2662_v48  ;;  %v45_v12 = vld.sshfl [vmem:[#allocation1 + $0x18] sm:$0xff pattern:$0x73625140]  ;;  %v4147_v23 = vpack.c.bf16 %v44_v8, %v44_v8 }
  0x4d   :  { %1743 = vmatpush.bf16.msra.mxu1 %v2767_v57  ;;  %v2854_v57 = vld [vmem:[%s5243_s1 + $0x580] sm:$0xf]  ;;  %v3425_v26 = vld [vmem:[%s5243_s1 + $0x7e4] sm:$0xf0]  ;;  %v4157_v27 = vpack.c.bf16 %v45_v12, %v45_v12  ;;  %v2958_v31 = vld [vmem:[%s5243_s1 + $0x650] sm:$0xf] }
  0x4e   :  { %1756 = vmatpush.bf16.msra.mxu2 %v2831_v58  ;;  %v2863_v58 = vor.u32 %v3351_v47, %v2862_v46  ;;  %v2855_v9 = vor.u32 %v3349_v59, %v2854_v57  ;;  %v3158_v25 = vld [vmem:[%s5243_s1 + $0x7e0] sm:$0xf]  ;;  %v3375_v32 = vld [vmem:[%s5243_s1 + $0x654] sm:$0xf0]  ;;  %v3022_v33 = vld [vmem:[%s5243_s1 + $0x6d0] sm:$0xf] }
  0x4f   :  { %1769 = vmatpush.bf16.msra.mxu3 %v2895_v62  ;;  %v3038_v62 = vld [vmem:[%s5243_s1 + $0x6f0] sm:$0xf]  ;;  %v3391_v38 = vld [vmem:[%s5243_s1 + $0x6d4] sm:$0xf0]  ;;  %v2959_v48 = vor.u32 %v3375_v32, %v2958_v31  ;;  %v3405_v57 = vld [vmem:[%s5243_s1 + $0x744] sm:$0xf0] }
  0x50   :  { %1731 = vmatpush.bf16.msra.mxu0 %v2695_v4  ;;  %v3427_v4 = vld [vmem:[%s5243_s1 + $0x7f4] sm:$0xf0]  ;;  %v3039_v13 = vor.u32 %v3395_v63, %v3038_v62  ;;  %v3086_v41 = vld [vmem:[%s5243_s1 + $0x750] sm:$0xf]  ;;  %v3421_v59 = vld [vmem:[%s5243_s1 + $0x7c4] sm:$0xf0] }
  0x51   :  { %1744 = vmatpush.bf16.msra.mxu1 %v2759_v5  ;;  %v2727_v5 = vor.u32 %v3317_v52, %v2726_v51  ;;  %v3407_v45 = vld [vmem:[%s5243_s1 + $0x754] sm:$0xf0]  ;;  %v3150_v46 = vld [vmem:[%s5243_s1 + $0x7d0] sm:$0xf]  ;;  %v2950_v51 = vld [vmem:[%s5243_s1 + $0x640] sm:$0xf] }
  0x52   :  { %1757 = vmatpush.bf16.msra.mxu2 %v2823_v6  ;;  %v2791_v6 = vor.u32 %v3333_v56, %v2790_v55  ;;  %v3423_v47 = vld [vmem:[%s5243_s1 + $0x7d4] sm:$0xf0]  ;;  %v3087_v50 = vor.u32 %v3407_v45, %v3086_v41  ;;  %v3373_v52 = vld [vmem:[%s5243_s1 + $0x644] sm:$0xf0]  ;;  %v3078_v56 = vld [vmem:[%s5243_s1 + $0x740] sm:$0xf] }
  0x53   :  { %1770 = vmatpush.bf16.msra.mxu3 %v2887_v10  ;;  %v2975_v10 = vor.u32 %v3379_v61, %v2974_v60  ;;  %v3389_v55 = vld [vmem:[%s5243_s1 + $0x6c4] sm:$0xf0]  ;;  %v2951_v60 = vor.u32 %v3373_v52, %v2950_v51  ;;  %v3079_v62 = vor.u32 %v3405_v57, %v3078_v56  ;;  %v2942_v63 = vld [vmem:[%s5243_s1 + $0x630] sm:$0xf]  ;;  %v3371_v0 = vld [vmem:[%s5243_s1 + $0x634] sm:$0xf0] }
  0x54   :  { %1732 = vmatpush.bf16.msra.mxu0 %v2687_v16  ;;  %v3377_v16 = vld [vmem:[%s5243_s1 + $0x664] sm:$0xf0]  ;;  %v3419_v7 = vld [vmem:[%s5243_s1 + $0x7b4] sm:$0xf0]  ;;  %v2943_v8 = vor.u32 %v3371_v0, %v2942_v63  ;;  %v2934_v11 = vld [vmem:[%s5243_s1 + $0x620] sm:$0xf] }
  0x55   :  { %1745 = vmatpush.bf16.msra.mxu1 %v2751_v17  ;;  %v3030_v17 = vld [vmem:[%s5243_s1 + $0x6e0] sm:$0xf]  ;;  %v3369_v12 = vld [vmem:[%s5243_s1 + $0x624] sm:$0xf0]  ;;  %v3054_v31 = vld [vmem:[%s5243_s1 + $0x710] sm:$0xf] }
  0x56   :  { %1758 = vmatpush.bf16.msra.mxu2 %v2815_v18  ;;  %v3167_v18 = vor.u32 %v3427_v4, %v3166_v3  ;;  %v3387_v3 = vld [vmem:[%s5243_s1 + $0x6b4] sm:$0xf0]  ;;  %v3070_v4 = vld [vmem:[%s5243_s1 + $0x730] sm:$0xf]  ;;  %v2918_v41 = vld [vmem:[%s5243_s1 + $0x600] sm:$0xf] }
  0x57   :  { %1771 = vmatpush.bf16.msra.mxu3 %v2879_v22  ;;  %v3409_v22 = vld [vmem:[%s5243_s1 + $0x764] sm:$0xf0] }
  0x58   :  { %1733 = vmatpush.bf16.msra.mxu0 %v2679_v28  ;;  %v2967_v28 = vor.u32 %v3377_v16, %v2966_v15  ;;  %v3385_v15 = vld [vmem:[%s5243_s1 + $0x6a4] sm:$0xf0]  ;;  %v3062_v16 = vld [vmem:[%s5243_s1 + $0x720] sm:$0xf] }
  0x59   :  { %1746 = vmatpush.bf16.msra.mxu1 %v2743_v29  ;;  %v3031_v29 = vor.u32 %v3393_v20, %v3030_v17  ;;  %v3401_v17 = vld [vmem:[%s5243_s1 + $0x724] sm:$0xf0] }
  0x5a   :  { %1759 = vmatpush.bf16.msra.mxu2 %v2807_v30  ;;  %v3095_v30 = vor.u32 %v3409_v22, %v3094_v21  ;;  %v3417_v20 = vld [vmem:[%s5243_s1 + $0x7a4] sm:$0xf0]  ;;  %v2935_v21 = vor.u32 %v3369_v12, %v2934_v11  ;;  %v2926_v22 = vld [vmem:[%s5243_s1 + $0x610] sm:$0xf] }
  0x5b   :  { %1772 = vmatpush.bf16.msra.mxu3 %v2871_v37  ;;  %v3159_v37 = vor.u32 %v3425_v26, %v3158_v25  ;;  %v3367_v25 = vld [vmem:[%s5243_s1 + $0x614] sm:$0xf0] }
  0x5c   :  { %1734 = vmatpush.bf16.msra.mxu0 %v2671_v49  ;;  %v3023_v49 = vor.u32 %v3391_v38, %v3022_v33  ;;  %v3399_v33 = vld [vmem:[%s5243_s1 + $0x714] sm:$0xf0] }
  0x5d   :  { %1747 = vmatpush.bf16.msra.mxu1 %v2735_v53  ;;  %v3014_v53 = vld [vmem:[%s5243_s1 + $0x6c0] sm:$0xf]  ;;  %v3415_v38 = vld [vmem:[%s5243_s1 + $0x794] sm:$0xf0] }
  0x5e   :  { %1760 = vmatpush.bf16.msra.mxu2 %v2799_v54  ;;  %v3151_v54 = vor.u32 %v3423_v47, %v3150_v46  ;;  %v3015_v61 = vor.u32 %v3389_v55, %v3014_v53 }
  0x5f   :  { %1773 = vmatpush.bf16.msra.mxu3 %v2863_v58  ;;  %v3142_v58 = vld [vmem:[%s5243_s1 + $0x7c0] sm:$0xf] }
  0x60   :  { %1735 = vmatpush.bf16.msra.mxu0 %v2663_v1  ;;  %v3006_v1 = vld [vmem:[%s5243_s1 + $0x6b0] sm:$0xf]  ;;  %v3143_v2 = vor.u32 %v3421_v59, %v3142_v58 }
  0x61   :  { %1748 = vmatpush.bf16.msra.mxu1 %v2727_v5  ;;  %v3403_v5 = vld [vmem:[%s5243_s1 + $0x734] sm:$0xf0] }
  0x62   :  { %1761 = vmatpush.bf16.msra.mxu2 %v2791_v6  ;;  %v3134_v6 = vld [vmem:[%s5243_s1 + $0x7b0] sm:$0xf] }
  0x63   :  { %1774 = vmatpush.bf16.msra.mxu3 %v2855_v9  ;;  %1736 = vmatmul.bf16.vlgmr.msra.gmra.mxu0 %v4136_v19  ;;  %v3007_v9 = vor.u32 %v3387_v3, %v3006_v1 }
  0x64   :  { %1780 = vmatpush.bf16.msrb.mxu0 %v2975_v10  ;;  %1749 = vmatmul.bf16.vlgmr.msra.gmra.mxu1 %v4149_v24  ;;  %v3071_v10 = vor.u32 %v3403_v5, %v3070_v4 }
  0x65   :  { %1793 = vmatpush.bf16.msrb.mxu1 %v3039_v13  ;;  %1762 = vmatmul.bf16.vlgmr.msra.gmra.mxu2 %v4147_v23  ;;  %v2998_v13 = vld [vmem:[%s5243_s1 + $0x6a0] sm:$0xf] }
  0x66   :  { %1806 = vmatpush.bf16.msrb.mxu2 %v3103_v14  ;;  %1775 = vmatmul.bf16.vlgmr.msra.gmra.mxu3 %v4157_v27  ;;  %v3135_v14 = vor.u32 %v3419_v7, %v3134_v6  ;;  %v2999_v26 = vor.u32 %v3385_v15, %v2998_v13 }
  0x67   :  { %1819 = vmatpush.bf16.msrb.mxu3 %v3167_v18  ;;  %v3126_v18 = vld [vmem:[%s5243_s1 + $0x7a0] sm:$0xf] }
  0x68   :  { %1781 = vmatpush.bf16.msrb.mxu0 %v2967_v28  ;;  %v3063_v28 = vor.u32 %v3401_v17, %v3062_v16  ;;  %v3127_v32 = vor.u32 %v3417_v20, %v3126_v18 }
  0x69   :  { %1794 = vmatpush.bf16.msrb.mxu1 %v3031_v29  ;;  %v2990_v29 = vld [vmem:[%s5243_s1 + $0x690] sm:$0xf] }
  0x6a   :  { %1807 = vmatpush.bf16.msrb.mxu2 %v3095_v30  ;;  %v3383_v30 = vld [vmem:[%s5243_s1 + $0x694] sm:$0xf0] }
  0x6b   :  { %1820 = vmatpush.bf16.msrb.mxu3 %v3159_v37  ;;  %v3118_v37 = vld [vmem:[%s5243_s1 + $0x790] sm:$0xf] }
  0x6c   :  { %1782 = vmatpush.bf16.msrb.mxu0 %v2959_v48 }
  0x6d   :  { %1795 = vmatpush.bf16.msrb.mxu1 %v3023_v49 }
  0x6e   :  { %1808 = vmatpush.bf16.msrb.mxu2 %v3087_v50 }
  0x6f   :  { %1821 = vmatpush.bf16.msrb.mxu3 %v3151_v54 }
  0x70   :  { %1783 = vmatpush.bf16.msrb.mxu0 %v2951_v60 }
  0x71   :  { %1796 = vmatpush.bf16.msrb.mxu1 %v3015_v61 }
  0x72   :  { %1809 = vmatpush.bf16.msrb.mxu2 %v3079_v62 }
  0x73   :  { %1822 = vmatpush.bf16.msrb.mxu3 %v3143_v2 }
  0x74   :  { %1784 = vmatpush.bf16.msrb.mxu0 %v2943_v8 }
  0x75   :  { %1797 = vmatpush.bf16.msrb.mxu1 %v3007_v9 }
  0x76   :  { %1810 = vmatpush.bf16.msrb.mxu2 %v3071_v10 }
  0x77   :  { %1823 = vmatpush.bf16.msrb.mxu3 %v3135_v14 }
  0x78   :  { %10 = vsyncpa [#allocation3], 0  ;;  %1785 = vmatpush.bf16.msrb.mxu0 %v2935_v21  ;;  %v2927_v45 = vor.u32 %v3367_v25, %v2926_v22  ;;  %v3365_v46 = vld [vmem:[%s5243_s1 + $0x604] sm:$0xf0]  ;;  %v2982_v47 = vld [vmem:[%s5243_s1 + $0x680] sm:$0xf]  ;;  %v2991_v49 = vor.u32 %v3383_v30, %v2990_v29  ;;  %v3055_v50 = vor.u32 %v3399_v33, %v3054_v31  ;;  %v3119_v54 = vor.u32 %v3415_v38, %v3118_v37 }
  0x79   :  { %v3381_v48 = vld [vmem:[%s5243_s1 + $0x684] sm:$0xf0]  ;;  %1798 = vmatpush.bf16.msrb.mxu1 %v2999_v26  ;;  %v3046_v51 = vld [vmem:[%s5243_s1 + $0x700] sm:$0xf]  ;;  %v3186_v56 = vld [vmem:[%s5243_s1 + $0x74] sm:$0xf]  ;;  %v2919_v61 = vor.u32 %v3365_v46, %v2918_v41 }
  0x7a   :  { %1811 = vmatpush.bf16.msrb.mxu2 %v3063_v28  ;;  %v3397_v52 = vld [vmem:[%s5243_s1 + $0x704] sm:$0xf0]  ;;  %v3110_v53 = vld [vmem:[%s5243_s1 + $0x780] sm:$0xf]  ;;  %v2208_v57 = vld [vmem:[%s5243_s1 + $0x78] sm:$0xf0]  ;;  %v2983_v1 = vor.u32 %v3381_v48, %v2982_v47 }
  0x7b   :  { %1824 = vmatpush.bf16.msrb.mxu3 %v3127_v32  ;;  %v3413_v55 = vld [vmem:[%s5243_s1 + $0x784] sm:$0xf0]  ;;  %v3202_v58 = vld [vmem:[%s5243_s1 + $0xf4] sm:$0xf]  ;;  %v2272_v59 = vld [vmem:[%s5243_s1 + $0xf8] sm:$0xf0]  ;;  %v3047_v2 = vor.u32 %v3397_v52, %v3046_v51  ;;  %v2211_v6 = vor.u32 %v3186_v56, %v2208_v57 }
  0x7c   :  { %v3218_v60 = vld [vmem:[%s5243_s1 + $0x174] sm:$0xf]  ;;  %1786 = vmatpush.bf16.msrb.mxu0 %v2927_v45  ;;  %v2336_v62 = vld [vmem:[%s5243_s1 + $0x178] sm:$0xf0]  ;;  %v3111_v5 = vor.u32 %v3413_v55, %v3110_v53  ;;  %v2275_v9 = vor.u32 %v3202_v58, %v2272_v59  ;;  %v3184_v11 = vld [vmem:[%s5243_s1 + $0x64] sm:$0xf] }
  0x7d   :  { %v3234_v63 = vld [vmem:[%s5243_s1 + $0x1f4] sm:$0xf]  ;;  %v2400_v0 = vld [vmem:[%s5243_s1 + $0x1f8] sm:$0xf0]  ;;  %1799 = vmatpush.bf16.msrb.mxu1 %v2991_v49  ;;  %v2339_v10 = vor.u32 %v3218_v60, %v2336_v62  ;;  %v2200_v12 = vld [vmem:[%s5243_s1 + $0x68] sm:$0xf0] }
  0x7e   :  { %1812 = vmatpush.bf16.msrb.mxu2 %v3055_v50  ;;  %v46_v3 = vld.sshfl [vmem:[#allocation1 + $0x20] sm:$0xff pattern:$0x73625140]  ;;  %v48_v4 = vld.sshfl [vmem:[#allocation1 + $0x30] sm:$0xff pattern:$0x73625140]  ;;  %v2403_v14 = vor.u32 %v3234_v63, %v2400_v0  ;;  %v2203_v28 = vor.u32 %v3184_v11, %v2200_v12 }
  0x7f   :  { %1825 = vmatpush.bf16.msrb.mxu3 %v3119_v54  ;;  %v47_v7 = vld.sshfl [vmem:[#allocation1 + $0x28] sm:$0xff pattern:$0x73625140]  ;;  %v49_v8 = vld.sshfl [vmem:[#allocation1 + $0x38] sm:$0xff pattern:$0x73625140]  ;;  %v4340_v15 = vpack.c.bf16 %v46_v3, %v46_v3  ;;  %v4351_v20 = vpack.c.bf16 %v48_v4, %v48_v4 }
  0x80   :  { %v3200_v13 = vld [vmem:[%s5243_s1 + $0xe4] sm:$0xf]  ;;  %1787 = vmatpush.bf16.msrb.mxu0 %v2919_v61  ;;  %v2264_v16 = vld [vmem:[%s5243_s1 + $0xe8] sm:$0xf0]  ;;  %v4353_v21 = vpack.c.bf16 %v47_v7, %v47_v7  ;;  %v4361_v26 = vpack.c.bf16 %v49_v8, %v49_v8  ;;  %v3182_v31 = vld [vmem:[%s5243_s1 + $0x54] sm:$0xf] }
  0x81   :  { %v3216_v17 = vld [vmem:[%s5243_s1 + $0x164] sm:$0xf]  ;;  %v2328_v18 = vld [vmem:[%s5243_s1 + $0x168] sm:$0xf0]  ;;  %1800 = vmatpush.bf16.msrb.mxu1 %v2983_v1  ;;  %v2267_v29 = vor.u32 %v3200_v13, %v2264_v16  ;;  %v2192_v32 = vld [vmem:[%s5243_s1 + $0x58] sm:$0xf0] }
  0x82   :  { %1813 = vmatpush.bf16.msrb.mxu2 %v3047_v2  ;;  %v3232_v22 = vld [vmem:[%s5243_s1 + $0x1e4] sm:$0xf]  ;;  %v2392_v25 = vld [vmem:[%s5243_s1 + $0x1e8] sm:$0xf0]  ;;  %v2331_v30 = vor.u32 %v3216_v17, %v2328_v18  ;;  %v3198_v33 = vld [vmem:[%s5243_s1 + $0xd4] sm:$0xf]  ;;  %v2195_v48 = vor.u32 %v3182_v31, %v2192_v32 }
  0x83   :  { %1826 = vmatpush.bf16.msrb.mxu3 %v3111_v5  ;;  %1788 = vmatmul.bf16.vlgmr.msrb.gmra.mxu0 %v4340_v15  ;;  %v2395_v37 = vor.u32 %v3232_v22, %v2392_v25  ;;  %v2256_v38 = vld [vmem:[%s5243_s1 + $0xd8] sm:$0xf0]  ;;  %v3214_v41 = vld [vmem:[%s5243_s1 + $0x154] sm:$0xf]  ;;  %v3180_v51 = vld [vmem:[%s5243_s1 + $0x44] sm:$0xf] }
  0x84   :  { %1832 = vmatpush.bf16.msra.mxu0 %v2211_v6  ;;  %v2320_v45 = vld [vmem:[%s5243_s1 + $0x158] sm:$0xf0]  ;;  %1801 = vmatmul.bf16.vlgmr.msrb.gmra.mxu1 %v4353_v21  ;;  %v3230_v46 = vld [vmem:[%s5243_s1 + $0x1d4] sm:$0xf]  ;;  %v2259_v49 = vor.u32 %v3198_v33, %v2256_v38  ;;  %v2184_v52 = vld [vmem:[%s5243_s1 + $0x48] sm:$0xf0] }
  0x85   :  { %1845 = vmatpush.bf16.msra.mxu1 %v2275_v9  ;;  %1814 = vmatmul.bf16.vlgmr.msrb.gmra.mxu2 %v4351_v20  ;;  %v2384_v47 = vld [vmem:[%s5243_s1 + $0x1d8] sm:$0xf0]  ;;  %v2323_v50 = vor.u32 %v3214_v41, %v2320_v45  ;;  %v3196_v53 = vld [vmem:[%s5243_s1 + $0xc4] sm:$0xf]  ;;  %v2248_v55 = vld [vmem:[%s5243_s1 + $0xc8] sm:$0xf0]  ;;  %v2187_v60 = vor.u32 %v3180_v51, %v2184_v52 }
  0x86   :  { %1858 = vmatpush.bf16.msra.mxu2 %v2339_v10  ;;  %1827 = vmatmul.bf16.vlgmr.msrb.gmra.mxu3 %v4361_v26  ;;  %v2387_v54 = vor.u32 %v3230_v46, %v2384_v47  ;;  %v3212_v56 = vld [vmem:[%s5243_s1 + $0x144] sm:$0xf]  ;;  %v2312_v57 = vld [vmem:[%s5243_s1 + $0x148] sm:$0xf0]  ;;  %v2251_v61 = vor.u32 %v3196_v53, %v2248_v55  ;;  %v3178_v63 = vld [vmem:[%s5243_s1 + $0x34] sm:$0xf] }
  0x87   :  { %1871 = vmatpush.bf16.msra.mxu3 %v2403_v14  ;;  %v3228_v58 = vld [vmem:[%s5243_s1 + $0x1c4] sm:$0xf]  ;;  %v2376_v59 = vld [vmem:[%s5243_s1 + $0x1c8] sm:$0xf0]  ;;  %v2315_v62 = vor.u32 %v3212_v56, %v2312_v57  ;;  %v2176_v0 = vld [vmem:[%s5243_s1 + $0x38] sm:$0xf0] }
  0x88   :  { %1833 = vmatpush.bf16.msra.mxu0 %v2203_v28  ;;  %v3194_v1 = vld [vmem:[%s5243_s1 + $0xb4] sm:$0xf]  ;;  %v2379_v2 = vor.u32 %v3228_v58, %v2376_v59  ;;  %v2240_v3 = vld [vmem:[%s5243_s1 + $0xb8] sm:$0xf0]  ;;  %v2179_v8 = vor.u32 %v3178_v63, %v2176_v0  ;;  %v3176_v11 = vld [vmem:[%s5243_s1 + $0x24] sm:$0xf] }
  0x89   :  { %1846 = vmatpush.bf16.msra.mxu1 %v2267_v29  ;;  %v3210_v4 = vld [vmem:[%s5243_s1 + $0x134] sm:$0xf]  ;;  %v2304_v5 = vld [vmem:[%s5243_s1 + $0x138] sm:$0xf0]  ;;  %v2243_v9 = vor.u32 %v3194_v1, %v2240_v3  ;;  %v2168_v12 = vld [vmem:[%s5243_s1 + $0x28] sm:$0xf0] }
  0x8a   :  { %1859 = vmatpush.bf16.msra.mxu2 %v2331_v30  ;;  %v3226_v6 = vld [vmem:[%s5243_s1 + $0x1b4] sm:$0xf]  ;;  %v2368_v7 = vld [vmem:[%s5243_s1 + $0x1b8] sm:$0xf0]  ;;  %v2307_v10 = vor.u32 %v3210_v4, %v2304_v5  ;;  %v3192_v13 = vld [vmem:[%s5243_s1 + $0xa4] sm:$0xf]  ;;  %v2171_v28 = vor.u32 %v3176_v11, %v2168_v12 }
  0x8b   :  { %1872 = vmatpush.bf16.msra.mxu3 %v2395_v37  ;;  %v2371_v14 = vor.u32 %v3226_v6, %v2368_v7  ;;  %v2232_v16 = vld [vmem:[%s5243_s1 + $0xa8] sm:$0xf0]  ;;  %v3208_v17 = vld [vmem:[%s5243_s1 + $0x124] sm:$0xf]  ;;  %v3174_v31 = vld [vmem:[%s5243_s1 + $0x14] sm:$0xf] }
  0x8c   :  { %1834 = vmatpush.bf16.msra.mxu0 %v2195_v48  ;;  %v2296_v18 = vld [vmem:[%s5243_s1 + $0x128] sm:$0xf0]  ;;  %v3224_v22 = vld [vmem:[%s5243_s1 + $0x1a4] sm:$0xf]  ;;  %v2235_v29 = vor.u32 %v3192_v13, %v2232_v16  ;;  %v2160_v32 = vld [vmem:[%s5243_s1 + $0x18] sm:$0xf0] }
  0x8d   :  { %1847 = vmatpush.bf16.msra.mxu1 %v2259_v49  ;;  %v2360_v25 = vld [vmem:[%s5243_s1 + $0x1a8] sm:$0xf0]  ;;  %v2299_v30 = vor.u32 %v3208_v17, %v2296_v18  ;;  %v3190_v33 = vld [vmem:[%s5243_s1 + $0x94] sm:$0xf]  ;;  %v2224_v38 = vld [vmem:[%s5243_s1 + $0x98] sm:$0xf0]  ;;  %v2163_v48 = vor.u32 %v3174_v31, %v2160_v32 }
  0x8e   :  { %1860 = vmatpush.bf16.msra.mxu2 %v2323_v50  ;;  %v2363_v37 = vor.u32 %v3224_v22, %v2360_v25  ;;  %v3206_v41 = vld [vmem:[%s5243_s1 + $0x114] sm:$0xf]  ;;  %v2288_v45 = vld [vmem:[%s5243_s1 + $0x118] sm:$0xf0]  ;;  %v3172_v49 = vld [vmem:[%s5243_s1 + $0x4] sm:$0xf]  ;;  %v2227_v51 = vor.u32 %v3190_v33, %v2224_v38 }
  0x8f   :  { %1873 = vmatpush.bf16.msra.mxu3 %v2387_v54  ;;  %v3222_v46 = vld [vmem:[%s5243_s1 + $0x194] sm:$0xf]  ;;  %v2352_v47 = vld [vmem:[%s5243_s1 + $0x198] sm:$0xf0]  ;;  %v2152_v50 = vld [vmem:[%s5243_s1 + $0x8] sm:$0xf0]  ;;  %v2291_v52 = vor.u32 %v3206_v41, %v2288_v45 }
  0x90   :  { %1835 = vmatpush.bf16.msra.mxu0 %v2187_v60  ;;  %v3188_v53 = vld [vmem:[%s5243_s1 + $0x84] sm:$0xf]  ;;  %v2216_v54 = vld [vmem:[%s5243_s1 + $0x88] sm:$0xf0]  ;;  %v2355_v56 = vor.u32 %v3222_v46, %v2352_v47  ;;  %v3250_v60 = vld [vmem:[%s5243_s1 + $0x274] sm:$0xf]  ;;  %v2155_v63 = vor.u32 %v3172_v49, %v2152_v50 }
  0x91   :  { %1848 = vmatpush.bf16.msra.mxu1 %v2251_v61  ;;  %v3204_v55 = vld [vmem:[%s5243_s1 + $0x104] sm:$0xf]  ;;  %v2280_v57 = vld [vmem:[%s5243_s1 + $0x108] sm:$0xf0]  ;;  %v2464_v61 = vld [vmem:[%s5243_s1 + $0x278] sm:$0xf0]  ;;  %v2219_v3 = vor.u32 %v3188_v53, %v2216_v54 }
  0x92   :  { %1861 = vmatpush.bf16.msra.mxu2 %v2315_v62  ;;  %v3220_v58 = vld [vmem:[%s5243_s1 + $0x184] sm:$0xf]  ;;  %v2344_v59 = vld [vmem:[%s5243_s1 + $0x188] sm:$0xf0]  ;;  %v3266_v62 = vld [vmem:[%s5243_s1 + $0x2f4] sm:$0xf]  ;;  %v2283_v4 = vor.u32 %v3204_v55, %v2280_v57 }
  0x93   :  { %1874 = vmatpush.bf16.msra.mxu3 %v2379_v2  ;;  %v2528_v0 = vld [vmem:[%s5243_s1 + $0x2f8] sm:$0xf0]  ;;  %v3282_v1 = vld [vmem:[%s5243_s1 + $0x374] sm:$0xf]  ;;  %v2347_v7 = vor.u32 %v3220_v58, %v2344_v59  ;;  %v3248_v11 = vld [vmem:[%s5243_s1 + $0x264] sm:$0xf] }
  0x94   :  { %1836 = vmatpush.bf16.msra.mxu0 %v2179_v8  ;;  %v2592_v2 = vld [vmem:[%s5243_s1 + $0x378] sm:$0xf0]  ;;  %v3298_v5 = vld [vmem:[%s5243_s1 + $0x3f4] sm:$0xf]  ;;  %v2467_v8 = vor.u32 %v3250_v60, %v2464_v61  ;;  %v2456_v12 = vld [vmem:[%s5243_s1 + $0x268] sm:$0xf0] }
  0x95   :  { %1849 = vmatpush.bf16.msra.mxu1 %v2243_v9  ;;  %v2656_v6 = vld [vmem:[%s5243_s1 + $0x3f8] sm:$0xf0]  ;;  %v2531_v9 = vor.u32 %v3266_v62, %v2528_v0  ;;  %v3264_v13 = vld [vmem:[%s5243_s1 + $0x2e4] sm:$0xf]  ;;  %v2520_v16 = vld [vmem:[%s5243_s1 + $0x2e8] sm:$0xf0] }
  0x96   :  { %1862 = vmatpush.bf16.msra.mxu2 %v2307_v10  ;;  %v2595_v10 = vor.u32 %v3282_v1, %v2592_v2  ;;  %v3280_v17 = vld [vmem:[%s5243_s1 + $0x364] sm:$0xf]  ;;  %v2584_v18 = vld [vmem:[%s5243_s1 + $0x368] sm:$0xf0]  ;;  %v3246_v31 = vld [vmem:[%s5243_s1 + $0x254] sm:$0xf] }
  0x97   :  { %1875 = vmatpush.bf16.msra.mxu3 %v2371_v14  ;;  %v2659_v14 = vor.u32 %v3298_v5, %v2656_v6  ;;  %v3296_v22 = vld [vmem:[%s5243_s1 + $0x3e4] sm:$0xf]  ;;  %v2648_v25 = vld [vmem:[%s5243_s1 + $0x3e8] sm:$0xf0]  ;;  %v2448_v32 = vld [vmem:[%s5243_s1 + $0x258] sm:$0xf0] }
  0x98   :  { %1837 = vmatpush.bf16.msra.mxu0 %v2171_v28  ;;  %v2459_v28 = vor.u32 %v3248_v11, %v2456_v12  ;;  %v3262_v33 = vld [vmem:[%s5243_s1 + $0x2d4] sm:$0xf]  ;;  %v2512_v38 = vld [vmem:[%s5243_s1 + $0x2d8] sm:$0xf0]  ;;  %v3244_v50 = vld [vmem:[%s5243_s1 + $0x244] sm:$0xf] }
  0x99   :  { %1850 = vmatpush.bf16.msra.mxu1 %v2235_v29  ;;  %v2523_v29 = vor.u32 %v3264_v13, %v2520_v16  ;;  %v3278_v41 = vld [vmem:[%s5243_s1 + $0x354] sm:$0xf]  ;;  %v2576_v45 = vld [vmem:[%s5243_s1 + $0x358] sm:$0xf0]  ;;  %v2515_v49 = vor.u32 %v3262_v33, %v2512_v38  ;;  %v2568_v53 = vld [vmem:[%s5243_s1 + $0x348] sm:$0xf0] }
  0x9a   :  { %1863 = vmatpush.bf16.msra.mxu2 %v2299_v30  ;;  %v2587_v30 = vor.u32 %v3280_v17, %v2584_v18  ;;  %v3294_v46 = vld [vmem:[%s5243_s1 + $0x3d4] sm:$0xf]  ;;  %v2640_v47 = vld [vmem:[%s5243_s1 + $0x3d8] sm:$0xf0]  ;;  %v3292_v54 = vld [vmem:[%s5243_s1 + $0x3c4] sm:$0xf] }
  0x9b   :  { %1876 = vmatpush.bf16.msra.mxu3 %v2363_v37  ;;  %v2651_v37 = vor.u32 %v3296_v22, %v2648_v25  ;;  %v2632_v55 = vld [vmem:[%s5243_s1 + $0x3c8] sm:$0xf0]  ;;  %v3242_v59 = vld [vmem:[%s5243_s1 + $0x234] sm:$0xf]  ;;  %v2432_v60 = vld [vmem:[%s5243_s1 + $0x238] sm:$0xf0] }
  0x9c   :  { %1838 = vmatpush.bf16.msra.mxu0 %v2163_v48  ;;  %v2451_v48 = vor.u32 %v3246_v31, %v2448_v32  ;;  %v3258_v61 = vld [vmem:[%s5243_s1 + $0x2b4] sm:$0xf]  ;;  %v2635_v62 = vor.u32 %v3292_v54, %v2632_v55  ;;  %v2560_v1 = vld [vmem:[%s5243_s1 + $0x338] sm:$0xf0]  ;;  %v3240_v5 = vld [vmem:[%s5243_s1 + $0x224] sm:$0xf] }
  0x9d   :  { %1851 = vmatpush.bf16.msra.mxu1 %v2227_v51  ;;  %v2440_v51 = vld [vmem:[%s5243_s1 + $0x248] sm:$0xf0]  ;;  %v3274_v0 = vld [vmem:[%s5243_s1 + $0x334] sm:$0xf]  ;;  %v3272_v12 = vld [vmem:[%s5243_s1 + $0x324] sm:$0xf] }
  0x9e   :  { %1864 = vmatpush.bf16.msra.mxu2 %v2291_v52  ;;  %v3276_v52 = vld [vmem:[%s5243_s1 + $0x344] sm:$0xf]  ;;  %v3290_v2 = vld [vmem:[%s5243_s1 + $0x3b4] sm:$0xf]  ;;  %v2552_v13 = vld [vmem:[%s5243_s1 + $0x328] sm:$0xf0] }
  0x9f   :  { %1877 = vmatpush.bf16.msra.mxu3 %v2355_v56  ;;  %v2443_v56 = vor.u32 %v3244_v50, %v2440_v51  ;;  %v2571_v58 = vor.u32 %v3276_v52, %v2568_v53  ;;  %v3288_v16 = vld [vmem:[%s5243_s1 + $0x3a4] sm:$0xf]  ;;  %v2616_v17 = vld [vmem:[%s5243_s1 + $0x3a8] sm:$0xf0]  ;;  %v3238_v22 = vld [vmem:[%s5243_s1 + $0x214] sm:$0xf] }
  0xa0   :  { %1839 = vmatpush.bf16.msra.mxu0 %v2155_v63  ;;  %v2496_v63 = vld [vmem:[%s5243_s1 + $0x2b8] sm:$0xf0]  ;;  %v2619_v32 = vor.u32 %v3288_v16, %v2616_v17  ;;  %v3252_v51 = vld [vmem:[%s5243_s1 + $0x284] sm:$0xf]  ;;  %v2536_v53 = vld [vmem:[%s5243_s1 + $0x308] sm:$0xf0] }
  0xa1   :  { %1852 = vmatpush.bf16.msra.mxu1 %v2219_v3  ;;  %v2624_v3 = vld [vmem:[%s5243_s1 + $0x3b8] sm:$0xf0]  ;;  %v2499_v6 = vor.u32 %v3258_v61, %v2496_v63  ;;  %v3284_v54 = vld [vmem:[%s5243_s1 + $0x384] sm:$0xf]  ;;  %v2600_v55 = vld [vmem:[%s5243_s1 + $0x388] sm:$0xf0] }
  0xa2   :  { %1865 = vmatpush.bf16.msra.mxu2 %v2283_v4  ;;  %v2435_v4 = vor.u32 %v3242_v59, %v2432_v60  ;;  %v2627_v11 = vor.u32 %v3290_v2, %v2624_v3  ;;  %v2480_v33 = vld [vmem:[%s5243_s1 + $0x298] sm:$0xf0]  ;;  %v3362_v3 = vld [vmem:[%s5243_s1 + $0x5f4] sm:$0xf]  ;;  %vm2118_vm0 = vcmask 197632  }
  0xa3   :  { %1878 = vmatpush.bf16.msra.mxu3 %v2347_v7  ;;  %1840 = vmatmul.bf16.vlgmr.msra.gmra.mxu0 %v3823_v36  ;;  %v3260_v36 = vld [vmem:[%s5243_s1 + $0x2c4] sm:$0xf]  ;;  %v2563_v7 = vor.u32 %v3274_v0, %v2560_v1  ;;  %v2544_v38 = vld [vmem:[%s5243_s1 + $0x318] sm:$0xf0] }
  0xa4   :  { %1884 = vmatpush.bf16.msrb.mxu0 %v2467_v8  ;;  %1853 = vmatmul.bf16.vlgmr.msra.gmra.mxu1 %v3833_v43  ;;  %v2504_v43 = vld [vmem:[%s5243_s1 + $0x2c8] sm:$0xf0]  ;;  %v2784_v61 = vld [vmem:[%s5243_s1 + $0x4f8] sm:$0xf0] }
  0xa5   :  { %1897 = vmatpush.bf16.msrb.mxu1 %v2531_v9  ;;  %1866 = vmatmul.bf16.vlgmr.msra.gmra.mxu2 %v3821_v35  ;;  %v2579_v35 = vor.u32 %v3278_v41, %v2576_v45  ;;  %v2507_v57 = vor.u32 %v3260_v36, %v2504_v43  ;;  %v2424_v8 = vld [vmem:[%s5243_s1 + $0x228] sm:$0xf0]  ;;  %v3256_v9 = vld [vmem:[%s5243_s1 + $0x2a4] sm:$0xf]  ;;  %v3286_v41 = vld [vmem:[%s5243_s1 + $0x394] sm:$0xf] }
  0xa6   :  { %1910 = vmatpush.bf16.msrb.mxu2 %v2595_v10  ;;  %1879 = vmatmul.bf16.vlgmr.msra.gmra.mxu3 %v3831_v42  ;;  %v2643_v42 = vor.u32 %v3294_v46, %v2640_v47  ;;  %v2488_v10 = vld [vmem:[%s5243_s1 + $0x2a8] sm:$0xf0]  ;;  %v2427_v18 = vor.u32 %v3240_v5, %v2424_v8  ;;  %v2608_v45 = vld [vmem:[%s5243_s1 + $0x398] sm:$0xf0]  ;;  %v3236_v47 = vld [vmem:[%s5243_s1 + $0x204] sm:$0xf]  ;;  %v2603_v5 = vor.u32 %v3284_v54, %v2600_v55 }
  0xa7   :  { %1923 = vmatpush.bf16.msrb.mxu3 %v2659_v14  ;;  %v4656_v14 = vld [vmem:[%s5244_s2] sm:$0x3]  ;;  %v2491_v25 = vor.u32 %v3256_v9, %v2488_v10  ;;  %v2472_v36 = vld [vmem:[%s5243_s1 + $0x288] sm:$0xf0]  ;;  %v2611_v52 = vor.u32 %v3286_v41, %v2608_v45  ;;  %v2848_v63 = vld [vmem:[%s5243_s1 + $0x578] sm:$0xf0] }
  0xa8   :  { %1885 = vmatpush.bf16.msrb.mxu0 %v2459_v28  ;;  %v2555_v28 = vor.u32 %v3272_v12, %v2552_v13  ;;  %v340_v31 = vperm.slane %v4656_v14, 0  ;;  %v1646_v59 = vpop.f32.mrf.mxu1  ;;  %v2475_v1 = vor.u32 %v3252_v51, %v2472_v36  ;;  %v3312_v10 = vld [vmem:[%s5243_s1 + $0x464] sm:$0xf]  ;;  %v2704_v41 = vld [vmem:[%s5243_s1 + $0x458] sm:$0xf0]  ;;  %s2139_s2 = sshll.u32 %s5247_s5, 4  ;;  %s2140_s2 = int_to_ptr.hbm [resolvable:$true] %s2139_s2 }
  0xa9   :  { %1898 = vmatpush.bf16.msrb.mxu1 %v2523_v29  ;;  %v2416_v29 = vld [vmem:[%s5243_s1 + $0x218] sm:$0xf0]  ;;  %v3328_v12 = vld [vmem:[%s5243_s1 + $0x4e4] sm:$0xf]  ;;  %v3326_v45 = vld [vmem:[%s5243_s1 + $0x4d4] sm:$0xf] }
  0xaa   :  { %1911 = vmatpush.bf16.msrb.mxu2 %v2587_v30  ;;  %v3254_v30 = vld [vmem:[%s5243_s1 + $0x294] sm:$0xf]  ;;  %v2419_v46 = vor.u32 %v3238_v22, %v2416_v29  ;;  %v3344_v22 = vld [vmem:[%s5243_s1 + $0x564] sm:$0xf]  ;;  %v2760_v54 = vld [vmem:[%s5243_s1 + $0x4c8] sm:$0xf0] }
  0xab   :  { %1924 = vmatpush.bf16.msrb.mxu3 %v2651_v37  ;;  %v3270_v37 = vld [vmem:[%s5243_s1 + $0x314] sm:$0xf]  ;;  %v3360_v29 = vld [vmem:[%s5243_s1 + $0x5e4] sm:$0xf] }
  0xac   :  { %1886 = vmatpush.bf16.msrb.mxu0 %v2451_v48  ;;  %v2408_v48 = vld [vmem:[%s5243_s1 + $0x208] sm:$0xf0]  ;;  %v2547_v50 = vor.u32 %v3270_v37, %v2544_v38  ;;  %v3310_v38 = vld [vmem:[%s5243_s1 + $0x454] sm:$0xf]  ;;  %v3340_v55 = vld [vmem:[%s5243_s1 + $0x544] sm:$0xf] }
  0xad   :  { %1899 = vmatpush.bf16.msrb.mxu1 %v2515_v49  ;;  %v1633_v49 = vpop.f32.mrf.mxu0  ;;  %v2411_v60 = vor.u32 %v3236_v47, %v2408_v48  ;;  %v2768_v48 = vld [vmem:[%s5243_s1 + $0x4d8] sm:$0xf0]  ;;  %v2707_v51 = vor.u32 %v3310_v38, %v2704_v41 }
  0xae   :  { %1912 = vmatpush.bf16.msrb.mxu2 %v2579_v35  ;;  %v2483_v35 = vor.u32 %v3254_v30, %v2480_v33  ;;  %v1634_v43 = vadd.f32 %v1633_v49, %v340_v31  ;;  %v2904_v30 = vld [vmem:[%s5243_s1 + $0x5e8] sm:$0xf0]  ;;  %v3342_v49 = vld [vmem:[%s5243_s1 + $0x554] sm:$0xf] }
  0xaf   :  { %1925 = vmatpush.bf16.msrb.mxu3 %v2643_v42  ;;  %v3268_v42 = vld [vmem:[%s5243_s1 + $0x304] sm:$0xf]  ;;  %v1672_v16 = vpop.f32.mrf.mxu3  ;;  %v2907_v47 = vor.u32 %v3360_v29, %v2904_v30 }
  0xb0   :  { %1887 = vmatpush.bf16.msrb.mxu0 %v2443_v56  ;;  %v3314_v56 = vld [vmem:[%s5243_s1 + $0x474] sm:$0xf]  ;;  %v1647_v0 = vadd.f32 %v1646_v59, %v1634_v43  ;;  %v2539_v2 = vor.u32 %v3268_v42, %v2536_v53  ;;  %v2771_v42 = vor.u32 %v3326_v45, %v2768_v48  ;;  %v2696_v53 = vld [vmem:[%s5243_s1 + $0x448] sm:$0xf0]  ;;  %v3352_v30 = vld [vmem:[%s5243_s1 + $0x5a4] sm:$0xf] }
  0xb1   :  { %1900 = vmatpush.bf16.msrb.mxu1 %v2507_v57  ;;  %v2720_v57 = vld [vmem:[%s5243_s1 + $0x478] sm:$0xf0]  ;;  %v3302_v45 = vld [vmem:[%s5243_s1 + $0x414] sm:$0xf] }
  0xb2   :  { %1913 = vmatpush.bf16.msrb.mxu2 %v2571_v58  ;;  %v3330_v58 = vld [vmem:[%s5243_s1 + $0x4f4] sm:$0xf] }
  0xb3   :  { %1926 = vmatpush.bf16.msrb.mxu3 %v2635_v62  ;;  %v3346_v62 = vld [vmem:[%s5243_s1 + $0x574] sm:$0xf]  ;;  %v2787_v8 = vor.u32 %v3330_v58, %v2784_v61  ;;  %v2888_v58 = vld [vmem:[%s5243_s1 + $0x5c8] sm:$0xf0] }
  0xb4   :  { %1888 = vmatpush.bf16.msrb.mxu0 %v2435_v4  ;;  %v2912_v4 = vld [vmem:[%s5243_s1 + $0x5f8] sm:$0xf0]  ;;  %v2851_v9 = vor.u32 %v3346_v62, %v2848_v63  ;;  %v3306_v63 = vld [vmem:[%s5243_s1 + $0x434] sm:$0xf] }
  0xb5   :  { %1901 = vmatpush.bf16.msrb.mxu1 %v2499_v6  ;;  %v2723_v6 = vor.u32 %v3314_v56, %v2720_v57  ;;  %v2915_v17 = vor.u32 %v3362_v3, %v2912_v4  ;;  %v2824_v56 = vld [vmem:[%s5243_s1 + $0x548] sm:$0xf0]  ;;  %v3356_v57 = vld [vmem:[%s5243_s1 + $0x5c4] sm:$0xf]  ;;  %v2752_v4 = vld [vmem:[%s5243_s1 + $0x4b8] sm:$0xf0] }
  0xb6   :  { %1914 = vmatpush.bf16.msrb.mxu2 %v2563_v7  ;;  %v1659_v7 = vpop.f32.mrf.mxu2  ;;  %v2827_v62 = vor.u32 %v3340_v55, %v2824_v56  ;;  %v2891_v3 = vor.u32 %v3356_v57, %v2888_v58  ;;  %v2792_v57 = vld [vmem:[%s5243_s1 + $0x508] sm:$0xf0]  ;;  %v3348_v58 = vld [vmem:[%s5243_s1 + $0x584] sm:$0xf] }
  0xb7   :  { %1927 = vmatpush.bf16.msrb.mxu3 %v2627_v11  ;;  %v2712_v11 = vld [vmem:[%s5243_s1 + $0x468] sm:$0xf0]  ;;  %v1660_v13 = vadd.f32 %v1659_v7, %v1647_v0  ;;  %v2688_v0 = vld [vmem:[%s5243_s1 + $0x438] sm:$0xf0]  ;;  %v3354_v7 = vld [vmem:[%s5243_s1 + $0x5b4] sm:$0xf] }
  0xb8   :  { %1889 = vmatpush.bf16.msrb.mxu0 %v2427_v18  ;;  %v2776_v18 = vld [vmem:[%s5243_s1 + $0x4e8] sm:$0xf0] }
  0xb9   :  { %1902 = vmatpush.bf16.msrb.mxu1 %v2491_v25  ;;  %v2840_v25 = vld [vmem:[%s5243_s1 + $0x568] sm:$0xf0]  ;;  %v4761_v31 = vadd.f32 %v1672_v16, %v1660_v13  ;;  %v2779_v33 = vor.u32 %v3328_v12, %v2776_v18  ;;  %v3304_v12 = vld [vmem:[%s5243_s1 + $0x424] sm:$0xf] }
  0xba   :  { %1915 = vmatpush.bf16.msrb.mxu2 %v2555_v28  ;;  %v1635_v28 = vpop.f32.mrf.mxu0  ;;  %v2843_v37 = vor.u32 %v3344_v22, %v2840_v25  ;;  %v2680_v13 = vld [vmem:[%s5243_s1 + $0x428] sm:$0xf0]  ;;  %v3320_v16 = vld [vmem:[%s5243_s1 + $0x4a4] sm:$0xf] }
  0xbb   :  { %1928 = vmatpush.bf16.msrb.mxu3 %v2619_v32  ;;  %v2715_v32 = vor.u32 %v3312_v10, %v2712_v11  ;;  %v2744_v22 = vld [vmem:[%s5243_s1 + $0x4a8] sm:$0xf0]  ;;  %v3336_v25 = vld [vmem:[%s5243_s1 + $0x524] sm:$0xf] }
  0xbc   :  { %1890 = vmatpush.bf16.msrb.mxu0 %v2419_v46  ;;  %v1648_v46 = vpop.f32.mrf.mxu1  ;;  %v2808_v28 = vld [vmem:[%s5243_s1 + $0x528] sm:$0xf0]  ;;  %v2747_v38 = vor.u32 %v3320_v16, %v2744_v22  ;;  %v3376_v16 = vld [vmem:[%s5243_s1 + $0x664] sm:$0xf] }
  0xbd   :  { %1903 = vmatpush.bf16.msrb.mxu1 %v2483_v35  ;;  %v2832_v35 = vld [vmem:[%s5243_s1 + $0x558] sm:$0xf0]  ;;  %v2811_v41 = vor.u32 %v3336_v25, %v2808_v28  ;;  %v3392_v22 = vld [vmem:[%s5243_s1 + $0x6e4] sm:$0xf]  ;;  %v3032_v28 = vld [vmem:[%s5243_s1 + $0x6e8] sm:$0xf0] }
  0xbe   :  { %1916 = vmatpush.bf16.msrb.mxu2 %v2547_v50  ;;  %v3358_v50 = vld [vmem:[%s5243_s1 + $0x5d4] sm:$0xf]  ;;  %v1661_v36 = vpop.f32.mrf.mxu2  ;;  %v2835_v43 = vor.u32 %v3342_v49, %v2832_v35  ;;  %v2672_v46 = vld [vmem:[%s5243_s1 + $0x418] sm:$0xf0] }
  0xbf   :  { %1929 = vmatpush.bf16.msrb.mxu3 %v2611_v52  ;;  %v3308_v52 = vld [vmem:[%s5243_s1 + $0x444] sm:$0xf]  ;;  %v2736_v35 = vld [vmem:[%s5243_s1 + $0x498] sm:$0xf0] }
  0xc0   :  { %1891 = vmatpush.bf16.msrb.mxu0 %v2411_v60  ;;  %v2699_v59 = vor.u32 %v3308_v52, %v2696_v53  ;;  %v2864_v36 = vld [vmem:[%s5243_s1 + $0x598] sm:$0xf0]  ;;  %v2664_v52 = vld [vmem:[%s5243_s1 + $0x408] sm:$0xf0] }
  0xc1   :  { %1904 = vmatpush.bf16.msrb.mxu1 %v2475_v1  ;;  %v3322_v1 = vld [vmem:[%s5243_s1 + $0x4b4] sm:$0xf] }
  0xc2   :  { %1917 = vmatpush.bf16.msrb.mxu2 %v2539_v2  ;;  %v4815_v60 = vpop.f32.mrf.mxu0  ;;  %v2755_v10 = vor.u32 %v3322_v1, %v2752_v4  ;;  %v3410_v4 = vld [vmem:[%s5243_s1 + $0x774] sm:$0xf] }
  0xc3   :  { %1930 = vmatpush.bf16.msrb.mxu3 %v2603_v5  ;;  %1892 = vmatmul.bf16.vlgmr.msrb.gmra.mxu0 %v3949_v39  ;;  %v3324_v39 = vld [vmem:[%s5243_s1 + $0x4c4] sm:$0xf]  ;;  %v3338_v5 = vld [vmem:[%s5243_s1 + $0x534] sm:$0xf] }
  0xc4   :  { %1936 = vmatpush.bf16.msra.mxu0 %v2723_v6  ;;  %1905 = vmatmul.bf16.vlgmr.msrb.gmra.mxu1 %v3953_v44  ;;  %v2763_v61 = vor.u32 %v3324_v39, %v2760_v54  ;;  %v4826_v2 = vpop.f32.mrf.mxu1  ;;  %v2816_v6 = vld [vmem:[%s5243_s1 + $0x538] sm:$0xf0]  ;;  %v3332_v54 = vld [vmem:[%s5243_s1 + $0x504] sm:$0xf] }
  0xc5   :  { %1949 = vmatpush.bf16.msra.mxu1 %v2787_v8  ;;  %1918 = vmatmul.bf16.vlgmr.msrb.gmra.mxu2 %v3941_v34  ;;  %v2896_v34 = vld [vmem:[%s5243_s1 + $0x5d8] sm:$0xf0]  ;;  %v2819_v11 = vor.u32 %v3338_v5, %v2816_v6 }
  0xc6   :  { %1962 = vmatpush.bf16.msra.mxu2 %v2851_v9  ;;  %1931 = vmatmul.bf16.vlgmr.msrb.gmra.mxu3 %v3951_v40  ;;  %v1674_v40 = vpop.f32.mrf.mxu3  ;;  %v2899_v44 = vor.u32 %v3358_v50, %v2896_v34  ;;  %v2880_v8 = vld [vmem:[%s5243_s1 + $0x5b8] sm:$0xf0]  ;;  %v2691_v9 = vor.u32 %v3306_v63, %v2688_v0  ;;  %v3334_v50 = vld [vmem:[%s5243_s1 + $0x514] sm:$0xf] }
  0xc7   :  { %1975 = vmatpush.bf16.msra.mxu3 %v2915_v17  ;;  %v2883_v18 = vor.u32 %v3354_v7, %v2880_v8  ;;  %v2800_v34 = vld [vmem:[%s5243_s1 + $0x518] sm:$0xf0]  ;;  %v3316_v40 = vld [vmem:[%s5243_s1 + $0x484] sm:$0xf]  ;;  %v3394_v0 = vld [vmem:[%s5243_s1 + $0x6f4] sm:$0xf]  ;;  %v2795_v7 = vor.u32 %v3332_v54, %v2792_v57 }
  0xc8   :  { %1937 = vmatpush.bf16.msra.mxu0 %v2715_v32  ;;  %v4852_v17 = vpop.f32.mrf.mxu2  ;;  %v2872_v32 = vld [vmem:[%s5243_s1 + $0x5a8] sm:$0xf0]  ;;  %v2803_v39 = vor.u32 %v3334_v50, %v2800_v34  ;;  %v2976_v63 = vld [vmem:[%s5243_s1 + $0x678] sm:$0xf0]  ;;  %v3426_v8 = vld [vmem:[%s5243_s1 + $0x7f4] sm:$0xf] }
  0xc9   :  { %1950 = vmatpush.bf16.msra.mxu1 %v2779_v33  ;;  %v2683_v33 = vor.u32 %v3304_v12, %v2680_v13  ;;  %v2875_v49 = vor.u32 %v3352_v30, %v2872_v32  ;;  %v3104_v5 = vld [vmem:[%s5243_s1 + $0x778] sm:$0xf0]  ;;  %v3408_v30 = vld [vmem:[%s5243_s1 + $0x764] sm:$0xf]  ;;  %v3096_v32 = vld [vmem:[%s5243_s1 + $0x768] sm:$0xf0] }
  0xca   :  { %1963 = vmatpush.bf16.msra.mxu2 %v2843_v37  ;;  %v1687_v37 = vpop.f32.mrf.mxu0  ;;  %v3107_v13 = vor.u32 %v3410_v4, %v3104_v5  ;;  %v3406_v50 = vld [vmem:[%s5243_s1 + $0x754] sm:$0xf]  ;;  %v3088_v34 = vld [vmem:[%s5243_s1 + $0x758] sm:$0xf0]  ;;  %v3420_v54 = vld [vmem:[%s5243_s1 + $0x7c4] sm:$0xf] }
  0xcb   :  { %1976 = vmatpush.bf16.msra.mxu3 %v2907_v47  ;;  %v3318_v47 = vld [vmem:[%s5243_s1 + $0x494] sm:$0xf]  ;;  %v3160_v37 = vld [vmem:[%s5243_s1 + $0x7e8] sm:$0xf0]  ;;  %v3072_v4 = vld [vmem:[%s5243_s1 + $0x738] sm:$0xf0] }
  0xcc   :  { %1938 = vmatpush.bf16.msra.mxu0 %v2707_v51  ;;  %v1700_v48 = vpop.f32.mrf.mxu1  ;;  %v3350_v51 = vld [vmem:[%s5243_s1 + $0x594] sm:$0xf]  ;;  %v2739_v53 = vor.u32 %v3318_v47, %v2736_v35  ;;  %v2960_v47 = vld [vmem:[%s5243_s1 + $0x658] sm:$0xf0] }
  0xcd   :  { %1951 = vmatpush.bf16.msra.mxu1 %v2771_v42  ;;  %v2675_v42 = vor.u32 %v3302_v45, %v2672_v46  ;;  %v2867_v56 = vor.u32 %v3350_v51, %v2864_v36  ;;  %v3099_v45 = vor.u32 %v3408_v30, %v3096_v32  ;;  %v3374_v46 = vld [vmem:[%s5243_s1 + $0x654] sm:$0xf]  ;;  %v3024_v35 = vld [vmem:[%s5243_s1 + $0x6d8] sm:$0xf0]  ;;  %v3416_v30 = vld [vmem:[%s5243_s1 + $0x7a4] sm:$0xf] }
  0xce   :  { %1964 = vmatpush.bf16.msra.mxu2 %v2835_v43  ;;  %v4863_v29 = vpop.f32.mrf.mxu3  ;;  %v3300_v43 = vld [vmem:[%s5243_s1 + $0x404] sm:$0xf]  ;;  %v3390_v48 = vld [vmem:[%s5243_s1 + $0x6d4] sm:$0xf]  ;;  %v3152_v51 = vld [vmem:[%s5243_s1 + $0x7d8] sm:$0xf0]  ;;  %v2963_v36 = vor.u32 %v3374_v46, %v2960_v47 }
  0xcf   :  { %1977 = vmatpush.bf16.msra.mxu3 %v2899_v44  ;;  %v2728_v44 = vld [vmem:[%s5243_s1 + $0x488] sm:$0xf0]  ;;  %v2667_v1 = vor.u32 %v3300_v43, %v2664_v52  ;;  %v3091_v43 = vor.u32 %v3406_v50, %v3088_v34  ;;  %v3388_v52 = vld [vmem:[%s5243_s1 + $0x6c4] sm:$0xf]  ;;  %v3418_v5 = vld [vmem:[%s5243_s1 + $0x7b4] sm:$0xf] }
  0xd0   :  { %1939 = vmatpush.bf16.msra.mxu0 %v2699_v59  ;;  %v1713_v55 = vpop.f32.mrf.mxu2  ;;  %v2856_v59 = vld [vmem:[%s5243_s1 + $0x588] sm:$0xf0]  ;;  %v2731_v6 = vor.u32 %v3316_v40, %v2728_v44  ;;  %v3366_v46 = vld [vmem:[%s5243_s1 + $0x614] sm:$0xf]  ;;  %v2928_v47 = vld [vmem:[%s5243_s1 + $0x618] sm:$0xf0] }
  0xd1   :  { %1952 = vmatpush.bf16.msra.mxu1 %v2763_v61  ;;  %v3080_v40 = vld [vmem:[%s5243_s1 + $0x748] sm:$0xf0]  ;;  %v3398_v50 = vld [vmem:[%s5243_s1 + $0x714] sm:$0xf]  ;;  %v3056_v34 = vld [vmem:[%s5243_s1 + $0x718] sm:$0xf0] }
  0xd2   :  { %1965 = vmatpush.bf16.msra.mxu2 %v2827_v62  ;;  %v3378_v62 = vld [vmem:[%s5243_s1 + $0x674] sm:$0xf]  ;;  %v3144_v55 = vld [vmem:[%s5243_s1 + $0x7c8] sm:$0xf0] }
  0xd3   :  { %1978 = vmatpush.bf16.msra.mxu3 %v2891_v3  ;;  %v3040_v3 = vld [vmem:[%s5243_s1 + $0x6f8] sm:$0xf0]  ;;  %v3128_v32 = vld [vmem:[%s5243_s1 + $0x7a8] sm:$0xf0] }
  0xd4   :  { %1940 = vmatpush.bf16.msra.mxu0 %v2691_v9  ;;  %v3168_v9 = vld [vmem:[%s5243_s1 + $0x7f8] sm:$0xf0]  ;;  %v3043_v12 = vor.u32 %v3394_v0, %v3040_v3  ;;  %v3147_v0 = vor.u32 %v3420_v54, %v3144_v55  ;;  %v3402_v3 = vld [vmem:[%s5243_s1 + $0x734] sm:$0xf]  ;;  %v3412_v54 = vld [vmem:[%s5243_s1 + $0x784] sm:$0xf] }
  0xd5   :  { %1953 = vmatpush.bf16.msra.mxu1 %v2755_v10  ;;  %v2859_v10 = vor.u32 %v3348_v58, %v2856_v59  ;;  %v3171_v25 = vor.u32 %v3426_v8, %v3168_v9  ;;  %v3075_v9 = vor.u32 %v3402_v3, %v3072_v4  ;;  %v3112_v55 = vld [vmem:[%s5243_s1 + $0x788] sm:$0xf0] }
  0xd6   :  { %1966 = vmatpush.bf16.msra.mxu2 %v2819_v11  ;;  %v1726_v61 = vpop.f32.mrf.mxu3  ;;  %v2979_v11 = vor.u32 %v3378_v62, %v2976_v63  ;;  %v2944_v62 = vld [vmem:[%s5243_s1 + $0x638] sm:$0xf0]  ;;  %v3386_v63 = vld [vmem:[%s5243_s1 + $0x6b4] sm:$0xf] }
  0xd7   :  { %1979 = vmatpush.bf16.msra.mxu3 %v2883_v18  ;;  %v2968_v18 = vld [vmem:[%s5243_s1 + $0x668] sm:$0xf0]  ;;  %v3370_v61 = vld [vmem:[%s5243_s1 + $0x634] sm:$0xf] }
  0xd8   :  { %1941 = vmatpush.bf16.msra.mxu0 %v2683_v33  ;;  %v3424_v33 = vld [vmem:[%s5243_s1 + $0x7e4] sm:$0xf] }
  0xd9   :  { %1954 = vmatpush.bf16.msra.mxu1 %v2747_v38  ;;  %v2971_v38 = vor.u32 %v3376_v16, %v2968_v18  ;;  %v3000_v18 = vld [vmem:[%s5243_s1 + $0x6a8] sm:$0xf0] }
  0xda   :  { %1967 = vmatpush.bf16.msra.mxu2 %v2811_v41  ;;  %v3035_v41 = vor.u32 %v3392_v22, %v3032_v28  ;;  %v3400_v22 = vld [vmem:[%s5243_s1 + $0x724] sm:$0xf] }
  0xdb   :  { %1980 = vmatpush.bf16.msra.mxu3 %v2875_v49  ;;  %v3163_v49 = vor.u32 %v3424_v33, %v3160_v37 }
  0xdc   :  { %1942 = vmatpush.bf16.msra.mxu0 %v2675_v42  ;;  %v3027_v42 = vor.u32 %v3390_v48, %v3024_v35  ;;  %v3382_v48 = vld [vmem:[%s5243_s1 + $0x694] sm:$0xf]  ;;  %v2992_v35 = vld [vmem:[%s5243_s1 + $0x698] sm:$0xf0] }
  0xdd   :  { %1955 = vmatpush.bf16.msra.mxu1 %v2739_v53  ;;  %v3016_v53 = vld [vmem:[%s5243_s1 + $0x6c8] sm:$0xf0] }
  0xde   :  { %1968 = vmatpush.bf16.msra.mxu2 %v2803_v39  ;;  %v3404_v39 = vld [vmem:[%s5243_s1 + $0x744] sm:$0xf]  ;;  %v3019_v58 = vor.u32 %v3388_v52, %v3016_v53  ;;  %v2920_v52 = vld [vmem:[%s5243_s1 + $0x608] sm:$0xf0] }
  0xdf   :  { %1981 = vmatpush.bf16.msra.mxu3 %v2867_v56  ;;  %v3083_v59 = vor.u32 %v3404_v39, %v3080_v40  ;;  %v3396_v53 = vld [vmem:[%s5243_s1 + $0x704] sm:$0xf]  ;;  %v3048_v39 = vld [vmem:[%s5243_s1 + $0x708] sm:$0xf0] }
  0xe0   :  { %1943 = vmatpush.bf16.msra.mxu0 %v2667_v1  ;;  %v5013_v44 = vpop.f32.mrf.mxu0  ;;  %v3008_v1 = vld [vmem:[%s5243_s1 + $0x6b8] sm:$0xf0] }
  0xe1   :  { %1956 = vmatpush.bf16.msra.mxu1 %v2731_v6  ;;  %v5021_v57 = vpop.f32.mrf.mxu1  ;;  %v3136_v6 = vld [vmem:[%s5243_s1 + $0x7b8] sm:$0xf0]  ;;  %v3011_v8 = vor.u32 %v3386_v63, %v3008_v1  ;;  %v3115_v63 = vor.u32 %v3412_v54, %v3112_v55  ;;  %v2071_v54 = vld [vmem:[%s5245_s3 + $0xe8] sm:$0xff]  ;;  %v2070_v55 = vld [vmem:[%s5245_s3 + $0xe0] sm:$0xff] }
  0xe2   :  { %1969 = vmatpush.bf16.msra.mxu2 %v2795_v7  ;;  %v2947_v7 = vor.u32 %v3370_v61, %v2944_v62  ;;  %v3051_v62 = vor.u32 %v3396_v53, %v3048_v39  ;;  %v2072_v53 = vld [vmem:[%s5245_s3 + $0xf0] sm:$0xff] }
  0xe3   :  { %1982 = vmatpush.bf16.msra.mxu3 %v2859_v10  ;;  %1944 = vmatmul.bf16.vlgmr.msra.gmra.mxu0 %v4136_v19  ;;  %v3422_v19 = vld [vmem:[%s5243_s1 + $0x7d4] sm:$0xf]  ;;  %v3368_v10 = vld [vmem:[%s5243_s1 + $0x624] sm:$0xf] }
  0xe4   :  { %1988 = vmatpush.bf16.msrb.mxu0 %v2979_v11  ;;  %1957 = vmatmul.bf16.vlgmr.msra.gmra.mxu1 %v4149_v24  ;;  %v2952_v24 = vld [vmem:[%s5243_s1 + $0x648] sm:$0xf0] }
  0xe5   :  { %2001 = vmatpush.bf16.msrb.mxu1 %v3043_v12  ;;  %1970 = vmatmul.bf16.vlgmr.msra.gmra.mxu2 %v4147_v23  ;;  %v3372_v23 = vld [vmem:[%s5243_s1 + $0x644] sm:$0xf]  ;;  %v2936_v11 = vld [vmem:[%s5243_s1 + $0x628] sm:$0xf0] }
  0xe6   :  { %2014 = vmatpush.bf16.msrb.mxu2 %v3107_v13  ;;  %1983 = vmatmul.bf16.vlgmr.msra.gmra.mxu3 %v4157_v27  ;;  %v3155_v27 = vor.u32 %v3422_v19, %v3152_v51  ;;  %v2955_v56 = vor.u32 %v3372_v23, %v2952_v24  ;;  %v3384_v12 = vld [vmem:[%s5243_s1 + $0x6a4] sm:$0xf]  ;;  %v3139_v13 = vor.u32 %v3418_v5, %v3136_v6  ;;  %v3414_v19 = vld [vmem:[%s5243_s1 + $0x794] sm:$0xf]  ;;  %v3120_v51 = vld [vmem:[%s5243_s1 + $0x798] sm:$0xf0] }
  0xe7   :  { %2027 = vmatpush.bf16.msrb.mxu3 %v3171_v25  ;;  %v3064_v25 = vld [vmem:[%s5243_s1 + $0x728] sm:$0xf0]  ;;  %v2939_v37 = vor.u32 %v3368_v10, %v2936_v11  ;;  %v3059_v23 = vor.u32 %v3398_v50, %v3056_v34  ;;  %v3364_v24 = vld [vmem:[%s5243_s1 + $0x604] sm:$0xf] }
  0xe8   :  { %1989 = vmatpush.bf16.msrb.mxu0 %v2971_v38  ;;  %v5056_v16 = vpop.f32.mrf.mxu2  ;;  %v1739_v33 = vpop.f32.mrf.mxu0  ;;  %v2054_v5 = vld [vmem:[%s5245_s3 + $0x60] sm:$0xff]  ;;  %v2051_v6 = vld [vmem:[%s5245_s3 + $0x48] sm:$0xff] }
  0xe9   :  { %2002 = vmatpush.bf16.msrb.mxu1 %v3035_v41  ;;  %v5067_v28 = vpop.f32.mrf.mxu3  ;;  %v1752_v38 = vpop.f32.mrf.mxu1  ;;  %v3003_v41 = vor.u32 %v3384_v12, %v3000_v18  ;;  %v2047_v18 = vld [vmem:[%s5245_s3 + $0x28] sm:$0xff] }
  0xea   :  { %2015 = vmatpush.bf16.msrb.mxu2 %v3099_v45  ;;  %v3067_v45 = vor.u32 %v3400_v22, %v3064_v25  ;;  %v2046_v25 = vld [vmem:[%s5245_s3 + $0x20] sm:$0xff] }
  0xeb   :  { %2028 = vmatpush.bf16.msrb.mxu3 %v3163_v49  ;;  %v3131_v49 = vor.u32 %v3416_v30, %v3128_v32  ;;  %v2045_v30 = vld [vmem:[%s5245_s3 + $0x18] sm:$0xff] }
  0xec   :  { %1990 = vmatpush.bf16.msrb.mxu0 %v2963_v36  ;;  %v1686_v36 = vadd.f32 %v4815_v60, %v4761_v31  ;;  %v3123_v31 = vor.u32 %v3414_v19, %v3120_v51  ;;  %v2984_v60 = vld [vmem:[%s5243_s1 + $0x688] sm:$0xf0] }
  0xed   :  { %2003 = vmatpush.bf16.msrb.mxu1 %v3027_v42  ;;  %v2931_v42 = vor.u32 %v3366_v46, %v2928_v47  ;;  %v341_v47 = vperm.slane %v4656_v14, 1  ;;  %v2073_v14 = vld [vmem:[%s5245_s3 + $0xf8] sm:$0xff] }
  0xee   :  { %2016 = vmatpush.bf16.msrb.mxu2 %v3091_v43  ;;  %v2995_v43 = vor.u32 %v3382_v48, %v2992_v35 }
  0xef   :  { %2029 = vmatpush.bf16.msrb.mxu3 %v3155_v27  ;;  %v3380_v27 = vld [vmem:[%s5243_s1 + $0x684] sm:$0xf] }
  0xf0   :  { %1991 = vmatpush.bf16.msrb.mxu0 %v2955_v56  ;;  %v1765_v40 = vpop.f32.mrf.mxu2  ;;  %v2987_v61 = vor.u32 %v3380_v27, %v2984_v60 }
  0xf1   :  { %2004 = vmatpush.bf16.msrb.mxu1 %v3019_v58  ;;  %v1778_v56 = vpop.f32.mrf.mxu3  ;;  %v1699_v58 = vadd.f32 %v4826_v2, %v1686_v36  ;;  %v2056_v2 = vld [vmem:[%s5245_s3 + $0x70] sm:$0xff] }
  0xf2   :  { %2017 = vmatpush.bf16.msrb.mxu2 %v3083_v59  ;;  %v2923_v59 = vor.u32 %v3364_v24, %v2920_v52 }
  0xf3   :  { %2030 = vmatpush.bf16.msrb.mxu3 %v3147_v0  ;;  %v2057_v0 = vld [vmem:[%s5245_s3 + $0x78] sm:$0xff]  ;;  %v1712_v1 = vadd.f32 %v4852_v17, %v1699_v58  ;;  %v2055_v17 = vld [vmem:[%s5245_s3 + $0x68] sm:$0xff] }
  0xf4   :  { %1992 = vmatpush.bf16.msrb.mxu0 %v2947_v7  ;;  %v2050_v7 = vld [vmem:[%s5245_s3 + $0x40] sm:$0xff]  ;;  %v2069_v58 = vld [vmem:[%s5245_s3 + $0xd8] sm:$0xff] }
  0xf5   :  { %2005 = vmatpush.bf16.msrb.mxu1 %v3011_v8  ;;  %v1725_v3 = vadd.f32 %v4863_v29, %v1712_v1  ;;  %v2049_v8 = vld [vmem:[%s5245_s3 + $0x38] sm:$0xff]  ;;  %v2064_v1 = vld [vmem:[%s5245_s3 + $0xb0] sm:$0xff] }
  0xf6   :  { %2018 = vmatpush.bf16.msrb.mxu2 %v3075_v9 }
  0xf7   :  { %2031 = vmatpush.bf16.msrb.mxu3 %v3139_v13  ;;  %v1738_v4 = vadd.f32 %v5013_v44, %v1725_v3  ;;  %v2048_v13 = vld [vmem:[%s5245_s3 + $0x30] sm:$0xff]  ;;  %v2063_v3 = vld [vmem:[%s5245_s3 + $0xa8] sm:$0xff] }
  0xf8   :  { %1993 = vmatpush.bf16.msrb.mxu0 %v2939_v37  ;;  %v2044_v37 = vld [vmem:[%s5245_s3 + $0x10] sm:$0xff] }
  0xf9   :  { %2006 = vmatpush.bf16.msrb.mxu1 %v3003_v41  ;;  %v2043_v41 = vld [vmem:[%s5245_s3 + $0x8] sm:$0xff] }
  0xfa   :  { %2019 = vmatpush.bf16.msrb.mxu2 %v3067_v45  ;;  %v2042_v45 = vld [vmem:[%s5245_s3] sm:$0xff] }
  0xfb   :  { %2032 = vmatpush.bf16.msrb.mxu3 %v3131_v49 }
  0xfc   :  { %1994 = vmatpush.bf16.msrb.mxu0 %v2931_v42 }
  0xfd   :  { %2007 = vmatpush.bf16.msrb.mxu1 %v2995_v43 }
  0xfe   :  { %2020 = vmatpush.bf16.msrb.mxu2 %v3059_v23 }
  0xff   :  { %2033 = vmatpush.bf16.msrb.mxu3 %v3123_v31 }
 0x100   :  { %1995 = vmatpush.bf16.msrb.mxu0 %v2923_v59 }
 0x101   :  { %2008 = vmatpush.bf16.msrb.mxu1 %v2987_v61  ;;  %v1802_v29 = vpop.f32.mrf.mxu1  ;;  %v2068_v61 = vld [vmem:[%s5245_s3 + $0xd0] sm:$0xff] }
 0x102   :  { %2021 = vmatpush.bf16.msrb.mxu2 %v3051_v62  ;;  %v2067_v62 = vld [vmem:[%s5245_s3 + $0xc8] sm:$0xff] }
 0x103   :  { %2034 = vmatpush.bf16.msrb.mxu3 %v3115_v63  ;;  %1996 = vmatmul.bf16.vlgmr.msrb.gmra.mxu0 %v4340_v15  ;;  %v2053_v15 = vld [vmem:[%s5245_s3 + $0x58] sm:$0xff]  ;;  %v2066_v63 = vld [vmem:[%s5245_s3 + $0xc0] sm:$0xff] }
 0x104   :  { %2078 = vmatpush.msra.mxu0 %v2057_v0  ;;  %2009 = vmatmul.bf16.vlgmr.msrb.gmra.mxu1 %v4353_v21  ;;  %v1751_v21 = vadd.f32 %v5021_v57, %v1738_v4  ;;  %v2065_v0 = vld [vmem:[%s5245_s3 + $0xb8] sm:$0xff] }
 0x105   :  { %2022 = vmatmul.bf16.vlgmr.msrb.gmra.mxu2 %v4351_v20  ;;  %v1789_v20 = vpop.f32.mrf.mxu0  ;;  %2098 = vmatpush.msra.mxu1 %v2073_v14 }
 0x106   :  { %2035 = vmatmul.bf16.vlgmr.msrb.gmra.mxu3 %v4361_v26  ;;  %2079 = vmatpush.msra.mxu0 %v2056_v2  ;;  %v2052_v26 = vld [vmem:[%s5245_s3 + $0x50] sm:$0xff]  ;;  %v1764_v44 = vadd.f32 %v5056_v16, %v1751_v21 }
 0x107   :  { %2099 = vmatpush.msra.mxu1 %v2072_v53 }
 0x108   :  { %2080 = vmatpush.msra.mxu0 %v2055_v17  ;;  %v1777_v57 = vadd.f32 %v5067_v28, %v1764_v44  ;;  %v1815_v9 = vpop.f32.mrf.mxu2  ;;  %v2062_v17 = vld [vmem:[%s5245_s3 + $0xa0] sm:$0xff]  ;;  %v2059_v44 = vld [vmem:[%s5245_s3 + $0x88] sm:$0xff] }
 0x109   :  { %v1828_v10 = vpop.f32.mrf.mxu3  ;;  %v1804_v16 = vpop.f32.mrf.mxu1  ;;  %2100 = vmatpush.msra.mxu1 %v2071_v54 }
 0x10a   :  { %2081 = vmatpush.msra.mxu0 %v2054_v5  ;;  %v1790_v12 = vadd.f32 %v1789_v20, %v1777_v57  ;;  %v2061_v5 = vld [vmem:[%s5245_s3 + $0x98] sm:$0xff]  ;;  %v2060_v20 = vld [vmem:[%s5245_s3 + $0x90] sm:$0xff]  ;;  %v2058_v57 = vld [vmem:[%s5245_s3 + $0x80] sm:$0xff] }
 0x10b   :  { %2101 = vmatpush.msra.mxu1 %v2070_v55 }
 0x10c   :  { %2082 = vmatpush.msra.mxu0 %v2053_v15  ;;  %v1803_v22 = vadd.f32 %v1802_v29, %v1790_v12 }
 0x10d   :  { %v1791_v11 = vpop.f32.mrf.mxu0  ;;  %2102 = vmatpush.msra.mxu1 %v2069_v58 }
 0x10e   :  { %2083 = vmatpush.msra.mxu0 %v2052_v26  ;;  %v1816_v28 = vadd.f32 %v1815_v9, %v1803_v22 }
 0x10f   :  { %2103 = vmatpush.msra.mxu1 %v2068_v61 }
 0x110   :  { %2084 = vmatpush.msra.mxu0 %v2051_v6  ;;  %v1817_v32 = vpop.f32.mrf.mxu2  ;;  %v1829_v38 = vadd.f32 %v1828_v10, %v1816_v28 }
 0x111   :  { %v1830_v33 = vpop.f32.mrf.mxu3  ;;  %2104 = vmatpush.msra.mxu1 %v2067_v62 }
 0x112   :  { %2085 = vmatpush.msra.mxu0 %v2050_v7  ;;  %v2040_v46 = vmax.f32 %v1829_v38, 0.0 }
 0x113   :  { %2105 = vmatpush.msra.mxu1 %v2066_v63 }
 0x114   :  { %2086 = vmatpush.msra.mxu0 %v2049_v8 }
 0x115   :  { %2106 = vmatpush.msra.mxu1 %v2065_v0 }
 0x116   :  { %2087 = vmatpush.msra.mxu0 %v2048_v13 }
 0x117   :  { %2107 = vmatpush.msra.mxu1 %v2064_v1 }
 0x118   :  { %2088 = vmatpush.msra.mxu0 %v2047_v18 }
 0x119   :  { %2108 = vmatpush.msra.mxu1 %v2063_v3 }
 0x11a   :  { %2089 = vmatpush.msra.mxu0 %v2046_v25 }
 0x11b   :  { %2109 = vmatpush.msra.mxu1 %v2062_v17 }
 0x11c   :  { %2090 = vmatpush.msra.mxu0 %v2045_v30 }
 0x11d   :  { %2110 = vmatpush.msra.mxu1 %v2061_v5 }
 0x11e   :  { %2091 = vmatpush.msra.mxu0 %v2044_v37 }
 0x11f   :  { %2111 = vmatpush.msra.mxu1 %v2060_v20 }
 0x120   :  { %2092 = vmatpush.msra.mxu0 %v2043_v41  ;;  %v1841_v48 = vpop.f32.mrf.mxu0 }
 0x121   :  { %v1842_v49 = vadd.f32 %v1841_v48, %v341_v47  ;;  %v1854_v35 = vpop.f32.mrf.mxu1  ;;  %2112 = vmatpush.msra.mxu1 %v2059_v44 }
 0x122   :  { %2093 = vmatpush.msra.mxu0 %v2042_v45 }
 0x123   :  { %2094 = vmatmul.f32.vlgmr.msra.gmra.mxu0 %v2040_v46  ;;  %v1855_v50 = vadd.f32 %v1854_v35, %v1842_v49  ;;  %2113 = vmatpush.msra.mxu1 %v2058_v57  ;;  %v3429_v49 = vld [vmem:[%s5246_s4] ss:$0 sm:$0xff]  ;;  %s3460_s4 = smov [#allocation2]  }
 0x124   :  { %s2137_s20 = sshll.u32 %s3460_s4, 4  ;;  %s2138_s20 = int_to_ptr.vmem [resolvable:$true] %s2137_s20 }
 0x128   :  { %v1867_v34 = vpop.f32.mrf.mxu2  ;;  %v1843_v42 = vpop.f32.mrf.mxu0 }
 0x129   :  { %v1868_v19 = vadd.f32 %v1867_v34, %v1855_v50  ;;  %v1880_v51 = vpop.f32.mrf.mxu3  ;;  %v1856_v43 = vpop.f32.mrf.mxu1 }
 0x12b   :  { %v1881_v36 = vadd.f32 %v1880_v51, %v1868_v19 }
 0x130   :  { %v1869_v23 = vpop.f32.mrf.mxu2 }
 0x131   :  { %v1882_v24 = vpop.f32.mrf.mxu3 }
 0x140   :  { %v1893_v52 = vpop.f32.mrf.mxu0 }
 0x141   :  { %v1906_v27 = vpop.f32.mrf.mxu1  ;;  %v1894_v15 = vadd.f32 %v1893_v52, %v1881_v36 }
 0x143   :  { %v1907_v6 = vadd.f32 %v1906_v27, %v1894_v15 }
 0x148   :  { %v1919_v31 = vpop.f32.mrf.mxu2  ;;  %v1895_v39 = vpop.f32.mrf.mxu0 }
 0x149   :  { %v1932_v60 = vpop.f32.mrf.mxu3  ;;  %v1908_v40 = vpop.f32.mrf.mxu1  ;;  %v1920_v8 = vadd.f32 %v1919_v31, %v1907_v6 }
 0x14b   :  { %v1933_v11 = vadd.f32 %v1932_v60, %v1920_v8 }
 0x150   :  { %v1921_v56 = vpop.f32.mrf.mxu2 }
 0x151   :  { %v1934_v59 = vpop.f32.mrf.mxu3 }
 0x160   :  { %v1945_v2 = vpop.f32.mrf.mxu0 }
 0x161   :  { %v1958_v4 = vpop.f32.mrf.mxu1  ;;  %v1946_v12 = vadd.f32 %v1945_v2, %v1933_v11 }
 0x163   :  { %v1959_v13 = vadd.f32 %v1958_v4, %v1946_v12 }
 0x168   :  { %v1971_v21 = vpop.f32.mrf.mxu2  ;;  %v1947_v29 = vpop.f32.mrf.mxu0 }
 0x169   :  { %v1984_v26 = vpop.f32.mrf.mxu3  ;;  %v1960_v7 = vpop.f32.mrf.mxu1  ;;  %v1972_v16 = vadd.f32 %v1971_v21, %v1959_v13 }
 0x16b   :  { %v1985_v18 = vadd.f32 %v1984_v26, %v1972_v16 }
 0x170   :  { %v1973_v9 = vpop.f32.mrf.mxu2 }
 0x171   :  { %v1986_v10 = vpop.f32.mrf.mxu3 }
 0x180   :  { %v1997_v22 = vpop.f32.mrf.mxu0 }
 0x181   :  { %v2010_v25 = vpop.f32.mrf.mxu1  ;;  %v1998_v28 = vadd.f32 %v1997_v22, %v1985_v18 }
 0x183   :  { %v2011_v30 = vadd.f32 %v2010_v25, %v1998_v28 }
 0x188   :  { %v2023_v32 = vpop.f32.mrf.mxu2  ;;  %v1999_v38 = vpop.f32.mrf.mxu0 }
 0x189   :  { %v2024_v33 = vadd.f32 %v2023_v32, %v2011_v30  ;;  %v2036_v37 = vpop.f32.mrf.mxu3  ;;  %v2012_v41 = vpop.f32.mrf.mxu1 }
 0x18b   :  { %v2037_v45 = vadd.f32 %v2036_v37, %v2024_v33 }
 0x18d   :  { %v2041_v46 = vmax.f32 %v2037_v45, 0.0 }
 0x18f   :  { %2114 = vmatmul.f32.vlgmr.msra.gmra.mxu1 %v2041_v46 }
 0x190   :  { %v2025_v47 = vpop.f32.mrf.mxu2 }
 0x191   :  { %v2038_v48 = vpop.f32.mrf.mxu3 }
 0x1a0   :  { %v2095_v35 = vpop.f32.mrf.mxu0 }
 0x1a1   :  { %v2096_v50 = vadd.f32 %v3429_v49, %v2095_v35 }
 0x20c   :  { %v2115_v34 = vpop.f32.mrf.mxu1 }
 0x20d   :  { %v2116_v19 = vadd.f32 %v2115_v34, %v2096_v50 }
 0x20f   :  { %v2119_v51 = vsel %vm2118_vm0, %v2116_v19, -inf }
 0x210   :  { %2120 = vmax.xlane.f32.xlu0 %v2119_v51 }
 0x283   :  { %v2121_v36 = vpop.xlane.xlu0 %2120 }
 0x284   :  { %v2122_v42 = vsub.f32 %v2116_v19, %v2121_v36 }
 0x286   :  { %v2123_v43 = vmul.f32 1.442695, %v2122_v42 }
 0x288   :  { %3430 = vpow2.f32 %v2123_v43 }
 0x28e   :  { %v3431_v23 = vpop.eup %3430 }
 0x28f   :  { %v2125_v24 = vsel %vm2118_vm0, %v3431_v23, 0.0 }
 0x290   :  { %2126 = vadd.xlane.f32.xlu0 %v2125_v24 }
 0x303   :  { %v2127_v52 = vpop.xlane.xlu0 %2126 }
 0x304   :  { %3432 = vlog2.f32 %v2127_v52 }
 0x30a   :  { %v3433_v27 = vpop.eup %3432 }
 0x30b   :  { %v2129_v31 = vmul.f32 0.6931472, %v3433_v27 }
 0x30d   :  { %v2130_v60 = vsub.f32 %v2122_v42, %v2129_v31 }
 0x30f   :  { %2131 = vst.msk [vmem:[#allocation2] sm:$0x3] %vm2118_vm0, %v2130_v60 }
 0x310   :  { %2142 = dma.vmem_to_hbm [thread:$0]  %s2138_s20, 32, %s2140_s2, [#allocation3]  }
 0x311   :  { %3458 = dma.done.wait [#allocation3], 32  }
 0x312   :  { %3459 = vsyncadd [#allocation3], 4294967264 }
 0x313   :  { %2147 = vsyncpa [#allocation3], 1 }

</bundles_post_ra>
